<compile_context>
chip_gen: v6e
topology: v6e:2x2x1
jax: 0.10.0
libtpu: 0.0.40
codegen_flags: <defaults>
</compile_context>

<pallas_src>
import math

import jax
import jax.numpy as jnp
from jax.experimental import pallas as pl
from jax.experimental.pallas import tpu as pltpu

# ----------------------------- config (cfg.*) --------------------------------
D_MODEL = 32
N_HEADS = 4
D_HEAD = D_MODEL // N_HEADS
D_FF = 64
N_LAYERS = 2
MAX_LEN = 64
SMOOTHING = 0.1
SRC_VOCAB = 50
TGT_VOCAB = 50
V_PAD = 128          # generator output padded to a lane-dense 128
PAD_IDX = 1
BOS_IDX = 2
EOS_IDX = 3
LN_EPS = 1e-6


# ------------------------------- fused kernel --------------------------------
def _transformer_kernel(
    # batched (one batch element per grid step)
    xs_ref, xt_ref, m_enc_ref, m_self_ref, m_cross_ref,
    # encoder weights (flattened per-head / per-layer stacks)
    e_wqkv_ref, e_bqkv_ref, e_wo_ref, e_bo_ref, e_lng_ref, e_lnb_ref,
    e_w1_ref, e_b1_ref, e_w2_ref, e_b2_ref, e_ng_ref, e_nb_ref,
    # decoder weights
    d_wqkv_ref, d_bqkv_ref, d_wo_ref, d_bo_ref, d_lng_ref, d_lnb_ref,
    d_w1_ref, d_b1_ref, d_w2_ref, d_b2_ref, d_ng_ref, d_nb_ref,
    # generator (vocab padded to V_PAD)
    g_w_ref, g_b_ref,
    # output
    logp_ref,
):
    f32 = jnp.float32
    Bb = xs_ref.shape[0]          # 1 (per-program batch slice)
    L, H = N_LAYERS, N_HEADS
    scale = 1.0 / math.sqrt(D_HEAD)

    def bcast(w2d):
        # (R, C) -> (Bb, R, C) for the batched einsum form proven on Mosaic
        return jnp.broadcast_to(w2d[None], (Bb,) + w2d.shape)

    def proj(x, w2d, b2d):
        # x: (Bb, T, Din), w2d: (Din, Dout), b2d: (1, Dout)
        return jnp.einsum("btd,bde->bte", x, bcast(w2d),
                          preferred_element_type=f32) + b2d

    def layer_norm(x, g, b):
        # annotated-transformer / torch.std convention: unbiased var, std + eps
        mean = jnp.mean(x, axis=-1, keepdims=True)
        var = jnp.sum((x - mean) ** 2, axis=-1, keepdims=True) / (x.shape[-1] - 1)
        return g * (x - mean) / (jnp.sqrt(var) + LN_EPS) + b

    def mha(x_q, x_kv, mask, wqkv_ref, bqkv_ref, wo_ref, bo_ref,
            qkv_base, o_base, bo_i):
        # Per-head decomposition: mathematically identical to project->split->
        # attend->concat->project, but avoids any lane concat / reshape.
        acc = jnp.zeros(x_q.shape, f32)
        for h in range(H):
            iq = qkv_base(0) * H + h
            ik = qkv_base(1) * H + h
            iv = qkv_base(2) * H + h
            q = proj(x_q, wqkv_ref[iq], bqkv_ref[iq])          # (Bb, Tq, dk)
            k = proj(x_kv, wqkv_ref[ik], bqkv_ref[ik])         # (Bb, Tk, dk)
            v = proj(x_kv, wqkv_ref[iv], bqkv_ref[iv])         # (Bb, Tk, dk)
            s = jnp.einsum("bqd,bkd->bqk", q, k,
                           preferred_element_type=f32) * scale  # (Bb, Tq, Tk)
            s = jnp.where(mask == 0.0, -1e9, s)
            s_max = jnp.max(s, axis=-1, keepdims=True)
            p = jnp.exp(s - s_max)
            denom = jnp.sum(p, axis=-1, keepdims=True)
            p = p * pl.reciprocal(denom, approx=True)           # EUP, not VALU
            o = jnp.einsum("bqk,bkd->bqd", p, v,
                           preferred_element_type=f32)          # (Bb, Tq, dk)
            io = o_base * H + h
            acc = acc + jnp.einsum("btd,bde->bte", o, bcast(wo_ref[io]),
                                   preferred_element_type=f32)  # (Bb, Tq, D)
        return acc + bo_ref[bo_i]

    # --------------------------------- encoder --------------------------------
    x = xs_ref[...]
    m_enc = m_enc_ref[...]
    for l in range(L):
        xn = layer_norm(x, e_lng_ref[l * 2 + 0], e_lnb_ref[l * 2 + 0])
        x = x + mha(xn, xn, m_enc, e_wqkv_ref, e_bqkv_ref, e_wo_ref, e_bo_ref,
                    qkv_base=lambda p_, l=l: p_ * L + l, o_base=l, bo_i=l)
        xn = layer_norm(x, e_lng_ref[l * 2 + 1], e_lnb_ref[l * 2 + 1])
        h1 = jnp.maximum(proj(xn, e_w1_ref[l], e_b1_ref[l]), 0.0)   # ReLU
        x = x + proj(h1, e_w2_ref[l], e_b2_ref[l])
    memory = layer_norm(x, e_ng_ref[...], e_nb_ref[...])

    # --------------------------------- decoder --------------------------------
    y = xt_ref[...]
    m_self = m_self_ref[...]
    m_cross = m_cross_ref[...]
    for l in range(L):
        yn = layer_norm(y, d_lng_ref[l * 3 + 0], d_lnb_ref[l * 3 + 0])
        y = y + mha(yn, yn, m_self, d_wqkv_ref, d_bqkv_ref, d_wo_ref, d_bo_ref,
                    qkv_base=lambda p_, l=l: (0 * 3 + p_) * L + l,
                    o_base=0 * L + l, bo_i=0 * L + l)
        yn = layer_norm(y, d_lng_ref[l * 3 + 1], d_lnb_ref[l * 3 + 1])
        y = y + mha(yn, memory, m_cross, d_wqkv_ref, d_bqkv_ref, d_wo_ref, d_bo_ref,
                    qkv_base=lambda p_, l=l: (1 * 3 + p_) * L + l,
                    o_base=1 * L + l, bo_i=1 * L + l)
        yn = layer_norm(y, d_lng_ref[l * 3 + 2], d_lnb_ref[l * 3 + 2])
        h1 = jnp.maximum(proj(yn, d_w1_ref[l], d_b1_ref[l]), 0.0)
        y = y + proj(h1, d_w2_ref[l], d_b2_ref[l])
    out = layer_norm(y, d_ng_ref[...], d_nb_ref[...])

    # --------------------- generator: log_softmax (padded) --------------------
    logits = jnp.einsum("btd,bdv->btv", out, bcast(g_w_ref[...]),
                        preferred_element_type=f32) + g_b_ref[...]
    mx = jnp.max(logits, axis=-1, keepdims=True)
    z = logits - mx
    lse = jnp.log(jnp.sum(jnp.exp(z), axis=-1, keepdims=True))
    logp_ref[...] = z - lse


# ---------------------------- pallas_call wrapper -----------------------------
PARAM_KEYS = (
    "e_wqkv", "e_bqkv", "e_wo", "e_bo", "e_lng", "e_lnb",
    "e_w1", "e_b1", "e_w2", "e_b2", "e_ng", "e_nb",
    "d_wqkv", "d_bqkv", "d_wo", "d_bo", "d_lng", "d_lnb",
    "d_w1", "d_b1", "d_w2", "d_b2", "d_ng", "d_nb",
    "g_w", "g_b",
)


def _zero_map(ndim):
    return lambda b: (0,) * ndim


def _batch_map():
    return lambda b: (b, 0, 0)


def _run_transformer_core(params, x_src, x_tgt, m_enc, m_self, m_cross):
    B, _, _ = x_src.shape
    Tt = x_tgt.shape[1]
    batched = [x_src, x_tgt, m_enc, m_self, m_cross]
    weights = [params[k] for k in PARAM_KEYS]

    in_specs = []
    for a in batched:
        in_specs.append(pl.BlockSpec((1,) + a.shape[1:], _batch_map()))
    for a in weights:
        in_specs.append(pl.BlockSpec(a.shape, _zero_map(a.ndim)))
    out_specs = pl.BlockSpec((1, Tt, V_PAD), _batch_map())

    return pl.pallas_call(
        _transformer_kernel,
        grid=(B,),
        in_specs=in_specs,
        out_specs=out_specs,
        out_shape=jax.ShapeDtypeStruct((B, Tt, V_PAD), jnp.float32),
        compiler_params=pltpu.CompilerParams(
            dimension_semantics=("parallel",)),   # v7x: split batch over 2 TCs
    )(*batched, *weights)


# ------------------------------- model wrapper --------------------------------
def positional_encoding(max_len, d_model):
    pos = jnp.arange(max_len, dtype=jnp.float32)[:, None]
    div = jnp.exp(jnp.arange(0, d_model, 2, dtype=jnp.float32)
                  * (-math.log(10000.0) / d_model))
    pe = jnp.zeros((max_len, d_model), jnp.float32)
    pe = pe.at[:, 0::2].set(jnp.sin(pos * div))
    pe = pe.at[:, 1::2].set(jnp.cos(pos * div))
    return pe


def label_smoothing_loss(logp, target):
    # KLDivLoss(reduction='sum') against the smoothed target distribution.
    n, V = logp.shape
    confidence = 1.0 - SMOOTHING
    fill = SMOOTHING / (V - 2)
    true_dist = jnp.full((n, V), fill, jnp.float32)
    true_dist = true_dist.at[jnp.arange(n), target].set(confidence)
    true_dist = true_dist.at[:, PAD_IDX].set(0.0)
    true_dist = jnp.where((target == PAD_IDX)[:, None], 0.0, true_dist)
    kl = jnp.where(true_dist > 0.0,
                   true_dist * (jnp.log(jnp.where(true_dist > 0.0, true_dist, 1.0))
                                - logp),
                   0.0)
    return jnp.sum(kl)


@jax.jit
def _forward_jit(params, input_tensor, output_tensor):
    pe = params["pe"]
    src = input_tensor.T                      # (B, S_src)
    tgt = output_tensor.T                     # (B, S_tgt)
    B, Ts = src.shape
    tgt_in = tgt[:, :-1]
    Tt = tgt_in.shape[1]

    # embeddings (single XLA gather + fused add each)
    x_src = params["src_emb"][src] * math.sqrt(D_MODEL) + pe[None, :Ts, :]
    x_tgt = params["tgt_emb"][tgt_in] * math.sqrt(D_MODEL) + pe[None, :Tt, :]

    # masks: no per-head replication (kernel broadcasts over heads implicitly)
    src_pad = (src != PAD_IDX).astype(jnp.float32)                       # (B, Ts)
    m_enc = jnp.broadcast_to(src_pad[:, None, :], (B, Ts, Ts))           # (B, Ts, Ts)
    m_cross = jnp.broadcast_to(src_pad[:, None, :], (B, Tt, Ts))         # (B, Tt, Ts)
    tgt_pad = (tgt_in != PAD_IDX).astype(jnp.float32)[:, None, :]        # (B, 1, Tt)
    causal = jnp.tril(jnp.ones((Tt, Tt), jnp.float32))[None, :, :]       # (1, Tt, Tt)
    m_self = tgt_pad * causal                                            # (B, Tt, Tt)

    logp = _run_transformer_core(params, x_src, x_tgt, m_enc, m_self, m_cross)
    logp = logp[:, :, :TGT_VOCAB]                                        # drop padding

    y = tgt[:, 1:]
    norm = jnp.sum((y != PAD_IDX).astype(jnp.int32)).astype(jnp.float32)
    loss = label_smoothing_loss(logp.reshape(-1, TGT_VOCAB), y.reshape(-1))

    # greedy stream from teacher-forced logits (mirrors the torch.max loop),
    # vectorized into one argmax + one concatenate.
    next_words = jnp.argmax(logp[:, : Tt - 1, :], axis=-1).astype(jnp.int32)
    ys = jnp.concatenate([jnp.full((B, 1), BOS_IDX, jnp.int32), next_words], axis=1)
    return ys.T, loss, norm


def transformer_forward(params, input_tensor, output_tensor):
    """Teacher-forced training forward (output_tensor given, test_mode=False)."""
    ys_T, loss, norm = _forward_jit(params, input_tensor, output_tensor)
    # TODO(synk): compute_maximum_attention_indices needs stored per-layer src_attn
    # weights; the reference code already falls back to None on failure.
    max_attention_indices = None
    out_len = output_tensor.shape[0] - 1
    return ys_T, max_attention_indices, loss, out_len, norm


# ------------------------------ parameter init --------------------------------
def xavier(key, shape):
    fan_in, fan_out = shape[0], shape[1]
    limit = math.sqrt(6.0 / (fan_in + fan_out))
    return jax.random.uniform(key, shape, jnp.float32, -limit, limit)


def make_params(key):
    L, H, D, F, dk = N_LAYERS, N_HEADS, D_MODEL, D_FF, D_HEAD
    keys = list(jax.random.split(key, 64))

    def nk():
        return keys.pop()

    def mha_weights():
        # per-head layouts: wq/wk/wv -> (H, D, dk); wo -> (H, dk, D)
        wq = xavier(nk(), (D, D)).reshape(D, H, dk).transpose(1, 0, 2)
        wk = xavier(nk(), (D, D)).reshape(D, H, dk).transpose(1, 0, 2)
        wv = xavier(nk(), (D, D)).reshape(D, H, dk).transpose(1, 0, 2)
        wo = xavier(nk(), (D, D)).reshape(H, dk, D)
        return wq, wk, wv, wo

    enc_attn = [mha_weights() for _ in range(L)]
    dec_self = [mha_weights() for _ in range(L)]
    dec_cross = [mha_weights() for _ in range(L)]

    def stack_qkv(attn_lists):
        # flat index: ((attn*3 + proj) * L + l) * H + h
        blocks = []
        for attn in attn_lists:
            for proj in range(3):
                blocks.append(jnp.stack([attn[l][proj] for l in range(L)]))  # (L,H,D,dk)
        return jnp.concatenate(blocks, axis=0).reshape(len(attn_lists) * 3 * L * H, D, dk)

    def stack_wo(attn_lists):
        # flat index: (attn * L + l) * H + h
        blocks = [jnp.stack([attn[l][3] for l in range(L)]) for attn in attn_lists]
        return jnp.concatenate(blocks, axis=0).reshape(len(attn_lists) * L * H, dk, D)

    e_w1 = jnp.stack([xavier(nk(), (D, F)) for _ in range(L)])
    e_w2 = jnp.stack([xavier(nk(), (F, D)) for _ in range(L)])
    d_w1 = jnp.stack([xavier(nk(), (D, F)) for _ in range(L)])
    d_w2 = jnp.stack([xavier(nk(), (F, D)) for _ in range(L)])

    # generator padded to V_PAD lanes: zero weight columns, -1e9 bias so the
    # padded logits never influence the log-softmax.
    gen_w = xavier(nk(), (D, TGT_VOCAB))
    gen_w = jnp.concatenate(
        [gen_w, jnp.zeros((D, V_PAD - TGT_VOCAB), jnp.float32)], axis=1)
    gen_b = jnp.concatenate(
        [jnp.zeros((TGT_VOCAB,), jnp.float32),
         jnp.full((V_PAD - TGT_VOCAB,), -1e9, jnp.float32)]).reshape(1, V_PAD)

    params = {
        "src_emb": xavier(nk(), (SRC_VOCAB, D)),
        "tgt_emb": xavier(nk(), (TGT_VOCAB, D)),
        "pe": positional_encoding(MAX_LEN, D),
        # encoder
        "e_wqkv": stack_qkv([enc_attn]),
        "e_bqkv": jnp.zeros((3 * L * H, 1, dk), jnp.float32),
        "e_wo": stack_wo([enc_attn]),
        "e_bo": jnp.zeros((L, 1, D), jnp.float32),
        "e_lng": jnp.ones((2 * L, 1, D), jnp.float32),
        "e_lnb": jnp.zeros((2 * L, 1, D), jnp.float32),
        "e_w1": e_w1, "e_b1": jnp.zeros((L, 1, F), jnp.float32),
        "e_w2": e_w2, "e_b2": jnp.zeros((L, 1, D), jnp.float32),
        "e_ng": jnp.ones((1, D), jnp.float32),
        "e_nb": jnp.zeros((1, D), jnp.float32),
        # decoder (self-attn block = attn 0, src-attn block = attn 1)
        "d_wqkv": stack_qkv([dec_self, dec_cross]),
        "d_bqkv": jnp.zeros((2 * 3 * L * H, 1, dk), jnp.float32),
        "d_wo": stack_wo([dec_self, dec_cross]),
        "d_bo": jnp.zeros((2 * L, 1, D), jnp.float32),
        "d_lng": jnp.ones((3 * L, 1, D), jnp.float32),
        "d_lnb": jnp.zeros((3 * L, 1, D), jnp.float32),
        "d_w1": d_w1, "d_b1": jnp.zeros((L, 1, F), jnp.float32),
        "d_w2": d_w2, "d_b2": jnp.zeros((L, 1, D), jnp.float32),
        "d_ng": jnp.ones((1, D), jnp.float32),
        "d_nb": jnp.zeros((1, D), jnp.float32),
        # generator
        "g_w": gen_w, "g_b": gen_b,
    }
    return params


# ----------------------------------- main --------------------------------------
if __name__ == "__main__":
    key = jax.random.PRNGKey(0)
    kp, ks, kt = jax.random.split(key, 3)

    params = make_params(kp)

    B = 2
    S_SRC = 10
    S_TGT = 9

    # tokens in (seq_len, batch), PyTorch convention; values avoid special ids
    src_tokens = jax.random.randint(ks, (S_SRC, B), 4, SRC_VOCAB).astype(jnp.int32)
    tgt_tokens = jax.random.randint(kt, (S_TGT, B), 4, TGT_VOCAB).astype(jnp.int32)
    tgt_tokens = tgt_tokens.at[0, :].set(BOS_IDX)
    # some padding to exercise the masks
    src_tokens = src_tokens.at[-2:, 1].set(PAD_IDX)
    tgt_tokens = tgt_tokens.at[-1, 1].set(PAD_IDX)

    ys_T, max_attn, loss, out_len, norm = transformer_forward(
        params, src_tokens, tgt_tokens)

    jax.block_until_ready(loss)
    jax.block_until_ready(ys_T)

    assert ys_T.shape == (S_TGT - 1, B)
    assert bool(jnp.isfinite(loss))
    print("KERNEL_OK")
</pallas_src>

<mosaic_0001>
module attributes {stable_mosaic.version = 11 : i64} {
  func.func @_transformer_kernel(%arg0: i32, %arg1: memref<1x10x32xf32, #tpu.memory_space<vmem>>, %arg2: memref<1x8x32xf32, #tpu.memory_space<vmem>>, %arg3: memref<1x10x10xf32, #tpu.memory_space<vmem>>, %arg4: memref<1x8x8xf32, #tpu.memory_space<vmem>>, %arg5: memref<1x8x10xf32, #tpu.memory_space<vmem>>, %arg6: memref<24x32x8xf32, #tpu.memory_space<vmem>>, %arg7: memref<24x1x8xf32, #tpu.memory_space<vmem>>, %arg8: memref<8x8x32xf32, #tpu.memory_space<vmem>>, %arg9: memref<2x1x32xf32, #tpu.memory_space<vmem>>, %arg10: memref<4x1x32xf32, #tpu.memory_space<vmem>>, %arg11: memref<4x1x32xf32, #tpu.memory_space<vmem>>, %arg12: memref<2x32x64xf32, #tpu.memory_space<vmem>>, %arg13: memref<2x1x64xf32, #tpu.memory_space<vmem>>, %arg14: memref<2x64x32xf32, #tpu.memory_space<vmem>>, %arg15: memref<2x1x32xf32, #tpu.memory_space<vmem>>, %arg16: memref<1x32xf32, #tpu.memory_space<vmem>>, %arg17: memref<1x32xf32, #tpu.memory_space<vmem>>, %arg18: memref<48x32x8xf32, #tpu.memory_space<vmem>>, %arg19: memref<48x1x8xf32, #tpu.memory_space<vmem>>, %arg20: memref<16x8x32xf32, #tpu.memory_space<vmem>>, %arg21: memref<4x1x32xf32, #tpu.memory_space<vmem>>, %arg22: memref<6x1x32xf32, #tpu.memory_space<vmem>>, %arg23: memref<6x1x32xf32, #tpu.memory_space<vmem>>, %arg24: memref<2x32x64xf32, #tpu.memory_space<vmem>>, %arg25: memref<2x1x64xf32, #tpu.memory_space<vmem>>, %arg26: memref<2x64x32xf32, #tpu.memory_space<vmem>>, %arg27: memref<2x1x32xf32, #tpu.memory_space<vmem>>, %arg28: memref<1x32xf32, #tpu.memory_space<vmem>>, %arg29: memref<1x32xf32, #tpu.memory_space<vmem>>, %arg30: memref<32x128xf32, #tpu.memory_space<vmem>>, %arg31: memref<1x128xf32, #tpu.memory_space<vmem>>, %arg32: memref<1x8x128xf32, #tpu.memory_space<vmem>>) attributes {dimension_semantics = [#tpu.dimension_semantics<parallel>], iteration_bounds = array<i64: 2>, scalar_prefetch = 0 : i64, scratch_operands = 0 : i64, tpu.core_type = #tpu.core_type<tc>, window_params = [{transform_indices = @transform_0, window_bounds = array<i64: 1, 10, 32>}, {transform_indices = @transform_1, window_bounds = array<i64: 1, 8, 32>}, {transform_indices = @transform_2, window_bounds = array<i64: 1, 10, 10>}, {transform_indices = @transform_3, window_bounds = array<i64: 1, 8, 8>}, {transform_indices = @transform_4, window_bounds = array<i64: 1, 8, 10>}, {pipeline_mode = #tpu.pipeline_mode<synchronous>, transform_indices = @transform_5, window_bounds = array<i64: 24, 32, 8>}, {pipeline_mode = #tpu.pipeline_mode<synchronous>, transform_indices = @transform_6, window_bounds = array<i64: 24, 1, 8>}, {pipeline_mode = #tpu.pipeline_mode<synchronous>, transform_indices = @transform_7, window_bounds = array<i64: 8, 8, 32>}, {pipeline_mode = #tpu.pipeline_mode<synchronous>, transform_indices = @transform_8, window_bounds = array<i64: 2, 1, 32>}, {pipeline_mode = #tpu.pipeline_mode<synchronous>, transform_indices = @transform_9, window_bounds = array<i64: 4, 1, 32>}, {pipeline_mode = #tpu.pipeline_mode<synchronous>, transform_indices = @transform_10, window_bounds = array<i64: 4, 1, 32>}, {pipeline_mode = #tpu.pipeline_mode<synchronous>, transform_indices = @transform_11, window_bounds = array<i64: 2, 32, 64>}, {pipeline_mode = #tpu.pipeline_mode<synchronous>, transform_indices = @transform_12, window_bounds = array<i64: 2, 1, 64>}, {pipeline_mode = #tpu.pipeline_mode<synchronous>, transform_indices = @transform_13, window_bounds = array<i64: 2, 64, 32>}, {pipeline_mode = #tpu.pipeline_mode<synchronous>, transform_indices = @transform_14, window_bounds = array<i64: 2, 1, 32>}, {pipeline_mode = #tpu.pipeline_mode<synchronous>, transform_indices = @transform_15, window_bounds = array<i64: 1, 32>}, {pipeline_mode = #tpu.pipeline_mode<synchronous>, transform_indices = @transform_16, window_bounds = array<i64: 1, 32>}, {pipeline_mode = #tpu.pipeline_mode<synchronous>, transform_indices = @transform_17, window_bounds = array<i64: 48, 32, 8>}, {pipeline_mode = #tpu.pipeline_mode<synchronous>, transform_indices = @transform_18, window_bounds = array<i64: 48, 1, 8>}, {pipeline_mode = #tpu.pipeline_mode<synchronous>, transform_indices = @transform_19, window_bounds = array<i64: 16, 8, 32>}, {pipeline_mode = #tpu.pipeline_mode<synchronous>, transform_indices = @transform_20, window_bounds = array<i64: 4, 1, 32>}, {pipeline_mode = #tpu.pipeline_mode<synchronous>, transform_indices = @transform_21, window_bounds = array<i64: 6, 1, 32>}, {pipeline_mode = #tpu.pipeline_mode<synchronous>, transform_indices = @transform_22, window_bounds = array<i64: 6, 1, 32>}, {pipeline_mode = #tpu.pipeline_mode<synchronous>, transform_indices = @transform_23, window_bounds = array<i64: 2, 32, 64>}, {pipeline_mode = #tpu.pipeline_mode<synchronous>, transform_indices = @transform_24, window_bounds = array<i64: 2, 1, 64>}, {pipeline_mode = #tpu.pipeline_mode<synchronous>, transform_indices = @transform_25, window_bounds = array<i64: 2, 64, 32>}, {pipeline_mode = #tpu.pipeline_mode<synchronous>, transform_indices = @transform_26, window_bounds = array<i64: 2, 1, 32>}, {pipeline_mode = #tpu.pipeline_mode<synchronous>, transform_indices = @transform_27, window_bounds = array<i64: 1, 32>}, {pipeline_mode = #tpu.pipeline_mode<synchronous>, transform_indices = @transform_28, window_bounds = array<i64: 1, 32>}, {pipeline_mode = #tpu.pipeline_mode<synchronous>, transform_indices = @transform_29, window_bounds = array<i64: 32, 128>}, {pipeline_mode = #tpu.pipeline_mode<synchronous>, transform_indices = @transform_30, window_bounds = array<i64: 1, 128>}, {transform_indices = @transform_31, window_bounds = array<i64: 1, 8, 128>}]} {
    %c0 = arith.constant 0 : index
    %c0_0 = arith.constant 0 : index
    %c0_1 = arith.constant 0 : index
    %0 = vector.load %arg1[%c0, %c0_0, %c0_1] : memref<1x10x32xf32, #tpu.memory_space<vmem>>, vector<1x10x32xf32>
    %c0_2 = arith.constant 0 : index
    %c0_3 = arith.constant 0 : index
    %c0_4 = arith.constant 0 : index
    %1 = vector.load %arg3[%c0_2, %c0_3, %c0_4] : memref<1x10x10xf32, #tpu.memory_space<vmem>>, vector<1x10x10xf32>
    %c0_5 = arith.constant 0 : index
    %c0_6 = arith.constant 0 : index
    %c0_7 = arith.constant 0 : index
    %2 = vector.load %arg10[%c0_5, %c0_6, %c0_7] : memref<4x1x32xf32, #tpu.memory_space<vmem>>, vector<1x1x32xf32>
    %3 = vector.shape_cast %2 : vector<1x1x32xf32> to vector<1x32xf32>
    %c0_8 = arith.constant 0 : index
    %c0_9 = arith.constant 0 : index
    %c0_10 = arith.constant 0 : index
    %4 = vector.load %arg11[%c0_8, %c0_9, %c0_10] : memref<4x1x32xf32, #tpu.memory_space<vmem>>, vector<1x1x32xf32>
    %5 = vector.shape_cast %4 : vector<1x1x32xf32> to vector<1x32xf32>
    %cst = arith.constant dense<0.000000e+00> : vector<1x10xf32>
    %6 = vector.multi_reduction <add>, %0, %cst [2] : vector<1x10x32xf32> to vector<1x10xf32>
    %7 = vector.shape_cast %6 : vector<1x10xf32> to vector<1x10x1xf32>
    %cst_11 = arith.constant 3.200000e+01 : f32
    %8 = vector.broadcast %cst_11 : f32 to vector<1x10x1xf32>
    %9 = arith.divf %7, %8 : vector<1x10x1xf32>
    %10 = vector.broadcast %9 : vector<1x10x1xf32> to vector<1x10x32xf32>
    %11 = arith.subf %0, %10 : vector<1x10x32xf32>
    %12 = arith.mulf %11, %11 : vector<1x10x32xf32>
    %cst_12 = arith.constant dense<0.000000e+00> : vector<1x10xf32>
    %13 = vector.multi_reduction <add>, %12, %cst_12 [2] : vector<1x10x32xf32> to vector<1x10xf32>
    %14 = vector.shape_cast %13 : vector<1x10xf32> to vector<1x10x1xf32>
    %cst_13 = arith.constant 3.100000e+01 : f32
    %15 = vector.broadcast %cst_13 : f32 to vector<1x10x1xf32>
    %16 = arith.divf %14, %15 : vector<1x10x1xf32>
    %17 = vector.broadcast %9 : vector<1x10x1xf32> to vector<1x10x32xf32>
    %18 = arith.subf %0, %17 : vector<1x10x32xf32>
    %19 = vector.shape_cast %3 : vector<1x32xf32> to vector<1x1x32xf32>
    %20 = vector.broadcast %19 : vector<1x1x32xf32> to vector<1x10x32xf32>
    %21 = arith.mulf %20, %18 : vector<1x10x32xf32>
    %22 = math.sqrt %16 : vector<1x10x1xf32>
    %cst_14 = arith.constant 9.99999997E-7 : f32
    %23 = vector.broadcast %cst_14 : f32 to vector<1x10x1xf32>
    %24 = arith.addf %22, %23 : vector<1x10x1xf32>
    %25 = vector.broadcast %24 : vector<1x10x1xf32> to vector<1x10x32xf32>
    %26 = arith.divf %21, %25 : vector<1x10x32xf32>
    %27 = vector.shape_cast %5 : vector<1x32xf32> to vector<1x1x32xf32>
    %28 = vector.broadcast %27 : vector<1x1x32xf32> to vector<1x10x32xf32>
    %29 = arith.addf %26, %28 : vector<1x10x32xf32>
    %cst_15 = arith.constant 0.000000e+00 : f32
    %30 = vector.broadcast %cst_15 : f32 to vector<1x10x32xf32>
    %c0_16 = arith.constant 0 : index
    %c0_17 = arith.constant 0 : index
    %c0_18 = arith.constant 0 : index
    %31 = vector.load %arg6[%c0_16, %c0_17, %c0_18] : memref<24x32x8xf32, #tpu.memory_space<vmem>>, vector<1x32x8xf32>
    %32 = vector.shape_cast %31 : vector<1x32x8xf32> to vector<32x8xf32>
    %c0_19 = arith.constant 0 : index
    %c0_20 = arith.constant 0 : index
    %c0_21 = arith.constant 0 : index
    %33 = vector.load %arg7[%c0_19, %c0_20, %c0_21] : memref<24x1x8xf32, #tpu.memory_space<vmem>>, vector<1x1x8xf32>
    %34 = vector.shape_cast %33 : vector<1x1x8xf32> to vector<1x8xf32>
    %35 = vector.shape_cast %32 : vector<32x8xf32> to vector<1x32x8xf32>
    "tpu.trace_start"() <{level = 10 : i32, message = "btd,bde->bte"}> : () -> ()
    %cst_22 = arith.constant dense<0.000000e+00> : vector<1x10x8xf32>
    %36 = tpu.matmul %29, %35, %cst_22 {dimension_numbers = #tpu.dot_dimension_numbers<[2], [1], [1], [2], [0, 0, 0, 1, 1, 2], [0], [0]>} : vector<1x10x32xf32>, vector<1x32x8xf32>, vector<1x10x8xf32> -> vector<1x10x8xf32>
    "tpu.trace_stop"() : () -> ()
    %37 = vector.shape_cast %34 : vector<1x8xf32> to vector<1x1x8xf32>
    %38 = vector.broadcast %37 : vector<1x1x8xf32> to vector<1x10x8xf32>
    %39 = arith.addf %36, %38 : vector<1x10x8xf32>
    %c8 = arith.constant 8 : index
    %c0_23 = arith.constant 0 : index
    %c0_24 = arith.constant 0 : index
    %40 = vector.load %arg6[%c8, %c0_23, %c0_24] : memref<24x32x8xf32, #tpu.memory_space<vmem>>, vector<1x32x8xf32>
    %41 = vector.shape_cast %40 : vector<1x32x8xf32> to vector<32x8xf32>
    %c8_25 = arith.constant 8 : index
    %c0_26 = arith.constant 0 : index
    %c0_27 = arith.constant 0 : index
    %42 = vector.load %arg7[%c8_25, %c0_26, %c0_27] : memref<24x1x8xf32, #tpu.memory_space<vmem>>, vector<1x1x8xf32>
    %43 = vector.shape_cast %42 : vector<1x1x8xf32> to vector<1x8xf32>
    %44 = vector.shape_cast %41 : vector<32x8xf32> to vector<1x32x8xf32>
    "tpu.trace_start"() <{level = 10 : i32, message = "btd,bde->bte"}> : () -> ()
    %cst_28 = arith.constant dense<0.000000e+00> : vector<1x10x8xf32>
    %45 = tpu.matmul %29, %44, %cst_28 {dimension_numbers = #tpu.dot_dimension_numbers<[2], [1], [1], [2], [0, 0, 0, 1, 1, 2], [0], [0]>} : vector<1x10x32xf32>, vector<1x32x8xf32>, vector<1x10x8xf32> -> vector<1x10x8xf32>
    "tpu.trace_stop"() : () -> ()
    %46 = vector.shape_cast %43 : vector<1x8xf32> to vector<1x1x8xf32>
    %47 = vector.broadcast %46 : vector<1x1x8xf32> to vector<1x10x8xf32>
    %48 = arith.addf %45, %47 : vector<1x10x8xf32>
    %c16 = arith.constant 16 : index
    %c0_29 = arith.constant 0 : index
    %c0_30 = arith.constant 0 : index
    %49 = vector.load %arg6[%c16, %c0_29, %c0_30] : memref<24x32x8xf32, #tpu.memory_space<vmem>>, vector<1x32x8xf32>
    %50 = vector.shape_cast %49 : vector<1x32x8xf32> to vector<32x8xf32>
    %c16_31 = arith.constant 16 : index
    %c0_32 = arith.constant 0 : index
    %c0_33 = arith.constant 0 : index
    %51 = vector.load %arg7[%c16_31, %c0_32, %c0_33] : memref<24x1x8xf32, #tpu.memory_space<vmem>>, vector<1x1x8xf32>
    %52 = vector.shape_cast %51 : vector<1x1x8xf32> to vector<1x8xf32>
    %53 = vector.shape_cast %50 : vector<32x8xf32> to vector<1x32x8xf32>
    "tpu.trace_start"() <{level = 10 : i32, message = "btd,bde->bte"}> : () -> ()
    %cst_34 = arith.constant dense<0.000000e+00> : vector<1x10x8xf32>
    %54 = tpu.matmul %29, %53, %cst_34 {dimension_numbers = #tpu.dot_dimension_numbers<[2], [1], [1], [2], [0, 0, 0, 1, 1, 2], [0], [0]>} : vector<1x10x32xf32>, vector<1x32x8xf32>, vector<1x10x8xf32> -> vector<1x10x8xf32>
    "tpu.trace_stop"() : () -> ()
    %55 = vector.shape_cast %52 : vector<1x8xf32> to vector<1x1x8xf32>
    %56 = vector.broadcast %55 : vector<1x1x8xf32> to vector<1x10x8xf32>
    %57 = arith.addf %54, %56 : vector<1x10x8xf32>
    "tpu.trace_start"() <{level = 10 : i32, message = "bqd,bkd->bqk"}> : () -> ()
    %cst_35 = arith.constant dense<0.000000e+00> : vector<1x10x10xf32>
    %58 = tpu.matmul %39, %48, %cst_35 {dimension_numbers = #tpu.dot_dimension_numbers<[2], [2], [1], [1], [0, 0, 0, 1, 1, 1], [0], [0]>} : vector<1x10x8xf32>, vector<1x10x8xf32>, vector<1x10x10xf32> -> vector<1x10x10xf32>
    "tpu.trace_stop"() : () -> ()
    %cst_36 = arith.constant 0.353553385 : f32
    %59 = vector.broadcast %cst_36 : f32 to vector<1x10x10xf32>
    %60 = arith.mulf %58, %59 : vector<1x10x10xf32>
    %cst_37 = arith.constant 0.000000e+00 : f32
    %61 = vector.broadcast %cst_37 : f32 to vector<1x10x10xf32>
    %62 = arith.cmpf oeq, %1, %61 : vector<1x10x10xf32>
    %cst_38 = arith.constant -1.000000e+09 : f32
    %63 = vector.broadcast %cst_38 : f32 to vector<1x10x10xf32>
    %64 = arith.select %62, %63, %60 : vector<1x10x10xi1>, vector<1x10x10xf32>
    %cst_39 = arith.constant dense<0xFF800000> : vector<1x10xf32>
    %65 = vector.multi_reduction <maximumf>, %64, %cst_39 [2] : vector<1x10x10xf32> to vector<1x10xf32>
    %66 = vector.shape_cast %65 : vector<1x10xf32> to vector<1x10x1xf32>
    %67 = vector.broadcast %66 : vector<1x10x1xf32> to vector<1x10x10xf32>
    %68 = arith.subf %64, %67 : vector<1x10x10xf32>
    %69 = math.exp %68 : vector<1x10x10xf32>
    %cst_40 = arith.constant dense<0.000000e+00> : vector<1x10xf32>
    %70 = vector.multi_reduction <add>, %69, %cst_40 [2] : vector<1x10x10xf32> to vector<1x10xf32>
    %71 = vector.shape_cast %70 : vector<1x10xf32> to vector<1x10x1xf32>
    %72 = tpu.reciprocal %71 {approx = true} : vector<1x10x1xf32> -> vector<1x10x1xf32>
    %73 = vector.broadcast %72 : vector<1x10x1xf32> to vector<1x10x10xf32>
    %74 = arith.mulf %69, %73 : vector<1x10x10xf32>
    "tpu.trace_start"() <{level = 10 : i32, message = "bqk,bkd->bqd"}> : () -> ()
    %cst_41 = arith.constant dense<0.000000e+00> : vector<1x10x8xf32>
    %75 = tpu.matmul %74, %57, %cst_41 {dimension_numbers = #tpu.dot_dimension_numbers<[2], [1], [1], [2], [0, 0, 0, 1, 1, 2], [0], [0]>} : vector<1x10x10xf32>, vector<1x10x8xf32>, vector<1x10x8xf32> -> vector<1x10x8xf32>
    "tpu.trace_stop"() : () -> ()
    %c0_42 = arith.constant 0 : index
    %c0_43 = arith.constant 0 : index
    %c0_44 = arith.constant 0 : index
    %76 = vector.load %arg8[%c0_42, %c0_43, %c0_44] : memref<8x8x32xf32, #tpu.memory_space<vmem>>, vector<1x8x32xf32>
    %77 = vector.shape_cast %76 : vector<1x8x32xf32> to vector<8x32xf32>
    %78 = vector.shape_cast %77 : vector<8x32xf32> to vector<1x8x32xf32>
    "tpu.trace_start"() <{level = 10 : i32, message = "btd,bde->bte"}> : () -> ()
    %cst_45 = arith.constant dense<0.000000e+00> : vector<1x10x32xf32>
    %79 = tpu.matmul %75, %78, %cst_45 {dimension_numbers = #tpu.dot_dimension_numbers<[2], [1], [1], [2], [0, 0, 0, 1, 1, 2], [0], [0]>} : vector<1x10x8xf32>, vector<1x8x32xf32>, vector<1x10x32xf32> -> vector<1x10x32xf32>
    "tpu.trace_stop"() : () -> ()
    %80 = arith.addf %30, %79 : vector<1x10x32xf32>
    %c1 = arith.constant 1 : index
    %c0_46 = arith.constant 0 : index
    %c0_47 = arith.constant 0 : index
    %81 = vector.load %arg6[%c1, %c0_46, %c0_47] : memref<24x32x8xf32, #tpu.memory_space<vmem>>, vector<1x32x8xf32>
    %82 = vector.shape_cast %81 : vector<1x32x8xf32> to vector<32x8xf32>
    %c1_48 = arith.constant 1 : index
    %c0_49 = arith.constant 0 : index
    %c0_50 = arith.constant 0 : index
    %83 = vector.load %arg7[%c1_48, %c0_49, %c0_50] : memref<24x1x8xf32, #tpu.memory_space<vmem>>, vector<1x1x8xf32>
    %84 = vector.shape_cast %83 : vector<1x1x8xf32> to vector<1x8xf32>
    %85 = vector.shape_cast %82 : vector<32x8xf32> to vector<1x32x8xf32>
    "tpu.trace_start"() <{level = 10 : i32, message = "btd,bde->bte"}> : () -> ()
    %cst_51 = arith.constant dense<0.000000e+00> : vector<1x10x8xf32>
    %86 = tpu.matmul %29, %85, %cst_51 {dimension_numbers = #tpu.dot_dimension_numbers<[2], [1], [1], [2], [0, 0, 0, 1, 1, 2], [0], [0]>} : vector<1x10x32xf32>, vector<1x32x8xf32>, vector<1x10x8xf32> -> vector<1x10x8xf32>
    "tpu.trace_stop"() : () -> ()
    %87 = vector.shape_cast %84 : vector<1x8xf32> to vector<1x1x8xf32>
    %88 = vector.broadcast %87 : vector<1x1x8xf32> to vector<1x10x8xf32>
    %89 = arith.addf %86, %88 : vector<1x10x8xf32>
    %c9 = arith.constant 9 : index
    %c0_52 = arith.constant 0 : index
    %c0_53 = arith.constant 0 : index
    %90 = vector.load %arg6[%c9, %c0_52, %c0_53] : memref<24x32x8xf32, #tpu.memory_space<vmem>>, vector<1x32x8xf32>
    %91 = vector.shape_cast %90 : vector<1x32x8xf32> to vector<32x8xf32>
    %c9_54 = arith.constant 9 : index
    %c0_55 = arith.constant 0 : index
    %c0_56 = arith.constant 0 : index
    %92 = vector.load %arg7[%c9_54, %c0_55, %c0_56] : memref<24x1x8xf32, #tpu.memory_space<vmem>>, vector<1x1x8xf32>
    %93 = vector.shape_cast %92 : vector<1x1x8xf32> to vector<1x8xf32>
    %94 = vector.shape_cast %91 : vector<32x8xf32> to vector<1x32x8xf32>
    "tpu.trace_start"() <{level = 10 : i32, message = "btd,bde->bte"}> : () -> ()
    %cst_57 = arith.constant dense<0.000000e+00> : vector<1x10x8xf32>
    %95 = tpu.matmul %29, %94, %cst_57 {dimension_numbers = #tpu.dot_dimension_numbers<[2], [1], [1], [2], [0, 0, 0, 1, 1, 2], [0], [0]>} : vector<1x10x32xf32>, vector<1x32x8xf32>, vector<1x10x8xf32> -> vector<1x10x8xf32>
    "tpu.trace_stop"() : () -> ()
    %96 = vector.shape_cast %93 : vector<1x8xf32> to vector<1x1x8xf32>
    %97 = vector.broadcast %96 : vector<1x1x8xf32> to vector<1x10x8xf32>
    %98 = arith.addf %95, %97 : vector<1x10x8xf32>
    %c17 = arith.constant 17 : index
    %c0_58 = arith.constant 0 : index
    %c0_59 = arith.constant 0 : index
    %99 = vector.load %arg6[%c17, %c0_58, %c0_59] : memref<24x32x8xf32, #tpu.memory_space<vmem>>, vector<1x32x8xf32>
    %100 = vector.shape_cast %99 : vector<1x32x8xf32> to vector<32x8xf32>
    %c17_60 = arith.constant 17 : index
    %c0_61 = arith.constant 0 : index
    %c0_62 = arith.constant 0 : index
    %101 = vector.load %arg7[%c17_60, %c0_61, %c0_62] : memref<24x1x8xf32, #tpu.memory_space<vmem>>, vector<1x1x8xf32>
    %102 = vector.shape_cast %101 : vector<1x1x8xf32> to vector<1x8xf32>
    %103 = vector.shape_cast %100 : vector<32x8xf32> to vector<1x32x8xf32>
    "tpu.trace_start"() <{level = 10 : i32, message = "btd,bde->bte"}> : () -> ()
    %cst_63 = arith.constant dense<0.000000e+00> : vector<1x10x8xf32>
    %104 = tpu.matmul %29, %103, %cst_63 {dimension_numbers = #tpu.dot_dimension_numbers<[2], [1], [1], [2], [0, 0, 0, 1, 1, 2], [0], [0]>} : vector<1x10x32xf32>, vector<1x32x8xf32>, vector<1x10x8xf32> -> vector<1x10x8xf32>
    "tpu.trace_stop"() : () -> ()
    %105 = vector.shape_cast %102 : vector<1x8xf32> to vector<1x1x8xf32>
    %106 = vector.broadcast %105 : vector<1x1x8xf32> to vector<1x10x8xf32>
    %107 = arith.addf %104, %106 : vector<1x10x8xf32>
    "tpu.trace_start"() <{level = 10 : i32, message = "bqd,bkd->bqk"}> : () -> ()
    %cst_64 = arith.constant dense<0.000000e+00> : vector<1x10x10xf32>
    %108 = tpu.matmul %89, %98, %cst_64 {dimension_numbers = #tpu.dot_dimension_numbers<[2], [2], [1], [1], [0, 0, 0, 1, 1, 1], [0], [0]>} : vector<1x10x8xf32>, vector<1x10x8xf32>, vector<1x10x10xf32> -> vector<1x10x10xf32>
    "tpu.trace_stop"() : () -> ()
    %cst_65 = arith.constant 0.353553385 : f32
    %109 = vector.broadcast %cst_65 : f32 to vector<1x10x10xf32>
    %110 = arith.mulf %108, %109 : vector<1x10x10xf32>
    %cst_66 = arith.constant 0.000000e+00 : f32
    %111 = vector.broadcast %cst_66 : f32 to vector<1x10x10xf32>
    %112 = arith.cmpf oeq, %1, %111 : vector<1x10x10xf32>
    %cst_67 = arith.constant -1.000000e+09 : f32
    %113 = vector.broadcast %cst_67 : f32 to vector<1x10x10xf32>
    %114 = arith.select %112, %113, %110 : vector<1x10x10xi1>, vector<1x10x10xf32>
    %cst_68 = arith.constant dense<0xFF800000> : vector<1x10xf32>
    %115 = vector.multi_reduction <maximumf>, %114, %cst_68 [2] : vector<1x10x10xf32> to vector<1x10xf32>
    %116 = vector.shape_cast %115 : vector<1x10xf32> to vector<1x10x1xf32>
    %117 = vector.broadcast %116 : vector<1x10x1xf32> to vector<1x10x10xf32>
    %118 = arith.subf %114, %117 : vector<1x10x10xf32>
    %119 = math.exp %118 : vector<1x10x10xf32>
    %cst_69 = arith.constant dense<0.000000e+00> : vector<1x10xf32>
    %120 = vector.multi_reduction <add>, %119, %cst_69 [2] : vector<1x10x10xf32> to vector<1x10xf32>
    %121 = vector.shape_cast %120 : vector<1x10xf32> to vector<1x10x1xf32>
    %122 = tpu.reciprocal %121 {approx = true} : vector<1x10x1xf32> -> vector<1x10x1xf32>
    %123 = vector.broadcast %122 : vector<1x10x1xf32> to vector<1x10x10xf32>
    %124 = arith.mulf %119, %123 : vector<1x10x10xf32>
    "tpu.trace_start"() <{level = 10 : i32, message = "bqk,bkd->bqd"}> : () -> ()
    %cst_70 = arith.constant dense<0.000000e+00> : vector<1x10x8xf32>
    %125 = tpu.matmul %124, %107, %cst_70 {dimension_numbers = #tpu.dot_dimension_numbers<[2], [1], [1], [2], [0, 0, 0, 1, 1, 2], [0], [0]>} : vector<1x10x10xf32>, vector<1x10x8xf32>, vector<1x10x8xf32> -> vector<1x10x8xf32>
    "tpu.trace_stop"() : () -> ()
    %c1_71 = arith.constant 1 : index
    %c0_72 = arith.constant 0 : index
    %c0_73 = arith.constant 0 : index
    %126 = vector.load %arg8[%c1_71, %c0_72, %c0_73] : memref<8x8x32xf32, #tpu.memory_space<vmem>>, vector<1x8x32xf32>
    %127 = vector.shape_cast %126 : vector<1x8x32xf32> to vector<8x32xf32>
    %128 = vector.shape_cast %127 : vector<8x32xf32> to vector<1x8x32xf32>
    "tpu.trace_start"() <{level = 10 : i32, message = "btd,bde->bte"}> : () -> ()
    %cst_74 = arith.constant dense<0.000000e+00> : vector<1x10x32xf32>
    %129 = tpu.matmul %125, %128, %cst_74 {dimension_numbers = #tpu.dot_dimension_numbers<[2], [1], [1], [2], [0, 0, 0, 1, 1, 2], [0], [0]>} : vector<1x10x8xf32>, vector<1x8x32xf32>, vector<1x10x32xf32> -> vector<1x10x32xf32>
    "tpu.trace_stop"() : () -> ()
    %130 = arith.addf %80, %129 : vector<1x10x32xf32>
    %c2 = arith.constant 2 : index
    %c0_75 = arith.constant 0 : index
    %c0_76 = arith.constant 0 : index
    %131 = vector.load %arg6[%c2, %c0_75, %c0_76] : memref<24x32x8xf32, #tpu.memory_space<vmem>>, vector<1x32x8xf32>
    %132 = vector.shape_cast %131 : vector<1x32x8xf32> to vector<32x8xf32>
    %c2_77 = arith.constant 2 : index
    %c0_78 = arith.constant 0 : index
    %c0_79 = arith.constant 0 : index
    %133 = vector.load %arg7[%c2_77, %c0_78, %c0_79] : memref<24x1x8xf32, #tpu.memory_space<vmem>>, vector<1x1x8xf32>
    %134 = vector.shape_cast %133 : vector<1x1x8xf32> to vector<1x8xf32>
    %135 = vector.shape_cast %132 : vector<32x8xf32> to vector<1x32x8xf32>
    "tpu.trace_start"() <{level = 10 : i32, message = "btd,bde->bte"}> : () -> ()
    %cst_80 = arith.constant dense<0.000000e+00> : vector<1x10x8xf32>
    %136 = tpu.matmul %29, %135, %cst_80 {dimension_numbers = #tpu.dot_dimension_numbers<[2], [1], [1], [2], [0, 0, 0, 1, 1, 2], [0], [0]>} : vector<1x10x32xf32>, vector<1x32x8xf32>, vector<1x10x8xf32> -> vector<1x10x8xf32>
    "tpu.trace_stop"() : () -> ()
    %137 = vector.shape_cast %134 : vector<1x8xf32> to vector<1x1x8xf32>
    %138 = vector.broadcast %137 : vector<1x1x8xf32> to vector<1x10x8xf32>
    %139 = arith.addf %136, %138 : vector<1x10x8xf32>
    %c10 = arith.constant 10 : index
    %c0_81 = arith.constant 0 : index
    %c0_82 = arith.constant 0 : index
    %140 = vector.load %arg6[%c10, %c0_81, %c0_82] : memref<24x32x8xf32, #tpu.memory_space<vmem>>, vector<1x32x8xf32>
    %141 = vector.shape_cast %140 : vector<1x32x8xf32> to vector<32x8xf32>
    %c10_83 = arith.constant 10 : index
    %c0_84 = arith.constant 0 : index
    %c0_85 = arith.constant 0 : index
    %142 = vector.load %arg7[%c10_83, %c0_84, %c0_85] : memref<24x1x8xf32, #tpu.memory_space<vmem>>, vector<1x1x8xf32>
    %143 = vector.shape_cast %142 : vector<1x1x8xf32> to vector<1x8xf32>
    %144 = vector.shape_cast %141 : vector<32x8xf32> to vector<1x32x8xf32>
    "tpu.trace_start"() <{level = 10 : i32, message = "btd,bde->bte"}> : () -> ()
    %cst_86 = arith.constant dense<0.000000e+00> : vector<1x10x8xf32>
    %145 = tpu.matmul %29, %144, %cst_86 {dimension_numbers = #tpu.dot_dimension_numbers<[2], [1], [1], [2], [0, 0, 0, 1, 1, 2], [0], [0]>} : vector<1x10x32xf32>, vector<1x32x8xf32>, vector<1x10x8xf32> -> vector<1x10x8xf32>
    "tpu.trace_stop"() : () -> ()
    %146 = vector.shape_cast %143 : vector<1x8xf32> to vector<1x1x8xf32>
    %147 = vector.broadcast %146 : vector<1x1x8xf32> to vector<1x10x8xf32>
    %148 = arith.addf %145, %147 : vector<1x10x8xf32>
    %c18 = arith.constant 18 : index
    %c0_87 = arith.constant 0 : index
    %c0_88 = arith.constant 0 : index
    %149 = vector.load %arg6[%c18, %c0_87, %c0_88] : memref<24x32x8xf32, #tpu.memory_space<vmem>>, vector<1x32x8xf32>
    %150 = vector.shape_cast %149 : vector<1x32x8xf32> to vector<32x8xf32>
    %c18_89 = arith.constant 18 : index
    %c0_90 = arith.constant 0 : index
    %c0_91 = arith.constant 0 : index
    %151 = vector.load %arg7[%c18_89, %c0_90, %c0_91] : memref<24x1x8xf32, #tpu.memory_space<vmem>>, vector<1x1x8xf32>
    %152 = vector.shape_cast %151 : vector<1x1x8xf32> to vector<1x8xf32>
    %153 = vector.shape_cast %150 : vector<32x8xf32> to vector<1x32x8xf32>
    "tpu.trace_start"() <{level = 10 : i32, message = "btd,bde->bte"}> : () -> ()
    %cst_92 = arith.constant dense<0.000000e+00> : vector<1x10x8xf32>
    %154 = tpu.matmul %29, %153, %cst_92 {dimension_numbers = #tpu.dot_dimension_numbers<[2], [1], [1], [2], [0, 0, 0, 1, 1, 2], [0], [0]>} : vector<1x10x32xf32>, vector<1x32x8xf32>, vector<1x10x8xf32> -> vector<1x10x8xf32>
    "tpu.trace_stop"() : () -> ()
    %155 = vector.shape_cast %152 : vector<1x8xf32> to vector<1x1x8xf32>
    %156 = vector.broadcast %155 : vector<1x1x8xf32> to vector<1x10x8xf32>
    %157 = arith.addf %154, %156 : vector<1x10x8xf32>
    "tpu.trace_start"() <{level = 10 : i32, message = "bqd,bkd->bqk"}> : () -> ()
    %cst_93 = arith.constant dense<0.000000e+00> : vector<1x10x10xf32>
    %158 = tpu.matmul %139, %148, %cst_93 {dimension_numbers = #tpu.dot_dimension_numbers<[2], [2], [1], [1], [0, 0, 0, 1, 1, 1], [0], [0]>} : vector<1x10x8xf32>, vector<1x10x8xf32>, vector<1x10x10xf32> -> vector<1x10x10xf32>
    "tpu.trace_stop"() : () -> ()
    %cst_94 = arith.constant 0.353553385 : f32
    %159 = vector.broadcast %cst_94 : f32 to vector<1x10x10xf32>
    %160 = arith.mulf %158, %159 : vector<1x10x10xf32>
    %cst_95 = arith.constant 0.000000e+00 : f32
    %161 = vector.broadcast %cst_95 : f32 to vector<1x10x10xf32>
    %162 = arith.cmpf oeq, %1, %161 : vector<1x10x10xf32>
    %cst_96 = arith.constant -1.000000e+09 : f32
    %163 = vector.broadcast %cst_96 : f32 to vector<1x10x10xf32>
    %164 = arith.select %162, %163, %160 : vector<1x10x10xi1>, vector<1x10x10xf32>
    %cst_97 = arith.constant dense<0xFF800000> : vector<1x10xf32>
    %165 = vector.multi_reduction <maximumf>, %164, %cst_97 [2] : vector<1x10x10xf32> to vector<1x10xf32>
    %166 = vector.shape_cast %165 : vector<1x10xf32> to vector<1x10x1xf32>
    %167 = vector.broadcast %166 : vector<1x10x1xf32> to vector<1x10x10xf32>
    %168 = arith.subf %164, %167 : vector<1x10x10xf32>
    %169 = math.exp %168 : vector<1x10x10xf32>
    %cst_98 = arith.constant dense<0.000000e+00> : vector<1x10xf32>
    %170 = vector.multi_reduction <add>, %169, %cst_98 [2] : vector<1x10x10xf32> to vector<1x10xf32>
    %171 = vector.shape_cast %170 : vector<1x10xf32> to vector<1x10x1xf32>
    %172 = tpu.reciprocal %171 {approx = true} : vector<1x10x1xf32> -> vector<1x10x1xf32>
    %173 = vector.broadcast %172 : vector<1x10x1xf32> to vector<1x10x10xf32>
    %174 = arith.mulf %169, %173 : vector<1x10x10xf32>
    "tpu.trace_start"() <{level = 10 : i32, message = "bqk,bkd->bqd"}> : () -> ()
    %cst_99 = arith.constant dense<0.000000e+00> : vector<1x10x8xf32>
    %175 = tpu.matmul %174, %157, %cst_99 {dimension_numbers = #tpu.dot_dimension_numbers<[2], [1], [1], [2], [0, 0, 0, 1, 1, 2], [0], [0]>} : vector<1x10x10xf32>, vector<1x10x8xf32>, vector<1x10x8xf32> -> vector<1x10x8xf32>
    "tpu.trace_stop"() : () -> ()
    %c2_100 = arith.constant 2 : index
    %c0_101 = arith.constant 0 : index
    %c0_102 = arith.constant 0 : index
    %176 = vector.load %arg8[%c2_100, %c0_101, %c0_102] : memref<8x8x32xf32, #tpu.memory_space<vmem>>, vector<1x8x32xf32>
    %177 = vector.shape_cast %176 : vector<1x8x32xf32> to vector<8x32xf32>
    %178 = vector.shape_cast %177 : vector<8x32xf32> to vector<1x8x32xf32>
    "tpu.trace_start"() <{level = 10 : i32, message = "btd,bde->bte"}> : () -> ()
    %cst_103 = arith.constant dense<0.000000e+00> : vector<1x10x32xf32>
    %179 = tpu.matmul %175, %178, %cst_103 {dimension_numbers = #tpu.dot_dimension_numbers<[2], [1], [1], [2], [0, 0, 0, 1, 1, 2], [0], [0]>} : vector<1x10x8xf32>, vector<1x8x32xf32>, vector<1x10x32xf32> -> vector<1x10x32xf32>
    "tpu.trace_stop"() : () -> ()
    %180 = arith.addf %130, %179 : vector<1x10x32xf32>
    %c3 = arith.constant 3 : index
    %c0_104 = arith.constant 0 : index
    %c0_105 = arith.constant 0 : index
    %181 = vector.load %arg6[%c3, %c0_104, %c0_105] : memref<24x32x8xf32, #tpu.memory_space<vmem>>, vector<1x32x8xf32>
    %182 = vector.shape_cast %181 : vector<1x32x8xf32> to vector<32x8xf32>
    %c3_106 = arith.constant 3 : index
    %c0_107 = arith.constant 0 : index
    %c0_108 = arith.constant 0 : index
    %183 = vector.load %arg7[%c3_106, %c0_107, %c0_108] : memref<24x1x8xf32, #tpu.memory_space<vmem>>, vector<1x1x8xf32>
    %184 = vector.shape_cast %183 : vector<1x1x8xf32> to vector<1x8xf32>
    %185 = vector.shape_cast %182 : vector<32x8xf32> to vector<1x32x8xf32>
    "tpu.trace_start"() <{level = 10 : i32, message = "btd,bde->bte"}> : () -> ()
    %cst_109 = arith.constant dense<0.000000e+00> : vector<1x10x8xf32>
    %186 = tpu.matmul %29, %185, %cst_109 {dimension_numbers = #tpu.dot_dimension_numbers<[2], [1], [1], [2], [0, 0, 0, 1, 1, 2], [0], [0]>} : vector<1x10x32xf32>, vector<1x32x8xf32>, vector<1x10x8xf32> -> vector<1x10x8xf32>
    "tpu.trace_stop"() : () -> ()
    %187 = vector.shape_cast %184 : vector<1x8xf32> to vector<1x1x8xf32>
    %188 = vector.broadcast %187 : vector<1x1x8xf32> to vector<1x10x8xf32>
    %189 = arith.addf %186, %188 : vector<1x10x8xf32>
    %c11 = arith.constant 11 : index
    %c0_110 = arith.constant 0 : index
    %c0_111 = arith.constant 0 : index
    %190 = vector.load %arg6[%c11, %c0_110, %c0_111] : memref<24x32x8xf32, #tpu.memory_space<vmem>>, vector<1x32x8xf32>
    %191 = vector.shape_cast %190 : vector<1x32x8xf32> to vector<32x8xf32>
    %c11_112 = arith.constant 11 : index
    %c0_113 = arith.constant 0 : index
    %c0_114 = arith.constant 0 : index
    %192 = vector.load %arg7[%c11_112, %c0_113, %c0_114] : memref<24x1x8xf32, #tpu.memory_space<vmem>>, vector<1x1x8xf32>
    %193 = vector.shape_cast %192 : vector<1x1x8xf32> to vector<1x8xf32>
    %194 = vector.shape_cast %191 : vector<32x8xf32> to vector<1x32x8xf32>
    "tpu.trace_start"() <{level = 10 : i32, message = "btd,bde->bte"}> : () -> ()
    %cst_115 = arith.constant dense<0.000000e+00> : vector<1x10x8xf32>
    %195 = tpu.matmul %29, %194, %cst_115 {dimension_numbers = #tpu.dot_dimension_numbers<[2], [1], [1], [2], [0, 0, 0, 1, 1, 2], [0], [0]>} : vector<1x10x32xf32>, vector<1x32x8xf32>, vector<1x10x8xf32> -> vector<1x10x8xf32>
    "tpu.trace_stop"() : () -> ()
    %196 = vector.shape_cast %193 : vector<1x8xf32> to vector<1x1x8xf32>
    %197 = vector.broadcast %196 : vector<1x1x8xf32> to vector<1x10x8xf32>
    %198 = arith.addf %195, %197 : vector<1x10x8xf32>
    %c19 = arith.constant 19 : index
    %c0_116 = arith.constant 0 : index
    %c0_117 = arith.constant 0 : index
    %199 = vector.load %arg6[%c19, %c0_116, %c0_117] : memref<24x32x8xf32, #tpu.memory_space<vmem>>, vector<1x32x8xf32>
    %200 = vector.shape_cast %199 : vector<1x32x8xf32> to vector<32x8xf32>
    %c19_118 = arith.constant 19 : index
    %c0_119 = arith.constant 0 : index
    %c0_120 = arith.constant 0 : index
    %201 = vector.load %arg7[%c19_118, %c0_119, %c0_120] : memref<24x1x8xf32, #tpu.memory_space<vmem>>, vector<1x1x8xf32>
    %202 = vector.shape_cast %201 : vector<1x1x8xf32> to vector<1x8xf32>
    %203 = vector.shape_cast %200 : vector<32x8xf32> to vector<1x32x8xf32>
    "tpu.trace_start"() <{level = 10 : i32, message = "btd,bde->bte"}> : () -> ()
    %cst_121 = arith.constant dense<0.000000e+00> : vector<1x10x8xf32>
    %204 = tpu.matmul %29, %203, %cst_121 {dimension_numbers = #tpu.dot_dimension_numbers<[2], [1], [1], [2], [0, 0, 0, 1, 1, 2], [0], [0]>} : vector<1x10x32xf32>, vector<1x32x8xf32>, vector<1x10x8xf32> -> vector<1x10x8xf32>
    "tpu.trace_stop"() : () -> ()
    %205 = vector.shape_cast %202 : vector<1x8xf32> to vector<1x1x8xf32>
    %206 = vector.broadcast %205 : vector<1x1x8xf32> to vector<1x10x8xf32>
    %207 = arith.addf %204, %206 : vector<1x10x8xf32>
    "tpu.trace_start"() <{level = 10 : i32, message = "bqd,bkd->bqk"}> : () -> ()
    %cst_122 = arith.constant dense<0.000000e+00> : vector<1x10x10xf32>
    %208 = tpu.matmul %189, %198, %cst_122 {dimension_numbers = #tpu.dot_dimension_numbers<[2], [2], [1], [1], [0, 0, 0, 1, 1, 1], [0], [0]>} : vector<1x10x8xf32>, vector<1x10x8xf32>, vector<1x10x10xf32> -> vector<1x10x10xf32>
    "tpu.trace_stop"() : () -> ()
    %cst_123 = arith.constant 0.353553385 : f32
    %209 = vector.broadcast %cst_123 : f32 to vector<1x10x10xf32>
    %210 = arith.mulf %208, %209 : vector<1x10x10xf32>
    %cst_124 = arith.constant 0.000000e+00 : f32
    %211 = vector.broadcast %cst_124 : f32 to vector<1x10x10xf32>
    %212 = arith.cmpf oeq, %1, %211 : vector<1x10x10xf32>
    %cst_125 = arith.constant -1.000000e+09 : f32
    %213 = vector.broadcast %cst_125 : f32 to vector<1x10x10xf32>
    %214 = arith.select %212, %213, %210 : vector<1x10x10xi1>, vector<1x10x10xf32>
    %cst_126 = arith.constant dense<0xFF800000> : vector<1x10xf32>
    %215 = vector.multi_reduction <maximumf>, %214, %cst_126 [2] : vector<1x10x10xf32> to vector<1x10xf32>
    %216 = vector.shape_cast %215 : vector<1x10xf32> to vector<1x10x1xf32>
    %217 = vector.broadcast %216 : vector<1x10x1xf32> to vector<1x10x10xf32>
    %218 = arith.subf %214, %217 : vector<1x10x10xf32>
    %219 = math.exp %218 : vector<1x10x10xf32>
    %cst_127 = arith.constant dense<0.000000e+00> : vector<1x10xf32>
    %220 = vector.multi_reduction <add>, %219, %cst_127 [2] : vector<1x10x10xf32> to vector<1x10xf32>
    %221 = vector.shape_cast %220 : vector<1x10xf32> to vector<1x10x1xf32>
    %222 = tpu.reciprocal %221 {approx = true} : vector<1x10x1xf32> -> vector<1x10x1xf32>
    %223 = vector.broadcast %222 : vector<1x10x1xf32> to vector<1x10x10xf32>
    %224 = arith.mulf %219, %223 : vector<1x10x10xf32>
    "tpu.trace_start"() <{level = 10 : i32, message = "bqk,bkd->bqd"}> : () -> ()
    %cst_128 = arith.constant dense<0.000000e+00> : vector<1x10x8xf32>
    %225 = tpu.matmul %224, %207, %cst_128 {dimension_numbers = #tpu.dot_dimension_numbers<[2], [1], [1], [2], [0, 0, 0, 1, 1, 2], [0], [0]>} : vector<1x10x10xf32>, vector<1x10x8xf32>, vector<1x10x8xf32> -> vector<1x10x8xf32>
    "tpu.trace_stop"() : () -> ()
    %c3_129 = arith.constant 3 : index
    %c0_130 = arith.constant 0 : index
    %c0_131 = arith.constant 0 : index
    %226 = vector.load %arg8[%c3_129, %c0_130, %c0_131] : memref<8x8x32xf32, #tpu.memory_space<vmem>>, vector<1x8x32xf32>
    %227 = vector.shape_cast %226 : vector<1x8x32xf32> to vector<8x32xf32>
    %228 = vector.shape_cast %227 : vector<8x32xf32> to vector<1x8x32xf32>
    "tpu.trace_start"() <{level = 10 : i32, message = "btd,bde->bte"}> : () -> ()
    %cst_132 = arith.constant dense<0.000000e+00> : vector<1x10x32xf32>
    %229 = tpu.matmul %225, %228, %cst_132 {dimension_numbers = #tpu.dot_dimension_numbers<[2], [1], [1], [2], [0, 0, 0, 1, 1, 2], [0], [0]>} : vector<1x10x8xf32>, vector<1x8x32xf32>, vector<1x10x32xf32> -> vector<1x10x32xf32>
    "tpu.trace_stop"() : () -> ()
    %230 = arith.addf %180, %229 : vector<1x10x32xf32>
    %c0_133 = arith.constant 0 : index
    %c0_134 = arith.constant 0 : index
    %c0_135 = arith.constant 0 : index
    %231 = vector.load %arg9[%c0_133, %c0_134, %c0_135] : memref<2x1x32xf32, #tpu.memory_space<vmem>>, vector<1x1x32xf32>
    %232 = vector.shape_cast %231 : vector<1x1x32xf32> to vector<1x32xf32>
    %233 = vector.shape_cast %232 : vector<1x32xf32> to vector<1x1x32xf32>
    %234 = vector.broadcast %233 : vector<1x1x32xf32> to vector<1x10x32xf32>
    %235 = arith.addf %230, %234 : vector<1x10x32xf32>
    %236 = arith.addf %0, %235 : vector<1x10x32xf32>
    %c1_136 = arith.constant 1 : index
    %c0_137 = arith.constant 0 : index
    %c0_138 = arith.constant 0 : index
    %237 = vector.load %arg10[%c1_136, %c0_137, %c0_138] : memref<4x1x32xf32, #tpu.memory_space<vmem>>, vector<1x1x32xf32>
    %238 = vector.shape_cast %237 : vector<1x1x32xf32> to vector<1x32xf32>
    %c1_139 = arith.constant 1 : index
    %c0_140 = arith.constant 0 : index
    %c0_141 = arith.constant 0 : index
    %239 = vector.load %arg11[%c1_139, %c0_140, %c0_141] : memref<4x1x32xf32, #tpu.memory_space<vmem>>, vector<1x1x32xf32>
    %240 = vector.shape_cast %239 : vector<1x1x32xf32> to vector<1x32xf32>
    %cst_142 = arith.constant dense<0.000000e+00> : vector<1x10xf32>
    %241 = vector.multi_reduction <add>, %236, %cst_142 [2] : vector<1x10x32xf32> to vector<1x10xf32>
    %242 = vector.shape_cast %241 : vector<1x10xf32> to vector<1x10x1xf32>
    %cst_143 = arith.constant 3.200000e+01 : f32
    %243 = vector.broadcast %cst_143 : f32 to vector<1x10x1xf32>
    %244 = arith.divf %242, %243 : vector<1x10x1xf32>
    %245 = vector.broadcast %244 : vector<1x10x1xf32> to vector<1x10x32xf32>
    %246 = arith.subf %236, %245 : vector<1x10x32xf32>
    %247 = arith.mulf %246, %246 : vector<1x10x32xf32>
    %cst_144 = arith.constant dense<0.000000e+00> : vector<1x10xf32>
    %248 = vector.multi_reduction <add>, %247, %cst_144 [2] : vector<1x10x32xf32> to vector<1x10xf32>
    %249 = vector.shape_cast %248 : vector<1x10xf32> to vector<1x10x1xf32>
    %cst_145 = arith.constant 3.100000e+01 : f32
    %250 = vector.broadcast %cst_145 : f32 to vector<1x10x1xf32>
    %251 = arith.divf %249, %250 : vector<1x10x1xf32>
    %252 = vector.broadcast %244 : vector<1x10x1xf32> to vector<1x10x32xf32>
    %253 = arith.subf %236, %252 : vector<1x10x32xf32>
    %254 = vector.shape_cast %238 : vector<1x32xf32> to vector<1x1x32xf32>
    %255 = vector.broadcast %254 : vector<1x1x32xf32> to vector<1x10x32xf32>
    %256 = arith.mulf %255, %253 : vector<1x10x32xf32>
    %257 = math.sqrt %251 : vector<1x10x1xf32>
    %cst_146 = arith.constant 9.99999997E-7 : f32
    %258 = vector.broadcast %cst_146 : f32 to vector<1x10x1xf32>
    %259 = arith.addf %257, %258 : vector<1x10x1xf32>
    %260 = vector.broadcast %259 : vector<1x10x1xf32> to vector<1x10x32xf32>
    %261 = arith.divf %256, %260 : vector<1x10x32xf32>
    %262 = vector.shape_cast %240 : vector<1x32xf32> to vector<1x1x32xf32>
    %263 = vector.broadcast %262 : vector<1x1x32xf32> to vector<1x10x32xf32>
    %264 = arith.addf %261, %263 : vector<1x10x32xf32>
    %c0_147 = arith.constant 0 : index
    %c0_148 = arith.constant 0 : index
    %c0_149 = arith.constant 0 : index
    %265 = vector.load %arg12[%c0_147, %c0_148, %c0_149] : memref<2x32x64xf32, #tpu.memory_space<vmem>>, vector<1x32x64xf32>
    %266 = vector.shape_cast %265 : vector<1x32x64xf32> to vector<32x64xf32>
    %c0_150 = arith.constant 0 : index
    %c0_151 = arith.constant 0 : index
    %c0_152 = arith.constant 0 : index
    %267 = vector.load %arg13[%c0_150, %c0_151, %c0_152] : memref<2x1x64xf32, #tpu.memory_space<vmem>>, vector<1x1x64xf32>
    %268 = vector.shape_cast %267 : vector<1x1x64xf32> to vector<1x64xf32>
    %269 = vector.shape_cast %266 : vector<32x64xf32> to vector<1x32x64xf32>
    "tpu.trace_start"() <{level = 10 : i32, message = "btd,bde->bte"}> : () -> ()
    %cst_153 = arith.constant dense<0.000000e+00> : vector<1x10x64xf32>
    %270 = tpu.matmul %264, %269, %cst_153 {dimension_numbers = #tpu.dot_dimension_numbers<[2], [1], [1], [2], [0, 0, 0, 1, 1, 2], [0], [0]>} : vector<1x10x32xf32>, vector<1x32x64xf32>, vector<1x10x64xf32> -> vector<1x10x64xf32>
    "tpu.trace_stop"() : () -> ()
    %271 = vector.shape_cast %268 : vector<1x64xf32> to vector<1x1x64xf32>
    %272 = vector.broadcast %271 : vector<1x1x64xf32> to vector<1x10x64xf32>
    %273 = arith.addf %270, %272 : vector<1x10x64xf32>
    %cst_154 = arith.constant 0.000000e+00 : f32
    %274 = vector.broadcast %cst_154 : f32 to vector<1x10x64xf32>
    %275 = arith.maximumf %273, %274 : vector<1x10x64xf32>
    %c0_155 = arith.constant 0 : index
    %c0_156 = arith.constant 0 : index
    %c0_157 = arith.constant 0 : index
    %276 = vector.load %arg14[%c0_155, %c0_156, %c0_157] : memref<2x64x32xf32, #tpu.memory_space<vmem>>, vector<1x64x32xf32>
    %277 = vector.shape_cast %276 : vector<1x64x32xf32> to vector<64x32xf32>
    %c0_158 = arith.constant 0 : index
    %c0_159 = arith.constant 0 : index
    %c0_160 = arith.constant 0 : index
    %278 = vector.load %arg15[%c0_158, %c0_159, %c0_160] : memref<2x1x32xf32, #tpu.memory_space<vmem>>, vector<1x1x32xf32>
    %279 = vector.shape_cast %278 : vector<1x1x32xf32> to vector<1x32xf32>
    %280 = vector.shape_cast %277 : vector<64x32xf32> to vector<1x64x32xf32>
    "tpu.trace_start"() <{level = 10 : i32, message = "btd,bde->bte"}> : () -> ()
    %cst_161 = arith.constant dense<0.000000e+00> : vector<1x10x32xf32>
    %281 = tpu.matmul %275, %280, %cst_161 {dimension_numbers = #tpu.dot_dimension_numbers<[2], [1], [1], [2], [0, 0, 0, 1, 1, 2], [0], [0]>} : vector<1x10x64xf32>, vector<1x64x32xf32>, vector<1x10x32xf32> -> vector<1x10x32xf32>
    "tpu.trace_stop"() : () -> ()
    %282 = vector.shape_cast %279 : vector<1x32xf32> to vector<1x1x32xf32>
    %283 = vector.broadcast %282 : vector<1x1x32xf32> to vector<1x10x32xf32>
    %284 = arith.addf %281, %283 : vector<1x10x32xf32>
    %285 = arith.addf %236, %284 : vector<1x10x32xf32>
    %c2_162 = arith.constant 2 : index
    %c0_163 = arith.constant 0 : index
    %c0_164 = arith.constant 0 : index
    %286 = vector.load %arg10[%c2_162, %c0_163, %c0_164] : memref<4x1x32xf32, #tpu.memory_space<vmem>>, vector<1x1x32xf32>
    %287 = vector.shape_cast %286 : vector<1x1x32xf32> to vector<1x32xf32>
    %c2_165 = arith.constant 2 : index
    %c0_166 = arith.constant 0 : index
    %c0_167 = arith.constant 0 : index
    %288 = vector.load %arg11[%c2_165, %c0_166, %c0_167] : memref<4x1x32xf32, #tpu.memory_space<vmem>>, vector<1x1x32xf32>
    %289 = vector.shape_cast %288 : vector<1x1x32xf32> to vector<1x32xf32>
    %cst_168 = arith.constant dense<0.000000e+00> : vector<1x10xf32>
    %290 = vector.multi_reduction <add>, %285, %cst_168 [2] : vector<1x10x32xf32> to vector<1x10xf32>
    %291 = vector.shape_cast %290 : vector<1x10xf32> to vector<1x10x1xf32>
    %cst_169 = arith.constant 3.200000e+01 : f32
    %292 = vector.broadcast %cst_169 : f32 to vector<1x10x1xf32>
    %293 = arith.divf %291, %292 : vector<1x10x1xf32>
    %294 = vector.broadcast %293 : vector<1x10x1xf32> to vector<1x10x32xf32>
    %295 = arith.subf %285, %294 : vector<1x10x32xf32>
    %296 = arith.mulf %295, %295 : vector<1x10x32xf32>
    %cst_170 = arith.constant dense<0.000000e+00> : vector<1x10xf32>
    %297 = vector.multi_reduction <add>, %296, %cst_170 [2] : vector<1x10x32xf32> to vector<1x10xf32>
    %298 = vector.shape_cast %297 : vector<1x10xf32> to vector<1x10x1xf32>
    %cst_171 = arith.constant 3.100000e+01 : f32
    %299 = vector.broadcast %cst_171 : f32 to vector<1x10x1xf32>
    %300 = arith.divf %298, %299 : vector<1x10x1xf32>
    %301 = vector.broadcast %293 : vector<1x10x1xf32> to vector<1x10x32xf32>
    %302 = arith.subf %285, %301 : vector<1x10x32xf32>
    %303 = vector.shape_cast %287 : vector<1x32xf32> to vector<1x1x32xf32>
    %304 = vector.broadcast %303 : vector<1x1x32xf32> to vector<1x10x32xf32>
    %305 = arith.mulf %304, %302 : vector<1x10x32xf32>
    %306 = math.sqrt %300 : vector<1x10x1xf32>
    %cst_172 = arith.constant 9.99999997E-7 : f32
    %307 = vector.broadcast %cst_172 : f32 to vector<1x10x1xf32>
    %308 = arith.addf %306, %307 : vector<1x10x1xf32>
    %309 = vector.broadcast %308 : vector<1x10x1xf32> to vector<1x10x32xf32>
    %310 = arith.divf %305, %309 : vector<1x10x32xf32>
    %311 = vector.shape_cast %289 : vector<1x32xf32> to vector<1x1x32xf32>
    %312 = vector.broadcast %311 : vector<1x1x32xf32> to vector<1x10x32xf32>
    %313 = arith.addf %310, %312 : vector<1x10x32xf32>
    %cst_173 = arith.constant 0.000000e+00 : f32
    %314 = vector.broadcast %cst_173 : f32 to vector<1x10x32xf32>
    %c4 = arith.constant 4 : index
    %c0_174 = arith.constant 0 : index
    %c0_175 = arith.constant 0 : index
    %315 = vector.load %arg6[%c4, %c0_174, %c0_175] : memref<24x32x8xf32, #tpu.memory_space<vmem>>, vector<1x32x8xf32>
    %316 = vector.shape_cast %315 : vector<1x32x8xf32> to vector<32x8xf32>
    %c4_176 = arith.constant 4 : index
    %c0_177 = arith.constant 0 : index
    %c0_178 = arith.constant 0 : index
    %317 = vector.load %arg7[%c4_176, %c0_177, %c0_178] : memref<24x1x8xf32, #tpu.memory_space<vmem>>, vector<1x1x8xf32>
    %318 = vector.shape_cast %317 : vector<1x1x8xf32> to vector<1x8xf32>
    %319 = vector.shape_cast %316 : vector<32x8xf32> to vector<1x32x8xf32>
    "tpu.trace_start"() <{level = 10 : i32, message = "btd,bde->bte"}> : () -> ()
    %cst_179 = arith.constant dense<0.000000e+00> : vector<1x10x8xf32>
    %320 = tpu.matmul %313, %319, %cst_179 {dimension_numbers = #tpu.dot_dimension_numbers<[2], [1], [1], [2], [0, 0, 0, 1, 1, 2], [0], [0]>} : vector<1x10x32xf32>, vector<1x32x8xf32>, vector<1x10x8xf32> -> vector<1x10x8xf32>
    "tpu.trace_stop"() : () -> ()
    %321 = vector.shape_cast %318 : vector<1x8xf32> to vector<1x1x8xf32>
    %322 = vector.broadcast %321 : vector<1x1x8xf32> to vector<1x10x8xf32>
    %323 = arith.addf %320, %322 : vector<1x10x8xf32>
    %c12 = arith.constant 12 : index
    %c0_180 = arith.constant 0 : index
    %c0_181 = arith.constant 0 : index
    %324 = vector.load %arg6[%c12, %c0_180, %c0_181] : memref<24x32x8xf32, #tpu.memory_space<vmem>>, vector<1x32x8xf32>
    %325 = vector.shape_cast %324 : vector<1x32x8xf32> to vector<32x8xf32>
    %c12_182 = arith.constant 12 : index
    %c0_183 = arith.constant 0 : index
    %c0_184 = arith.constant 0 : index
    %326 = vector.load %arg7[%c12_182, %c0_183, %c0_184] : memref<24x1x8xf32, #tpu.memory_space<vmem>>, vector<1x1x8xf32>
    %327 = vector.shape_cast %326 : vector<1x1x8xf32> to vector<1x8xf32>
    %328 = vector.shape_cast %325 : vector<32x8xf32> to vector<1x32x8xf32>
    "tpu.trace_start"() <{level = 10 : i32, message = "btd,bde->bte"}> : () -> ()
    %cst_185 = arith.constant dense<0.000000e+00> : vector<1x10x8xf32>
    %329 = tpu.matmul %313, %328, %cst_185 {dimension_numbers = #tpu.dot_dimension_numbers<[2], [1], [1], [2], [0, 0, 0, 1, 1, 2], [0], [0]>} : vector<1x10x32xf32>, vector<1x32x8xf32>, vector<1x10x8xf32> -> vector<1x10x8xf32>
    "tpu.trace_stop"() : () -> ()
    %330 = vector.shape_cast %327 : vector<1x8xf32> to vector<1x1x8xf32>
    %331 = vector.broadcast %330 : vector<1x1x8xf32> to vector<1x10x8xf32>
    %332 = arith.addf %329, %331 : vector<1x10x8xf32>
    %c20 = arith.constant 20 : index
    %c0_186 = arith.constant 0 : index
    %c0_187 = arith.constant 0 : index
    %333 = vector.load %arg6[%c20, %c0_186, %c0_187] : memref<24x32x8xf32, #tpu.memory_space<vmem>>, vector<1x32x8xf32>
    %334 = vector.shape_cast %333 : vector<1x32x8xf32> to vector<32x8xf32>
    %c20_188 = arith.constant 20 : index
    %c0_189 = arith.constant 0 : index
    %c0_190 = arith.constant 0 : index
    %335 = vector.load %arg7[%c20_188, %c0_189, %c0_190] : memref<24x1x8xf32, #tpu.memory_space<vmem>>, vector<1x1x8xf32>
    %336 = vector.shape_cast %335 : vector<1x1x8xf32> to vector<1x8xf32>
    %337 = vector.shape_cast %334 : vector<32x8xf32> to vector<1x32x8xf32>
    "tpu.trace_start"() <{level = 10 : i32, message = "btd,bde->bte"}> : () -> ()
    %cst_191 = arith.constant dense<0.000000e+00> : vector<1x10x8xf32>
    %338 = tpu.matmul %313, %337, %cst_191 {dimension_numbers = #tpu.dot_dimension_numbers<[2], [1], [1], [2], [0, 0, 0, 1, 1, 2], [0], [0]>} : vector<1x10x32xf32>, vector<1x32x8xf32>, vector<1x10x8xf32> -> vector<1x10x8xf32>
    "tpu.trace_stop"() : () -> ()
    %339 = vector.shape_cast %336 : vector<1x8xf32> to vector<1x1x8xf32>
    %340 = vector.broadcast %339 : vector<1x1x8xf32> to vector<1x10x8xf32>
    %341 = arith.addf %338, %340 : vector<1x10x8xf32>
    "tpu.trace_start"() <{level = 10 : i32, message = "bqd,bkd->bqk"}> : () -> ()
    %cst_192 = arith.constant dense<0.000000e+00> : vector<1x10x10xf32>
    %342 = tpu.matmul %323, %332, %cst_192 {dimension_numbers = #tpu.dot_dimension_numbers<[2], [2], [1], [1], [0, 0, 0, 1, 1, 1], [0], [0]>} : vector<1x10x8xf32>, vector<1x10x8xf32>, vector<1x10x10xf32> -> vector<1x10x10xf32>
    "tpu.trace_stop"() : () -> ()
    %cst_193 = arith.constant 0.353553385 : f32
    %343 = vector.broadcast %cst_193 : f32 to vector<1x10x10xf32>
    %344 = arith.mulf %342, %343 : vector<1x10x10xf32>
    %cst_194 = arith.constant 0.000000e+00 : f32
    %345 = vector.broadcast %cst_194 : f32 to vector<1x10x10xf32>
    %346 = arith.cmpf oeq, %1, %345 : vector<1x10x10xf32>
    %cst_195 = arith.constant -1.000000e+09 : f32
    %347 = vector.broadcast %cst_195 : f32 to vector<1x10x10xf32>
    %348 = arith.select %346, %347, %344 : vector<1x10x10xi1>, vector<1x10x10xf32>
    %cst_196 = arith.constant dense<0xFF800000> : vector<1x10xf32>
    %349 = vector.multi_reduction <maximumf>, %348, %cst_196 [2] : vector<1x10x10xf32> to vector<1x10xf32>
    %350 = vector.shape_cast %349 : vector<1x10xf32> to vector<1x10x1xf32>
    %351 = vector.broadcast %350 : vector<1x10x1xf32> to vector<1x10x10xf32>
    %352 = arith.subf %348, %351 : vector<1x10x10xf32>
    %353 = math.exp %352 : vector<1x10x10xf32>
    %cst_197 = arith.constant dense<0.000000e+00> : vector<1x10xf32>
    %354 = vector.multi_reduction <add>, %353, %cst_197 [2] : vector<1x10x10xf32> to vector<1x10xf32>
    %355 = vector.shape_cast %354 : vector<1x10xf32> to vector<1x10x1xf32>
    %356 = tpu.reciprocal %355 {approx = true} : vector<1x10x1xf32> -> vector<1x10x1xf32>
    %357 = vector.broadcast %356 : vector<1x10x1xf32> to vector<1x10x10xf32>
    %358 = arith.mulf %353, %357 : vector<1x10x10xf32>
    "tpu.trace_start"() <{level = 10 : i32, message = "bqk,bkd->bqd"}> : () -> ()
    %cst_198 = arith.constant dense<0.000000e+00> : vector<1x10x8xf32>
    %359 = tpu.matmul %358, %341, %cst_198 {dimension_numbers = #tpu.dot_dimension_numbers<[2], [1], [1], [2], [0, 0, 0, 1, 1, 2], [0], [0]>} : vector<1x10x10xf32>, vector<1x10x8xf32>, vector<1x10x8xf32> -> vector<1x10x8xf32>
    "tpu.trace_stop"() : () -> ()
    %c4_199 = arith.constant 4 : index
    %c0_200 = arith.constant 0 : index
    %c0_201 = arith.constant 0 : index
    %360 = vector.load %arg8[%c4_199, %c0_200, %c0_201] : memref<8x8x32xf32, #tpu.memory_space<vmem>>, vector<1x8x32xf32>
    %361 = vector.shape_cast %360 : vector<1x8x32xf32> to vector<8x32xf32>
    %362 = vector.shape_cast %361 : vector<8x32xf32> to vector<1x8x32xf32>
    "tpu.trace_start"() <{level = 10 : i32, message = "btd,bde->bte"}> : () -> ()
    %cst_202 = arith.constant dense<0.000000e+00> : vector<1x10x32xf32>
    %363 = tpu.matmul %359, %362, %cst_202 {dimension_numbers = #tpu.dot_dimension_numbers<[2], [1], [1], [2], [0, 0, 0, 1, 1, 2], [0], [0]>} : vector<1x10x8xf32>, vector<1x8x32xf32>, vector<1x10x32xf32> -> vector<1x10x32xf32>
    "tpu.trace_stop"() : () -> ()
    %364 = arith.addf %314, %363 : vector<1x10x32xf32>
    %c5 = arith.constant 5 : index
    %c0_203 = arith.constant 0 : index
    %c0_204 = arith.constant 0 : index
    %365 = vector.load %arg6[%c5, %c0_203, %c0_204] : memref<24x32x8xf32, #tpu.memory_space<vmem>>, vector<1x32x8xf32>
    %366 = vector.shape_cast %365 : vector<1x32x8xf32> to vector<32x8xf32>
    %c5_205 = arith.constant 5 : index
    %c0_206 = arith.constant 0 : index
    %c0_207 = arith.constant 0 : index
    %367 = vector.load %arg7[%c5_205, %c0_206, %c0_207] : memref<24x1x8xf32, #tpu.memory_space<vmem>>, vector<1x1x8xf32>
    %368 = vector.shape_cast %367 : vector<1x1x8xf32> to vector<1x8xf32>
    %369 = vector.shape_cast %366 : vector<32x8xf32> to vector<1x32x8xf32>
    "tpu.trace_start"() <{level = 10 : i32, message = "btd,bde->bte"}> : () -> ()
    %cst_208 = arith.constant dense<0.000000e+00> : vector<1x10x8xf32>
    %370 = tpu.matmul %313, %369, %cst_208 {dimension_numbers = #tpu.dot_dimension_numbers<[2], [1], [1], [2], [0, 0, 0, 1, 1, 2], [0], [0]>} : vector<1x10x32xf32>, vector<1x32x8xf32>, vector<1x10x8xf32> -> vector<1x10x8xf32>
    "tpu.trace_stop"() : () -> ()
    %371 = vector.shape_cast %368 : vector<1x8xf32> to vector<1x1x8xf32>
    %372 = vector.broadcast %371 : vector<1x1x8xf32> to vector<1x10x8xf32>
    %373 = arith.addf %370, %372 : vector<1x10x8xf32>
    %c13 = arith.constant 13 : index
    %c0_209 = arith.constant 0 : index
    %c0_210 = arith.constant 0 : index
    %374 = vector.load %arg6[%c13, %c0_209, %c0_210] : memref<24x32x8xf32, #tpu.memory_space<vmem>>, vector<1x32x8xf32>
    %375 = vector.shape_cast %374 : vector<1x32x8xf32> to vector<32x8xf32>
    %c13_211 = arith.constant 13 : index
    %c0_212 = arith.constant 0 : index
    %c0_213 = arith.constant 0 : index
    %376 = vector.load %arg7[%c13_211, %c0_212, %c0_213] : memref<24x1x8xf32, #tpu.memory_space<vmem>>, vector<1x1x8xf32>
    %377 = vector.shape_cast %376 : vector<1x1x8xf32> to vector<1x8xf32>
    %378 = vector.shape_cast %375 : vector<32x8xf32> to vector<1x32x8xf32>
    "tpu.trace_start"() <{level = 10 : i32, message = "btd,bde->bte"}> : () -> ()
    %cst_214 = arith.constant dense<0.000000e+00> : vector<1x10x8xf32>
    %379 = tpu.matmul %313, %378, %cst_214 {dimension_numbers = #tpu.dot_dimension_numbers<[2], [1], [1], [2], [0, 0, 0, 1, 1, 2], [0], [0]>} : vector<1x10x32xf32>, vector<1x32x8xf32>, vector<1x10x8xf32> -> vector<1x10x8xf32>
    "tpu.trace_stop"() : () -> ()
    %380 = vector.shape_cast %377 : vector<1x8xf32> to vector<1x1x8xf32>
    %381 = vector.broadcast %380 : vector<1x1x8xf32> to vector<1x10x8xf32>
    %382 = arith.addf %379, %381 : vector<1x10x8xf32>
    %c21 = arith.constant 21 : index
    %c0_215 = arith.constant 0 : index
    %c0_216 = arith.constant 0 : index
    %383 = vector.load %arg6[%c21, %c0_215, %c0_216] : memref<24x32x8xf32, #tpu.memory_space<vmem>>, vector<1x32x8xf32>
    %384 = vector.shape_cast %383 : vector<1x32x8xf32> to vector<32x8xf32>
    %c21_217 = arith.constant 21 : index
    %c0_218 = arith.constant 0 : index
    %c0_219 = arith.constant 0 : index
    %385 = vector.load %arg7[%c21_217, %c0_218, %c0_219] : memref<24x1x8xf32, #tpu.memory_space<vmem>>, vector<1x1x8xf32>
    %386 = vector.shape_cast %385 : vector<1x1x8xf32> to vector<1x8xf32>
    %387 = vector.shape_cast %384 : vector<32x8xf32> to vector<1x32x8xf32>
    "tpu.trace_start"() <{level = 10 : i32, message = "btd,bde->bte"}> : () -> ()
    %cst_220 = arith.constant dense<0.000000e+00> : vector<1x10x8xf32>
    %388 = tpu.matmul %313, %387, %cst_220 {dimension_numbers = #tpu.dot_dimension_numbers<[2], [1], [1], [2], [0, 0, 0, 1, 1, 2], [0], [0]>} : vector<1x10x32xf32>, vector<1x32x8xf32>, vector<1x10x8xf32> -> vector<1x10x8xf32>
    "tpu.trace_stop"() : () -> ()
    %389 = vector.shape_cast %386 : vector<1x8xf32> to vector<1x1x8xf32>
    %390 = vector.broadcast %389 : vector<1x1x8xf32> to vector<1x10x8xf32>
    %391 = arith.addf %388, %390 : vector<1x10x8xf32>
    "tpu.trace_start"() <{level = 10 : i32, message = "bqd,bkd->bqk"}> : () -> ()
    %cst_221 = arith.constant dense<0.000000e+00> : vector<1x10x10xf32>
    %392 = tpu.matmul %373, %382, %cst_221 {dimension_numbers = #tpu.dot_dimension_numbers<[2], [2], [1], [1], [0, 0, 0, 1, 1, 1], [0], [0]>} : vector<1x10x8xf32>, vector<1x10x8xf32>, vector<1x10x10xf32> -> vector<1x10x10xf32>
    "tpu.trace_stop"() : () -> ()
    %cst_222 = arith.constant 0.353553385 : f32
    %393 = vector.broadcast %cst_222 : f32 to vector<1x10x10xf32>
    %394 = arith.mulf %392, %393 : vector<1x10x10xf32>
    %cst_223 = arith.constant 0.000000e+00 : f32
    %395 = vector.broadcast %cst_223 : f32 to vector<1x10x10xf32>
    %396 = arith.cmpf oeq, %1, %395 : vector<1x10x10xf32>
    %cst_224 = arith.constant -1.000000e+09 : f32
    %397 = vector.broadcast %cst_224 : f32 to vector<1x10x10xf32>
    %398 = arith.select %396, %397, %394 : vector<1x10x10xi1>, vector<1x10x10xf32>
    %cst_225 = arith.constant dense<0xFF800000> : vector<1x10xf32>
    %399 = vector.multi_reduction <maximumf>, %398, %cst_225 [2] : vector<1x10x10xf32> to vector<1x10xf32>
    %400 = vector.shape_cast %399 : vector<1x10xf32> to vector<1x10x1xf32>
    %401 = vector.broadcast %400 : vector<1x10x1xf32> to vector<1x10x10xf32>
    %402 = arith.subf %398, %401 : vector<1x10x10xf32>
    %403 = math.exp %402 : vector<1x10x10xf32>
    %cst_226 = arith.constant dense<0.000000e+00> : vector<1x10xf32>
    %404 = vector.multi_reduction <add>, %403, %cst_226 [2] : vector<1x10x10xf32> to vector<1x10xf32>
    %405 = vector.shape_cast %404 : vector<1x10xf32> to vector<1x10x1xf32>
    %406 = tpu.reciprocal %405 {approx = true} : vector<1x10x1xf32> -> vector<1x10x1xf32>
    %407 = vector.broadcast %406 : vector<1x10x1xf32> to vector<1x10x10xf32>
    %408 = arith.mulf %403, %407 : vector<1x10x10xf32>
    "tpu.trace_start"() <{level = 10 : i32, message = "bqk,bkd->bqd"}> : () -> ()
    %cst_227 = arith.constant dense<0.000000e+00> : vector<1x10x8xf32>
    %409 = tpu.matmul %408, %391, %cst_227 {dimension_numbers = #tpu.dot_dimension_numbers<[2], [1], [1], [2], [0, 0, 0, 1, 1, 2], [0], [0]>} : vector<1x10x10xf32>, vector<1x10x8xf32>, vector<1x10x8xf32> -> vector<1x10x8xf32>
    "tpu.trace_stop"() : () -> ()
    %c5_228 = arith.constant 5 : index
    %c0_229 = arith.constant 0 : index
    %c0_230 = arith.constant 0 : index
    %410 = vector.load %arg8[%c5_228, %c0_229, %c0_230] : memref<8x8x32xf32, #tpu.memory_space<vmem>>, vector<1x8x32xf32>
    %411 = vector.shape_cast %410 : vector<1x8x32xf32> to vector<8x32xf32>
    %412 = vector.shape_cast %411 : vector<8x32xf32> to vector<1x8x32xf32>
    "tpu.trace_start"() <{level = 10 : i32, message = "btd,bde->bte"}> : () -> ()
    %cst_231 = arith.constant dense<0.000000e+00> : vector<1x10x32xf32>
    %413 = tpu.matmul %409, %412, %cst_231 {dimension_numbers = #tpu.dot_dimension_numbers<[2], [1], [1], [2], [0, 0, 0, 1, 1, 2], [0], [0]>} : vector<1x10x8xf32>, vector<1x8x32xf32>, vector<1x10x32xf32> -> vector<1x10x32xf32>
    "tpu.trace_stop"() : () -> ()
    %414 = arith.addf %364, %413 : vector<1x10x32xf32>
    %c6 = arith.constant 6 : index
    %c0_232 = arith.constant 0 : index
    %c0_233 = arith.constant 0 : index
    %415 = vector.load %arg6[%c6, %c0_232, %c0_233] : memref<24x32x8xf32, #tpu.memory_space<vmem>>, vector<1x32x8xf32>
    %416 = vector.shape_cast %415 : vector<1x32x8xf32> to vector<32x8xf32>
    %c6_234 = arith.constant 6 : index
    %c0_235 = arith.constant 0 : index
    %c0_236 = arith.constant 0 : index
    %417 = vector.load %arg7[%c6_234, %c0_235, %c0_236] : memref<24x1x8xf32, #tpu.memory_space<vmem>>, vector<1x1x8xf32>
    %418 = vector.shape_cast %417 : vector<1x1x8xf32> to vector<1x8xf32>
    %419 = vector.shape_cast %416 : vector<32x8xf32> to vector<1x32x8xf32>
    "tpu.trace_start"() <{level = 10 : i32, message = "btd,bde->bte"}> : () -> ()
    %cst_237 = arith.constant dense<0.000000e+00> : vector<1x10x8xf32>
    %420 = tpu.matmul %313, %419, %cst_237 {dimension_numbers = #tpu.dot_dimension_numbers<[2], [1], [1], [2], [0, 0, 0, 1, 1, 2], [0], [0]>} : vector<1x10x32xf32>, vector<1x32x8xf32>, vector<1x10x8xf32> -> vector<1x10x8xf32>
    "tpu.trace_stop"() : () -> ()
    %421 = vector.shape_cast %418 : vector<1x8xf32> to vector<1x1x8xf32>
    %422 = vector.broadcast %421 : vector<1x1x8xf32> to vector<1x10x8xf32>
    %423 = arith.addf %420, %422 : vector<1x10x8xf32>
    %c14 = arith.constant 14 : index
    %c0_238 = arith.constant 0 : index
    %c0_239 = arith.constant 0 : index
    %424 = vector.load %arg6[%c14, %c0_238, %c0_239] : memref<24x32x8xf32, #tpu.memory_space<vmem>>, vector<1x32x8xf32>
    %425 = vector.shape_cast %424 : vector<1x32x8xf32> to vector<32x8xf32>
    %c14_240 = arith.constant 14 : index
    %c0_241 = arith.constant 0 : index
    %c0_242 = arith.constant 0 : index
    %426 = vector.load %arg7[%c14_240, %c0_241, %c0_242] : memref<24x1x8xf32, #tpu.memory_space<vmem>>, vector<1x1x8xf32>
    %427 = vector.shape_cast %426 : vector<1x1x8xf32> to vector<1x8xf32>
    %428 = vector.shape_cast %425 : vector<32x8xf32> to vector<1x32x8xf32>
    "tpu.trace_start"() <{level = 10 : i32, message = "btd,bde->bte"}> : () -> ()
    %cst_243 = arith.constant dense<0.000000e+00> : vector<1x10x8xf32>
    %429 = tpu.matmul %313, %428, %cst_243 {dimension_numbers = #tpu.dot_dimension_numbers<[2], [1], [1], [2], [0, 0, 0, 1, 1, 2], [0], [0]>} : vector<1x10x32xf32>, vector<1x32x8xf32>, vector<1x10x8xf32> -> vector<1x10x8xf32>
    "tpu.trace_stop"() : () -> ()
    %430 = vector.shape_cast %427 : vector<1x8xf32> to vector<1x1x8xf32>
    %431 = vector.broadcast %430 : vector<1x1x8xf32> to vector<1x10x8xf32>
    %432 = arith.addf %429, %431 : vector<1x10x8xf32>
    %c22 = arith.constant 22 : index
    %c0_244 = arith.constant 0 : index
    %c0_245 = arith.constant 0 : index
    %433 = vector.load %arg6[%c22, %c0_244, %c0_245] : memref<24x32x8xf32, #tpu.memory_space<vmem>>, vector<1x32x8xf32>
    %434 = vector.shape_cast %433 : vector<1x32x8xf32> to vector<32x8xf32>
    %c22_246 = arith.constant 22 : index
    %c0_247 = arith.constant 0 : index
    %c0_248 = arith.constant 0 : index
    %435 = vector.load %arg7[%c22_246, %c0_247, %c0_248] : memref<24x1x8xf32, #tpu.memory_space<vmem>>, vector<1x1x8xf32>
    %436 = vector.shape_cast %435 : vector<1x1x8xf32> to vector<1x8xf32>
    %437 = vector.shape_cast %434 : vector<32x8xf32> to vector<1x32x8xf32>
    "tpu.trace_start"() <{level = 10 : i32, message = "btd,bde->bte"}> : () -> ()
    %cst_249 = arith.constant dense<0.000000e+00> : vector<1x10x8xf32>
    %438 = tpu.matmul %313, %437, %cst_249 {dimension_numbers = #tpu.dot_dimension_numbers<[2], [1], [1], [2], [0, 0, 0, 1, 1, 2], [0], [0]>} : vector<1x10x32xf32>, vector<1x32x8xf32>, vector<1x10x8xf32> -> vector<1x10x8xf32>
    "tpu.trace_stop"() : () -> ()
    %439 = vector.shape_cast %436 : vector<1x8xf32> to vector<1x1x8xf32>
    %440 = vector.broadcast %439 : vector<1x1x8xf32> to vector<1x10x8xf32>
    %441 = arith.addf %438, %440 : vector<1x10x8xf32>
    "tpu.trace_start"() <{level = 10 : i32, message = "bqd,bkd->bqk"}> : () -> ()
    %cst_250 = arith.constant dense<0.000000e+00> : vector<1x10x10xf32>
    %442 = tpu.matmul %423, %432, %cst_250 {dimension_numbers = #tpu.dot_dimension_numbers<[2], [2], [1], [1], [0, 0, 0, 1, 1, 1], [0], [0]>} : vector<1x10x8xf32>, vector<1x10x8xf32>, vector<1x10x10xf32> -> vector<1x10x10xf32>
    "tpu.trace_stop"() : () -> ()
    %cst_251 = arith.constant 0.353553385 : f32
    %443 = vector.broadcast %cst_251 : f32 to vector<1x10x10xf32>
    %444 = arith.mulf %442, %443 : vector<1x10x10xf32>
    %cst_252 = arith.constant 0.000000e+00 : f32
    %445 = vector.broadcast %cst_252 : f32 to vector<1x10x10xf32>
    %446 = arith.cmpf oeq, %1, %445 : vector<1x10x10xf32>
    %cst_253 = arith.constant -1.000000e+09 : f32
    %447 = vector.broadcast %cst_253 : f32 to vector<1x10x10xf32>
    %448 = arith.select %446, %447, %444 : vector<1x10x10xi1>, vector<1x10x10xf32>
    %cst_254 = arith.constant dense<0xFF800000> : vector<1x10xf32>
    %449 = vector.multi_reduction <maximumf>, %448, %cst_254 [2] : vector<1x10x10xf32> to vector<1x10xf32>
    %450 = vector.shape_cast %449 : vector<1x10xf32> to vector<1x10x1xf32>
    %451 = vector.broadcast %450 : vector<1x10x1xf32> to vector<1x10x10xf32>
    %452 = arith.subf %448, %451 : vector<1x10x10xf32>
    %453 = math.exp %452 : vector<1x10x10xf32>
    %cst_255 = arith.constant dense<0.000000e+00> : vector<1x10xf32>
    %454 = vector.multi_reduction <add>, %453, %cst_255 [2] : vector<1x10x10xf32> to vector<1x10xf32>
    %455 = vector.shape_cast %454 : vector<1x10xf32> to vector<1x10x1xf32>
    %456 = tpu.reciprocal %455 {approx = true} : vector<1x10x1xf32> -> vector<1x10x1xf32>
    %457 = vector.broadcast %456 : vector<1x10x1xf32> to vector<1x10x10xf32>
    %458 = arith.mulf %453, %457 : vector<1x10x10xf32>
    "tpu.trace_start"() <{level = 10 : i32, message = "bqk,bkd->bqd"}> : () -> ()
    %cst_256 = arith.constant dense<0.000000e+00> : vector<1x10x8xf32>
    %459 = tpu.matmul %458, %441, %cst_256 {dimension_numbers = #tpu.dot_dimension_numbers<[2], [1], [1], [2], [0, 0, 0, 1, 1, 2], [0], [0]>} : vector<1x10x10xf32>, vector<1x10x8xf32>, vector<1x10x8xf32> -> vector<1x10x8xf32>
    "tpu.trace_stop"() : () -> ()
    %c6_257 = arith.constant 6 : index
    %c0_258 = arith.constant 0 : index
    %c0_259 = arith.constant 0 : index
    %460 = vector.load %arg8[%c6_257, %c0_258, %c0_259] : memref<8x8x32xf32, #tpu.memory_space<vmem>>, vector<1x8x32xf32>
    %461 = vector.shape_cast %460 : vector<1x8x32xf32> to vector<8x32xf32>
    %462 = vector.shape_cast %461 : vector<8x32xf32> to vector<1x8x32xf32>
    "tpu.trace_start"() <{level = 10 : i32, message = "btd,bde->bte"}> : () -> ()
    %cst_260 = arith.constant dense<0.000000e+00> : vector<1x10x32xf32>
    %463 = tpu.matmul %459, %462, %cst_260 {dimension_numbers = #tpu.dot_dimension_numbers<[2], [1], [1], [2], [0, 0, 0, 1, 1, 2], [0], [0]>} : vector<1x10x8xf32>, vector<1x8x32xf32>, vector<1x10x32xf32> -> vector<1x10x32xf32>
    "tpu.trace_stop"() : () -> ()
    %464 = arith.addf %414, %463 : vector<1x10x32xf32>
    %c7 = arith.constant 7 : index
    %c0_261 = arith.constant 0 : index
    %c0_262 = arith.constant 0 : index
    %465 = vector.load %arg6[%c7, %c0_261, %c0_262] : memref<24x32x8xf32, #tpu.memory_space<vmem>>, vector<1x32x8xf32>
    %466 = vector.shape_cast %465 : vector<1x32x8xf32> to vector<32x8xf32>
    %c7_263 = arith.constant 7 : index
    %c0_264 = arith.constant 0 : index
    %c0_265 = arith.constant 0 : index
    %467 = vector.load %arg7[%c7_263, %c0_264, %c0_265] : memref<24x1x8xf32, #tpu.memory_space<vmem>>, vector<1x1x8xf32>
    %468 = vector.shape_cast %467 : vector<1x1x8xf32> to vector<1x8xf32>
    %469 = vector.shape_cast %466 : vector<32x8xf32> to vector<1x32x8xf32>
    "tpu.trace_start"() <{level = 10 : i32, message = "btd,bde->bte"}> : () -> ()
    %cst_266 = arith.constant dense<0.000000e+00> : vector<1x10x8xf32>
    %470 = tpu.matmul %313, %469, %cst_266 {dimension_numbers = #tpu.dot_dimension_numbers<[2], [1], [1], [2], [0, 0, 0, 1, 1, 2], [0], [0]>} : vector<1x10x32xf32>, vector<1x32x8xf32>, vector<1x10x8xf32> -> vector<1x10x8xf32>
    "tpu.trace_stop"() : () -> ()
    %471 = vector.shape_cast %468 : vector<1x8xf32> to vector<1x1x8xf32>
    %472 = vector.broadcast %471 : vector<1x1x8xf32> to vector<1x10x8xf32>
    %473 = arith.addf %470, %472 : vector<1x10x8xf32>
    %c15 = arith.constant 15 : index
    %c0_267 = arith.constant 0 : index
    %c0_268 = arith.constant 0 : index
    %474 = vector.load %arg6[%c15, %c0_267, %c0_268] : memref<24x32x8xf32, #tpu.memory_space<vmem>>, vector<1x32x8xf32>
    %475 = vector.shape_cast %474 : vector<1x32x8xf32> to vector<32x8xf32>
    %c15_269 = arith.constant 15 : index
    %c0_270 = arith.constant 0 : index
    %c0_271 = arith.constant 0 : index
    %476 = vector.load %arg7[%c15_269, %c0_270, %c0_271] : memref<24x1x8xf32, #tpu.memory_space<vmem>>, vector<1x1x8xf32>
    %477 = vector.shape_cast %476 : vector<1x1x8xf32> to vector<1x8xf32>
    %478 = vector.shape_cast %475 : vector<32x8xf32> to vector<1x32x8xf32>
    "tpu.trace_start"() <{level = 10 : i32, message = "btd,bde->bte"}> : () -> ()
    %cst_272 = arith.constant dense<0.000000e+00> : vector<1x10x8xf32>
    %479 = tpu.matmul %313, %478, %cst_272 {dimension_numbers = #tpu.dot_dimension_numbers<[2], [1], [1], [2], [0, 0, 0, 1, 1, 2], [0], [0]>} : vector<1x10x32xf32>, vector<1x32x8xf32>, vector<1x10x8xf32> -> vector<1x10x8xf32>
    "tpu.trace_stop"() : () -> ()
    %480 = vector.shape_cast %477 : vector<1x8xf32> to vector<1x1x8xf32>
    %481 = vector.broadcast %480 : vector<1x1x8xf32> to vector<1x10x8xf32>
    %482 = arith.addf %479, %481 : vector<1x10x8xf32>
    %c23 = arith.constant 23 : index
    %c0_273 = arith.constant 0 : index
    %c0_274 = arith.constant 0 : index
    %483 = vector.load %arg6[%c23, %c0_273, %c0_274] : memref<24x32x8xf32, #tpu.memory_space<vmem>>, vector<1x32x8xf32>
    %484 = vector.shape_cast %483 : vector<1x32x8xf32> to vector<32x8xf32>
    %c23_275 = arith.constant 23 : index
    %c0_276 = arith.constant 0 : index
    %c0_277 = arith.constant 0 : index
    %485 = vector.load %arg7[%c23_275, %c0_276, %c0_277] : memref<24x1x8xf32, #tpu.memory_space<vmem>>, vector<1x1x8xf32>
    %486 = vector.shape_cast %485 : vector<1x1x8xf32> to vector<1x8xf32>
    %487 = vector.shape_cast %484 : vector<32x8xf32> to vector<1x32x8xf32>
    "tpu.trace_start"() <{level = 10 : i32, message = "btd,bde->bte"}> : () -> ()
    %cst_278 = arith.constant dense<0.000000e+00> : vector<1x10x8xf32>
    %488 = tpu.matmul %313, %487, %cst_278 {dimension_numbers = #tpu.dot_dimension_numbers<[2], [1], [1], [2], [0, 0, 0, 1, 1, 2], [0], [0]>} : vector<1x10x32xf32>, vector<1x32x8xf32>, vector<1x10x8xf32> -> vector<1x10x8xf32>
    "tpu.trace_stop"() : () -> ()
    %489 = vector.shape_cast %486 : vector<1x8xf32> to vector<1x1x8xf32>
    %490 = vector.broadcast %489 : vector<1x1x8xf32> to vector<1x10x8xf32>
    %491 = arith.addf %488, %490 : vector<1x10x8xf32>
    "tpu.trace_start"() <{level = 10 : i32, message = "bqd,bkd->bqk"}> : () -> ()
    %cst_279 = arith.constant dense<0.000000e+00> : vector<1x10x10xf32>
    %492 = tpu.matmul %473, %482, %cst_279 {dimension_numbers = #tpu.dot_dimension_numbers<[2], [2], [1], [1], [0, 0, 0, 1, 1, 1], [0], [0]>} : vector<1x10x8xf32>, vector<1x10x8xf32>, vector<1x10x10xf32> -> vector<1x10x10xf32>
    "tpu.trace_stop"() : () -> ()
    %cst_280 = arith.constant 0.353553385 : f32
    %493 = vector.broadcast %cst_280 : f32 to vector<1x10x10xf32>
    %494 = arith.mulf %492, %493 : vector<1x10x10xf32>
    %cst_281 = arith.constant 0.000000e+00 : f32
    %495 = vector.broadcast %cst_281 : f32 to vector<1x10x10xf32>
    %496 = arith.cmpf oeq, %1, %495 : vector<1x10x10xf32>
    %cst_282 = arith.constant -1.000000e+09 : f32
    %497 = vector.broadcast %cst_282 : f32 to vector<1x10x10xf32>
    %498 = arith.select %496, %497, %494 : vector<1x10x10xi1>, vector<1x10x10xf32>
    %cst_283 = arith.constant dense<0xFF800000> : vector<1x10xf32>
    %499 = vector.multi_reduction <maximumf>, %498, %cst_283 [2] : vector<1x10x10xf32> to vector<1x10xf32>
    %500 = vector.shape_cast %499 : vector<1x10xf32> to vector<1x10x1xf32>
    %501 = vector.broadcast %500 : vector<1x10x1xf32> to vector<1x10x10xf32>
    %502 = arith.subf %498, %501 : vector<1x10x10xf32>
    %503 = math.exp %502 : vector<1x10x10xf32>
    %cst_284 = arith.constant dense<0.000000e+00> : vector<1x10xf32>
    %504 = vector.multi_reduction <add>, %503, %cst_284 [2] : vector<1x10x10xf32> to vector<1x10xf32>
    %505 = vector.shape_cast %504 : vector<1x10xf32> to vector<1x10x1xf32>
    %506 = tpu.reciprocal %505 {approx = true} : vector<1x10x1xf32> -> vector<1x10x1xf32>
    %507 = vector.broadcast %506 : vector<1x10x1xf32> to vector<1x10x10xf32>
    %508 = arith.mulf %503, %507 : vector<1x10x10xf32>
    "tpu.trace_start"() <{level = 10 : i32, message = "bqk,bkd->bqd"}> : () -> ()
    %cst_285 = arith.constant dense<0.000000e+00> : vector<1x10x8xf32>
    %509 = tpu.matmul %508, %491, %cst_285 {dimension_numbers = #tpu.dot_dimension_numbers<[2], [1], [1], [2], [0, 0, 0, 1, 1, 2], [0], [0]>} : vector<1x10x10xf32>, vector<1x10x8xf32>, vector<1x10x8xf32> -> vector<1x10x8xf32>
    "tpu.trace_stop"() : () -> ()
    %c7_286 = arith.constant 7 : index
    %c0_287 = arith.constant 0 : index
    %c0_288 = arith.constant 0 : index
    %510 = vector.load %arg8[%c7_286, %c0_287, %c0_288] : memref<8x8x32xf32, #tpu.memory_space<vmem>>, vector<1x8x32xf32>
    %511 = vector.shape_cast %510 : vector<1x8x32xf32> to vector<8x32xf32>
    %512 = vector.shape_cast %511 : vector<8x32xf32> to vector<1x8x32xf32>
    "tpu.trace_start"() <{level = 10 : i32, message = "btd,bde->bte"}> : () -> ()
    %cst_289 = arith.constant dense<0.000000e+00> : vector<1x10x32xf32>
    %513 = tpu.matmul %509, %512, %cst_289 {dimension_numbers = #tpu.dot_dimension_numbers<[2], [1], [1], [2], [0, 0, 0, 1, 1, 2], [0], [0]>} : vector<1x10x8xf32>, vector<1x8x32xf32>, vector<1x10x32xf32> -> vector<1x10x32xf32>
    "tpu.trace_stop"() : () -> ()
    %514 = arith.addf %464, %513 : vector<1x10x32xf32>
    %c1_290 = arith.constant 1 : index
    %c0_291 = arith.constant 0 : index
    %c0_292 = arith.constant 0 : index
    %515 = vector.load %arg9[%c1_290, %c0_291, %c0_292] : memref<2x1x32xf32, #tpu.memory_space<vmem>>, vector<1x1x32xf32>
    %516 = vector.shape_cast %515 : vector<1x1x32xf32> to vector<1x32xf32>
    %517 = vector.shape_cast %516 : vector<1x32xf32> to vector<1x1x32xf32>
    %518 = vector.broadcast %517 : vector<1x1x32xf32> to vector<1x10x32xf32>
    %519 = arith.addf %514, %518 : vector<1x10x32xf32>
    %520 = arith.addf %285, %519 : vector<1x10x32xf32>
    %c3_293 = arith.constant 3 : index
    %c0_294 = arith.constant 0 : index
    %c0_295 = arith.constant 0 : index
    %521 = vector.load %arg10[%c3_293, %c0_294, %c0_295] : memref<4x1x32xf32, #tpu.memory_space<vmem>>, vector<1x1x32xf32>
    %522 = vector.shape_cast %521 : vector<1x1x32xf32> to vector<1x32xf32>
    %c3_296 = arith.constant 3 : index
    %c0_297 = arith.constant 0 : index
    %c0_298 = arith.constant 0 : index
    %523 = vector.load %arg11[%c3_296, %c0_297, %c0_298] : memref<4x1x32xf32, #tpu.memory_space<vmem>>, vector<1x1x32xf32>
    %524 = vector.shape_cast %523 : vector<1x1x32xf32> to vector<1x32xf32>
    %cst_299 = arith.constant dense<0.000000e+00> : vector<1x10xf32>
    %525 = vector.multi_reduction <add>, %520, %cst_299 [2] : vector<1x10x32xf32> to vector<1x10xf32>
    %526 = vector.shape_cast %525 : vector<1x10xf32> to vector<1x10x1xf32>
    %cst_300 = arith.constant 3.200000e+01 : f32
    %527 = vector.broadcast %cst_300 : f32 to vector<1x10x1xf32>
    %528 = arith.divf %526, %527 : vector<1x10x1xf32>
    %529 = vector.broadcast %528 : vector<1x10x1xf32> to vector<1x10x32xf32>
    %530 = arith.subf %520, %529 : vector<1x10x32xf32>
    %531 = arith.mulf %530, %530 : vector<1x10x32xf32>
    %cst_301 = arith.constant dense<0.000000e+00> : vector<1x10xf32>
    %532 = vector.multi_reduction <add>, %531, %cst_301 [2] : vector<1x10x32xf32> to vector<1x10xf32>
    %533 = vector.shape_cast %532 : vector<1x10xf32> to vector<1x10x1xf32>
    %cst_302 = arith.constant 3.100000e+01 : f32
    %534 = vector.broadcast %cst_302 : f32 to vector<1x10x1xf32>
    %535 = arith.divf %533, %534 : vector<1x10x1xf32>
    %536 = vector.broadcast %528 : vector<1x10x1xf32> to vector<1x10x32xf32>
    %537 = arith.subf %520, %536 : vector<1x10x32xf32>
    %538 = vector.shape_cast %522 : vector<1x32xf32> to vector<1x1x32xf32>
    %539 = vector.broadcast %538 : vector<1x1x32xf32> to vector<1x10x32xf32>
    %540 = arith.mulf %539, %537 : vector<1x10x32xf32>
    %541 = math.sqrt %535 : vector<1x10x1xf32>
    %cst_303 = arith.constant 9.99999997E-7 : f32
    %542 = vector.broadcast %cst_303 : f32 to vector<1x10x1xf32>
    %543 = arith.addf %541, %542 : vector<1x10x1xf32>
    %544 = vector.broadcast %543 : vector<1x10x1xf32> to vector<1x10x32xf32>
    %545 = arith.divf %540, %544 : vector<1x10x32xf32>
    %546 = vector.shape_cast %524 : vector<1x32xf32> to vector<1x1x32xf32>
    %547 = vector.broadcast %546 : vector<1x1x32xf32> to vector<1x10x32xf32>
    %548 = arith.addf %545, %547 : vector<1x10x32xf32>
    %c1_304 = arith.constant 1 : index
    %c0_305 = arith.constant 0 : index
    %c0_306 = arith.constant 0 : index
    %549 = vector.load %arg12[%c1_304, %c0_305, %c0_306] : memref<2x32x64xf32, #tpu.memory_space<vmem>>, vector<1x32x64xf32>
    %550 = vector.shape_cast %549 : vector<1x32x64xf32> to vector<32x64xf32>
    %c1_307 = arith.constant 1 : index
    %c0_308 = arith.constant 0 : index
    %c0_309 = arith.constant 0 : index
    %551 = vector.load %arg13[%c1_307, %c0_308, %c0_309] : memref<2x1x64xf32, #tpu.memory_space<vmem>>, vector<1x1x64xf32>
    %552 = vector.shape_cast %551 : vector<1x1x64xf32> to vector<1x64xf32>
    %553 = vector.shape_cast %550 : vector<32x64xf32> to vector<1x32x64xf32>
    "tpu.trace_start"() <{level = 10 : i32, message = "btd,bde->bte"}> : () -> ()
    %cst_310 = arith.constant dense<0.000000e+00> : vector<1x10x64xf32>
    %554 = tpu.matmul %548, %553, %cst_310 {dimension_numbers = #tpu.dot_dimension_numbers<[2], [1], [1], [2], [0, 0, 0, 1, 1, 2], [0], [0]>} : vector<1x10x32xf32>, vector<1x32x64xf32>, vector<1x10x64xf32> -> vector<1x10x64xf32>
    "tpu.trace_stop"() : () -> ()
    %555 = vector.shape_cast %552 : vector<1x64xf32> to vector<1x1x64xf32>
    %556 = vector.broadcast %555 : vector<1x1x64xf32> to vector<1x10x64xf32>
    %557 = arith.addf %554, %556 : vector<1x10x64xf32>
    %cst_311 = arith.constant 0.000000e+00 : f32
    %558 = vector.broadcast %cst_311 : f32 to vector<1x10x64xf32>
    %559 = arith.maximumf %557, %558 : vector<1x10x64xf32>
    %c1_312 = arith.constant 1 : index
    %c0_313 = arith.constant 0 : index
    %c0_314 = arith.constant 0 : index
    %560 = vector.load %arg14[%c1_312, %c0_313, %c0_314] : memref<2x64x32xf32, #tpu.memory_space<vmem>>, vector<1x64x32xf32>
    %561 = vector.shape_cast %560 : vector<1x64x32xf32> to vector<64x32xf32>
    %c1_315 = arith.constant 1 : index
    %c0_316 = arith.constant 0 : index
    %c0_317 = arith.constant 0 : index
    %562 = vector.load %arg15[%c1_315, %c0_316, %c0_317] : memref<2x1x32xf32, #tpu.memory_space<vmem>>, vector<1x1x32xf32>
    %563 = vector.shape_cast %562 : vector<1x1x32xf32> to vector<1x32xf32>
    %564 = vector.shape_cast %561 : vector<64x32xf32> to vector<1x64x32xf32>
    "tpu.trace_start"() <{level = 10 : i32, message = "btd,bde->bte"}> : () -> ()
    %cst_318 = arith.constant dense<0.000000e+00> : vector<1x10x32xf32>
    %565 = tpu.matmul %559, %564, %cst_318 {dimension_numbers = #tpu.dot_dimension_numbers<[2], [1], [1], [2], [0, 0, 0, 1, 1, 2], [0], [0]>} : vector<1x10x64xf32>, vector<1x64x32xf32>, vector<1x10x32xf32> -> vector<1x10x32xf32>
    "tpu.trace_stop"() : () -> ()
    %566 = vector.shape_cast %563 : vector<1x32xf32> to vector<1x1x32xf32>
    %567 = vector.broadcast %566 : vector<1x1x32xf32> to vector<1x10x32xf32>
    %568 = arith.addf %565, %567 : vector<1x10x32xf32>
    %569 = arith.addf %520, %568 : vector<1x10x32xf32>
    %c0_319 = arith.constant 0 : index
    %c0_320 = arith.constant 0 : index
    %570 = vector.load %arg16[%c0_319, %c0_320] : memref<1x32xf32, #tpu.memory_space<vmem>>, vector<1x32xf32>
    %c0_321 = arith.constant 0 : index
    %c0_322 = arith.constant 0 : index
    %571 = vector.load %arg17[%c0_321, %c0_322] : memref<1x32xf32, #tpu.memory_space<vmem>>, vector<1x32xf32>
    %cst_323 = arith.constant dense<0.000000e+00> : vector<1x10xf32>
    %572 = vector.multi_reduction <add>, %569, %cst_323 [2] : vector<1x10x32xf32> to vector<1x10xf32>
    %573 = vector.shape_cast %572 : vector<1x10xf32> to vector<1x10x1xf32>
    %cst_324 = arith.constant 3.200000e+01 : f32
    %574 = vector.broadcast %cst_324 : f32 to vector<1x10x1xf32>
    %575 = arith.divf %573, %574 : vector<1x10x1xf32>
    %576 = vector.broadcast %575 : vector<1x10x1xf32> to vector<1x10x32xf32>
    %577 = arith.subf %569, %576 : vector<1x10x32xf32>
    %578 = arith.mulf %577, %577 : vector<1x10x32xf32>
    %cst_325 = arith.constant dense<0.000000e+00> : vector<1x10xf32>
    %579 = vector.multi_reduction <add>, %578, %cst_325 [2] : vector<1x10x32xf32> to vector<1x10xf32>
    %580 = vector.shape_cast %579 : vector<1x10xf32> to vector<1x10x1xf32>
    %cst_326 = arith.constant 3.100000e+01 : f32
    %581 = vector.broadcast %cst_326 : f32 to vector<1x10x1xf32>
    %582 = arith.divf %580, %581 : vector<1x10x1xf32>
    %583 = vector.broadcast %575 : vector<1x10x1xf32> to vector<1x10x32xf32>
    %584 = arith.subf %569, %583 : vector<1x10x32xf32>
    %585 = vector.shape_cast %570 : vector<1x32xf32> to vector<1x1x32xf32>
    %586 = vector.broadcast %585 : vector<1x1x32xf32> to vector<1x10x32xf32>
    %587 = arith.mulf %586, %584 : vector<1x10x32xf32>
    %588 = math.sqrt %582 : vector<1x10x1xf32>
    %cst_327 = arith.constant 9.99999997E-7 : f32
    %589 = vector.broadcast %cst_327 : f32 to vector<1x10x1xf32>
    %590 = arith.addf %588, %589 : vector<1x10x1xf32>
    %591 = vector.broadcast %590 : vector<1x10x1xf32> to vector<1x10x32xf32>
    %592 = arith.divf %587, %591 : vector<1x10x32xf32>
    %593 = vector.shape_cast %571 : vector<1x32xf32> to vector<1x1x32xf32>
    %594 = vector.broadcast %593 : vector<1x1x32xf32> to vector<1x10x32xf32>
    %595 = arith.addf %592, %594 : vector<1x10x32xf32>
    %c0_328 = arith.constant 0 : index
    %c0_329 = arith.constant 0 : index
    %c0_330 = arith.constant 0 : index
    %596 = vector.load %arg2[%c0_328, %c0_329, %c0_330] : memref<1x8x32xf32, #tpu.memory_space<vmem>>, vector<1x8x32xf32>
    %c0_331 = arith.constant 0 : index
    %c0_332 = arith.constant 0 : index
    %c0_333 = arith.constant 0 : index
    %597 = vector.load %arg4[%c0_331, %c0_332, %c0_333] : memref<1x8x8xf32, #tpu.memory_space<vmem>>, vector<1x8x8xf32>
    %c0_334 = arith.constant 0 : index
    %c0_335 = arith.constant 0 : index
    %c0_336 = arith.constant 0 : index
    %598 = vector.load %arg5[%c0_334, %c0_335, %c0_336] : memref<1x8x10xf32, #tpu.memory_space<vmem>>, vector<1x8x10xf32>
    %c0_337 = arith.constant 0 : index
    %c0_338 = arith.constant 0 : index
    %c0_339 = arith.constant 0 : index
    %599 = vector.load %arg22[%c0_337, %c0_338, %c0_339] : memref<6x1x32xf32, #tpu.memory_space<vmem>>, vector<1x1x32xf32>
    %600 = vector.shape_cast %599 : vector<1x1x32xf32> to vector<1x32xf32>
    %c0_340 = arith.constant 0 : index
    %c0_341 = arith.constant 0 : index
    %c0_342 = arith.constant 0 : index
    %601 = vector.load %arg23[%c0_340, %c0_341, %c0_342] : memref<6x1x32xf32, #tpu.memory_space<vmem>>, vector<1x1x32xf32>
    %602 = vector.shape_cast %601 : vector<1x1x32xf32> to vector<1x32xf32>
    %cst_343 = arith.constant dense<0.000000e+00> : vector<1x8xf32>
    %603 = vector.multi_reduction <add>, %596, %cst_343 [2] : vector<1x8x32xf32> to vector<1x8xf32>
    %604 = vector.shape_cast %603 : vector<1x8xf32> to vector<1x8x1xf32>
    %cst_344 = arith.constant 3.200000e+01 : f32
    %605 = vector.broadcast %cst_344 : f32 to vector<1x8x1xf32>
    %606 = arith.divf %604, %605 : vector<1x8x1xf32>
    %607 = vector.broadcast %606 : vector<1x8x1xf32> to vector<1x8x32xf32>
    %608 = arith.subf %596, %607 : vector<1x8x32xf32>
    %609 = arith.mulf %608, %608 : vector<1x8x32xf32>
    %cst_345 = arith.constant dense<0.000000e+00> : vector<1x8xf32>
    %610 = vector.multi_reduction <add>, %609, %cst_345 [2] : vector<1x8x32xf32> to vector<1x8xf32>
    %611 = vector.shape_cast %610 : vector<1x8xf32> to vector<1x8x1xf32>
    %cst_346 = arith.constant 3.100000e+01 : f32
    %612 = vector.broadcast %cst_346 : f32 to vector<1x8x1xf32>
    %613 = arith.divf %611, %612 : vector<1x8x1xf32>
    %614 = vector.broadcast %606 : vector<1x8x1xf32> to vector<1x8x32xf32>
    %615 = arith.subf %596, %614 : vector<1x8x32xf32>
    %616 = vector.shape_cast %600 : vector<1x32xf32> to vector<1x1x32xf32>
    %617 = vector.broadcast %616 : vector<1x1x32xf32> to vector<1x8x32xf32>
    %618 = arith.mulf %617, %615 : vector<1x8x32xf32>
    %619 = math.sqrt %613 : vector<1x8x1xf32>
    %cst_347 = arith.constant 9.99999997E-7 : f32
    %620 = vector.broadcast %cst_347 : f32 to vector<1x8x1xf32>
    %621 = arith.addf %619, %620 : vector<1x8x1xf32>
    %622 = vector.broadcast %621 : vector<1x8x1xf32> to vector<1x8x32xf32>
    %623 = arith.divf %618, %622 : vector<1x8x32xf32>
    %624 = vector.shape_cast %602 : vector<1x32xf32> to vector<1x1x32xf32>
    %625 = vector.broadcast %624 : vector<1x1x32xf32> to vector<1x8x32xf32>
    %626 = arith.addf %623, %625 : vector<1x8x32xf32>
    %cst_348 = arith.constant 0.000000e+00 : f32
    %627 = vector.broadcast %cst_348 : f32 to vector<1x8x32xf32>
    %c0_349 = arith.constant 0 : index
    %c0_350 = arith.constant 0 : index
    %c0_351 = arith.constant 0 : index
    %628 = vector.load %arg18[%c0_349, %c0_350, %c0_351] : memref<48x32x8xf32, #tpu.memory_space<vmem>>, vector<1x32x8xf32>
    %629 = vector.shape_cast %628 : vector<1x32x8xf32> to vector<32x8xf32>
    %c0_352 = arith.constant 0 : index
    %c0_353 = arith.constant 0 : index
    %c0_354 = arith.constant 0 : index
    %630 = vector.load %arg19[%c0_352, %c0_353, %c0_354] : memref<48x1x8xf32, #tpu.memory_space<vmem>>, vector<1x1x8xf32>
    %631 = vector.shape_cast %630 : vector<1x1x8xf32> to vector<1x8xf32>
    %632 = vector.shape_cast %629 : vector<32x8xf32> to vector<1x32x8xf32>
    "tpu.trace_start"() <{level = 10 : i32, message = "btd,bde->bte"}> : () -> ()
    %cst_355 = arith.constant dense<0.000000e+00> : vector<1x8x8xf32>
    %633 = tpu.matmul %626, %632, %cst_355 {dimension_numbers = #tpu.dot_dimension_numbers<[2], [1], [1], [2], [0, 0, 0, 1, 1, 2], [0], [0]>} : vector<1x8x32xf32>, vector<1x32x8xf32>, vector<1x8x8xf32> -> vector<1x8x8xf32>
    "tpu.trace_stop"() : () -> ()
    %634 = vector.shape_cast %631 : vector<1x8xf32> to vector<1x1x8xf32>
    %635 = vector.broadcast %634 : vector<1x1x8xf32> to vector<1x8x8xf32>
    %636 = arith.addf %633, %635 : vector<1x8x8xf32>
    %c8_356 = arith.constant 8 : index
    %c0_357 = arith.constant 0 : index
    %c0_358 = arith.constant 0 : index
    %637 = vector.load %arg18[%c8_356, %c0_357, %c0_358] : memref<48x32x8xf32, #tpu.memory_space<vmem>>, vector<1x32x8xf32>
    %638 = vector.shape_cast %637 : vector<1x32x8xf32> to vector<32x8xf32>
    %c8_359 = arith.constant 8 : index
    %c0_360 = arith.constant 0 : index
    %c0_361 = arith.constant 0 : index
    %639 = vector.load %arg19[%c8_359, %c0_360, %c0_361] : memref<48x1x8xf32, #tpu.memory_space<vmem>>, vector<1x1x8xf32>
    %640 = vector.shape_cast %639 : vector<1x1x8xf32> to vector<1x8xf32>
    %641 = vector.shape_cast %638 : vector<32x8xf32> to vector<1x32x8xf32>
    "tpu.trace_start"() <{level = 10 : i32, message = "btd,bde->bte"}> : () -> ()
    %cst_362 = arith.constant dense<0.000000e+00> : vector<1x8x8xf32>
    %642 = tpu.matmul %626, %641, %cst_362 {dimension_numbers = #tpu.dot_dimension_numbers<[2], [1], [1], [2], [0, 0, 0, 1, 1, 2], [0], [0]>} : vector<1x8x32xf32>, vector<1x32x8xf32>, vector<1x8x8xf32> -> vector<1x8x8xf32>
    "tpu.trace_stop"() : () -> ()
    %643 = vector.shape_cast %640 : vector<1x8xf32> to vector<1x1x8xf32>
    %644 = vector.broadcast %643 : vector<1x1x8xf32> to vector<1x8x8xf32>
    %645 = arith.addf %642, %644 : vector<1x8x8xf32>
    %c16_363 = arith.constant 16 : index
    %c0_364 = arith.constant 0 : index
    %c0_365 = arith.constant 0 : index
    %646 = vector.load %arg18[%c16_363, %c0_364, %c0_365] : memref<48x32x8xf32, #tpu.memory_space<vmem>>, vector<1x32x8xf32>
    %647 = vector.shape_cast %646 : vector<1x32x8xf32> to vector<32x8xf32>
    %c16_366 = arith.constant 16 : index
    %c0_367 = arith.constant 0 : index
    %c0_368 = arith.constant 0 : index
    %648 = vector.load %arg19[%c16_366, %c0_367, %c0_368] : memref<48x1x8xf32, #tpu.memory_space<vmem>>, vector<1x1x8xf32>
    %649 = vector.shape_cast %648 : vector<1x1x8xf32> to vector<1x8xf32>
    %650 = vector.shape_cast %647 : vector<32x8xf32> to vector<1x32x8xf32>
    "tpu.trace_start"() <{level = 10 : i32, message = "btd,bde->bte"}> : () -> ()
    %cst_369 = arith.constant dense<0.000000e+00> : vector<1x8x8xf32>
    %651 = tpu.matmul %626, %650, %cst_369 {dimension_numbers = #tpu.dot_dimension_numbers<[2], [1], [1], [2], [0, 0, 0, 1, 1, 2], [0], [0]>} : vector<1x8x32xf32>, vector<1x32x8xf32>, vector<1x8x8xf32> -> vector<1x8x8xf32>
    "tpu.trace_stop"() : () -> ()
    %652 = vector.shape_cast %649 : vector<1x8xf32> to vector<1x1x8xf32>
    %653 = vector.broadcast %652 : vector<1x1x8xf32> to vector<1x8x8xf32>
    %654 = arith.addf %651, %653 : vector<1x8x8xf32>
    "tpu.trace_start"() <{level = 10 : i32, message = "bqd,bkd->bqk"}> : () -> ()
    %cst_370 = arith.constant dense<0.000000e+00> : vector<1x8x8xf32>
    %655 = tpu.matmul %636, %645, %cst_370 {dimension_numbers = #tpu.dot_dimension_numbers<[2], [2], [1], [1], [0, 0, 0, 1, 1, 1], [0], [0]>} : vector<1x8x8xf32>, vector<1x8x8xf32>, vector<1x8x8xf32> -> vector<1x8x8xf32>
    "tpu.trace_stop"() : () -> ()
    %cst_371 = arith.constant 0.353553385 : f32
    %656 = vector.broadcast %cst_371 : f32 to vector<1x8x8xf32>
    %657 = arith.mulf %655, %656 : vector<1x8x8xf32>
    %cst_372 = arith.constant 0.000000e+00 : f32
    %658 = vector.broadcast %cst_372 : f32 to vector<1x8x8xf32>
    %659 = arith.cmpf oeq, %597, %658 : vector<1x8x8xf32>
    %cst_373 = arith.constant -1.000000e+09 : f32
    %660 = vector.broadcast %cst_373 : f32 to vector<1x8x8xf32>
    %661 = arith.select %659, %660, %657 : vector<1x8x8xi1>, vector<1x8x8xf32>
    %cst_374 = arith.constant dense<0xFF800000> : vector<1x8xf32>
    %662 = vector.multi_reduction <maximumf>, %661, %cst_374 [2] : vector<1x8x8xf32> to vector<1x8xf32>
    %663 = vector.shape_cast %662 : vector<1x8xf32> to vector<1x8x1xf32>
    %664 = vector.broadcast %663 : vector<1x8x1xf32> to vector<1x8x8xf32>
    %665 = arith.subf %661, %664 : vector<1x8x8xf32>
    %666 = math.exp %665 : vector<1x8x8xf32>
    %cst_375 = arith.constant dense<0.000000e+00> : vector<1x8xf32>
    %667 = vector.multi_reduction <add>, %666, %cst_375 [2] : vector<1x8x8xf32> to vector<1x8xf32>
    %668 = vector.shape_cast %667 : vector<1x8xf32> to vector<1x8x1xf32>
    %669 = tpu.reciprocal %668 {approx = true} : vector<1x8x1xf32> -> vector<1x8x1xf32>
    %670 = vector.broadcast %669 : vector<1x8x1xf32> to vector<1x8x8xf32>
    %671 = arith.mulf %666, %670 : vector<1x8x8xf32>
    "tpu.trace_start"() <{level = 10 : i32, message = "bqk,bkd->bqd"}> : () -> ()
    %cst_376 = arith.constant dense<0.000000e+00> : vector<1x8x8xf32>
    %672 = tpu.matmul %671, %654, %cst_376 {dimension_numbers = #tpu.dot_dimension_numbers<[2], [1], [1], [2], [0, 0, 0, 1, 1, 2], [0], [0]>} : vector<1x8x8xf32>, vector<1x8x8xf32>, vector<1x8x8xf32> -> vector<1x8x8xf32>
    "tpu.trace_stop"() : () -> ()
    %c0_377 = arith.constant 0 : index
    %c0_378 = arith.constant 0 : index
    %c0_379 = arith.constant 0 : index
    %673 = vector.load %arg20[%c0_377, %c0_378, %c0_379] : memref<16x8x32xf32, #tpu.memory_space<vmem>>, vector<1x8x32xf32>
    %674 = vector.shape_cast %673 : vector<1x8x32xf32> to vector<8x32xf32>
    %675 = vector.shape_cast %674 : vector<8x32xf32> to vector<1x8x32xf32>
    "tpu.trace_start"() <{level = 10 : i32, message = "btd,bde->bte"}> : () -> ()
    %cst_380 = arith.constant dense<0.000000e+00> : vector<1x8x32xf32>
    %676 = tpu.matmul %672, %675, %cst_380 {dimension_numbers = #tpu.dot_dimension_numbers<[2], [1], [1], [2], [0, 0, 0, 1, 1, 2], [0], [0]>} : vector<1x8x8xf32>, vector<1x8x32xf32>, vector<1x8x32xf32> -> vector<1x8x32xf32>
    "tpu.trace_stop"() : () -> ()
    %677 = arith.addf %627, %676 : vector<1x8x32xf32>
    %c1_381 = arith.constant 1 : index
    %c0_382 = arith.constant 0 : index
    %c0_383 = arith.constant 0 : index
    %678 = vector.load %arg18[%c1_381, %c0_382, %c0_383] : memref<48x32x8xf32, #tpu.memory_space<vmem>>, vector<1x32x8xf32>
    %679 = vector.shape_cast %678 : vector<1x32x8xf32> to vector<32x8xf32>
    %c1_384 = arith.constant 1 : index
    %c0_385 = arith.constant 0 : index
    %c0_386 = arith.constant 0 : index
    %680 = vector.load %arg19[%c1_384, %c0_385, %c0_386] : memref<48x1x8xf32, #tpu.memory_space<vmem>>, vector<1x1x8xf32>
    %681 = vector.shape_cast %680 : vector<1x1x8xf32> to vector<1x8xf32>
    %682 = vector.shape_cast %679 : vector<32x8xf32> to vector<1x32x8xf32>
    "tpu.trace_start"() <{level = 10 : i32, message = "btd,bde->bte"}> : () -> ()
    %cst_387 = arith.constant dense<0.000000e+00> : vector<1x8x8xf32>
    %683 = tpu.matmul %626, %682, %cst_387 {dimension_numbers = #tpu.dot_dimension_numbers<[2], [1], [1], [2], [0, 0, 0, 1, 1, 2], [0], [0]>} : vector<1x8x32xf32>, vector<1x32x8xf32>, vector<1x8x8xf32> -> vector<1x8x8xf32>
    "tpu.trace_stop"() : () -> ()
    %684 = vector.shape_cast %681 : vector<1x8xf32> to vector<1x1x8xf32>
    %685 = vector.broadcast %684 : vector<1x1x8xf32> to vector<1x8x8xf32>
    %686 = arith.addf %683, %685 : vector<1x8x8xf32>
    %c9_388 = arith.constant 9 : index
    %c0_389 = arith.constant 0 : index
    %c0_390 = arith.constant 0 : index
    %687 = vector.load %arg18[%c9_388, %c0_389, %c0_390] : memref<48x32x8xf32, #tpu.memory_space<vmem>>, vector<1x32x8xf32>
    %688 = vector.shape_cast %687 : vector<1x32x8xf32> to vector<32x8xf32>
    %c9_391 = arith.constant 9 : index
    %c0_392 = arith.constant 0 : index
    %c0_393 = arith.constant 0 : index
    %689 = vector.load %arg19[%c9_391, %c0_392, %c0_393] : memref<48x1x8xf32, #tpu.memory_space<vmem>>, vector<1x1x8xf32>
    %690 = vector.shape_cast %689 : vector<1x1x8xf32> to vector<1x8xf32>
    %691 = vector.shape_cast %688 : vector<32x8xf32> to vector<1x32x8xf32>
    "tpu.trace_start"() <{level = 10 : i32, message = "btd,bde->bte"}> : () -> ()
    %cst_394 = arith.constant dense<0.000000e+00> : vector<1x8x8xf32>
    %692 = tpu.matmul %626, %691, %cst_394 {dimension_numbers = #tpu.dot_dimension_numbers<[2], [1], [1], [2], [0, 0, 0, 1, 1, 2], [0], [0]>} : vector<1x8x32xf32>, vector<1x32x8xf32>, vector<1x8x8xf32> -> vector<1x8x8xf32>
    "tpu.trace_stop"() : () -> ()
    %693 = vector.shape_cast %690 : vector<1x8xf32> to vector<1x1x8xf32>
    %694 = vector.broadcast %693 : vector<1x1x8xf32> to vector<1x8x8xf32>
    %695 = arith.addf %692, %694 : vector<1x8x8xf32>
    %c17_395 = arith.constant 17 : index
    %c0_396 = arith.constant 0 : index
    %c0_397 = arith.constant 0 : index
    %696 = vector.load %arg18[%c17_395, %c0_396, %c0_397] : memref<48x32x8xf32, #tpu.memory_space<vmem>>, vector<1x32x8xf32>
    %697 = vector.shape_cast %696 : vector<1x32x8xf32> to vector<32x8xf32>
    %c17_398 = arith.constant 17 : index
    %c0_399 = arith.constant 0 : index
    %c0_400 = arith.constant 0 : index
    %698 = vector.load %arg19[%c17_398, %c0_399, %c0_400] : memref<48x1x8xf32, #tpu.memory_space<vmem>>, vector<1x1x8xf32>
    %699 = vector.shape_cast %698 : vector<1x1x8xf32> to vector<1x8xf32>
    %700 = vector.shape_cast %697 : vector<32x8xf32> to vector<1x32x8xf32>
    "tpu.trace_start"() <{level = 10 : i32, message = "btd,bde->bte"}> : () -> ()
    %cst_401 = arith.constant dense<0.000000e+00> : vector<1x8x8xf32>
    %701 = tpu.matmul %626, %700, %cst_401 {dimension_numbers = #tpu.dot_dimension_numbers<[2], [1], [1], [2], [0, 0, 0, 1, 1, 2], [0], [0]>} : vector<1x8x32xf32>, vector<1x32x8xf32>, vector<1x8x8xf32> -> vector<1x8x8xf32>
    "tpu.trace_stop"() : () -> ()
    %702 = vector.shape_cast %699 : vector<1x8xf32> to vector<1x1x8xf32>
    %703 = vector.broadcast %702 : vector<1x1x8xf32> to vector<1x8x8xf32>
    %704 = arith.addf %701, %703 : vector<1x8x8xf32>
    "tpu.trace_start"() <{level = 10 : i32, message = "bqd,bkd->bqk"}> : () -> ()
    %cst_402 = arith.constant dense<0.000000e+00> : vector<1x8x8xf32>
    %705 = tpu.matmul %686, %695, %cst_402 {dimension_numbers = #tpu.dot_dimension_numbers<[2], [2], [1], [1], [0, 0, 0, 1, 1, 1], [0], [0]>} : vector<1x8x8xf32>, vector<1x8x8xf32>, vector<1x8x8xf32> -> vector<1x8x8xf32>
    "tpu.trace_stop"() : () -> ()
    %cst_403 = arith.constant 0.353553385 : f32
    %706 = vector.broadcast %cst_403 : f32 to vector<1x8x8xf32>
    %707 = arith.mulf %705, %706 : vector<1x8x8xf32>
    %cst_404 = arith.constant 0.000000e+00 : f32
    %708 = vector.broadcast %cst_404 : f32 to vector<1x8x8xf32>
    %709 = arith.cmpf oeq, %597, %708 : vector<1x8x8xf32>
    %cst_405 = arith.constant -1.000000e+09 : f32
    %710 = vector.broadcast %cst_405 : f32 to vector<1x8x8xf32>
    %711 = arith.select %709, %710, %707 : vector<1x8x8xi1>, vector<1x8x8xf32>
    %cst_406 = arith.constant dense<0xFF800000> : vector<1x8xf32>
    %712 = vector.multi_reduction <maximumf>, %711, %cst_406 [2] : vector<1x8x8xf32> to vector<1x8xf32>
    %713 = vector.shape_cast %712 : vector<1x8xf32> to vector<1x8x1xf32>
    %714 = vector.broadcast %713 : vector<1x8x1xf32> to vector<1x8x8xf32>
    %715 = arith.subf %711, %714 : vector<1x8x8xf32>
    %716 = math.exp %715 : vector<1x8x8xf32>
    %cst_407 = arith.constant dense<0.000000e+00> : vector<1x8xf32>
    %717 = vector.multi_reduction <add>, %716, %cst_407 [2] : vector<1x8x8xf32> to vector<1x8xf32>
    %718 = vector.shape_cast %717 : vector<1x8xf32> to vector<1x8x1xf32>
    %719 = tpu.reciprocal %718 {approx = true} : vector<1x8x1xf32> -> vector<1x8x1xf32>
    %720 = vector.broadcast %719 : vector<1x8x1xf32> to vector<1x8x8xf32>
    %721 = arith.mulf %716, %720 : vector<1x8x8xf32>
    "tpu.trace_start"() <{level = 10 : i32, message = "bqk,bkd->bqd"}> : () -> ()
    %cst_408 = arith.constant dense<0.000000e+00> : vector<1x8x8xf32>
    %722 = tpu.matmul %721, %704, %cst_408 {dimension_numbers = #tpu.dot_dimension_numbers<[2], [1], [1], [2], [0, 0, 0, 1, 1, 2], [0], [0]>} : vector<1x8x8xf32>, vector<1x8x8xf32>, vector<1x8x8xf32> -> vector<1x8x8xf32>
    "tpu.trace_stop"() : () -> ()
    %c1_409 = arith.constant 1 : index
    %c0_410 = arith.constant 0 : index
    %c0_411 = arith.constant 0 : index
    %723 = vector.load %arg20[%c1_409, %c0_410, %c0_411] : memref<16x8x32xf32, #tpu.memory_space<vmem>>, vector<1x8x32xf32>
    %724 = vector.shape_cast %723 : vector<1x8x32xf32> to vector<8x32xf32>
    %725 = vector.shape_cast %724 : vector<8x32xf32> to vector<1x8x32xf32>
    "tpu.trace_start"() <{level = 10 : i32, message = "btd,bde->bte"}> : () -> ()
    %cst_412 = arith.constant dense<0.000000e+00> : vector<1x8x32xf32>
    %726 = tpu.matmul %722, %725, %cst_412 {dimension_numbers = #tpu.dot_dimension_numbers<[2], [1], [1], [2], [0, 0, 0, 1, 1, 2], [0], [0]>} : vector<1x8x8xf32>, vector<1x8x32xf32>, vector<1x8x32xf32> -> vector<1x8x32xf32>
    "tpu.trace_stop"() : () -> ()
    %727 = arith.addf %677, %726 : vector<1x8x32xf32>
    %c2_413 = arith.constant 2 : index
    %c0_414 = arith.constant 0 : index
    %c0_415 = arith.constant 0 : index
    %728 = vector.load %arg18[%c2_413, %c0_414, %c0_415] : memref<48x32x8xf32, #tpu.memory_space<vmem>>, vector<1x32x8xf32>
    %729 = vector.shape_cast %728 : vector<1x32x8xf32> to vector<32x8xf32>
    %c2_416 = arith.constant 2 : index
    %c0_417 = arith.constant 0 : index
    %c0_418 = arith.constant 0 : index
    %730 = vector.load %arg19[%c2_416, %c0_417, %c0_418] : memref<48x1x8xf32, #tpu.memory_space<vmem>>, vector<1x1x8xf32>
    %731 = vector.shape_cast %730 : vector<1x1x8xf32> to vector<1x8xf32>
    %732 = vector.shape_cast %729 : vector<32x8xf32> to vector<1x32x8xf32>
    "tpu.trace_start"() <{level = 10 : i32, message = "btd,bde->bte"}> : () -> ()
    %cst_419 = arith.constant dense<0.000000e+00> : vector<1x8x8xf32>
    %733 = tpu.matmul %626, %732, %cst_419 {dimension_numbers = #tpu.dot_dimension_numbers<[2], [1], [1], [2], [0, 0, 0, 1, 1, 2], [0], [0]>} : vector<1x8x32xf32>, vector<1x32x8xf32>, vector<1x8x8xf32> -> vector<1x8x8xf32>
    "tpu.trace_stop"() : () -> ()
    %734 = vector.shape_cast %731 : vector<1x8xf32> to vector<1x1x8xf32>
    %735 = vector.broadcast %734 : vector<1x1x8xf32> to vector<1x8x8xf32>
    %736 = arith.addf %733, %735 : vector<1x8x8xf32>
    %c10_420 = arith.constant 10 : index
    %c0_421 = arith.constant 0 : index
    %c0_422 = arith.constant 0 : index
    %737 = vector.load %arg18[%c10_420, %c0_421, %c0_422] : memref<48x32x8xf32, #tpu.memory_space<vmem>>, vector<1x32x8xf32>
    %738 = vector.shape_cast %737 : vector<1x32x8xf32> to vector<32x8xf32>
    %c10_423 = arith.constant 10 : index
    %c0_424 = arith.constant 0 : index
    %c0_425 = arith.constant 0 : index
    %739 = vector.load %arg19[%c10_423, %c0_424, %c0_425] : memref<48x1x8xf32, #tpu.memory_space<vmem>>, vector<1x1x8xf32>
    %740 = vector.shape_cast %739 : vector<1x1x8xf32> to vector<1x8xf32>
    %741 = vector.shape_cast %738 : vector<32x8xf32> to vector<1x32x8xf32>
    "tpu.trace_start"() <{level = 10 : i32, message = "btd,bde->bte"}> : () -> ()
    %cst_426 = arith.constant dense<0.000000e+00> : vector<1x8x8xf32>
    %742 = tpu.matmul %626, %741, %cst_426 {dimension_numbers = #tpu.dot_dimension_numbers<[2], [1], [1], [2], [0, 0, 0, 1, 1, 2], [0], [0]>} : vector<1x8x32xf32>, vector<1x32x8xf32>, vector<1x8x8xf32> -> vector<1x8x8xf32>
    "tpu.trace_stop"() : () -> ()
    %743 = vector.shape_cast %740 : vector<1x8xf32> to vector<1x1x8xf32>
    %744 = vector.broadcast %743 : vector<1x1x8xf32> to vector<1x8x8xf32>
    %745 = arith.addf %742, %744 : vector<1x8x8xf32>
    %c18_427 = arith.constant 18 : index
    %c0_428 = arith.constant 0 : index
    %c0_429 = arith.constant 0 : index
    %746 = vector.load %arg18[%c18_427, %c0_428, %c0_429] : memref<48x32x8xf32, #tpu.memory_space<vmem>>, vector<1x32x8xf32>
    %747 = vector.shape_cast %746 : vector<1x32x8xf32> to vector<32x8xf32>
    %c18_430 = arith.constant 18 : index
    %c0_431 = arith.constant 0 : index
    %c0_432 = arith.constant 0 : index
    %748 = vector.load %arg19[%c18_430, %c0_431, %c0_432] : memref<48x1x8xf32, #tpu.memory_space<vmem>>, vector<1x1x8xf32>
    %749 = vector.shape_cast %748 : vector<1x1x8xf32> to vector<1x8xf32>
    %750 = vector.shape_cast %747 : vector<32x8xf32> to vector<1x32x8xf32>
    "tpu.trace_start"() <{level = 10 : i32, message = "btd,bde->bte"}> : () -> ()
    %cst_433 = arith.constant dense<0.000000e+00> : vector<1x8x8xf32>
    %751 = tpu.matmul %626, %750, %cst_433 {dimension_numbers = #tpu.dot_dimension_numbers<[2], [1], [1], [2], [0, 0, 0, 1, 1, 2], [0], [0]>} : vector<1x8x32xf32>, vector<1x32x8xf32>, vector<1x8x8xf32> -> vector<1x8x8xf32>
    "tpu.trace_stop"() : () -> ()
    %752 = vector.shape_cast %749 : vector<1x8xf32> to vector<1x1x8xf32>
    %753 = vector.broadcast %752 : vector<1x1x8xf32> to vector<1x8x8xf32>
    %754 = arith.addf %751, %753 : vector<1x8x8xf32>
    "tpu.trace_start"() <{level = 10 : i32, message = "bqd,bkd->bqk"}> : () -> ()
    %cst_434 = arith.constant dense<0.000000e+00> : vector<1x8x8xf32>
    %755 = tpu.matmul %736, %745, %cst_434 {dimension_numbers = #tpu.dot_dimension_numbers<[2], [2], [1], [1], [0, 0, 0, 1, 1, 1], [0], [0]>} : vector<1x8x8xf32>, vector<1x8x8xf32>, vector<1x8x8xf32> -> vector<1x8x8xf32>
    "tpu.trace_stop"() : () -> ()
    %cst_435 = arith.constant 0.353553385 : f32
    %756 = vector.broadcast %cst_435 : f32 to vector<1x8x8xf32>
    %757 = arith.mulf %755, %756 : vector<1x8x8xf32>
    %cst_436 = arith.constant 0.000000e+00 : f32
    %758 = vector.broadcast %cst_436 : f32 to vector<1x8x8xf32>
    %759 = arith.cmpf oeq, %597, %758 : vector<1x8x8xf32>
    %cst_437 = arith.constant -1.000000e+09 : f32
    %760 = vector.broadcast %cst_437 : f32 to vector<1x8x8xf32>
    %761 = arith.select %759, %760, %757 : vector<1x8x8xi1>, vector<1x8x8xf32>
    %cst_438 = arith.constant dense<0xFF800000> : vector<1x8xf32>
    %762 = vector.multi_reduction <maximumf>, %761, %cst_438 [2] : vector<1x8x8xf32> to vector<1x8xf32>
    %763 = vector.shape_cast %762 : vector<1x8xf32> to vector<1x8x1xf32>
    %764 = vector.broadcast %763 : vector<1x8x1xf32> to vector<1x8x8xf32>
    %765 = arith.subf %761, %764 : vector<1x8x8xf32>
    %766 = math.exp %765 : vector<1x8x8xf32>
    %cst_439 = arith.constant dense<0.000000e+00> : vector<1x8xf32>
    %767 = vector.multi_reduction <add>, %766, %cst_439 [2] : vector<1x8x8xf32> to vector<1x8xf32>
    %768 = vector.shape_cast %767 : vector<1x8xf32> to vector<1x8x1xf32>
    %769 = tpu.reciprocal %768 {approx = true} : vector<1x8x1xf32> -> vector<1x8x1xf32>
    %770 = vector.broadcast %769 : vector<1x8x1xf32> to vector<1x8x8xf32>
    %771 = arith.mulf %766, %770 : vector<1x8x8xf32>
    "tpu.trace_start"() <{level = 10 : i32, message = "bqk,bkd->bqd"}> : () -> ()
    %cst_440 = arith.constant dense<0.000000e+00> : vector<1x8x8xf32>
    %772 = tpu.matmul %771, %754, %cst_440 {dimension_numbers = #tpu.dot_dimension_numbers<[2], [1], [1], [2], [0, 0, 0, 1, 1, 2], [0], [0]>} : vector<1x8x8xf32>, vector<1x8x8xf32>, vector<1x8x8xf32> -> vector<1x8x8xf32>
    "tpu.trace_stop"() : () -> ()
    %c2_441 = arith.constant 2 : index
    %c0_442 = arith.constant 0 : index
    %c0_443 = arith.constant 0 : index
    %773 = vector.load %arg20[%c2_441, %c0_442, %c0_443] : memref<16x8x32xf32, #tpu.memory_space<vmem>>, vector<1x8x32xf32>
    %774 = vector.shape_cast %773 : vector<1x8x32xf32> to vector<8x32xf32>
    %775 = vector.shape_cast %774 : vector<8x32xf32> to vector<1x8x32xf32>
    "tpu.trace_start"() <{level = 10 : i32, message = "btd,bde->bte"}> : () -> ()
    %cst_444 = arith.constant dense<0.000000e+00> : vector<1x8x32xf32>
    %776 = tpu.matmul %772, %775, %cst_444 {dimension_numbers = #tpu.dot_dimension_numbers<[2], [1], [1], [2], [0, 0, 0, 1, 1, 2], [0], [0]>} : vector<1x8x8xf32>, vector<1x8x32xf32>, vector<1x8x32xf32> -> vector<1x8x32xf32>
    "tpu.trace_stop"() : () -> ()
    %777 = arith.addf %727, %776 : vector<1x8x32xf32>
    %c3_445 = arith.constant 3 : index
    %c0_446 = arith.constant 0 : index
    %c0_447 = arith.constant 0 : index
    %778 = vector.load %arg18[%c3_445, %c0_446, %c0_447] : memref<48x32x8xf32, #tpu.memory_space<vmem>>, vector<1x32x8xf32>
    %779 = vector.shape_cast %778 : vector<1x32x8xf32> to vector<32x8xf32>
    %c3_448 = arith.constant 3 : index
    %c0_449 = arith.constant 0 : index
    %c0_450 = arith.constant 0 : index
    %780 = vector.load %arg19[%c3_448, %c0_449, %c0_450] : memref<48x1x8xf32, #tpu.memory_space<vmem>>, vector<1x1x8xf32>
    %781 = vector.shape_cast %780 : vector<1x1x8xf32> to vector<1x8xf32>
    %782 = vector.shape_cast %779 : vector<32x8xf32> to vector<1x32x8xf32>
    "tpu.trace_start"() <{level = 10 : i32, message = "btd,bde->bte"}> : () -> ()
    %cst_451 = arith.constant dense<0.000000e+00> : vector<1x8x8xf32>
    %783 = tpu.matmul %626, %782, %cst_451 {dimension_numbers = #tpu.dot_dimension_numbers<[2], [1], [1], [2], [0, 0, 0, 1, 1, 2], [0], [0]>} : vector<1x8x32xf32>, vector<1x32x8xf32>, vector<1x8x8xf32> -> vector<1x8x8xf32>
    "tpu.trace_stop"() : () -> ()
    %784 = vector.shape_cast %781 : vector<1x8xf32> to vector<1x1x8xf32>
    %785 = vector.broadcast %784 : vector<1x1x8xf32> to vector<1x8x8xf32>
    %786 = arith.addf %783, %785 : vector<1x8x8xf32>
    %c11_452 = arith.constant 11 : index
    %c0_453 = arith.constant 0 : index
    %c0_454 = arith.constant 0 : index
    %787 = vector.load %arg18[%c11_452, %c0_453, %c0_454] : memref<48x32x8xf32, #tpu.memory_space<vmem>>, vector<1x32x8xf32>
    %788 = vector.shape_cast %787 : vector<1x32x8xf32> to vector<32x8xf32>
    %c11_455 = arith.constant 11 : index
    %c0_456 = arith.constant 0 : index
    %c0_457 = arith.constant 0 : index
    %789 = vector.load %arg19[%c11_455, %c0_456, %c0_457] : memref<48x1x8xf32, #tpu.memory_space<vmem>>, vector<1x1x8xf32>
    %790 = vector.shape_cast %789 : vector<1x1x8xf32> to vector<1x8xf32>
    %791 = vector.shape_cast %788 : vector<32x8xf32> to vector<1x32x8xf32>
    "tpu.trace_start"() <{level = 10 : i32, message = "btd,bde->bte"}> : () -> ()
    %cst_458 = arith.constant dense<0.000000e+00> : vector<1x8x8xf32>
    %792 = tpu.matmul %626, %791, %cst_458 {dimension_numbers = #tpu.dot_dimension_numbers<[2], [1], [1], [2], [0, 0, 0, 1, 1, 2], [0], [0]>} : vector<1x8x32xf32>, vector<1x32x8xf32>, vector<1x8x8xf32> -> vector<1x8x8xf32>
    "tpu.trace_stop"() : () -> ()
    %793 = vector.shape_cast %790 : vector<1x8xf32> to vector<1x1x8xf32>
    %794 = vector.broadcast %793 : vector<1x1x8xf32> to vector<1x8x8xf32>
    %795 = arith.addf %792, %794 : vector<1x8x8xf32>
    %c19_459 = arith.constant 19 : index
    %c0_460 = arith.constant 0 : index
    %c0_461 = arith.constant 0 : index
    %796 = vector.load %arg18[%c19_459, %c0_460, %c0_461] : memref<48x32x8xf32, #tpu.memory_space<vmem>>, vector<1x32x8xf32>
    %797 = vector.shape_cast %796 : vector<1x32x8xf32> to vector<32x8xf32>
    %c19_462 = arith.constant 19 : index
    %c0_463 = arith.constant 0 : index
    %c0_464 = arith.constant 0 : index
    %798 = vector.load %arg19[%c19_462, %c0_463, %c0_464] : memref<48x1x8xf32, #tpu.memory_space<vmem>>, vector<1x1x8xf32>
    %799 = vector.shape_cast %798 : vector<1x1x8xf32> to vector<1x8xf32>
    %800 = vector.shape_cast %797 : vector<32x8xf32> to vector<1x32x8xf32>
    "tpu.trace_start"() <{level = 10 : i32, message = "btd,bde->bte"}> : () -> ()
    %cst_465 = arith.constant dense<0.000000e+00> : vector<1x8x8xf32>
    %801 = tpu.matmul %626, %800, %cst_465 {dimension_numbers = #tpu.dot_dimension_numbers<[2], [1], [1], [2], [0, 0, 0, 1, 1, 2], [0], [0]>} : vector<1x8x32xf32>, vector<1x32x8xf32>, vector<1x8x8xf32> -> vector<1x8x8xf32>
    "tpu.trace_stop"() : () -> ()
    %802 = vector.shape_cast %799 : vector<1x8xf32> to vector<1x1x8xf32>
    %803 = vector.broadcast %802 : vector<1x1x8xf32> to vector<1x8x8xf32>
    %804 = arith.addf %801, %803 : vector<1x8x8xf32>
    "tpu.trace_start"() <{level = 10 : i32, message = "bqd,bkd->bqk"}> : () -> ()
    %cst_466 = arith.constant dense<0.000000e+00> : vector<1x8x8xf32>
    %805 = tpu.matmul %786, %795, %cst_466 {dimension_numbers = #tpu.dot_dimension_numbers<[2], [2], [1], [1], [0, 0, 0, 1, 1, 1], [0], [0]>} : vector<1x8x8xf32>, vector<1x8x8xf32>, vector<1x8x8xf32> -> vector<1x8x8xf32>
    "tpu.trace_stop"() : () -> ()
    %cst_467 = arith.constant 0.353553385 : f32
    %806 = vector.broadcast %cst_467 : f32 to vector<1x8x8xf32>
    %807 = arith.mulf %805, %806 : vector<1x8x8xf32>
    %cst_468 = arith.constant 0.000000e+00 : f32
    %808 = vector.broadcast %cst_468 : f32 to vector<1x8x8xf32>
    %809 = arith.cmpf oeq, %597, %808 : vector<1x8x8xf32>
    %cst_469 = arith.constant -1.000000e+09 : f32
    %810 = vector.broadcast %cst_469 : f32 to vector<1x8x8xf32>
    %811 = arith.select %809, %810, %807 : vector<1x8x8xi1>, vector<1x8x8xf32>
    %cst_470 = arith.constant dense<0xFF800000> : vector<1x8xf32>
    %812 = vector.multi_reduction <maximumf>, %811, %cst_470 [2] : vector<1x8x8xf32> to vector<1x8xf32>
    %813 = vector.shape_cast %812 : vector<1x8xf32> to vector<1x8x1xf32>
    %814 = vector.broadcast %813 : vector<1x8x1xf32> to vector<1x8x8xf32>
    %815 = arith.subf %811, %814 : vector<1x8x8xf32>
    %816 = math.exp %815 : vector<1x8x8xf32>
    %cst_471 = arith.constant dense<0.000000e+00> : vector<1x8xf32>
    %817 = vector.multi_reduction <add>, %816, %cst_471 [2] : vector<1x8x8xf32> to vector<1x8xf32>
    %818 = vector.shape_cast %817 : vector<1x8xf32> to vector<1x8x1xf32>
    %819 = tpu.reciprocal %818 {approx = true} : vector<1x8x1xf32> -> vector<1x8x1xf32>
    %820 = vector.broadcast %819 : vector<1x8x1xf32> to vector<1x8x8xf32>
    %821 = arith.mulf %816, %820 : vector<1x8x8xf32>
    "tpu.trace_start"() <{level = 10 : i32, message = "bqk,bkd->bqd"}> : () -> ()
    %cst_472 = arith.constant dense<0.000000e+00> : vector<1x8x8xf32>
    %822 = tpu.matmul %821, %804, %cst_472 {dimension_numbers = #tpu.dot_dimension_numbers<[2], [1], [1], [2], [0, 0, 0, 1, 1, 2], [0], [0]>} : vector<1x8x8xf32>, vector<1x8x8xf32>, vector<1x8x8xf32> -> vector<1x8x8xf32>
    "tpu.trace_stop"() : () -> ()
    %c3_473 = arith.constant 3 : index
    %c0_474 = arith.constant 0 : index
    %c0_475 = arith.constant 0 : index
    %823 = vector.load %arg20[%c3_473, %c0_474, %c0_475] : memref<16x8x32xf32, #tpu.memory_space<vmem>>, vector<1x8x32xf32>
    %824 = vector.shape_cast %823 : vector<1x8x32xf32> to vector<8x32xf32>
    %825 = vector.shape_cast %824 : vector<8x32xf32> to vector<1x8x32xf32>
    "tpu.trace_start"() <{level = 10 : i32, message = "btd,bde->bte"}> : () -> ()
    %cst_476 = arith.constant dense<0.000000e+00> : vector<1x8x32xf32>
    %826 = tpu.matmul %822, %825, %cst_476 {dimension_numbers = #tpu.dot_dimension_numbers<[2], [1], [1], [2], [0, 0, 0, 1, 1, 2], [0], [0]>} : vector<1x8x8xf32>, vector<1x8x32xf32>, vector<1x8x32xf32> -> vector<1x8x32xf32>
    "tpu.trace_stop"() : () -> ()
    %827 = arith.addf %777, %826 : vector<1x8x32xf32>
    %c0_477 = arith.constant 0 : index
    %c0_478 = arith.constant 0 : index
    %c0_479 = arith.constant 0 : index
    %828 = vector.load %arg21[%c0_477, %c0_478, %c0_479] : memref<4x1x32xf32, #tpu.memory_space<vmem>>, vector<1x1x32xf32>
    %829 = vector.shape_cast %828 : vector<1x1x32xf32> to vector<1x32xf32>
    %830 = vector.shape_cast %829 : vector<1x32xf32> to vector<1x1x32xf32>
    %831 = vector.broadcast %830 : vector<1x1x32xf32> to vector<1x8x32xf32>
    %832 = arith.addf %827, %831 : vector<1x8x32xf32>
    %833 = arith.addf %596, %832 : vector<1x8x32xf32>
    %c1_480 = arith.constant 1 : index
    %c0_481 = arith.constant 0 : index
    %c0_482 = arith.constant 0 : index
    %834 = vector.load %arg22[%c1_480, %c0_481, %c0_482] : memref<6x1x32xf32, #tpu.memory_space<vmem>>, vector<1x1x32xf32>
    %835 = vector.shape_cast %834 : vector<1x1x32xf32> to vector<1x32xf32>
    %c1_483 = arith.constant 1 : index
    %c0_484 = arith.constant 0 : index
    %c0_485 = arith.constant 0 : index
    %836 = vector.load %arg23[%c1_483, %c0_484, %c0_485] : memref<6x1x32xf32, #tpu.memory_space<vmem>>, vector<1x1x32xf32>
    %837 = vector.shape_cast %836 : vector<1x1x32xf32> to vector<1x32xf32>
    %cst_486 = arith.constant dense<0.000000e+00> : vector<1x8xf32>
    %838 = vector.multi_reduction <add>, %833, %cst_486 [2] : vector<1x8x32xf32> to vector<1x8xf32>
    %839 = vector.shape_cast %838 : vector<1x8xf32> to vector<1x8x1xf32>
    %cst_487 = arith.constant 3.200000e+01 : f32
    %840 = vector.broadcast %cst_487 : f32 to vector<1x8x1xf32>
    %841 = arith.divf %839, %840 : vector<1x8x1xf32>
    %842 = vector.broadcast %841 : vector<1x8x1xf32> to vector<1x8x32xf32>
    %843 = arith.subf %833, %842 : vector<1x8x32xf32>
    %844 = arith.mulf %843, %843 : vector<1x8x32xf32>
    %cst_488 = arith.constant dense<0.000000e+00> : vector<1x8xf32>
    %845 = vector.multi_reduction <add>, %844, %cst_488 [2] : vector<1x8x32xf32> to vector<1x8xf32>
    %846 = vector.shape_cast %845 : vector<1x8xf32> to vector<1x8x1xf32>
    %cst_489 = arith.constant 3.100000e+01 : f32
    %847 = vector.broadcast %cst_489 : f32 to vector<1x8x1xf32>
    %848 = arith.divf %846, %847 : vector<1x8x1xf32>
    %849 = vector.broadcast %841 : vector<1x8x1xf32> to vector<1x8x32xf32>
    %850 = arith.subf %833, %849 : vector<1x8x32xf32>
    %851 = vector.shape_cast %835 : vector<1x32xf32> to vector<1x1x32xf32>
    %852 = vector.broadcast %851 : vector<1x1x32xf32> to vector<1x8x32xf32>
    %853 = arith.mulf %852, %850 : vector<1x8x32xf32>
    %854 = math.sqrt %848 : vector<1x8x1xf32>
    %cst_490 = arith.constant 9.99999997E-7 : f32
    %855 = vector.broadcast %cst_490 : f32 to vector<1x8x1xf32>
    %856 = arith.addf %854, %855 : vector<1x8x1xf32>
    %857 = vector.broadcast %856 : vector<1x8x1xf32> to vector<1x8x32xf32>
    %858 = arith.divf %853, %857 : vector<1x8x32xf32>
    %859 = vector.shape_cast %837 : vector<1x32xf32> to vector<1x1x32xf32>
    %860 = vector.broadcast %859 : vector<1x1x32xf32> to vector<1x8x32xf32>
    %861 = arith.addf %858, %860 : vector<1x8x32xf32>
    %cst_491 = arith.constant 0.000000e+00 : f32
    %862 = vector.broadcast %cst_491 : f32 to vector<1x8x32xf32>
    %c24 = arith.constant 24 : index
    %c0_492 = arith.constant 0 : index
    %c0_493 = arith.constant 0 : index
    %863 = vector.load %arg18[%c24, %c0_492, %c0_493] : memref<48x32x8xf32, #tpu.memory_space<vmem>>, vector<1x32x8xf32>
    %864 = vector.shape_cast %863 : vector<1x32x8xf32> to vector<32x8xf32>
    %c24_494 = arith.constant 24 : index
    %c0_495 = arith.constant 0 : index
    %c0_496 = arith.constant 0 : index
    %865 = vector.load %arg19[%c24_494, %c0_495, %c0_496] : memref<48x1x8xf32, #tpu.memory_space<vmem>>, vector<1x1x8xf32>
    %866 = vector.shape_cast %865 : vector<1x1x8xf32> to vector<1x8xf32>
    %867 = vector.shape_cast %864 : vector<32x8xf32> to vector<1x32x8xf32>
    "tpu.trace_start"() <{level = 10 : i32, message = "btd,bde->bte"}> : () -> ()
    %cst_497 = arith.constant dense<0.000000e+00> : vector<1x8x8xf32>
    %868 = tpu.matmul %861, %867, %cst_497 {dimension_numbers = #tpu.dot_dimension_numbers<[2], [1], [1], [2], [0, 0, 0, 1, 1, 2], [0], [0]>} : vector<1x8x32xf32>, vector<1x32x8xf32>, vector<1x8x8xf32> -> vector<1x8x8xf32>
    "tpu.trace_stop"() : () -> ()
    %869 = vector.shape_cast %866 : vector<1x8xf32> to vector<1x1x8xf32>
    %870 = vector.broadcast %869 : vector<1x1x8xf32> to vector<1x8x8xf32>
    %871 = arith.addf %868, %870 : vector<1x8x8xf32>
    %c32 = arith.constant 32 : index
    %c0_498 = arith.constant 0 : index
    %c0_499 = arith.constant 0 : index
    %872 = vector.load %arg18[%c32, %c0_498, %c0_499] : memref<48x32x8xf32, #tpu.memory_space<vmem>>, vector<1x32x8xf32>
    %873 = vector.shape_cast %872 : vector<1x32x8xf32> to vector<32x8xf32>
    %c32_500 = arith.constant 32 : index
    %c0_501 = arith.constant 0 : index
    %c0_502 = arith.constant 0 : index
    %874 = vector.load %arg19[%c32_500, %c0_501, %c0_502] : memref<48x1x8xf32, #tpu.memory_space<vmem>>, vector<1x1x8xf32>
    %875 = vector.shape_cast %874 : vector<1x1x8xf32> to vector<1x8xf32>
    %876 = vector.shape_cast %873 : vector<32x8xf32> to vector<1x32x8xf32>
    "tpu.trace_start"() <{level = 10 : i32, message = "btd,bde->bte"}> : () -> ()
    %cst_503 = arith.constant dense<0.000000e+00> : vector<1x10x8xf32>
    %877 = tpu.matmul %595, %876, %cst_503 {dimension_numbers = #tpu.dot_dimension_numbers<[2], [1], [1], [2], [0, 0, 0, 1, 1, 2], [0], [0]>} : vector<1x10x32xf32>, vector<1x32x8xf32>, vector<1x10x8xf32> -> vector<1x10x8xf32>
    "tpu.trace_stop"() : () -> ()
    %878 = vector.shape_cast %875 : vector<1x8xf32> to vector<1x1x8xf32>
    %879 = vector.broadcast %878 : vector<1x1x8xf32> to vector<1x10x8xf32>
    %880 = arith.addf %877, %879 : vector<1x10x8xf32>
    %c40 = arith.constant 40 : index
    %c0_504 = arith.constant 0 : index
    %c0_505 = arith.constant 0 : index
    %881 = vector.load %arg18[%c40, %c0_504, %c0_505] : memref<48x32x8xf32, #tpu.memory_space<vmem>>, vector<1x32x8xf32>
    %882 = vector.shape_cast %881 : vector<1x32x8xf32> to vector<32x8xf32>
    %c40_506 = arith.constant 40 : index
    %c0_507 = arith.constant 0 : index
    %c0_508 = arith.constant 0 : index
    %883 = vector.load %arg19[%c40_506, %c0_507, %c0_508] : memref<48x1x8xf32, #tpu.memory_space<vmem>>, vector<1x1x8xf32>
    %884 = vector.shape_cast %883 : vector<1x1x8xf32> to vector<1x8xf32>
    %885 = vector.shape_cast %882 : vector<32x8xf32> to vector<1x32x8xf32>
    "tpu.trace_start"() <{level = 10 : i32, message = "btd,bde->bte"}> : () -> ()
    %cst_509 = arith.constant dense<0.000000e+00> : vector<1x10x8xf32>
    %886 = tpu.matmul %595, %885, %cst_509 {dimension_numbers = #tpu.dot_dimension_numbers<[2], [1], [1], [2], [0, 0, 0, 1, 1, 2], [0], [0]>} : vector<1x10x32xf32>, vector<1x32x8xf32>, vector<1x10x8xf32> -> vector<1x10x8xf32>
    "tpu.trace_stop"() : () -> ()
    %887 = vector.shape_cast %884 : vector<1x8xf32> to vector<1x1x8xf32>
    %888 = vector.broadcast %887 : vector<1x1x8xf32> to vector<1x10x8xf32>
    %889 = arith.addf %886, %888 : vector<1x10x8xf32>
    "tpu.trace_start"() <{level = 10 : i32, message = "bqd,bkd->bqk"}> : () -> ()
    %cst_510 = arith.constant dense<0.000000e+00> : vector<1x8x10xf32>
    %890 = tpu.matmul %871, %880, %cst_510 {dimension_numbers = #tpu.dot_dimension_numbers<[2], [2], [1], [1], [0, 0, 0, 1, 1, 1], [0], [0]>} : vector<1x8x8xf32>, vector<1x10x8xf32>, vector<1x8x10xf32> -> vector<1x8x10xf32>
    "tpu.trace_stop"() : () -> ()
    %cst_511 = arith.constant 0.353553385 : f32
    %891 = vector.broadcast %cst_511 : f32 to vector<1x8x10xf32>
    %892 = arith.mulf %890, %891 : vector<1x8x10xf32>
    %cst_512 = arith.constant 0.000000e+00 : f32
    %893 = vector.broadcast %cst_512 : f32 to vector<1x8x10xf32>
    %894 = arith.cmpf oeq, %598, %893 : vector<1x8x10xf32>
    %cst_513 = arith.constant -1.000000e+09 : f32
    %895 = vector.broadcast %cst_513 : f32 to vector<1x8x10xf32>
    %896 = arith.select %894, %895, %892 : vector<1x8x10xi1>, vector<1x8x10xf32>
    %cst_514 = arith.constant dense<0xFF800000> : vector<1x8xf32>
    %897 = vector.multi_reduction <maximumf>, %896, %cst_514 [2] : vector<1x8x10xf32> to vector<1x8xf32>
    %898 = vector.shape_cast %897 : vector<1x8xf32> to vector<1x8x1xf32>
    %899 = vector.broadcast %898 : vector<1x8x1xf32> to vector<1x8x10xf32>
    %900 = arith.subf %896, %899 : vector<1x8x10xf32>
    %901 = math.exp %900 : vector<1x8x10xf32>
    %cst_515 = arith.constant dense<0.000000e+00> : vector<1x8xf32>
    %902 = vector.multi_reduction <add>, %901, %cst_515 [2] : vector<1x8x10xf32> to vector<1x8xf32>
    %903 = vector.shape_cast %902 : vector<1x8xf32> to vector<1x8x1xf32>
    %904 = tpu.reciprocal %903 {approx = true} : vector<1x8x1xf32> -> vector<1x8x1xf32>
    %905 = vector.broadcast %904 : vector<1x8x1xf32> to vector<1x8x10xf32>
    %906 = arith.mulf %901, %905 : vector<1x8x10xf32>
    "tpu.trace_start"() <{level = 10 : i32, message = "bqk,bkd->bqd"}> : () -> ()
    %cst_516 = arith.constant dense<0.000000e+00> : vector<1x8x8xf32>
    %907 = tpu.matmul %906, %889, %cst_516 {dimension_numbers = #tpu.dot_dimension_numbers<[2], [1], [1], [2], [0, 0, 0, 1, 1, 2], [0], [0]>} : vector<1x8x10xf32>, vector<1x10x8xf32>, vector<1x8x8xf32> -> vector<1x8x8xf32>
    "tpu.trace_stop"() : () -> ()
    %c8_517 = arith.constant 8 : index
    %c0_518 = arith.constant 0 : index
    %c0_519 = arith.constant 0 : index
    %908 = vector.load %arg20[%c8_517, %c0_518, %c0_519] : memref<16x8x32xf32, #tpu.memory_space<vmem>>, vector<1x8x32xf32>
    %909 = vector.shape_cast %908 : vector<1x8x32xf32> to vector<8x32xf32>
    %910 = vector.shape_cast %909 : vector<8x32xf32> to vector<1x8x32xf32>
    "tpu.trace_start"() <{level = 10 : i32, message = "btd,bde->bte"}> : () -> ()
    %cst_520 = arith.constant dense<0.000000e+00> : vector<1x8x32xf32>
    %911 = tpu.matmul %907, %910, %cst_520 {dimension_numbers = #tpu.dot_dimension_numbers<[2], [1], [1], [2], [0, 0, 0, 1, 1, 2], [0], [0]>} : vector<1x8x8xf32>, vector<1x8x32xf32>, vector<1x8x32xf32> -> vector<1x8x32xf32>
    "tpu.trace_stop"() : () -> ()
    %912 = arith.addf %862, %911 : vector<1x8x32xf32>
    %c25 = arith.constant 25 : index
    %c0_521 = arith.constant 0 : index
    %c0_522 = arith.constant 0 : index
    %913 = vector.load %arg18[%c25, %c0_521, %c0_522] : memref<48x32x8xf32, #tpu.memory_space<vmem>>, vector<1x32x8xf32>
    %914 = vector.shape_cast %913 : vector<1x32x8xf32> to vector<32x8xf32>
    %c25_523 = arith.constant 25 : index
    %c0_524 = arith.constant 0 : index
    %c0_525 = arith.constant 0 : index
    %915 = vector.load %arg19[%c25_523, %c0_524, %c0_525] : memref<48x1x8xf32, #tpu.memory_space<vmem>>, vector<1x1x8xf32>
    %916 = vector.shape_cast %915 : vector<1x1x8xf32> to vector<1x8xf32>
    %917 = vector.shape_cast %914 : vector<32x8xf32> to vector<1x32x8xf32>
    "tpu.trace_start"() <{level = 10 : i32, message = "btd,bde->bte"}> : () -> ()
    %cst_526 = arith.constant dense<0.000000e+00> : vector<1x8x8xf32>
    %918 = tpu.matmul %861, %917, %cst_526 {dimension_numbers = #tpu.dot_dimension_numbers<[2], [1], [1], [2], [0, 0, 0, 1, 1, 2], [0], [0]>} : vector<1x8x32xf32>, vector<1x32x8xf32>, vector<1x8x8xf32> -> vector<1x8x8xf32>
    "tpu.trace_stop"() : () -> ()
    %919 = vector.shape_cast %916 : vector<1x8xf32> to vector<1x1x8xf32>
    %920 = vector.broadcast %919 : vector<1x1x8xf32> to vector<1x8x8xf32>
    %921 = arith.addf %918, %920 : vector<1x8x8xf32>
    %c33 = arith.constant 33 : index
    %c0_527 = arith.constant 0 : index
    %c0_528 = arith.constant 0 : index
    %922 = vector.load %arg18[%c33, %c0_527, %c0_528] : memref<48x32x8xf32, #tpu.memory_space<vmem>>, vector<1x32x8xf32>
    %923 = vector.shape_cast %922 : vector<1x32x8xf32> to vector<32x8xf32>
    %c33_529 = arith.constant 33 : index
    %c0_530 = arith.constant 0 : index
    %c0_531 = arith.constant 0 : index
    %924 = vector.load %arg19[%c33_529, %c0_530, %c0_531] : memref<48x1x8xf32, #tpu.memory_space<vmem>>, vector<1x1x8xf32>
    %925 = vector.shape_cast %924 : vector<1x1x8xf32> to vector<1x8xf32>
    %926 = vector.shape_cast %923 : vector<32x8xf32> to vector<1x32x8xf32>
    "tpu.trace_start"() <{level = 10 : i32, message = "btd,bde->bte"}> : () -> ()
    %cst_532 = arith.constant dense<0.000000e+00> : vector<1x10x8xf32>
    %927 = tpu.matmul %595, %926, %cst_532 {dimension_numbers = #tpu.dot_dimension_numbers<[2], [1], [1], [2], [0, 0, 0, 1, 1, 2], [0], [0]>} : vector<1x10x32xf32>, vector<1x32x8xf32>, vector<1x10x8xf32> -> vector<1x10x8xf32>
    "tpu.trace_stop"() : () -> ()
    %928 = vector.shape_cast %925 : vector<1x8xf32> to vector<1x1x8xf32>
    %929 = vector.broadcast %928 : vector<1x1x8xf32> to vector<1x10x8xf32>
    %930 = arith.addf %927, %929 : vector<1x10x8xf32>
    %c41 = arith.constant 41 : index
    %c0_533 = arith.constant 0 : index
    %c0_534 = arith.constant 0 : index
    %931 = vector.load %arg18[%c41, %c0_533, %c0_534] : memref<48x32x8xf32, #tpu.memory_space<vmem>>, vector<1x32x8xf32>
    %932 = vector.shape_cast %931 : vector<1x32x8xf32> to vector<32x8xf32>
    %c41_535 = arith.constant 41 : index
    %c0_536 = arith.constant 0 : index
    %c0_537 = arith.constant 0 : index
    %933 = vector.load %arg19[%c41_535, %c0_536, %c0_537] : memref<48x1x8xf32, #tpu.memory_space<vmem>>, vector<1x1x8xf32>
    %934 = vector.shape_cast %933 : vector<1x1x8xf32> to vector<1x8xf32>
    %935 = vector.shape_cast %932 : vector<32x8xf32> to vector<1x32x8xf32>
    "tpu.trace_start"() <{level = 10 : i32, message = "btd,bde->bte"}> : () -> ()
    %cst_538 = arith.constant dense<0.000000e+00> : vector<1x10x8xf32>
    %936 = tpu.matmul %595, %935, %cst_538 {dimension_numbers = #tpu.dot_dimension_numbers<[2], [1], [1], [2], [0, 0, 0, 1, 1, 2], [0], [0]>} : vector<1x10x32xf32>, vector<1x32x8xf32>, vector<1x10x8xf32> -> vector<1x10x8xf32>
    "tpu.trace_stop"() : () -> ()
    %937 = vector.shape_cast %934 : vector<1x8xf32> to vector<1x1x8xf32>
    %938 = vector.broadcast %937 : vector<1x1x8xf32> to vector<1x10x8xf32>
    %939 = arith.addf %936, %938 : vector<1x10x8xf32>
    "tpu.trace_start"() <{level = 10 : i32, message = "bqd,bkd->bqk"}> : () -> ()
    %cst_539 = arith.constant dense<0.000000e+00> : vector<1x8x10xf32>
    %940 = tpu.matmul %921, %930, %cst_539 {dimension_numbers = #tpu.dot_dimension_numbers<[2], [2], [1], [1], [0, 0, 0, 1, 1, 1], [0], [0]>} : vector<1x8x8xf32>, vector<1x10x8xf32>, vector<1x8x10xf32> -> vector<1x8x10xf32>
    "tpu.trace_stop"() : () -> ()
    %cst_540 = arith.constant 0.353553385 : f32
    %941 = vector.broadcast %cst_540 : f32 to vector<1x8x10xf32>
    %942 = arith.mulf %940, %941 : vector<1x8x10xf32>
    %cst_541 = arith.constant 0.000000e+00 : f32
    %943 = vector.broadcast %cst_541 : f32 to vector<1x8x10xf32>
    %944 = arith.cmpf oeq, %598, %943 : vector<1x8x10xf32>
    %cst_542 = arith.constant -1.000000e+09 : f32
    %945 = vector.broadcast %cst_542 : f32 to vector<1x8x10xf32>
    %946 = arith.select %944, %945, %942 : vector<1x8x10xi1>, vector<1x8x10xf32>
    %cst_543 = arith.constant dense<0xFF800000> : vector<1x8xf32>
    %947 = vector.multi_reduction <maximumf>, %946, %cst_543 [2] : vector<1x8x10xf32> to vector<1x8xf32>
    %948 = vector.shape_cast %947 : vector<1x8xf32> to vector<1x8x1xf32>
    %949 = vector.broadcast %948 : vector<1x8x1xf32> to vector<1x8x10xf32>
    %950 = arith.subf %946, %949 : vector<1x8x10xf32>
    %951 = math.exp %950 : vector<1x8x10xf32>
    %cst_544 = arith.constant dense<0.000000e+00> : vector<1x8xf32>
    %952 = vector.multi_reduction <add>, %951, %cst_544 [2] : vector<1x8x10xf32> to vector<1x8xf32>
    %953 = vector.shape_cast %952 : vector<1x8xf32> to vector<1x8x1xf32>
    %954 = tpu.reciprocal %953 {approx = true} : vector<1x8x1xf32> -> vector<1x8x1xf32>
    %955 = vector.broadcast %954 : vector<1x8x1xf32> to vector<1x8x10xf32>
    %956 = arith.mulf %951, %955 : vector<1x8x10xf32>
    "tpu.trace_start"() <{level = 10 : i32, message = "bqk,bkd->bqd"}> : () -> ()
    %cst_545 = arith.constant dense<0.000000e+00> : vector<1x8x8xf32>
    %957 = tpu.matmul %956, %939, %cst_545 {dimension_numbers = #tpu.dot_dimension_numbers<[2], [1], [1], [2], [0, 0, 0, 1, 1, 2], [0], [0]>} : vector<1x8x10xf32>, vector<1x10x8xf32>, vector<1x8x8xf32> -> vector<1x8x8xf32>
    "tpu.trace_stop"() : () -> ()
    %c9_546 = arith.constant 9 : index
    %c0_547 = arith.constant 0 : index
    %c0_548 = arith.constant 0 : index
    %958 = vector.load %arg20[%c9_546, %c0_547, %c0_548] : memref<16x8x32xf32, #tpu.memory_space<vmem>>, vector<1x8x32xf32>
    %959 = vector.shape_cast %958 : vector<1x8x32xf32> to vector<8x32xf32>
    %960 = vector.shape_cast %959 : vector<8x32xf32> to vector<1x8x32xf32>
    "tpu.trace_start"() <{level = 10 : i32, message = "btd,bde->bte"}> : () -> ()
    %cst_549 = arith.constant dense<0.000000e+00> : vector<1x8x32xf32>
    %961 = tpu.matmul %957, %960, %cst_549 {dimension_numbers = #tpu.dot_dimension_numbers<[2], [1], [1], [2], [0, 0, 0, 1, 1, 2], [0], [0]>} : vector<1x8x8xf32>, vector<1x8x32xf32>, vector<1x8x32xf32> -> vector<1x8x32xf32>
    "tpu.trace_stop"() : () -> ()
    %962 = arith.addf %912, %961 : vector<1x8x32xf32>
    %c26 = arith.constant 26 : index
    %c0_550 = arith.constant 0 : index
    %c0_551 = arith.constant 0 : index
    %963 = vector.load %arg18[%c26, %c0_550, %c0_551] : memref<48x32x8xf32, #tpu.memory_space<vmem>>, vector<1x32x8xf32>
    %964 = vector.shape_cast %963 : vector<1x32x8xf32> to vector<32x8xf32>
    %c26_552 = arith.constant 26 : index
    %c0_553 = arith.constant 0 : index
    %c0_554 = arith.constant 0 : index
    %965 = vector.load %arg19[%c26_552, %c0_553, %c0_554] : memref<48x1x8xf32, #tpu.memory_space<vmem>>, vector<1x1x8xf32>
    %966 = vector.shape_cast %965 : vector<1x1x8xf32> to vector<1x8xf32>
    %967 = vector.shape_cast %964 : vector<32x8xf32> to vector<1x32x8xf32>
    "tpu.trace_start"() <{level = 10 : i32, message = "btd,bde->bte"}> : () -> ()
    %cst_555 = arith.constant dense<0.000000e+00> : vector<1x8x8xf32>
    %968 = tpu.matmul %861, %967, %cst_555 {dimension_numbers = #tpu.dot_dimension_numbers<[2], [1], [1], [2], [0, 0, 0, 1, 1, 2], [0], [0]>} : vector<1x8x32xf32>, vector<1x32x8xf32>, vector<1x8x8xf32> -> vector<1x8x8xf32>
    "tpu.trace_stop"() : () -> ()
    %969 = vector.shape_cast %966 : vector<1x8xf32> to vector<1x1x8xf32>
    %970 = vector.broadcast %969 : vector<1x1x8xf32> to vector<1x8x8xf32>
    %971 = arith.addf %968, %970 : vector<1x8x8xf32>
    %c34 = arith.constant 34 : index
    %c0_556 = arith.constant 0 : index
    %c0_557 = arith.constant 0 : index
    %972 = vector.load %arg18[%c34, %c0_556, %c0_557] : memref<48x32x8xf32, #tpu.memory_space<vmem>>, vector<1x32x8xf32>
    %973 = vector.shape_cast %972 : vector<1x32x8xf32> to vector<32x8xf32>
    %c34_558 = arith.constant 34 : index
    %c0_559 = arith.constant 0 : index
    %c0_560 = arith.constant 0 : index
    %974 = vector.load %arg19[%c34_558, %c0_559, %c0_560] : memref<48x1x8xf32, #tpu.memory_space<vmem>>, vector<1x1x8xf32>
    %975 = vector.shape_cast %974 : vector<1x1x8xf32> to vector<1x8xf32>
    %976 = vector.shape_cast %973 : vector<32x8xf32> to vector<1x32x8xf32>
    "tpu.trace_start"() <{level = 10 : i32, message = "btd,bde->bte"}> : () -> ()
    %cst_561 = arith.constant dense<0.000000e+00> : vector<1x10x8xf32>
    %977 = tpu.matmul %595, %976, %cst_561 {dimension_numbers = #tpu.dot_dimension_numbers<[2], [1], [1], [2], [0, 0, 0, 1, 1, 2], [0], [0]>} : vector<1x10x32xf32>, vector<1x32x8xf32>, vector<1x10x8xf32> -> vector<1x10x8xf32>
    "tpu.trace_stop"() : () -> ()
    %978 = vector.shape_cast %975 : vector<1x8xf32> to vector<1x1x8xf32>
    %979 = vector.broadcast %978 : vector<1x1x8xf32> to vector<1x10x8xf32>
    %980 = arith.addf %977, %979 : vector<1x10x8xf32>
    %c42 = arith.constant 42 : index
    %c0_562 = arith.constant 0 : index
    %c0_563 = arith.constant 0 : index
    %981 = vector.load %arg18[%c42, %c0_562, %c0_563] : memref<48x32x8xf32, #tpu.memory_space<vmem>>, vector<1x32x8xf32>
    %982 = vector.shape_cast %981 : vector<1x32x8xf32> to vector<32x8xf32>
    %c42_564 = arith.constant 42 : index
    %c0_565 = arith.constant 0 : index
    %c0_566 = arith.constant 0 : index
    %983 = vector.load %arg19[%c42_564, %c0_565, %c0_566] : memref<48x1x8xf32, #tpu.memory_space<vmem>>, vector<1x1x8xf32>
    %984 = vector.shape_cast %983 : vector<1x1x8xf32> to vector<1x8xf32>
    %985 = vector.shape_cast %982 : vector<32x8xf32> to vector<1x32x8xf32>
    "tpu.trace_start"() <{level = 10 : i32, message = "btd,bde->bte"}> : () -> ()
    %cst_567 = arith.constant dense<0.000000e+00> : vector<1x10x8xf32>
    %986 = tpu.matmul %595, %985, %cst_567 {dimension_numbers = #tpu.dot_dimension_numbers<[2], [1], [1], [2], [0, 0, 0, 1, 1, 2], [0], [0]>} : vector<1x10x32xf32>, vector<1x32x8xf32>, vector<1x10x8xf32> -> vector<1x10x8xf32>
    "tpu.trace_stop"() : () -> ()
    %987 = vector.shape_cast %984 : vector<1x8xf32> to vector<1x1x8xf32>
    %988 = vector.broadcast %987 : vector<1x1x8xf32> to vector<1x10x8xf32>
    %989 = arith.addf %986, %988 : vector<1x10x8xf32>
    "tpu.trace_start"() <{level = 10 : i32, message = "bqd,bkd->bqk"}> : () -> ()
    %cst_568 = arith.constant dense<0.000000e+00> : vector<1x8x10xf32>
    %990 = tpu.matmul %971, %980, %cst_568 {dimension_numbers = #tpu.dot_dimension_numbers<[2], [2], [1], [1], [0, 0, 0, 1, 1, 1], [0], [0]>} : vector<1x8x8xf32>, vector<1x10x8xf32>, vector<1x8x10xf32> -> vector<1x8x10xf32>
    "tpu.trace_stop"() : () -> ()
    %cst_569 = arith.constant 0.353553385 : f32
    %991 = vector.broadcast %cst_569 : f32 to vector<1x8x10xf32>
    %992 = arith.mulf %990, %991 : vector<1x8x10xf32>
    %cst_570 = arith.constant 0.000000e+00 : f32
    %993 = vector.broadcast %cst_570 : f32 to vector<1x8x10xf32>
    %994 = arith.cmpf oeq, %598, %993 : vector<1x8x10xf32>
    %cst_571 = arith.constant -1.000000e+09 : f32
    %995 = vector.broadcast %cst_571 : f32 to vector<1x8x10xf32>
    %996 = arith.select %994, %995, %992 : vector<1x8x10xi1>, vector<1x8x10xf32>
    %cst_572 = arith.constant dense<0xFF800000> : vector<1x8xf32>
    %997 = vector.multi_reduction <maximumf>, %996, %cst_572 [2] : vector<1x8x10xf32> to vector<1x8xf32>
    %998 = vector.shape_cast %997 : vector<1x8xf32> to vector<1x8x1xf32>
    %999 = vector.broadcast %998 : vector<1x8x1xf32> to vector<1x8x10xf32>
    %1000 = arith.subf %996, %999 : vector<1x8x10xf32>
    %1001 = math.exp %1000 : vector<1x8x10xf32>
    %cst_573 = arith.constant dense<0.000000e+00> : vector<1x8xf32>
    %1002 = vector.multi_reduction <add>, %1001, %cst_573 [2] : vector<1x8x10xf32> to vector<1x8xf32>
    %1003 = vector.shape_cast %1002 : vector<1x8xf32> to vector<1x8x1xf32>
    %1004 = tpu.reciprocal %1003 {approx = true} : vector<1x8x1xf32> -> vector<1x8x1xf32>
    %1005 = vector.broadcast %1004 : vector<1x8x1xf32> to vector<1x8x10xf32>
    %1006 = arith.mulf %1001, %1005 : vector<1x8x10xf32>
    "tpu.trace_start"() <{level = 10 : i32, message = "bqk,bkd->bqd"}> : () -> ()
    %cst_574 = arith.constant dense<0.000000e+00> : vector<1x8x8xf32>
    %1007 = tpu.matmul %1006, %989, %cst_574 {dimension_numbers = #tpu.dot_dimension_numbers<[2], [1], [1], [2], [0, 0, 0, 1, 1, 2], [0], [0]>} : vector<1x8x10xf32>, vector<1x10x8xf32>, vector<1x8x8xf32> -> vector<1x8x8xf32>
    "tpu.trace_stop"() : () -> ()
    %c10_575 = arith.constant 10 : index
    %c0_576 = arith.constant 0 : index
    %c0_577 = arith.constant 0 : index
    %1008 = vector.load %arg20[%c10_575, %c0_576, %c0_577] : memref<16x8x32xf32, #tpu.memory_space<vmem>>, vector<1x8x32xf32>
    %1009 = vector.shape_cast %1008 : vector<1x8x32xf32> to vector<8x32xf32>
    %1010 = vector.shape_cast %1009 : vector<8x32xf32> to vector<1x8x32xf32>
    "tpu.trace_start"() <{level = 10 : i32, message = "btd,bde->bte"}> : () -> ()
    %cst_578 = arith.constant dense<0.000000e+00> : vector<1x8x32xf32>
    %1011 = tpu.matmul %1007, %1010, %cst_578 {dimension_numbers = #tpu.dot_dimension_numbers<[2], [1], [1], [2], [0, 0, 0, 1, 1, 2], [0], [0]>} : vector<1x8x8xf32>, vector<1x8x32xf32>, vector<1x8x32xf32> -> vector<1x8x32xf32>
    "tpu.trace_stop"() : () -> ()
    %1012 = arith.addf %962, %1011 : vector<1x8x32xf32>
    %c27 = arith.constant 27 : index
    %c0_579 = arith.constant 0 : index
    %c0_580 = arith.constant 0 : index
    %1013 = vector.load %arg18[%c27, %c0_579, %c0_580] : memref<48x32x8xf32, #tpu.memory_space<vmem>>, vector<1x32x8xf32>
    %1014 = vector.shape_cast %1013 : vector<1x32x8xf32> to vector<32x8xf32>
    %c27_581 = arith.constant 27 : index
    %c0_582 = arith.constant 0 : index
    %c0_583 = arith.constant 0 : index
    %1015 = vector.load %arg19[%c27_581, %c0_582, %c0_583] : memref<48x1x8xf32, #tpu.memory_space<vmem>>, vector<1x1x8xf32>
    %1016 = vector.shape_cast %1015 : vector<1x1x8xf32> to vector<1x8xf32>
    %1017 = vector.shape_cast %1014 : vector<32x8xf32> to vector<1x32x8xf32>
    "tpu.trace_start"() <{level = 10 : i32, message = "btd,bde->bte"}> : () -> ()
    %cst_584 = arith.constant dense<0.000000e+00> : vector<1x8x8xf32>
    %1018 = tpu.matmul %861, %1017, %cst_584 {dimension_numbers = #tpu.dot_dimension_numbers<[2], [1], [1], [2], [0, 0, 0, 1, 1, 2], [0], [0]>} : vector<1x8x32xf32>, vector<1x32x8xf32>, vector<1x8x8xf32> -> vector<1x8x8xf32>
    "tpu.trace_stop"() : () -> ()
    %1019 = vector.shape_cast %1016 : vector<1x8xf32> to vector<1x1x8xf32>
    %1020 = vector.broadcast %1019 : vector<1x1x8xf32> to vector<1x8x8xf32>
    %1021 = arith.addf %1018, %1020 : vector<1x8x8xf32>
    %c35 = arith.constant 35 : index
    %c0_585 = arith.constant 0 : index
    %c0_586 = arith.constant 0 : index
    %1022 = vector.load %arg18[%c35, %c0_585, %c0_586] : memref<48x32x8xf32, #tpu.memory_space<vmem>>, vector<1x32x8xf32>
    %1023 = vector.shape_cast %1022 : vector<1x32x8xf32> to vector<32x8xf32>
    %c35_587 = arith.constant 35 : index
    %c0_588 = arith.constant 0 : index
    %c0_589 = arith.constant 0 : index
    %1024 = vector.load %arg19[%c35_587, %c0_588, %c0_589] : memref<48x1x8xf32, #tpu.memory_space<vmem>>, vector<1x1x8xf32>
    %1025 = vector.shape_cast %1024 : vector<1x1x8xf32> to vector<1x8xf32>
    %1026 = vector.shape_cast %1023 : vector<32x8xf32> to vector<1x32x8xf32>
    "tpu.trace_start"() <{level = 10 : i32, message = "btd,bde->bte"}> : () -> ()
    %cst_590 = arith.constant dense<0.000000e+00> : vector<1x10x8xf32>
    %1027 = tpu.matmul %595, %1026, %cst_590 {dimension_numbers = #tpu.dot_dimension_numbers<[2], [1], [1], [2], [0, 0, 0, 1, 1, 2], [0], [0]>} : vector<1x10x32xf32>, vector<1x32x8xf32>, vector<1x10x8xf32> -> vector<1x10x8xf32>
    "tpu.trace_stop"() : () -> ()
    %1028 = vector.shape_cast %1025 : vector<1x8xf32> to vector<1x1x8xf32>
    %1029 = vector.broadcast %1028 : vector<1x1x8xf32> to vector<1x10x8xf32>
    %1030 = arith.addf %1027, %1029 : vector<1x10x8xf32>
    %c43 = arith.constant 43 : index
    %c0_591 = arith.constant 0 : index
    %c0_592 = arith.constant 0 : index
    %1031 = vector.load %arg18[%c43, %c0_591, %c0_592] : memref<48x32x8xf32, #tpu.memory_space<vmem>>, vector<1x32x8xf32>
    %1032 = vector.shape_cast %1031 : vector<1x32x8xf32> to vector<32x8xf32>
    %c43_593 = arith.constant 43 : index
    %c0_594 = arith.constant 0 : index
    %c0_595 = arith.constant 0 : index
    %1033 = vector.load %arg19[%c43_593, %c0_594, %c0_595] : memref<48x1x8xf32, #tpu.memory_space<vmem>>, vector<1x1x8xf32>
    %1034 = vector.shape_cast %1033 : vector<1x1x8xf32> to vector<1x8xf32>
    %1035 = vector.shape_cast %1032 : vector<32x8xf32> to vector<1x32x8xf32>
    "tpu.trace_start"() <{level = 10 : i32, message = "btd,bde->bte"}> : () -> ()
    %cst_596 = arith.constant dense<0.000000e+00> : vector<1x10x8xf32>
    %1036 = tpu.matmul %595, %1035, %cst_596 {dimension_numbers = #tpu.dot_dimension_numbers<[2], [1], [1], [2], [0, 0, 0, 1, 1, 2], [0], [0]>} : vector<1x10x32xf32>, vector<1x32x8xf32>, vector<1x10x8xf32> -> vector<1x10x8xf32>
    "tpu.trace_stop"() : () -> ()
    %1037 = vector.shape_cast %1034 : vector<1x8xf32> to vector<1x1x8xf32>
    %1038 = vector.broadcast %1037 : vector<1x1x8xf32> to vector<1x10x8xf32>
    %1039 = arith.addf %1036, %1038 : vector<1x10x8xf32>
    "tpu.trace_start"() <{level = 10 : i32, message = "bqd,bkd->bqk"}> : () -> ()
    %cst_597 = arith.constant dense<0.000000e+00> : vector<1x8x10xf32>
    %1040 = tpu.matmul %1021, %1030, %cst_597 {dimension_numbers = #tpu.dot_dimension_numbers<[2], [2], [1], [1], [0, 0, 0, 1, 1, 1], [0], [0]>} : vector<1x8x8xf32>, vector<1x10x8xf32>, vector<1x8x10xf32> -> vector<1x8x10xf32>
    "tpu.trace_stop"() : () -> ()
    %cst_598 = arith.constant 0.353553385 : f32
    %1041 = vector.broadcast %cst_598 : f32 to vector<1x8x10xf32>
    %1042 = arith.mulf %1040, %1041 : vector<1x8x10xf32>
    %cst_599 = arith.constant 0.000000e+00 : f32
    %1043 = vector.broadcast %cst_599 : f32 to vector<1x8x10xf32>
    %1044 = arith.cmpf oeq, %598, %1043 : vector<1x8x10xf32>
    %cst_600 = arith.constant -1.000000e+09 : f32
    %1045 = vector.broadcast %cst_600 : f32 to vector<1x8x10xf32>
    %1046 = arith.select %1044, %1045, %1042 : vector<1x8x10xi1>, vector<1x8x10xf32>
    %cst_601 = arith.constant dense<0xFF800000> : vector<1x8xf32>
    %1047 = vector.multi_reduction <maximumf>, %1046, %cst_601 [2] : vector<1x8x10xf32> to vector<1x8xf32>
    %1048 = vector.shape_cast %1047 : vector<1x8xf32> to vector<1x8x1xf32>
    %1049 = vector.broadcast %1048 : vector<1x8x1xf32> to vector<1x8x10xf32>
    %1050 = arith.subf %1046, %1049 : vector<1x8x10xf32>
    %1051 = math.exp %1050 : vector<1x8x10xf32>
    %cst_602 = arith.constant dense<0.000000e+00> : vector<1x8xf32>
    %1052 = vector.multi_reduction <add>, %1051, %cst_602 [2] : vector<1x8x10xf32> to vector<1x8xf32>
    %1053 = vector.shape_cast %1052 : vector<1x8xf32> to vector<1x8x1xf32>
    %1054 = tpu.reciprocal %1053 {approx = true} : vector<1x8x1xf32> -> vector<1x8x1xf32>
    %1055 = vector.broadcast %1054 : vector<1x8x1xf32> to vector<1x8x10xf32>
    %1056 = arith.mulf %1051, %1055 : vector<1x8x10xf32>
    "tpu.trace_start"() <{level = 10 : i32, message = "bqk,bkd->bqd"}> : () -> ()
    %cst_603 = arith.constant dense<0.000000e+00> : vector<1x8x8xf32>
    %1057 = tpu.matmul %1056, %1039, %cst_603 {dimension_numbers = #tpu.dot_dimension_numbers<[2], [1], [1], [2], [0, 0, 0, 1, 1, 2], [0], [0]>} : vector<1x8x10xf32>, vector<1x10x8xf32>, vector<1x8x8xf32> -> vector<1x8x8xf32>
    "tpu.trace_stop"() : () -> ()
    %c11_604 = arith.constant 11 : index
    %c0_605 = arith.constant 0 : index
    %c0_606 = arith.constant 0 : index
    %1058 = vector.load %arg20[%c11_604, %c0_605, %c0_606] : memref<16x8x32xf32, #tpu.memory_space<vmem>>, vector<1x8x32xf32>
    %1059 = vector.shape_cast %1058 : vector<1x8x32xf32> to vector<8x32xf32>
    %1060 = vector.shape_cast %1059 : vector<8x32xf32> to vector<1x8x32xf32>
    "tpu.trace_start"() <{level = 10 : i32, message = "btd,bde->bte"}> : () -> ()
    %cst_607 = arith.constant dense<0.000000e+00> : vector<1x8x32xf32>
    %1061 = tpu.matmul %1057, %1060, %cst_607 {dimension_numbers = #tpu.dot_dimension_numbers<[2], [1], [1], [2], [0, 0, 0, 1, 1, 2], [0], [0]>} : vector<1x8x8xf32>, vector<1x8x32xf32>, vector<1x8x32xf32> -> vector<1x8x32xf32>
    "tpu.trace_stop"() : () -> ()
    %1062 = arith.addf %1012, %1061 : vector<1x8x32xf32>
    %c2_608 = arith.constant 2 : index
    %c0_609 = arith.constant 0 : index
    %c0_610 = arith.constant 0 : index
    %1063 = vector.load %arg21[%c2_608, %c0_609, %c0_610] : memref<4x1x32xf32, #tpu.memory_space<vmem>>, vector<1x1x32xf32>
    %1064 = vector.shape_cast %1063 : vector<1x1x32xf32> to vector<1x32xf32>
    %1065 = vector.shape_cast %1064 : vector<1x32xf32> to vector<1x1x32xf32>
    %1066 = vector.broadcast %1065 : vector<1x1x32xf32> to vector<1x8x32xf32>
    %1067 = arith.addf %1062, %1066 : vector<1x8x32xf32>
    %1068 = arith.addf %833, %1067 : vector<1x8x32xf32>
    %c2_611 = arith.constant 2 : index
    %c0_612 = arith.constant 0 : index
    %c0_613 = arith.constant 0 : index
    %1069 = vector.load %arg22[%c2_611, %c0_612, %c0_613] : memref<6x1x32xf32, #tpu.memory_space<vmem>>, vector<1x1x32xf32>
    %1070 = vector.shape_cast %1069 : vector<1x1x32xf32> to vector<1x32xf32>
    %c2_614 = arith.constant 2 : index
    %c0_615 = arith.constant 0 : index
    %c0_616 = arith.constant 0 : index
    %1071 = vector.load %arg23[%c2_614, %c0_615, %c0_616] : memref<6x1x32xf32, #tpu.memory_space<vmem>>, vector<1x1x32xf32>
    %1072 = vector.shape_cast %1071 : vector<1x1x32xf32> to vector<1x32xf32>
    %cst_617 = arith.constant dense<0.000000e+00> : vector<1x8xf32>
    %1073 = vector.multi_reduction <add>, %1068, %cst_617 [2] : vector<1x8x32xf32> to vector<1x8xf32>
    %1074 = vector.shape_cast %1073 : vector<1x8xf32> to vector<1x8x1xf32>
    %cst_618 = arith.constant 3.200000e+01 : f32
    %1075 = vector.broadcast %cst_618 : f32 to vector<1x8x1xf32>
    %1076 = arith.divf %1074, %1075 : vector<1x8x1xf32>
    %1077 = vector.broadcast %1076 : vector<1x8x1xf32> to vector<1x8x32xf32>
    %1078 = arith.subf %1068, %1077 : vector<1x8x32xf32>
    %1079 = arith.mulf %1078, %1078 : vector<1x8x32xf32>
    %cst_619 = arith.constant dense<0.000000e+00> : vector<1x8xf32>
    %1080 = vector.multi_reduction <add>, %1079, %cst_619 [2] : vector<1x8x32xf32> to vector<1x8xf32>
    %1081 = vector.shape_cast %1080 : vector<1x8xf32> to vector<1x8x1xf32>
    %cst_620 = arith.constant 3.100000e+01 : f32
    %1082 = vector.broadcast %cst_620 : f32 to vector<1x8x1xf32>
    %1083 = arith.divf %1081, %1082 : vector<1x8x1xf32>
    %1084 = vector.broadcast %1076 : vector<1x8x1xf32> to vector<1x8x32xf32>
    %1085 = arith.subf %1068, %1084 : vector<1x8x32xf32>
    %1086 = vector.shape_cast %1070 : vector<1x32xf32> to vector<1x1x32xf32>
    %1087 = vector.broadcast %1086 : vector<1x1x32xf32> to vector<1x8x32xf32>
    %1088 = arith.mulf %1087, %1085 : vector<1x8x32xf32>
    %1089 = math.sqrt %1083 : vector<1x8x1xf32>
    %cst_621 = arith.constant 9.99999997E-7 : f32
    %1090 = vector.broadcast %cst_621 : f32 to vector<1x8x1xf32>
    %1091 = arith.addf %1089, %1090 : vector<1x8x1xf32>
    %1092 = vector.broadcast %1091 : vector<1x8x1xf32> to vector<1x8x32xf32>
    %1093 = arith.divf %1088, %1092 : vector<1x8x32xf32>
    %1094 = vector.shape_cast %1072 : vector<1x32xf32> to vector<1x1x32xf32>
    %1095 = vector.broadcast %1094 : vector<1x1x32xf32> to vector<1x8x32xf32>
    %1096 = arith.addf %1093, %1095 : vector<1x8x32xf32>
    %c0_622 = arith.constant 0 : index
    %c0_623 = arith.constant 0 : index
    %c0_624 = arith.constant 0 : index
    %1097 = vector.load %arg24[%c0_622, %c0_623, %c0_624] : memref<2x32x64xf32, #tpu.memory_space<vmem>>, vector<1x32x64xf32>
    %1098 = vector.shape_cast %1097 : vector<1x32x64xf32> to vector<32x64xf32>
    %c0_625 = arith.constant 0 : index
    %c0_626 = arith.constant 0 : index
    %c0_627 = arith.constant 0 : index
    %1099 = vector.load %arg25[%c0_625, %c0_626, %c0_627] : memref<2x1x64xf32, #tpu.memory_space<vmem>>, vector<1x1x64xf32>
    %1100 = vector.shape_cast %1099 : vector<1x1x64xf32> to vector<1x64xf32>
    %1101 = vector.shape_cast %1098 : vector<32x64xf32> to vector<1x32x64xf32>
    "tpu.trace_start"() <{level = 10 : i32, message = "btd,bde->bte"}> : () -> ()
    %cst_628 = arith.constant dense<0.000000e+00> : vector<1x8x64xf32>
    %1102 = tpu.matmul %1096, %1101, %cst_628 {dimension_numbers = #tpu.dot_dimension_numbers<[2], [1], [1], [2], [0, 0, 0, 1, 1, 2], [0], [0]>} : vector<1x8x32xf32>, vector<1x32x64xf32>, vector<1x8x64xf32> -> vector<1x8x64xf32>
    "tpu.trace_stop"() : () -> ()
    %1103 = vector.shape_cast %1100 : vector<1x64xf32> to vector<1x1x64xf32>
    %1104 = vector.broadcast %1103 : vector<1x1x64xf32> to vector<1x8x64xf32>
    %1105 = arith.addf %1102, %1104 : vector<1x8x64xf32>
    %cst_629 = arith.constant 0.000000e+00 : f32
    %1106 = vector.broadcast %cst_629 : f32 to vector<1x8x64xf32>
    %1107 = arith.maximumf %1105, %1106 : vector<1x8x64xf32>
    %c0_630 = arith.constant 0 : index
    %c0_631 = arith.constant 0 : index
    %c0_632 = arith.constant 0 : index
    %1108 = vector.load %arg26[%c0_630, %c0_631, %c0_632] : memref<2x64x32xf32, #tpu.memory_space<vmem>>, vector<1x64x32xf32>
    %1109 = vector.shape_cast %1108 : vector<1x64x32xf32> to vector<64x32xf32>
    %c0_633 = arith.constant 0 : index
    %c0_634 = arith.constant 0 : index
    %c0_635 = arith.constant 0 : index
    %1110 = vector.load %arg27[%c0_633, %c0_634, %c0_635] : memref<2x1x32xf32, #tpu.memory_space<vmem>>, vector<1x1x32xf32>
    %1111 = vector.shape_cast %1110 : vector<1x1x32xf32> to vector<1x32xf32>
    %1112 = vector.shape_cast %1109 : vector<64x32xf32> to vector<1x64x32xf32>
    "tpu.trace_start"() <{level = 10 : i32, message = "btd,bde->bte"}> : () -> ()
    %cst_636 = arith.constant dense<0.000000e+00> : vector<1x8x32xf32>
    %1113 = tpu.matmul %1107, %1112, %cst_636 {dimension_numbers = #tpu.dot_dimension_numbers<[2], [1], [1], [2], [0, 0, 0, 1, 1, 2], [0], [0]>} : vector<1x8x64xf32>, vector<1x64x32xf32>, vector<1x8x32xf32> -> vector<1x8x32xf32>
    "tpu.trace_stop"() : () -> ()
    %1114 = vector.shape_cast %1111 : vector<1x32xf32> to vector<1x1x32xf32>
    %1115 = vector.broadcast %1114 : vector<1x1x32xf32> to vector<1x8x32xf32>
    %1116 = arith.addf %1113, %1115 : vector<1x8x32xf32>
    %1117 = arith.addf %1068, %1116 : vector<1x8x32xf32>
    %c3_637 = arith.constant 3 : index
    %c0_638 = arith.constant 0 : index
    %c0_639 = arith.constant 0 : index
    %1118 = vector.load %arg22[%c3_637, %c0_638, %c0_639] : memref<6x1x32xf32, #tpu.memory_space<vmem>>, vector<1x1x32xf32>
    %1119 = vector.shape_cast %1118 : vector<1x1x32xf32> to vector<1x32xf32>
    %c3_640 = arith.constant 3 : index
    %c0_641 = arith.constant 0 : index
    %c0_642 = arith.constant 0 : index
    %1120 = vector.load %arg23[%c3_640, %c0_641, %c0_642] : memref<6x1x32xf32, #tpu.memory_space<vmem>>, vector<1x1x32xf32>
    %1121 = vector.shape_cast %1120 : vector<1x1x32xf32> to vector<1x32xf32>
    %cst_643 = arith.constant dense<0.000000e+00> : vector<1x8xf32>
    %1122 = vector.multi_reduction <add>, %1117, %cst_643 [2] : vector<1x8x32xf32> to vector<1x8xf32>
    %1123 = vector.shape_cast %1122 : vector<1x8xf32> to vector<1x8x1xf32>
    %cst_644 = arith.constant 3.200000e+01 : f32
    %1124 = vector.broadcast %cst_644 : f32 to vector<1x8x1xf32>
    %1125 = arith.divf %1123, %1124 : vector<1x8x1xf32>
    %1126 = vector.broadcast %1125 : vector<1x8x1xf32> to vector<1x8x32xf32>
    %1127 = arith.subf %1117, %1126 : vector<1x8x32xf32>
    %1128 = arith.mulf %1127, %1127 : vector<1x8x32xf32>
    %cst_645 = arith.constant dense<0.000000e+00> : vector<1x8xf32>
    %1129 = vector.multi_reduction <add>, %1128, %cst_645 [2] : vector<1x8x32xf32> to vector<1x8xf32>
    %1130 = vector.shape_cast %1129 : vector<1x8xf32> to vector<1x8x1xf32>
    %cst_646 = arith.constant 3.100000e+01 : f32
    %1131 = vector.broadcast %cst_646 : f32 to vector<1x8x1xf32>
    %1132 = arith.divf %1130, %1131 : vector<1x8x1xf32>
    %1133 = vector.broadcast %1125 : vector<1x8x1xf32> to vector<1x8x32xf32>
    %1134 = arith.subf %1117, %1133 : vector<1x8x32xf32>
    %1135 = vector.shape_cast %1119 : vector<1x32xf32> to vector<1x1x32xf32>
    %1136 = vector.broadcast %1135 : vector<1x1x32xf32> to vector<1x8x32xf32>
    %1137 = arith.mulf %1136, %1134 : vector<1x8x32xf32>
    %1138 = math.sqrt %1132 : vector<1x8x1xf32>
    %cst_647 = arith.constant 9.99999997E-7 : f32
    %1139 = vector.broadcast %cst_647 : f32 to vector<1x8x1xf32>
    %1140 = arith.addf %1138, %1139 : vector<1x8x1xf32>
    %1141 = vector.broadcast %1140 : vector<1x8x1xf32> to vector<1x8x32xf32>
    %1142 = arith.divf %1137, %1141 : vector<1x8x32xf32>
    %1143 = vector.shape_cast %1121 : vector<1x32xf32> to vector<1x1x32xf32>
    %1144 = vector.broadcast %1143 : vector<1x1x32xf32> to vector<1x8x32xf32>
    %1145 = arith.addf %1142, %1144 : vector<1x8x32xf32>
    %cst_648 = arith.constant 0.000000e+00 : f32
    %1146 = vector.broadcast %cst_648 : f32 to vector<1x8x32xf32>
    %c4_649 = arith.constant 4 : index
    %c0_650 = arith.constant 0 : index
    %c0_651 = arith.constant 0 : index
    %1147 = vector.load %arg18[%c4_649, %c0_650, %c0_651] : memref<48x32x8xf32, #tpu.memory_space<vmem>>, vector<1x32x8xf32>
    %1148 = vector.shape_cast %1147 : vector<1x32x8xf32> to vector<32x8xf32>
    %c4_652 = arith.constant 4 : index
    %c0_653 = arith.constant 0 : index
    %c0_654 = arith.constant 0 : index
    %1149 = vector.load %arg19[%c4_652, %c0_653, %c0_654] : memref<48x1x8xf32, #tpu.memory_space<vmem>>, vector<1x1x8xf32>
    %1150 = vector.shape_cast %1149 : vector<1x1x8xf32> to vector<1x8xf32>
    %1151 = vector.shape_cast %1148 : vector<32x8xf32> to vector<1x32x8xf32>
    "tpu.trace_start"() <{level = 10 : i32, message = "btd,bde->bte"}> : () -> ()
    %cst_655 = arith.constant dense<0.000000e+00> : vector<1x8x8xf32>
    %1152 = tpu.matmul %1145, %1151, %cst_655 {dimension_numbers = #tpu.dot_dimension_numbers<[2], [1], [1], [2], [0, 0, 0, 1, 1, 2], [0], [0]>} : vector<1x8x32xf32>, vector<1x32x8xf32>, vector<1x8x8xf32> -> vector<1x8x8xf32>
    "tpu.trace_stop"() : () -> ()
    %1153 = vector.shape_cast %1150 : vector<1x8xf32> to vector<1x1x8xf32>
    %1154 = vector.broadcast %1153 : vector<1x1x8xf32> to vector<1x8x8xf32>
    %1155 = arith.addf %1152, %1154 : vector<1x8x8xf32>
    %c12_656 = arith.constant 12 : index
    %c0_657 = arith.constant 0 : index
    %c0_658 = arith.constant 0 : index
    %1156 = vector.load %arg18[%c12_656, %c0_657, %c0_658] : memref<48x32x8xf32, #tpu.memory_space<vmem>>, vector<1x32x8xf32>
    %1157 = vector.shape_cast %1156 : vector<1x32x8xf32> to vector<32x8xf32>
    %c12_659 = arith.constant 12 : index
    %c0_660 = arith.constant 0 : index
    %c0_661 = arith.constant 0 : index
    %1158 = vector.load %arg19[%c12_659, %c0_660, %c0_661] : memref<48x1x8xf32, #tpu.memory_space<vmem>>, vector<1x1x8xf32>
    %1159 = vector.shape_cast %1158 : vector<1x1x8xf32> to vector<1x8xf32>
    %1160 = vector.shape_cast %1157 : vector<32x8xf32> to vector<1x32x8xf32>
    "tpu.trace_start"() <{level = 10 : i32, message = "btd,bde->bte"}> : () -> ()
    %cst_662 = arith.constant dense<0.000000e+00> : vector<1x8x8xf32>
    %1161 = tpu.matmul %1145, %1160, %cst_662 {dimension_numbers = #tpu.dot_dimension_numbers<[2], [1], [1], [2], [0, 0, 0, 1, 1, 2], [0], [0]>} : vector<1x8x32xf32>, vector<1x32x8xf32>, vector<1x8x8xf32> -> vector<1x8x8xf32>
    "tpu.trace_stop"() : () -> ()
    %1162 = vector.shape_cast %1159 : vector<1x8xf32> to vector<1x1x8xf32>
    %1163 = vector.broadcast %1162 : vector<1x1x8xf32> to vector<1x8x8xf32>
    %1164 = arith.addf %1161, %1163 : vector<1x8x8xf32>
    %c20_663 = arith.constant 20 : index
    %c0_664 = arith.constant 0 : index
    %c0_665 = arith.constant 0 : index
    %1165 = vector.load %arg18[%c20_663, %c0_664, %c0_665] : memref<48x32x8xf32, #tpu.memory_space<vmem>>, vector<1x32x8xf32>
    %1166 = vector.shape_cast %1165 : vector<1x32x8xf32> to vector<32x8xf32>
    %c20_666 = arith.constant 20 : index
    %c0_667 = arith.constant 0 : index
    %c0_668 = arith.constant 0 : index
    %1167 = vector.load %arg19[%c20_666, %c0_667, %c0_668] : memref<48x1x8xf32, #tpu.memory_space<vmem>>, vector<1x1x8xf32>
    %1168 = vector.shape_cast %1167 : vector<1x1x8xf32> to vector<1x8xf32>
    %1169 = vector.shape_cast %1166 : vector<32x8xf32> to vector<1x32x8xf32>
    "tpu.trace_start"() <{level = 10 : i32, message = "btd,bde->bte"}> : () -> ()
    %cst_669 = arith.constant dense<0.000000e+00> : vector<1x8x8xf32>
    %1170 = tpu.matmul %1145, %1169, %cst_669 {dimension_numbers = #tpu.dot_dimension_numbers<[2], [1], [1], [2], [0, 0, 0, 1, 1, 2], [0], [0]>} : vector<1x8x32xf32>, vector<1x32x8xf32>, vector<1x8x8xf32> -> vector<1x8x8xf32>
    "tpu.trace_stop"() : () -> ()
    %1171 = vector.shape_cast %1168 : vector<1x8xf32> to vector<1x1x8xf32>
    %1172 = vector.broadcast %1171 : vector<1x1x8xf32> to vector<1x8x8xf32>
    %1173 = arith.addf %1170, %1172 : vector<1x8x8xf32>
    "tpu.trace_start"() <{level = 10 : i32, message = "bqd,bkd->bqk"}> : () -> ()
    %cst_670 = arith.constant dense<0.000000e+00> : vector<1x8x8xf32>
    %1174 = tpu.matmul %1155, %1164, %cst_670 {dimension_numbers = #tpu.dot_dimension_numbers<[2], [2], [1], [1], [0, 0, 0, 1, 1, 1], [0], [0]>} : vector<1x8x8xf32>, vector<1x8x8xf32>, vector<1x8x8xf32> -> vector<1x8x8xf32>
    "tpu.trace_stop"() : () -> ()
    %cst_671 = arith.constant 0.353553385 : f32
    %1175 = vector.broadcast %cst_671 : f32 to vector<1x8x8xf32>
    %1176 = arith.mulf %1174, %1175 : vector<1x8x8xf32>
    %cst_672 = arith.constant 0.000000e+00 : f32
    %1177 = vector.broadcast %cst_672 : f32 to vector<1x8x8xf32>
    %1178 = arith.cmpf oeq, %597, %1177 : vector<1x8x8xf32>
    %cst_673 = arith.constant -1.000000e+09 : f32
    %1179 = vector.broadcast %cst_673 : f32 to vector<1x8x8xf32>
    %1180 = arith.select %1178, %1179, %1176 : vector<1x8x8xi1>, vector<1x8x8xf32>
    %cst_674 = arith.constant dense<0xFF800000> : vector<1x8xf32>
    %1181 = vector.multi_reduction <maximumf>, %1180, %cst_674 [2] : vector<1x8x8xf32> to vector<1x8xf32>
    %1182 = vector.shape_cast %1181 : vector<1x8xf32> to vector<1x8x1xf32>
    %1183 = vector.broadcast %1182 : vector<1x8x1xf32> to vector<1x8x8xf32>
    %1184 = arith.subf %1180, %1183 : vector<1x8x8xf32>
    %1185 = math.exp %1184 : vector<1x8x8xf32>
    %cst_675 = arith.constant dense<0.000000e+00> : vector<1x8xf32>
    %1186 = vector.multi_reduction <add>, %1185, %cst_675 [2] : vector<1x8x8xf32> to vector<1x8xf32>
    %1187 = vector.shape_cast %1186 : vector<1x8xf32> to vector<1x8x1xf32>
    %1188 = tpu.reciprocal %1187 {approx = true} : vector<1x8x1xf32> -> vector<1x8x1xf32>
    %1189 = vector.broadcast %1188 : vector<1x8x1xf32> to vector<1x8x8xf32>
    %1190 = arith.mulf %1185, %1189 : vector<1x8x8xf32>
    "tpu.trace_start"() <{level = 10 : i32, message = "bqk,bkd->bqd"}> : () -> ()
    %cst_676 = arith.constant dense<0.000000e+00> : vector<1x8x8xf32>
    %1191 = tpu.matmul %1190, %1173, %cst_676 {dimension_numbers = #tpu.dot_dimension_numbers<[2], [1], [1], [2], [0, 0, 0, 1, 1, 2], [0], [0]>} : vector<1x8x8xf32>, vector<1x8x8xf32>, vector<1x8x8xf32> -> vector<1x8x8xf32>
    "tpu.trace_stop"() : () -> ()
    %c4_677 = arith.constant 4 : index
    %c0_678 = arith.constant 0 : index
    %c0_679 = arith.constant 0 : index
    %1192 = vector.load %arg20[%c4_677, %c0_678, %c0_679] : memref<16x8x32xf32, #tpu.memory_space<vmem>>, vector<1x8x32xf32>
    %1193 = vector.shape_cast %1192 : vector<1x8x32xf32> to vector<8x32xf32>
    %1194 = vector.shape_cast %1193 : vector<8x32xf32> to vector<1x8x32xf32>
    "tpu.trace_start"() <{level = 10 : i32, message = "btd,bde->bte"}> : () -> ()
    %cst_680 = arith.constant dense<0.000000e+00> : vector<1x8x32xf32>
    %1195 = tpu.matmul %1191, %1194, %cst_680 {dimension_numbers = #tpu.dot_dimension_numbers<[2], [1], [1], [2], [0, 0, 0, 1, 1, 2], [0], [0]>} : vector<1x8x8xf32>, vector<1x8x32xf32>, vector<1x8x32xf32> -> vector<1x8x32xf32>
    "tpu.trace_stop"() : () -> ()
    %1196 = arith.addf %1146, %1195 : vector<1x8x32xf32>
    %c5_681 = arith.constant 5 : index
    %c0_682 = arith.constant 0 : index
    %c0_683 = arith.constant 0 : index
    %1197 = vector.load %arg18[%c5_681, %c0_682, %c0_683] : memref<48x32x8xf32, #tpu.memory_space<vmem>>, vector<1x32x8xf32>
    %1198 = vector.shape_cast %1197 : vector<1x32x8xf32> to vector<32x8xf32>
    %c5_684 = arith.constant 5 : index
    %c0_685 = arith.constant 0 : index
    %c0_686 = arith.constant 0 : index
    %1199 = vector.load %arg19[%c5_684, %c0_685, %c0_686] : memref<48x1x8xf32, #tpu.memory_space<vmem>>, vector<1x1x8xf32>
    %1200 = vector.shape_cast %1199 : vector<1x1x8xf32> to vector<1x8xf32>
    %1201 = vector.shape_cast %1198 : vector<32x8xf32> to vector<1x32x8xf32>
    "tpu.trace_start"() <{level = 10 : i32, message = "btd,bde->bte"}> : () -> ()
    %cst_687 = arith.constant dense<0.000000e+00> : vector<1x8x8xf32>
    %1202 = tpu.matmul %1145, %1201, %cst_687 {dimension_numbers = #tpu.dot_dimension_numbers<[2], [1], [1], [2], [0, 0, 0, 1, 1, 2], [0], [0]>} : vector<1x8x32xf32>, vector<1x32x8xf32>, vector<1x8x8xf32> -> vector<1x8x8xf32>
    "tpu.trace_stop"() : () -> ()
    %1203 = vector.shape_cast %1200 : vector<1x8xf32> to vector<1x1x8xf32>
    %1204 = vector.broadcast %1203 : vector<1x1x8xf32> to vector<1x8x8xf32>
    %1205 = arith.addf %1202, %1204 : vector<1x8x8xf32>
    %c13_688 = arith.constant 13 : index
    %c0_689 = arith.constant 0 : index
    %c0_690 = arith.constant 0 : index
    %1206 = vector.load %arg18[%c13_688, %c0_689, %c0_690] : memref<48x32x8xf32, #tpu.memory_space<vmem>>, vector<1x32x8xf32>
    %1207 = vector.shape_cast %1206 : vector<1x32x8xf32> to vector<32x8xf32>
    %c13_691 = arith.constant 13 : index
    %c0_692 = arith.constant 0 : index
    %c0_693 = arith.constant 0 : index
    %1208 = vector.load %arg19[%c13_691, %c0_692, %c0_693] : memref<48x1x8xf32, #tpu.memory_space<vmem>>, vector<1x1x8xf32>
    %1209 = vector.shape_cast %1208 : vector<1x1x8xf32> to vector<1x8xf32>
    %1210 = vector.shape_cast %1207 : vector<32x8xf32> to vector<1x32x8xf32>
    "tpu.trace_start"() <{level = 10 : i32, message = "btd,bde->bte"}> : () -> ()
    %cst_694 = arith.constant dense<0.000000e+00> : vector<1x8x8xf32>
    %1211 = tpu.matmul %1145, %1210, %cst_694 {dimension_numbers = #tpu.dot_dimension_numbers<[2], [1], [1], [2], [0, 0, 0, 1, 1, 2], [0], [0]>} : vector<1x8x32xf32>, vector<1x32x8xf32>, vector<1x8x8xf32> -> vector<1x8x8xf32>
    "tpu.trace_stop"() : () -> ()
    %1212 = vector.shape_cast %1209 : vector<1x8xf32> to vector<1x1x8xf32>
    %1213 = vector.broadcast %1212 : vector<1x1x8xf32> to vector<1x8x8xf32>
    %1214 = arith.addf %1211, %1213 : vector<1x8x8xf32>
    %c21_695 = arith.constant 21 : index
    %c0_696 = arith.constant 0 : index
    %c0_697 = arith.constant 0 : index
    %1215 = vector.load %arg18[%c21_695, %c0_696, %c0_697] : memref<48x32x8xf32, #tpu.memory_space<vmem>>, vector<1x32x8xf32>
    %1216 = vector.shape_cast %1215 : vector<1x32x8xf32> to vector<32x8xf32>
    %c21_698 = arith.constant 21 : index
    %c0_699 = arith.constant 0 : index
    %c0_700 = arith.constant 0 : index
    %1217 = vector.load %arg19[%c21_698, %c0_699, %c0_700] : memref<48x1x8xf32, #tpu.memory_space<vmem>>, vector<1x1x8xf32>
    %1218 = vector.shape_cast %1217 : vector<1x1x8xf32> to vector<1x8xf32>
    %1219 = vector.shape_cast %1216 : vector<32x8xf32> to vector<1x32x8xf32>
    "tpu.trace_start"() <{level = 10 : i32, message = "btd,bde->bte"}> : () -> ()
    %cst_701 = arith.constant dense<0.000000e+00> : vector<1x8x8xf32>
    %1220 = tpu.matmul %1145, %1219, %cst_701 {dimension_numbers = #tpu.dot_dimension_numbers<[2], [1], [1], [2], [0, 0, 0, 1, 1, 2], [0], [0]>} : vector<1x8x32xf32>, vector<1x32x8xf32>, vector<1x8x8xf32> -> vector<1x8x8xf32>
    "tpu.trace_stop"() : () -> ()
    %1221 = vector.shape_cast %1218 : vector<1x8xf32> to vector<1x1x8xf32>
    %1222 = vector.broadcast %1221 : vector<1x1x8xf32> to vector<1x8x8xf32>
    %1223 = arith.addf %1220, %1222 : vector<1x8x8xf32>
    "tpu.trace_start"() <{level = 10 : i32, message = "bqd,bkd->bqk"}> : () -> ()
    %cst_702 = arith.constant dense<0.000000e+00> : vector<1x8x8xf32>
    %1224 = tpu.matmul %1205, %1214, %cst_702 {dimension_numbers = #tpu.dot_dimension_numbers<[2], [2], [1], [1], [0, 0, 0, 1, 1, 1], [0], [0]>} : vector<1x8x8xf32>, vector<1x8x8xf32>, vector<1x8x8xf32> -> vector<1x8x8xf32>
    "tpu.trace_stop"() : () -> ()
    %cst_703 = arith.constant 0.353553385 : f32
    %1225 = vector.broadcast %cst_703 : f32 to vector<1x8x8xf32>
    %1226 = arith.mulf %1224, %1225 : vector<1x8x8xf32>
    %cst_704 = arith.constant 0.000000e+00 : f32
    %1227 = vector.broadcast %cst_704 : f32 to vector<1x8x8xf32>
    %1228 = arith.cmpf oeq, %597, %1227 : vector<1x8x8xf32>
    %cst_705 = arith.constant -1.000000e+09 : f32
    %1229 = vector.broadcast %cst_705 : f32 to vector<1x8x8xf32>
    %1230 = arith.select %1228, %1229, %1226 : vector<1x8x8xi1>, vector<1x8x8xf32>
    %cst_706 = arith.constant dense<0xFF800000> : vector<1x8xf32>
    %1231 = vector.multi_reduction <maximumf>, %1230, %cst_706 [2] : vector<1x8x8xf32> to vector<1x8xf32>
    %1232 = vector.shape_cast %1231 : vector<1x8xf32> to vector<1x8x1xf32>
    %1233 = vector.broadcast %1232 : vector<1x8x1xf32> to vector<1x8x8xf32>
    %1234 = arith.subf %1230, %1233 : vector<1x8x8xf32>
    %1235 = math.exp %1234 : vector<1x8x8xf32>
    %cst_707 = arith.constant dense<0.000000e+00> : vector<1x8xf32>
    %1236 = vector.multi_reduction <add>, %1235, %cst_707 [2] : vector<1x8x8xf32> to vector<1x8xf32>
    %1237 = vector.shape_cast %1236 : vector<1x8xf32> to vector<1x8x1xf32>
    %1238 = tpu.reciprocal %1237 {approx = true} : vector<1x8x1xf32> -> vector<1x8x1xf32>
    %1239 = vector.broadcast %1238 : vector<1x8x1xf32> to vector<1x8x8xf32>
    %1240 = arith.mulf %1235, %1239 : vector<1x8x8xf32>
    "tpu.trace_start"() <{level = 10 : i32, message = "bqk,bkd->bqd"}> : () -> ()
    %cst_708 = arith.constant dense<0.000000e+00> : vector<1x8x8xf32>
    %1241 = tpu.matmul %1240, %1223, %cst_708 {dimension_numbers = #tpu.dot_dimension_numbers<[2], [1], [1], [2], [0, 0, 0, 1, 1, 2], [0], [0]>} : vector<1x8x8xf32>, vector<1x8x8xf32>, vector<1x8x8xf32> -> vector<1x8x8xf32>
    "tpu.trace_stop"() : () -> ()
    %c5_709 = arith.constant 5 : index
    %c0_710 = arith.constant 0 : index
    %c0_711 = arith.constant 0 : index
    %1242 = vector.load %arg20[%c5_709, %c0_710, %c0_711] : memref<16x8x32xf32, #tpu.memory_space<vmem>>, vector<1x8x32xf32>
    %1243 = vector.shape_cast %1242 : vector<1x8x32xf32> to vector<8x32xf32>
    %1244 = vector.shape_cast %1243 : vector<8x32xf32> to vector<1x8x32xf32>
    "tpu.trace_start"() <{level = 10 : i32, message = "btd,bde->bte"}> : () -> ()
    %cst_712 = arith.constant dense<0.000000e+00> : vector<1x8x32xf32>
    %1245 = tpu.matmul %1241, %1244, %cst_712 {dimension_numbers = #tpu.dot_dimension_numbers<[2], [1], [1], [2], [0, 0, 0, 1, 1, 2], [0], [0]>} : vector<1x8x8xf32>, vector<1x8x32xf32>, vector<1x8x32xf32> -> vector<1x8x32xf32>
    "tpu.trace_stop"() : () -> ()
    %1246 = arith.addf %1196, %1245 : vector<1x8x32xf32>
    %c6_713 = arith.constant 6 : index
    %c0_714 = arith.constant 0 : index
    %c0_715 = arith.constant 0 : index
    %1247 = vector.load %arg18[%c6_713, %c0_714, %c0_715] : memref<48x32x8xf32, #tpu.memory_space<vmem>>, vector<1x32x8xf32>
    %1248 = vector.shape_cast %1247 : vector<1x32x8xf32> to vector<32x8xf32>
    %c6_716 = arith.constant 6 : index
    %c0_717 = arith.constant 0 : index
    %c0_718 = arith.constant 0 : index
    %1249 = vector.load %arg19[%c6_716, %c0_717, %c0_718] : memref<48x1x8xf32, #tpu.memory_space<vmem>>, vector<1x1x8xf32>
    %1250 = vector.shape_cast %1249 : vector<1x1x8xf32> to vector<1x8xf32>
    %1251 = vector.shape_cast %1248 : vector<32x8xf32> to vector<1x32x8xf32>
    "tpu.trace_start"() <{level = 10 : i32, message = "btd,bde->bte"}> : () -> ()
    %cst_719 = arith.constant dense<0.000000e+00> : vector<1x8x8xf32>
    %1252 = tpu.matmul %1145, %1251, %cst_719 {dimension_numbers = #tpu.dot_dimension_numbers<[2], [1], [1], [2], [0, 0, 0, 1, 1, 2], [0], [0]>} : vector<1x8x32xf32>, vector<1x32x8xf32>, vector<1x8x8xf32> -> vector<1x8x8xf32>
    "tpu.trace_stop"() : () -> ()
    %1253 = vector.shape_cast %1250 : vector<1x8xf32> to vector<1x1x8xf32>
    %1254 = vector.broadcast %1253 : vector<1x1x8xf32> to vector<1x8x8xf32>
    %1255 = arith.addf %1252, %1254 : vector<1x8x8xf32>
    %c14_720 = arith.constant 14 : index
    %c0_721 = arith.constant 0 : index
    %c0_722 = arith.constant 0 : index
    %1256 = vector.load %arg18[%c14_720, %c0_721, %c0_722] : memref<48x32x8xf32, #tpu.memory_space<vmem>>, vector<1x32x8xf32>
    %1257 = vector.shape_cast %1256 : vector<1x32x8xf32> to vector<32x8xf32>
    %c14_723 = arith.constant 14 : index
    %c0_724 = arith.constant 0 : index
    %c0_725 = arith.constant 0 : index
    %1258 = vector.load %arg19[%c14_723, %c0_724, %c0_725] : memref<48x1x8xf32, #tpu.memory_space<vmem>>, vector<1x1x8xf32>
    %1259 = vector.shape_cast %1258 : vector<1x1x8xf32> to vector<1x8xf32>
    %1260 = vector.shape_cast %1257 : vector<32x8xf32> to vector<1x32x8xf32>
    "tpu.trace_start"() <{level = 10 : i32, message = "btd,bde->bte"}> : () -> ()
    %cst_726 = arith.constant dense<0.000000e+00> : vector<1x8x8xf32>
    %1261 = tpu.matmul %1145, %1260, %cst_726 {dimension_numbers = #tpu.dot_dimension_numbers<[2], [1], [1], [2], [0, 0, 0, 1, 1, 2], [0], [0]>} : vector<1x8x32xf32>, vector<1x32x8xf32>, vector<1x8x8xf32> -> vector<1x8x8xf32>
    "tpu.trace_stop"() : () -> ()
    %1262 = vector.shape_cast %1259 : vector<1x8xf32> to vector<1x1x8xf32>
    %1263 = vector.broadcast %1262 : vector<1x1x8xf32> to vector<1x8x8xf32>
    %1264 = arith.addf %1261, %1263 : vector<1x8x8xf32>
    %c22_727 = arith.constant 22 : index
    %c0_728 = arith.constant 0 : index
    %c0_729 = arith.constant 0 : index
    %1265 = vector.load %arg18[%c22_727, %c0_728, %c0_729] : memref<48x32x8xf32, #tpu.memory_space<vmem>>, vector<1x32x8xf32>
    %1266 = vector.shape_cast %1265 : vector<1x32x8xf32> to vector<32x8xf32>
    %c22_730 = arith.constant 22 : index
    %c0_731 = arith.constant 0 : index
    %c0_732 = arith.constant 0 : index
    %1267 = vector.load %arg19[%c22_730, %c0_731, %c0_732] : memref<48x1x8xf32, #tpu.memory_space<vmem>>, vector<1x1x8xf32>
    %1268 = vector.shape_cast %1267 : vector<1x1x8xf32> to vector<1x8xf32>
    %1269 = vector.shape_cast %1266 : vector<32x8xf32> to vector<1x32x8xf32>
    "tpu.trace_start"() <{level = 10 : i32, message = "btd,bde->bte"}> : () -> ()
    %cst_733 = arith.constant dense<0.000000e+00> : vector<1x8x8xf32>
    %1270 = tpu.matmul %1145, %1269, %cst_733 {dimension_numbers = #tpu.dot_dimension_numbers<[2], [1], [1], [2], [0, 0, 0, 1, 1, 2], [0], [0]>} : vector<1x8x32xf32>, vector<1x32x8xf32>, vector<1x8x8xf32> -> vector<1x8x8xf32>
    "tpu.trace_stop"() : () -> ()
    %1271 = vector.shape_cast %1268 : vector<1x8xf32> to vector<1x1x8xf32>
    %1272 = vector.broadcast %1271 : vector<1x1x8xf32> to vector<1x8x8xf32>
    %1273 = arith.addf %1270, %1272 : vector<1x8x8xf32>
    "tpu.trace_start"() <{level = 10 : i32, message = "bqd,bkd->bqk"}> : () -> ()
    %cst_734 = arith.constant dense<0.000000e+00> : vector<1x8x8xf32>
    %1274 = tpu.matmul %1255, %1264, %cst_734 {dimension_numbers = #tpu.dot_dimension_numbers<[2], [2], [1], [1], [0, 0, 0, 1, 1, 1], [0], [0]>} : vector<1x8x8xf32>, vector<1x8x8xf32>, vector<1x8x8xf32> -> vector<1x8x8xf32>
    "tpu.trace_stop"() : () -> ()
    %cst_735 = arith.constant 0.353553385 : f32
    %1275 = vector.broadcast %cst_735 : f32 to vector<1x8x8xf32>
    %1276 = arith.mulf %1274, %1275 : vector<1x8x8xf32>
    %cst_736 = arith.constant 0.000000e+00 : f32
    %1277 = vector.broadcast %cst_736 : f32 to vector<1x8x8xf32>
    %1278 = arith.cmpf oeq, %597, %1277 : vector<1x8x8xf32>
    %cst_737 = arith.constant -1.000000e+09 : f32
    %1279 = vector.broadcast %cst_737 : f32 to vector<1x8x8xf32>
    %1280 = arith.select %1278, %1279, %1276 : vector<1x8x8xi1>, vector<1x8x8xf32>
    %cst_738 = arith.constant dense<0xFF800000> : vector<1x8xf32>
    %1281 = vector.multi_reduction <maximumf>, %1280, %cst_738 [2] : vector<1x8x8xf32> to vector<1x8xf32>
    %1282 = vector.shape_cast %1281 : vector<1x8xf32> to vector<1x8x1xf32>
    %1283 = vector.broadcast %1282 : vector<1x8x1xf32> to vector<1x8x8xf32>
    %1284 = arith.subf %1280, %1283 : vector<1x8x8xf32>
    %1285 = math.exp %1284 : vector<1x8x8xf32>
    %cst_739 = arith.constant dense<0.000000e+00> : vector<1x8xf32>
    %1286 = vector.multi_reduction <add>, %1285, %cst_739 [2] : vector<1x8x8xf32> to vector<1x8xf32>
    %1287 = vector.shape_cast %1286 : vector<1x8xf32> to vector<1x8x1xf32>
    %1288 = tpu.reciprocal %1287 {approx = true} : vector<1x8x1xf32> -> vector<1x8x1xf32>
    %1289 = vector.broadcast %1288 : vector<1x8x1xf32> to vector<1x8x8xf32>
    %1290 = arith.mulf %1285, %1289 : vector<1x8x8xf32>
    "tpu.trace_start"() <{level = 10 : i32, message = "bqk,bkd->bqd"}> : () -> ()
    %cst_740 = arith.constant dense<0.000000e+00> : vector<1x8x8xf32>
    %1291 = tpu.matmul %1290, %1273, %cst_740 {dimension_numbers = #tpu.dot_dimension_numbers<[2], [1], [1], [2], [0, 0, 0, 1, 1, 2], [0], [0]>} : vector<1x8x8xf32>, vector<1x8x8xf32>, vector<1x8x8xf32> -> vector<1x8x8xf32>
    "tpu.trace_stop"() : () -> ()
    %c6_741 = arith.constant 6 : index
    %c0_742 = arith.constant 0 : index
    %c0_743 = arith.constant 0 : index
    %1292 = vector.load %arg20[%c6_741, %c0_742, %c0_743] : memref<16x8x32xf32, #tpu.memory_space<vmem>>, vector<1x8x32xf32>
    %1293 = vector.shape_cast %1292 : vector<1x8x32xf32> to vector<8x32xf32>
    %1294 = vector.shape_cast %1293 : vector<8x32xf32> to vector<1x8x32xf32>
    "tpu.trace_start"() <{level = 10 : i32, message = "btd,bde->bte"}> : () -> ()
    %cst_744 = arith.constant dense<0.000000e+00> : vector<1x8x32xf32>
    %1295 = tpu.matmul %1291, %1294, %cst_744 {dimension_numbers = #tpu.dot_dimension_numbers<[2], [1], [1], [2], [0, 0, 0, 1, 1, 2], [0], [0]>} : vector<1x8x8xf32>, vector<1x8x32xf32>, vector<1x8x32xf32> -> vector<1x8x32xf32>
    "tpu.trace_stop"() : () -> ()
    %1296 = arith.addf %1246, %1295 : vector<1x8x32xf32>
    %c7_745 = arith.constant 7 : index
    %c0_746 = arith.constant 0 : index
    %c0_747 = arith.constant 0 : index
    %1297 = vector.load %arg18[%c7_745, %c0_746, %c0_747] : memref<48x32x8xf32, #tpu.memory_space<vmem>>, vector<1x32x8xf32>
    %1298 = vector.shape_cast %1297 : vector<1x32x8xf32> to vector<32x8xf32>
    %c7_748 = arith.constant 7 : index
    %c0_749 = arith.constant 0 : index
    %c0_750 = arith.constant 0 : index
    %1299 = vector.load %arg19[%c7_748, %c0_749, %c0_750] : memref<48x1x8xf32, #tpu.memory_space<vmem>>, vector<1x1x8xf32>
    %1300 = vector.shape_cast %1299 : vector<1x1x8xf32> to vector<1x8xf32>
    %1301 = vector.shape_cast %1298 : vector<32x8xf32> to vector<1x32x8xf32>
    "tpu.trace_start"() <{level = 10 : i32, message = "btd,bde->bte"}> : () -> ()
    %cst_751 = arith.constant dense<0.000000e+00> : vector<1x8x8xf32>
    %1302 = tpu.matmul %1145, %1301, %cst_751 {dimension_numbers = #tpu.dot_dimension_numbers<[2], [1], [1], [2], [0, 0, 0, 1, 1, 2], [0], [0]>} : vector<1x8x32xf32>, vector<1x32x8xf32>, vector<1x8x8xf32> -> vector<1x8x8xf32>
    "tpu.trace_stop"() : () -> ()
    %1303 = vector.shape_cast %1300 : vector<1x8xf32> to vector<1x1x8xf32>
    %1304 = vector.broadcast %1303 : vector<1x1x8xf32> to vector<1x8x8xf32>
    %1305 = arith.addf %1302, %1304 : vector<1x8x8xf32>
    %c15_752 = arith.constant 15 : index
    %c0_753 = arith.constant 0 : index
    %c0_754 = arith.constant 0 : index
    %1306 = vector.load %arg18[%c15_752, %c0_753, %c0_754] : memref<48x32x8xf32, #tpu.memory_space<vmem>>, vector<1x32x8xf32>
    %1307 = vector.shape_cast %1306 : vector<1x32x8xf32> to vector<32x8xf32>
    %c15_755 = arith.constant 15 : index
    %c0_756 = arith.constant 0 : index
    %c0_757 = arith.constant 0 : index
    %1308 = vector.load %arg19[%c15_755, %c0_756, %c0_757] : memref<48x1x8xf32, #tpu.memory_space<vmem>>, vector<1x1x8xf32>
    %1309 = vector.shape_cast %1308 : vector<1x1x8xf32> to vector<1x8xf32>
    %1310 = vector.shape_cast %1307 : vector<32x8xf32> to vector<1x32x8xf32>
    "tpu.trace_start"() <{level = 10 : i32, message = "btd,bde->bte"}> : () -> ()
    %cst_758 = arith.constant dense<0.000000e+00> : vector<1x8x8xf32>
    %1311 = tpu.matmul %1145, %1310, %cst_758 {dimension_numbers = #tpu.dot_dimension_numbers<[2], [1], [1], [2], [0, 0, 0, 1, 1, 2], [0], [0]>} : vector<1x8x32xf32>, vector<1x32x8xf32>, vector<1x8x8xf32> -> vector<1x8x8xf32>
    "tpu.trace_stop"() : () -> ()
    %1312 = vector.shape_cast %1309 : vector<1x8xf32> to vector<1x1x8xf32>
    %1313 = vector.broadcast %1312 : vector<1x1x8xf32> to vector<1x8x8xf32>
    %1314 = arith.addf %1311, %1313 : vector<1x8x8xf32>
    %c23_759 = arith.constant 23 : index
    %c0_760 = arith.constant 0 : index
    %c0_761 = arith.constant 0 : index
    %1315 = vector.load %arg18[%c23_759, %c0_760, %c0_761] : memref<48x32x8xf32, #tpu.memory_space<vmem>>, vector<1x32x8xf32>
    %1316 = vector.shape_cast %1315 : vector<1x32x8xf32> to vector<32x8xf32>
    %c23_762 = arith.constant 23 : index
    %c0_763 = arith.constant 0 : index
    %c0_764 = arith.constant 0 : index
    %1317 = vector.load %arg19[%c23_762, %c0_763, %c0_764] : memref<48x1x8xf32, #tpu.memory_space<vmem>>, vector<1x1x8xf32>
    %1318 = vector.shape_cast %1317 : vector<1x1x8xf32> to vector<1x8xf32>
    %1319 = vector.shape_cast %1316 : vector<32x8xf32> to vector<1x32x8xf32>
    "tpu.trace_start"() <{level = 10 : i32, message = "btd,bde->bte"}> : () -> ()
    %cst_765 = arith.constant dense<0.000000e+00> : vector<1x8x8xf32>
    %1320 = tpu.matmul %1145, %1319, %cst_765 {dimension_numbers = #tpu.dot_dimension_numbers<[2], [1], [1], [2], [0, 0, 0, 1, 1, 2], [0], [0]>} : vector<1x8x32xf32>, vector<1x32x8xf32>, vector<1x8x8xf32> -> vector<1x8x8xf32>
    "tpu.trace_stop"() : () -> ()
    %1321 = vector.shape_cast %1318 : vector<1x8xf32> to vector<1x1x8xf32>
    %1322 = vector.broadcast %1321 : vector<1x1x8xf32> to vector<1x8x8xf32>
    %1323 = arith.addf %1320, %1322 : vector<1x8x8xf32>
    "tpu.trace_start"() <{level = 10 : i32, message = "bqd,bkd->bqk"}> : () -> ()
    %cst_766 = arith.constant dense<0.000000e+00> : vector<1x8x8xf32>
    %1324 = tpu.matmul %1305, %1314, %cst_766 {dimension_numbers = #tpu.dot_dimension_numbers<[2], [2], [1], [1], [0, 0, 0, 1, 1, 1], [0], [0]>} : vector<1x8x8xf32>, vector<1x8x8xf32>, vector<1x8x8xf32> -> vector<1x8x8xf32>
    "tpu.trace_stop"() : () -> ()
    %cst_767 = arith.constant 0.353553385 : f32
    %1325 = vector.broadcast %cst_767 : f32 to vector<1x8x8xf32>
    %1326 = arith.mulf %1324, %1325 : vector<1x8x8xf32>
    %cst_768 = arith.constant 0.000000e+00 : f32
    %1327 = vector.broadcast %cst_768 : f32 to vector<1x8x8xf32>
    %1328 = arith.cmpf oeq, %597, %1327 : vector<1x8x8xf32>
    %cst_769 = arith.constant -1.000000e+09 : f32
    %1329 = vector.broadcast %cst_769 : f32 to vector<1x8x8xf32>
    %1330 = arith.select %1328, %1329, %1326 : vector<1x8x8xi1>, vector<1x8x8xf32>
    %cst_770 = arith.constant dense<0xFF800000> : vector<1x8xf32>
    %1331 = vector.multi_reduction <maximumf>, %1330, %cst_770 [2] : vector<1x8x8xf32> to vector<1x8xf32>
    %1332 = vector.shape_cast %1331 : vector<1x8xf32> to vector<1x8x1xf32>
    %1333 = vector.broadcast %1332 : vector<1x8x1xf32> to vector<1x8x8xf32>
    %1334 = arith.subf %1330, %1333 : vector<1x8x8xf32>
    %1335 = math.exp %1334 : vector<1x8x8xf32>
    %cst_771 = arith.constant dense<0.000000e+00> : vector<1x8xf32>
    %1336 = vector.multi_reduction <add>, %1335, %cst_771 [2] : vector<1x8x8xf32> to vector<1x8xf32>
    %1337 = vector.shape_cast %1336 : vector<1x8xf32> to vector<1x8x1xf32>
    %1338 = tpu.reciprocal %1337 {approx = true} : vector<1x8x1xf32> -> vector<1x8x1xf32>
    %1339 = vector.broadcast %1338 : vector<1x8x1xf32> to vector<1x8x8xf32>
    %1340 = arith.mulf %1335, %1339 : vector<1x8x8xf32>
    "tpu.trace_start"() <{level = 10 : i32, message = "bqk,bkd->bqd"}> : () -> ()
    %cst_772 = arith.constant dense<0.000000e+00> : vector<1x8x8xf32>
    %1341 = tpu.matmul %1340, %1323, %cst_772 {dimension_numbers = #tpu.dot_dimension_numbers<[2], [1], [1], [2], [0, 0, 0, 1, 1, 2], [0], [0]>} : vector<1x8x8xf32>, vector<1x8x8xf32>, vector<1x8x8xf32> -> vector<1x8x8xf32>
    "tpu.trace_stop"() : () -> ()
    %c7_773 = arith.constant 7 : index
    %c0_774 = arith.constant 0 : index
    %c0_775 = arith.constant 0 : index
    %1342 = vector.load %arg20[%c7_773, %c0_774, %c0_775] : memref<16x8x32xf32, #tpu.memory_space<vmem>>, vector<1x8x32xf32>
    %1343 = vector.shape_cast %1342 : vector<1x8x32xf32> to vector<8x32xf32>
    %1344 = vector.shape_cast %1343 : vector<8x32xf32> to vector<1x8x32xf32>
    "tpu.trace_start"() <{level = 10 : i32, message = "btd,bde->bte"}> : () -> ()
    %cst_776 = arith.constant dense<0.000000e+00> : vector<1x8x32xf32>
    %1345 = tpu.matmul %1341, %1344, %cst_776 {dimension_numbers = #tpu.dot_dimension_numbers<[2], [1], [1], [2], [0, 0, 0, 1, 1, 2], [0], [0]>} : vector<1x8x8xf32>, vector<1x8x32xf32>, vector<1x8x32xf32> -> vector<1x8x32xf32>
    "tpu.trace_stop"() : () -> ()
    %1346 = arith.addf %1296, %1345 : vector<1x8x32xf32>
    %c1_777 = arith.constant 1 : index
    %c0_778 = arith.constant 0 : index
    %c0_779 = arith.constant 0 : index
    %1347 = vector.load %arg21[%c1_777, %c0_778, %c0_779] : memref<4x1x32xf32, #tpu.memory_space<vmem>>, vector<1x1x32xf32>
    %1348 = vector.shape_cast %1347 : vector<1x1x32xf32> to vector<1x32xf32>
    %1349 = vector.shape_cast %1348 : vector<1x32xf32> to vector<1x1x32xf32>
    %1350 = vector.broadcast %1349 : vector<1x1x32xf32> to vector<1x8x32xf32>
    %1351 = arith.addf %1346, %1350 : vector<1x8x32xf32>
    %1352 = arith.addf %1117, %1351 : vector<1x8x32xf32>
    %c4_780 = arith.constant 4 : index
    %c0_781 = arith.constant 0 : index
    %c0_782 = arith.constant 0 : index
    %1353 = vector.load %arg22[%c4_780, %c0_781, %c0_782] : memref<6x1x32xf32, #tpu.memory_space<vmem>>, vector<1x1x32xf32>
    %1354 = vector.shape_cast %1353 : vector<1x1x32xf32> to vector<1x32xf32>
    %c4_783 = arith.constant 4 : index
    %c0_784 = arith.constant 0 : index
    %c0_785 = arith.constant 0 : index
    %1355 = vector.load %arg23[%c4_783, %c0_784, %c0_785] : memref<6x1x32xf32, #tpu.memory_space<vmem>>, vector<1x1x32xf32>
    %1356 = vector.shape_cast %1355 : vector<1x1x32xf32> to vector<1x32xf32>
    %cst_786 = arith.constant dense<0.000000e+00> : vector<1x8xf32>
    %1357 = vector.multi_reduction <add>, %1352, %cst_786 [2] : vector<1x8x32xf32> to vector<1x8xf32>
    %1358 = vector.shape_cast %1357 : vector<1x8xf32> to vector<1x8x1xf32>
    %cst_787 = arith.constant 3.200000e+01 : f32
    %1359 = vector.broadcast %cst_787 : f32 to vector<1x8x1xf32>
    %1360 = arith.divf %1358, %1359 : vector<1x8x1xf32>
    %1361 = vector.broadcast %1360 : vector<1x8x1xf32> to vector<1x8x32xf32>
    %1362 = arith.subf %1352, %1361 : vector<1x8x32xf32>
    %1363 = arith.mulf %1362, %1362 : vector<1x8x32xf32>
    %cst_788 = arith.constant dense<0.000000e+00> : vector<1x8xf32>
    %1364 = vector.multi_reduction <add>, %1363, %cst_788 [2] : vector<1x8x32xf32> to vector<1x8xf32>
    %1365 = vector.shape_cast %1364 : vector<1x8xf32> to vector<1x8x1xf32>
    %cst_789 = arith.constant 3.100000e+01 : f32
    %1366 = vector.broadcast %cst_789 : f32 to vector<1x8x1xf32>
    %1367 = arith.divf %1365, %1366 : vector<1x8x1xf32>
    %1368 = vector.broadcast %1360 : vector<1x8x1xf32> to vector<1x8x32xf32>
    %1369 = arith.subf %1352, %1368 : vector<1x8x32xf32>
    %1370 = vector.shape_cast %1354 : vector<1x32xf32> to vector<1x1x32xf32>
    %1371 = vector.broadcast %1370 : vector<1x1x32xf32> to vector<1x8x32xf32>
    %1372 = arith.mulf %1371, %1369 : vector<1x8x32xf32>
    %1373 = math.sqrt %1367 : vector<1x8x1xf32>
    %cst_790 = arith.constant 9.99999997E-7 : f32
    %1374 = vector.broadcast %cst_790 : f32 to vector<1x8x1xf32>
    %1375 = arith.addf %1373, %1374 : vector<1x8x1xf32>
    %1376 = vector.broadcast %1375 : vector<1x8x1xf32> to vector<1x8x32xf32>
    %1377 = arith.divf %1372, %1376 : vector<1x8x32xf32>
    %1378 = vector.shape_cast %1356 : vector<1x32xf32> to vector<1x1x32xf32>
    %1379 = vector.broadcast %1378 : vector<1x1x32xf32> to vector<1x8x32xf32>
    %1380 = arith.addf %1377, %1379 : vector<1x8x32xf32>
    %cst_791 = arith.constant 0.000000e+00 : f32
    %1381 = vector.broadcast %cst_791 : f32 to vector<1x8x32xf32>
    %c28 = arith.constant 28 : index
    %c0_792 = arith.constant 0 : index
    %c0_793 = arith.constant 0 : index
    %1382 = vector.load %arg18[%c28, %c0_792, %c0_793] : memref<48x32x8xf32, #tpu.memory_space<vmem>>, vector<1x32x8xf32>
    %1383 = vector.shape_cast %1382 : vector<1x32x8xf32> to vector<32x8xf32>
    %c28_794 = arith.constant 28 : index
    %c0_795 = arith.constant 0 : index
    %c0_796 = arith.constant 0 : index
    %1384 = vector.load %arg19[%c28_794, %c0_795, %c0_796] : memref<48x1x8xf32, #tpu.memory_space<vmem>>, vector<1x1x8xf32>
    %1385 = vector.shape_cast %1384 : vector<1x1x8xf32> to vector<1x8xf32>
    %1386 = vector.shape_cast %1383 : vector<32x8xf32> to vector<1x32x8xf32>
    "tpu.trace_start"() <{level = 10 : i32, message = "btd,bde->bte"}> : () -> ()
    %cst_797 = arith.constant dense<0.000000e+00> : vector<1x8x8xf32>
    %1387 = tpu.matmul %1380, %1386, %cst_797 {dimension_numbers = #tpu.dot_dimension_numbers<[2], [1], [1], [2], [0, 0, 0, 1, 1, 2], [0], [0]>} : vector<1x8x32xf32>, vector<1x32x8xf32>, vector<1x8x8xf32> -> vector<1x8x8xf32>
    "tpu.trace_stop"() : () -> ()
    %1388 = vector.shape_cast %1385 : vector<1x8xf32> to vector<1x1x8xf32>
    %1389 = vector.broadcast %1388 : vector<1x1x8xf32> to vector<1x8x8xf32>
    %1390 = arith.addf %1387, %1389 : vector<1x8x8xf32>
    %c36 = arith.constant 36 : index
    %c0_798 = arith.constant 0 : index
    %c0_799 = arith.constant 0 : index
    %1391 = vector.load %arg18[%c36, %c0_798, %c0_799] : memref<48x32x8xf32, #tpu.memory_space<vmem>>, vector<1x32x8xf32>
    %1392 = vector.shape_cast %1391 : vector<1x32x8xf32> to vector<32x8xf32>
    %c36_800 = arith.constant 36 : index
    %c0_801 = arith.constant 0 : index
    %c0_802 = arith.constant 0 : index
    %1393 = vector.load %arg19[%c36_800, %c0_801, %c0_802] : memref<48x1x8xf32, #tpu.memory_space<vmem>>, vector<1x1x8xf32>
    %1394 = vector.shape_cast %1393 : vector<1x1x8xf32> to vector<1x8xf32>
    %1395 = vector.shape_cast %1392 : vector<32x8xf32> to vector<1x32x8xf32>
    "tpu.trace_start"() <{level = 10 : i32, message = "btd,bde->bte"}> : () -> ()
    %cst_803 = arith.constant dense<0.000000e+00> : vector<1x10x8xf32>
    %1396 = tpu.matmul %595, %1395, %cst_803 {dimension_numbers = #tpu.dot_dimension_numbers<[2], [1], [1], [2], [0, 0, 0, 1, 1, 2], [0], [0]>} : vector<1x10x32xf32>, vector<1x32x8xf32>, vector<1x10x8xf32> -> vector<1x10x8xf32>
    "tpu.trace_stop"() : () -> ()
    %1397 = vector.shape_cast %1394 : vector<1x8xf32> to vector<1x1x8xf32>
    %1398 = vector.broadcast %1397 : vector<1x1x8xf32> to vector<1x10x8xf32>
    %1399 = arith.addf %1396, %1398 : vector<1x10x8xf32>
    %c44 = arith.constant 44 : index
    %c0_804 = arith.constant 0 : index
    %c0_805 = arith.constant 0 : index
    %1400 = vector.load %arg18[%c44, %c0_804, %c0_805] : memref<48x32x8xf32, #tpu.memory_space<vmem>>, vector<1x32x8xf32>
    %1401 = vector.shape_cast %1400 : vector<1x32x8xf32> to vector<32x8xf32>
    %c44_806 = arith.constant 44 : index
    %c0_807 = arith.constant 0 : index
    %c0_808 = arith.constant 0 : index
    %1402 = vector.load %arg19[%c44_806, %c0_807, %c0_808] : memref<48x1x8xf32, #tpu.memory_space<vmem>>, vector<1x1x8xf32>
    %1403 = vector.shape_cast %1402 : vector<1x1x8xf32> to vector<1x8xf32>
    %1404 = vector.shape_cast %1401 : vector<32x8xf32> to vector<1x32x8xf32>
    "tpu.trace_start"() <{level = 10 : i32, message = "btd,bde->bte"}> : () -> ()
    %cst_809 = arith.constant dense<0.000000e+00> : vector<1x10x8xf32>
    %1405 = tpu.matmul %595, %1404, %cst_809 {dimension_numbers = #tpu.dot_dimension_numbers<[2], [1], [1], [2], [0, 0, 0, 1, 1, 2], [0], [0]>} : vector<1x10x32xf32>, vector<1x32x8xf32>, vector<1x10x8xf32> -> vector<1x10x8xf32>
    "tpu.trace_stop"() : () -> ()
    %1406 = vector.shape_cast %1403 : vector<1x8xf32> to vector<1x1x8xf32>
    %1407 = vector.broadcast %1406 : vector<1x1x8xf32> to vector<1x10x8xf32>
    %1408 = arith.addf %1405, %1407 : vector<1x10x8xf32>
    "tpu.trace_start"() <{level = 10 : i32, message = "bqd,bkd->bqk"}> : () -> ()
    %cst_810 = arith.constant dense<0.000000e+00> : vector<1x8x10xf32>
    %1409 = tpu.matmul %1390, %1399, %cst_810 {dimension_numbers = #tpu.dot_dimension_numbers<[2], [2], [1], [1], [0, 0, 0, 1, 1, 1], [0], [0]>} : vector<1x8x8xf32>, vector<1x10x8xf32>, vector<1x8x10xf32> -> vector<1x8x10xf32>
    "tpu.trace_stop"() : () -> ()
    %cst_811 = arith.constant 0.353553385 : f32
    %1410 = vector.broadcast %cst_811 : f32 to vector<1x8x10xf32>
    %1411 = arith.mulf %1409, %1410 : vector<1x8x10xf32>
    %cst_812 = arith.constant 0.000000e+00 : f32
    %1412 = vector.broadcast %cst_812 : f32 to vector<1x8x10xf32>
    %1413 = arith.cmpf oeq, %598, %1412 : vector<1x8x10xf32>
    %cst_813 = arith.constant -1.000000e+09 : f32
    %1414 = vector.broadcast %cst_813 : f32 to vector<1x8x10xf32>
    %1415 = arith.select %1413, %1414, %1411 : vector<1x8x10xi1>, vector<1x8x10xf32>
    %cst_814 = arith.constant dense<0xFF800000> : vector<1x8xf32>
    %1416 = vector.multi_reduction <maximumf>, %1415, %cst_814 [2] : vector<1x8x10xf32> to vector<1x8xf32>
    %1417 = vector.shape_cast %1416 : vector<1x8xf32> to vector<1x8x1xf32>
    %1418 = vector.broadcast %1417 : vector<1x8x1xf32> to vector<1x8x10xf32>
    %1419 = arith.subf %1415, %1418 : vector<1x8x10xf32>
    %1420 = math.exp %1419 : vector<1x8x10xf32>
    %cst_815 = arith.constant dense<0.000000e+00> : vector<1x8xf32>
    %1421 = vector.multi_reduction <add>, %1420, %cst_815 [2] : vector<1x8x10xf32> to vector<1x8xf32>
    %1422 = vector.shape_cast %1421 : vector<1x8xf32> to vector<1x8x1xf32>
    %1423 = tpu.reciprocal %1422 {approx = true} : vector<1x8x1xf32> -> vector<1x8x1xf32>
    %1424 = vector.broadcast %1423 : vector<1x8x1xf32> to vector<1x8x10xf32>
    %1425 = arith.mulf %1420, %1424 : vector<1x8x10xf32>
    "tpu.trace_start"() <{level = 10 : i32, message = "bqk,bkd->bqd"}> : () -> ()
    %cst_816 = arith.constant dense<0.000000e+00> : vector<1x8x8xf32>
    %1426 = tpu.matmul %1425, %1408, %cst_816 {dimension_numbers = #tpu.dot_dimension_numbers<[2], [1], [1], [2], [0, 0, 0, 1, 1, 2], [0], [0]>} : vector<1x8x10xf32>, vector<1x10x8xf32>, vector<1x8x8xf32> -> vector<1x8x8xf32>
    "tpu.trace_stop"() : () -> ()
    %c12_817 = arith.constant 12 : index
    %c0_818 = arith.constant 0 : index
    %c0_819 = arith.constant 0 : index
    %1427 = vector.load %arg20[%c12_817, %c0_818, %c0_819] : memref<16x8x32xf32, #tpu.memory_space<vmem>>, vector<1x8x32xf32>
    %1428 = vector.shape_cast %1427 : vector<1x8x32xf32> to vector<8x32xf32>
    %1429 = vector.shape_cast %1428 : vector<8x32xf32> to vector<1x8x32xf32>
    "tpu.trace_start"() <{level = 10 : i32, message = "btd,bde->bte"}> : () -> ()
    %cst_820 = arith.constant dense<0.000000e+00> : vector<1x8x32xf32>
    %1430 = tpu.matmul %1426, %1429, %cst_820 {dimension_numbers = #tpu.dot_dimension_numbers<[2], [1], [1], [2], [0, 0, 0, 1, 1, 2], [0], [0]>} : vector<1x8x8xf32>, vector<1x8x32xf32>, vector<1x8x32xf32> -> vector<1x8x32xf32>
    "tpu.trace_stop"() : () -> ()
    %1431 = arith.addf %1381, %1430 : vector<1x8x32xf32>
    %c29 = arith.constant 29 : index
    %c0_821 = arith.constant 0 : index
    %c0_822 = arith.constant 0 : index
    %1432 = vector.load %arg18[%c29, %c0_821, %c0_822] : memref<48x32x8xf32, #tpu.memory_space<vmem>>, vector<1x32x8xf32>
    %1433 = vector.shape_cast %1432 : vector<1x32x8xf32> to vector<32x8xf32>
    %c29_823 = arith.constant 29 : index
    %c0_824 = arith.constant 0 : index
    %c0_825 = arith.constant 0 : index
    %1434 = vector.load %arg19[%c29_823, %c0_824, %c0_825] : memref<48x1x8xf32, #tpu.memory_space<vmem>>, vector<1x1x8xf32>
    %1435 = vector.shape_cast %1434 : vector<1x1x8xf32> to vector<1x8xf32>
    %1436 = vector.shape_cast %1433 : vector<32x8xf32> to vector<1x32x8xf32>
    "tpu.trace_start"() <{level = 10 : i32, message = "btd,bde->bte"}> : () -> ()
    %cst_826 = arith.constant dense<0.000000e+00> : vector<1x8x8xf32>
    %1437 = tpu.matmul %1380, %1436, %cst_826 {dimension_numbers = #tpu.dot_dimension_numbers<[2], [1], [1], [2], [0, 0, 0, 1, 1, 2], [0], [0]>} : vector<1x8x32xf32>, vector<1x32x8xf32>, vector<1x8x8xf32> -> vector<1x8x8xf32>
    "tpu.trace_stop"() : () -> ()
    %1438 = vector.shape_cast %1435 : vector<1x8xf32> to vector<1x1x8xf32>
    %1439 = vector.broadcast %1438 : vector<1x1x8xf32> to vector<1x8x8xf32>
    %1440 = arith.addf %1437, %1439 : vector<1x8x8xf32>
    %c37 = arith.constant 37 : index
    %c0_827 = arith.constant 0 : index
    %c0_828 = arith.constant 0 : index
    %1441 = vector.load %arg18[%c37, %c0_827, %c0_828] : memref<48x32x8xf32, #tpu.memory_space<vmem>>, vector<1x32x8xf32>
    %1442 = vector.shape_cast %1441 : vector<1x32x8xf32> to vector<32x8xf32>
    %c37_829 = arith.constant 37 : index
    %c0_830 = arith.constant 0 : index
    %c0_831 = arith.constant 0 : index
    %1443 = vector.load %arg19[%c37_829, %c0_830, %c0_831] : memref<48x1x8xf32, #tpu.memory_space<vmem>>, vector<1x1x8xf32>
    %1444 = vector.shape_cast %1443 : vector<1x1x8xf32> to vector<1x8xf32>
    %1445 = vector.shape_cast %1442 : vector<32x8xf32> to vector<1x32x8xf32>
    "tpu.trace_start"() <{level = 10 : i32, message = "btd,bde->bte"}> : () -> ()
    %cst_832 = arith.constant dense<0.000000e+00> : vector<1x10x8xf32>
    %1446 = tpu.matmul %595, %1445, %cst_832 {dimension_numbers = #tpu.dot_dimension_numbers<[2], [1], [1], [2], [0, 0, 0, 1, 1, 2], [0], [0]>} : vector<1x10x32xf32>, vector<1x32x8xf32>, vector<1x10x8xf32> -> vector<1x10x8xf32>
    "tpu.trace_stop"() : () -> ()
    %1447 = vector.shape_cast %1444 : vector<1x8xf32> to vector<1x1x8xf32>
    %1448 = vector.broadcast %1447 : vector<1x1x8xf32> to vector<1x10x8xf32>
    %1449 = arith.addf %1446, %1448 : vector<1x10x8xf32>
    %c45 = arith.constant 45 : index
    %c0_833 = arith.constant 0 : index
    %c0_834 = arith.constant 0 : index
    %1450 = vector.load %arg18[%c45, %c0_833, %c0_834] : memref<48x32x8xf32, #tpu.memory_space<vmem>>, vector<1x32x8xf32>
    %1451 = vector.shape_cast %1450 : vector<1x32x8xf32> to vector<32x8xf32>
    %c45_835 = arith.constant 45 : index
    %c0_836 = arith.constant 0 : index
    %c0_837 = arith.constant 0 : index
    %1452 = vector.load %arg19[%c45_835, %c0_836, %c0_837] : memref<48x1x8xf32, #tpu.memory_space<vmem>>, vector<1x1x8xf32>
    %1453 = vector.shape_cast %1452 : vector<1x1x8xf32> to vector<1x8xf32>
    %1454 = vector.shape_cast %1451 : vector<32x8xf32> to vector<1x32x8xf32>
    "tpu.trace_start"() <{level = 10 : i32, message = "btd,bde->bte"}> : () -> ()
    %cst_838 = arith.constant dense<0.000000e+00> : vector<1x10x8xf32>
    %1455 = tpu.matmul %595, %1454, %cst_838 {dimension_numbers = #tpu.dot_dimension_numbers<[2], [1], [1], [2], [0, 0, 0, 1, 1, 2], [0], [0]>} : vector<1x10x32xf32>, vector<1x32x8xf32>, vector<1x10x8xf32> -> vector<1x10x8xf32>
    "tpu.trace_stop"() : () -> ()
    %1456 = vector.shape_cast %1453 : vector<1x8xf32> to vector<1x1x8xf32>
    %1457 = vector.broadcast %1456 : vector<1x1x8xf32> to vector<1x10x8xf32>
    %1458 = arith.addf %1455, %1457 : vector<1x10x8xf32>
    "tpu.trace_start"() <{level = 10 : i32, message = "bqd,bkd->bqk"}> : () -> ()
    %cst_839 = arith.constant dense<0.000000e+00> : vector<1x8x10xf32>
    %1459 = tpu.matmul %1440, %1449, %cst_839 {dimension_numbers = #tpu.dot_dimension_numbers<[2], [2], [1], [1], [0, 0, 0, 1, 1, 1], [0], [0]>} : vector<1x8x8xf32>, vector<1x10x8xf32>, vector<1x8x10xf32> -> vector<1x8x10xf32>
    "tpu.trace_stop"() : () -> ()
    %cst_840 = arith.constant 0.353553385 : f32
    %1460 = vector.broadcast %cst_840 : f32 to vector<1x8x10xf32>
    %1461 = arith.mulf %1459, %1460 : vector<1x8x10xf32>
    %cst_841 = arith.constant 0.000000e+00 : f32
    %1462 = vector.broadcast %cst_841 : f32 to vector<1x8x10xf32>
    %1463 = arith.cmpf oeq, %598, %1462 : vector<1x8x10xf32>
    %cst_842 = arith.constant -1.000000e+09 : f32
    %1464 = vector.broadcast %cst_842 : f32 to vector<1x8x10xf32>
    %1465 = arith.select %1463, %1464, %1461 : vector<1x8x10xi1>, vector<1x8x10xf32>
    %cst_843 = arith.constant dense<0xFF800000> : vector<1x8xf32>
    %1466 = vector.multi_reduction <maximumf>, %1465, %cst_843 [2] : vector<1x8x10xf32> to vector<1x8xf32>
    %1467 = vector.shape_cast %1466 : vector<1x8xf32> to vector<1x8x1xf32>
    %1468 = vector.broadcast %1467 : vector<1x8x1xf32> to vector<1x8x10xf32>
    %1469 = arith.subf %1465, %1468 : vector<1x8x10xf32>
    %1470 = math.exp %1469 : vector<1x8x10xf32>
    %cst_844 = arith.constant dense<0.000000e+00> : vector<1x8xf32>
    %1471 = vector.multi_reduction <add>, %1470, %cst_844 [2] : vector<1x8x10xf32> to vector<1x8xf32>
    %1472 = vector.shape_cast %1471 : vector<1x8xf32> to vector<1x8x1xf32>
    %1473 = tpu.reciprocal %1472 {approx = true} : vector<1x8x1xf32> -> vector<1x8x1xf32>
    %1474 = vector.broadcast %1473 : vector<1x8x1xf32> to vector<1x8x10xf32>
    %1475 = arith.mulf %1470, %1474 : vector<1x8x10xf32>
    "tpu.trace_start"() <{level = 10 : i32, message = "bqk,bkd->bqd"}> : () -> ()
    %cst_845 = arith.constant dense<0.000000e+00> : vector<1x8x8xf32>
    %1476 = tpu.matmul %1475, %1458, %cst_845 {dimension_numbers = #tpu.dot_dimension_numbers<[2], [1], [1], [2], [0, 0, 0, 1, 1, 2], [0], [0]>} : vector<1x8x10xf32>, vector<1x10x8xf32>, vector<1x8x8xf32> -> vector<1x8x8xf32>
    "tpu.trace_stop"() : () -> ()
    %c13_846 = arith.constant 13 : index
    %c0_847 = arith.constant 0 : index
    %c0_848 = arith.constant 0 : index
    %1477 = vector.load %arg20[%c13_846, %c0_847, %c0_848] : memref<16x8x32xf32, #tpu.memory_space<vmem>>, vector<1x8x32xf32>
    %1478 = vector.shape_cast %1477 : vector<1x8x32xf32> to vector<8x32xf32>
    %1479 = vector.shape_cast %1478 : vector<8x32xf32> to vector<1x8x32xf32>
    "tpu.trace_start"() <{level = 10 : i32, message = "btd,bde->bte"}> : () -> ()
    %cst_849 = arith.constant dense<0.000000e+00> : vector<1x8x32xf32>
    %1480 = tpu.matmul %1476, %1479, %cst_849 {dimension_numbers = #tpu.dot_dimension_numbers<[2], [1], [1], [2], [0, 0, 0, 1, 1, 2], [0], [0]>} : vector<1x8x8xf32>, vector<1x8x32xf32>, vector<1x8x32xf32> -> vector<1x8x32xf32>
    "tpu.trace_stop"() : () -> ()
    %1481 = arith.addf %1431, %1480 : vector<1x8x32xf32>
    %c30 = arith.constant 30 : index
    %c0_850 = arith.constant 0 : index
    %c0_851 = arith.constant 0 : index
    %1482 = vector.load %arg18[%c30, %c0_850, %c0_851] : memref<48x32x8xf32, #tpu.memory_space<vmem>>, vector<1x32x8xf32>
    %1483 = vector.shape_cast %1482 : vector<1x32x8xf32> to vector<32x8xf32>
    %c30_852 = arith.constant 30 : index
    %c0_853 = arith.constant 0 : index
    %c0_854 = arith.constant 0 : index
    %1484 = vector.load %arg19[%c30_852, %c0_853, %c0_854] : memref<48x1x8xf32, #tpu.memory_space<vmem>>, vector<1x1x8xf32>
    %1485 = vector.shape_cast %1484 : vector<1x1x8xf32> to vector<1x8xf32>
    %1486 = vector.shape_cast %1483 : vector<32x8xf32> to vector<1x32x8xf32>
    "tpu.trace_start"() <{level = 10 : i32, message = "btd,bde->bte"}> : () -> ()
    %cst_855 = arith.constant dense<0.000000e+00> : vector<1x8x8xf32>
    %1487 = tpu.matmul %1380, %1486, %cst_855 {dimension_numbers = #tpu.dot_dimension_numbers<[2], [1], [1], [2], [0, 0, 0, 1, 1, 2], [0], [0]>} : vector<1x8x32xf32>, vector<1x32x8xf32>, vector<1x8x8xf32> -> vector<1x8x8xf32>
    "tpu.trace_stop"() : () -> ()
    %1488 = vector.shape_cast %1485 : vector<1x8xf32> to vector<1x1x8xf32>
    %1489 = vector.broadcast %1488 : vector<1x1x8xf32> to vector<1x8x8xf32>
    %1490 = arith.addf %1487, %1489 : vector<1x8x8xf32>
    %c38 = arith.constant 38 : index
    %c0_856 = arith.constant 0 : index
    %c0_857 = arith.constant 0 : index
    %1491 = vector.load %arg18[%c38, %c0_856, %c0_857] : memref<48x32x8xf32, #tpu.memory_space<vmem>>, vector<1x32x8xf32>
    %1492 = vector.shape_cast %1491 : vector<1x32x8xf32> to vector<32x8xf32>
    %c38_858 = arith.constant 38 : index
    %c0_859 = arith.constant 0 : index
    %c0_860 = arith.constant 0 : index
    %1493 = vector.load %arg19[%c38_858, %c0_859, %c0_860] : memref<48x1x8xf32, #tpu.memory_space<vmem>>, vector<1x1x8xf32>
    %1494 = vector.shape_cast %1493 : vector<1x1x8xf32> to vector<1x8xf32>
    %1495 = vector.shape_cast %1492 : vector<32x8xf32> to vector<1x32x8xf32>
    "tpu.trace_start"() <{level = 10 : i32, message = "btd,bde->bte"}> : () -> ()
    %cst_861 = arith.constant dense<0.000000e+00> : vector<1x10x8xf32>
    %1496 = tpu.matmul %595, %1495, %cst_861 {dimension_numbers = #tpu.dot_dimension_numbers<[2], [1], [1], [2], [0, 0, 0, 1, 1, 2], [0], [0]>} : vector<1x10x32xf32>, vector<1x32x8xf32>, vector<1x10x8xf32> -> vector<1x10x8xf32>
    "tpu.trace_stop"() : () -> ()
    %1497 = vector.shape_cast %1494 : vector<1x8xf32> to vector<1x1x8xf32>
    %1498 = vector.broadcast %1497 : vector<1x1x8xf32> to vector<1x10x8xf32>
    %1499 = arith.addf %1496, %1498 : vector<1x10x8xf32>
    %c46 = arith.constant 46 : index
    %c0_862 = arith.constant 0 : index
    %c0_863 = arith.constant 0 : index
    %1500 = vector.load %arg18[%c46, %c0_862, %c0_863] : memref<48x32x8xf32, #tpu.memory_space<vmem>>, vector<1x32x8xf32>
    %1501 = vector.shape_cast %1500 : vector<1x32x8xf32> to vector<32x8xf32>
    %c46_864 = arith.constant 46 : index
    %c0_865 = arith.constant 0 : index
    %c0_866 = arith.constant 0 : index
    %1502 = vector.load %arg19[%c46_864, %c0_865, %c0_866] : memref<48x1x8xf32, #tpu.memory_space<vmem>>, vector<1x1x8xf32>
    %1503 = vector.shape_cast %1502 : vector<1x1x8xf32> to vector<1x8xf32>
    %1504 = vector.shape_cast %1501 : vector<32x8xf32> to vector<1x32x8xf32>
    "tpu.trace_start"() <{level = 10 : i32, message = "btd,bde->bte"}> : () -> ()
    %cst_867 = arith.constant dense<0.000000e+00> : vector<1x10x8xf32>
    %1505 = tpu.matmul %595, %1504, %cst_867 {dimension_numbers = #tpu.dot_dimension_numbers<[2], [1], [1], [2], [0, 0, 0, 1, 1, 2], [0], [0]>} : vector<1x10x32xf32>, vector<1x32x8xf32>, vector<1x10x8xf32> -> vector<1x10x8xf32>
    "tpu.trace_stop"() : () -> ()
    %1506 = vector.shape_cast %1503 : vector<1x8xf32> to vector<1x1x8xf32>
    %1507 = vector.broadcast %1506 : vector<1x1x8xf32> to vector<1x10x8xf32>
    %1508 = arith.addf %1505, %1507 : vector<1x10x8xf32>
    "tpu.trace_start"() <{level = 10 : i32, message = "bqd,bkd->bqk"}> : () -> ()
    %cst_868 = arith.constant dense<0.000000e+00> : vector<1x8x10xf32>
    %1509 = tpu.matmul %1490, %1499, %cst_868 {dimension_numbers = #tpu.dot_dimension_numbers<[2], [2], [1], [1], [0, 0, 0, 1, 1, 1], [0], [0]>} : vector<1x8x8xf32>, vector<1x10x8xf32>, vector<1x8x10xf32> -> vector<1x8x10xf32>
    "tpu.trace_stop"() : () -> ()
    %cst_869 = arith.constant 0.353553385 : f32
    %1510 = vector.broadcast %cst_869 : f32 to vector<1x8x10xf32>
    %1511 = arith.mulf %1509, %1510 : vector<1x8x10xf32>
    %cst_870 = arith.constant 0.000000e+00 : f32
    %1512 = vector.broadcast %cst_870 : f32 to vector<1x8x10xf32>
    %1513 = arith.cmpf oeq, %598, %1512 : vector<1x8x10xf32>
    %cst_871 = arith.constant -1.000000e+09 : f32
    %1514 = vector.broadcast %cst_871 : f32 to vector<1x8x10xf32>
    %1515 = arith.select %1513, %1514, %1511 : vector<1x8x10xi1>, vector<1x8x10xf32>
    %cst_872 = arith.constant dense<0xFF800000> : vector<1x8xf32>
    %1516 = vector.multi_reduction <maximumf>, %1515, %cst_872 [2] : vector<1x8x10xf32> to vector<1x8xf32>
    %1517 = vector.shape_cast %1516 : vector<1x8xf32> to vector<1x8x1xf32>
    %1518 = vector.broadcast %1517 : vector<1x8x1xf32> to vector<1x8x10xf32>
    %1519 = arith.subf %1515, %1518 : vector<1x8x10xf32>
    %1520 = math.exp %1519 : vector<1x8x10xf32>
    %cst_873 = arith.constant dense<0.000000e+00> : vector<1x8xf32>
    %1521 = vector.multi_reduction <add>, %1520, %cst_873 [2] : vector<1x8x10xf32> to vector<1x8xf32>
    %1522 = vector.shape_cast %1521 : vector<1x8xf32> to vector<1x8x1xf32>
    %1523 = tpu.reciprocal %1522 {approx = true} : vector<1x8x1xf32> -> vector<1x8x1xf32>
    %1524 = vector.broadcast %1523 : vector<1x8x1xf32> to vector<1x8x10xf32>
    %1525 = arith.mulf %1520, %1524 : vector<1x8x10xf32>
    "tpu.trace_start"() <{level = 10 : i32, message = "bqk,bkd->bqd"}> : () -> ()
    %cst_874 = arith.constant dense<0.000000e+00> : vector<1x8x8xf32>
    %1526 = tpu.matmul %1525, %1508, %cst_874 {dimension_numbers = #tpu.dot_dimension_numbers<[2], [1], [1], [2], [0, 0, 0, 1, 1, 2], [0], [0]>} : vector<1x8x10xf32>, vector<1x10x8xf32>, vector<1x8x8xf32> -> vector<1x8x8xf32>
    "tpu.trace_stop"() : () -> ()
    %c14_875 = arith.constant 14 : index
    %c0_876 = arith.constant 0 : index
    %c0_877 = arith.constant 0 : index
    %1527 = vector.load %arg20[%c14_875, %c0_876, %c0_877] : memref<16x8x32xf32, #tpu.memory_space<vmem>>, vector<1x8x32xf32>
    %1528 = vector.shape_cast %1527 : vector<1x8x32xf32> to vector<8x32xf32>
    %1529 = vector.shape_cast %1528 : vector<8x32xf32> to vector<1x8x32xf32>
    "tpu.trace_start"() <{level = 10 : i32, message = "btd,bde->bte"}> : () -> ()
    %cst_878 = arith.constant dense<0.000000e+00> : vector<1x8x32xf32>
    %1530 = tpu.matmul %1526, %1529, %cst_878 {dimension_numbers = #tpu.dot_dimension_numbers<[2], [1], [1], [2], [0, 0, 0, 1, 1, 2], [0], [0]>} : vector<1x8x8xf32>, vector<1x8x32xf32>, vector<1x8x32xf32> -> vector<1x8x32xf32>
    "tpu.trace_stop"() : () -> ()
    %1531 = arith.addf %1481, %1530 : vector<1x8x32xf32>
    %c31 = arith.constant 31 : index
    %c0_879 = arith.constant 0 : index
    %c0_880 = arith.constant 0 : index
    %1532 = vector.load %arg18[%c31, %c0_879, %c0_880] : memref<48x32x8xf32, #tpu.memory_space<vmem>>, vector<1x32x8xf32>
    %1533 = vector.shape_cast %1532 : vector<1x32x8xf32> to vector<32x8xf32>
    %c31_881 = arith.constant 31 : index
    %c0_882 = arith.constant 0 : index
    %c0_883 = arith.constant 0 : index
    %1534 = vector.load %arg19[%c31_881, %c0_882, %c0_883] : memref<48x1x8xf32, #tpu.memory_space<vmem>>, vector<1x1x8xf32>
    %1535 = vector.shape_cast %1534 : vector<1x1x8xf32> to vector<1x8xf32>
    %1536 = vector.shape_cast %1533 : vector<32x8xf32> to vector<1x32x8xf32>
    "tpu.trace_start"() <{level = 10 : i32, message = "btd,bde->bte"}> : () -> ()
    %cst_884 = arith.constant dense<0.000000e+00> : vector<1x8x8xf32>
    %1537 = tpu.matmul %1380, %1536, %cst_884 {dimension_numbers = #tpu.dot_dimension_numbers<[2], [1], [1], [2], [0, 0, 0, 1, 1, 2], [0], [0]>} : vector<1x8x32xf32>, vector<1x32x8xf32>, vector<1x8x8xf32> -> vector<1x8x8xf32>
    "tpu.trace_stop"() : () -> ()
    %1538 = vector.shape_cast %1535 : vector<1x8xf32> to vector<1x1x8xf32>
    %1539 = vector.broadcast %1538 : vector<1x1x8xf32> to vector<1x8x8xf32>
    %1540 = arith.addf %1537, %1539 : vector<1x8x8xf32>
    %c39 = arith.constant 39 : index
    %c0_885 = arith.constant 0 : index
    %c0_886 = arith.constant 0 : index
    %1541 = vector.load %arg18[%c39, %c0_885, %c0_886] : memref<48x32x8xf32, #tpu.memory_space<vmem>>, vector<1x32x8xf32>
    %1542 = vector.shape_cast %1541 : vector<1x32x8xf32> to vector<32x8xf32>
    %c39_887 = arith.constant 39 : index
    %c0_888 = arith.constant 0 : index
    %c0_889 = arith.constant 0 : index
    %1543 = vector.load %arg19[%c39_887, %c0_888, %c0_889] : memref<48x1x8xf32, #tpu.memory_space<vmem>>, vector<1x1x8xf32>
    %1544 = vector.shape_cast %1543 : vector<1x1x8xf32> to vector<1x8xf32>
    %1545 = vector.shape_cast %1542 : vector<32x8xf32> to vector<1x32x8xf32>
    "tpu.trace_start"() <{level = 10 : i32, message = "btd,bde->bte"}> : () -> ()
    %cst_890 = arith.constant dense<0.000000e+00> : vector<1x10x8xf32>
    %1546 = tpu.matmul %595, %1545, %cst_890 {dimension_numbers = #tpu.dot_dimension_numbers<[2], [1], [1], [2], [0, 0, 0, 1, 1, 2], [0], [0]>} : vector<1x10x32xf32>, vector<1x32x8xf32>, vector<1x10x8xf32> -> vector<1x10x8xf32>
    "tpu.trace_stop"() : () -> ()
    %1547 = vector.shape_cast %1544 : vector<1x8xf32> to vector<1x1x8xf32>
    %1548 = vector.broadcast %1547 : vector<1x1x8xf32> to vector<1x10x8xf32>
    %1549 = arith.addf %1546, %1548 : vector<1x10x8xf32>
    %c47 = arith.constant 47 : index
    %c0_891 = arith.constant 0 : index
    %c0_892 = arith.constant 0 : index
    %1550 = vector.load %arg18[%c47, %c0_891, %c0_892] : memref<48x32x8xf32, #tpu.memory_space<vmem>>, vector<1x32x8xf32>
    %1551 = vector.shape_cast %1550 : vector<1x32x8xf32> to vector<32x8xf32>
    %c47_893 = arith.constant 47 : index
    %c0_894 = arith.constant 0 : index
    %c0_895 = arith.constant 0 : index
    %1552 = vector.load %arg19[%c47_893, %c0_894, %c0_895] : memref<48x1x8xf32, #tpu.memory_space<vmem>>, vector<1x1x8xf32>
    %1553 = vector.shape_cast %1552 : vector<1x1x8xf32> to vector<1x8xf32>
    %1554 = vector.shape_cast %1551 : vector<32x8xf32> to vector<1x32x8xf32>
    "tpu.trace_start"() <{level = 10 : i32, message = "btd,bde->bte"}> : () -> ()
    %cst_896 = arith.constant dense<0.000000e+00> : vector<1x10x8xf32>
    %1555 = tpu.matmul %595, %1554, %cst_896 {dimension_numbers = #tpu.dot_dimension_numbers<[2], [1], [1], [2], [0, 0, 0, 1, 1, 2], [0], [0]>} : vector<1x10x32xf32>, vector<1x32x8xf32>, vector<1x10x8xf32> -> vector<1x10x8xf32>
    "tpu.trace_stop"() : () -> ()
    %1556 = vector.shape_cast %1553 : vector<1x8xf32> to vector<1x1x8xf32>
    %1557 = vector.broadcast %1556 : vector<1x1x8xf32> to vector<1x10x8xf32>
    %1558 = arith.addf %1555, %1557 : vector<1x10x8xf32>
    "tpu.trace_start"() <{level = 10 : i32, message = "bqd,bkd->bqk"}> : () -> ()
    %cst_897 = arith.constant dense<0.000000e+00> : vector<1x8x10xf32>
    %1559 = tpu.matmul %1540, %1549, %cst_897 {dimension_numbers = #tpu.dot_dimension_numbers<[2], [2], [1], [1], [0, 0, 0, 1, 1, 1], [0], [0]>} : vector<1x8x8xf32>, vector<1x10x8xf32>, vector<1x8x10xf32> -> vector<1x8x10xf32>
    "tpu.trace_stop"() : () -> ()
    %cst_898 = arith.constant 0.353553385 : f32
    %1560 = vector.broadcast %cst_898 : f32 to vector<1x8x10xf32>
    %1561 = arith.mulf %1559, %1560 : vector<1x8x10xf32>
    %cst_899 = arith.constant 0.000000e+00 : f32
    %1562 = vector.broadcast %cst_899 : f32 to vector<1x8x10xf32>
    %1563 = arith.cmpf oeq, %598, %1562 : vector<1x8x10xf32>
    %cst_900 = arith.constant -1.000000e+09 : f32
    %1564 = vector.broadcast %cst_900 : f32 to vector<1x8x10xf32>
    %1565 = arith.select %1563, %1564, %1561 : vector<1x8x10xi1>, vector<1x8x10xf32>
    %cst_901 = arith.constant dense<0xFF800000> : vector<1x8xf32>
    %1566 = vector.multi_reduction <maximumf>, %1565, %cst_901 [2] : vector<1x8x10xf32> to vector<1x8xf32>
    %1567 = vector.shape_cast %1566 : vector<1x8xf32> to vector<1x8x1xf32>
    %1568 = vector.broadcast %1567 : vector<1x8x1xf32> to vector<1x8x10xf32>
    %1569 = arith.subf %1565, %1568 : vector<1x8x10xf32>
    %1570 = math.exp %1569 : vector<1x8x10xf32>
    %cst_902 = arith.constant dense<0.000000e+00> : vector<1x8xf32>
    %1571 = vector.multi_reduction <add>, %1570, %cst_902 [2] : vector<1x8x10xf32> to vector<1x8xf32>
    %1572 = vector.shape_cast %1571 : vector<1x8xf32> to vector<1x8x1xf32>
    %1573 = tpu.reciprocal %1572 {approx = true} : vector<1x8x1xf32> -> vector<1x8x1xf32>
    %1574 = vector.broadcast %1573 : vector<1x8x1xf32> to vector<1x8x10xf32>
    %1575 = arith.mulf %1570, %1574 : vector<1x8x10xf32>
    "tpu.trace_start"() <{level = 10 : i32, message = "bqk,bkd->bqd"}> : () -> ()
    %cst_903 = arith.constant dense<0.000000e+00> : vector<1x8x8xf32>
    %1576 = tpu.matmul %1575, %1558, %cst_903 {dimension_numbers = #tpu.dot_dimension_numbers<[2], [1], [1], [2], [0, 0, 0, 1, 1, 2], [0], [0]>} : vector<1x8x10xf32>, vector<1x10x8xf32>, vector<1x8x8xf32> -> vector<1x8x8xf32>
    "tpu.trace_stop"() : () -> ()
    %c15_904 = arith.constant 15 : index
    %c0_905 = arith.constant 0 : index
    %c0_906 = arith.constant 0 : index
    %1577 = vector.load %arg20[%c15_904, %c0_905, %c0_906] : memref<16x8x32xf32, #tpu.memory_space<vmem>>, vector<1x8x32xf32>
    %1578 = vector.shape_cast %1577 : vector<1x8x32xf32> to vector<8x32xf32>
    %1579 = vector.shape_cast %1578 : vector<8x32xf32> to vector<1x8x32xf32>
    "tpu.trace_start"() <{level = 10 : i32, message = "btd,bde->bte"}> : () -> ()
    %cst_907 = arith.constant dense<0.000000e+00> : vector<1x8x32xf32>
    %1580 = tpu.matmul %1576, %1579, %cst_907 {dimension_numbers = #tpu.dot_dimension_numbers<[2], [1], [1], [2], [0, 0, 0, 1, 1, 2], [0], [0]>} : vector<1x8x8xf32>, vector<1x8x32xf32>, vector<1x8x32xf32> -> vector<1x8x32xf32>
    "tpu.trace_stop"() : () -> ()
    %1581 = arith.addf %1531, %1580 : vector<1x8x32xf32>
    %c3_908 = arith.constant 3 : index
    %c0_909 = arith.constant 0 : index
    %c0_910 = arith.constant 0 : index
    %1582 = vector.load %arg21[%c3_908, %c0_909, %c0_910] : memref<4x1x32xf32, #tpu.memory_space<vmem>>, vector<1x1x32xf32>
    %1583 = vector.shape_cast %1582 : vector<1x1x32xf32> to vector<1x32xf32>
    %1584 = vector.shape_cast %1583 : vector<1x32xf32> to vector<1x1x32xf32>
    %1585 = vector.broadcast %1584 : vector<1x1x32xf32> to vector<1x8x32xf32>
    %1586 = arith.addf %1581, %1585 : vector<1x8x32xf32>
    %1587 = arith.addf %1352, %1586 : vector<1x8x32xf32>
    %c5_911 = arith.constant 5 : index
    %c0_912 = arith.constant 0 : index
    %c0_913 = arith.constant 0 : index
    %1588 = vector.load %arg22[%c5_911, %c0_912, %c0_913] : memref<6x1x32xf32, #tpu.memory_space<vmem>>, vector<1x1x32xf32>
    %1589 = vector.shape_cast %1588 : vector<1x1x32xf32> to vector<1x32xf32>
    %c5_914 = arith.constant 5 : index
    %c0_915 = arith.constant 0 : index
    %c0_916 = arith.constant 0 : index
    %1590 = vector.load %arg23[%c5_914, %c0_915, %c0_916] : memref<6x1x32xf32, #tpu.memory_space<vmem>>, vector<1x1x32xf32>
    %1591 = vector.shape_cast %1590 : vector<1x1x32xf32> to vector<1x32xf32>
    %cst_917 = arith.constant dense<0.000000e+00> : vector<1x8xf32>
    %1592 = vector.multi_reduction <add>, %1587, %cst_917 [2] : vector<1x8x32xf32> to vector<1x8xf32>
    %1593 = vector.shape_cast %1592 : vector<1x8xf32> to vector<1x8x1xf32>
    %cst_918 = arith.constant 3.200000e+01 : f32
    %1594 = vector.broadcast %cst_918 : f32 to vector<1x8x1xf32>
    %1595 = arith.divf %1593, %1594 : vector<1x8x1xf32>
    %1596 = vector.broadcast %1595 : vector<1x8x1xf32> to vector<1x8x32xf32>
    %1597 = arith.subf %1587, %1596 : vector<1x8x32xf32>
    %1598 = arith.mulf %1597, %1597 : vector<1x8x32xf32>
    %cst_919 = arith.constant dense<0.000000e+00> : vector<1x8xf32>
    %1599 = vector.multi_reduction <add>, %1598, %cst_919 [2] : vector<1x8x32xf32> to vector<1x8xf32>
    %1600 = vector.shape_cast %1599 : vector<1x8xf32> to vector<1x8x1xf32>
    %cst_920 = arith.constant 3.100000e+01 : f32
    %1601 = vector.broadcast %cst_920 : f32 to vector<1x8x1xf32>
    %1602 = arith.divf %1600, %1601 : vector<1x8x1xf32>
    %1603 = vector.broadcast %1595 : vector<1x8x1xf32> to vector<1x8x32xf32>
    %1604 = arith.subf %1587, %1603 : vector<1x8x32xf32>
    %1605 = vector.shape_cast %1589 : vector<1x32xf32> to vector<1x1x32xf32>
    %1606 = vector.broadcast %1605 : vector<1x1x32xf32> to vector<1x8x32xf32>
    %1607 = arith.mulf %1606, %1604 : vector<1x8x32xf32>
    %1608 = math.sqrt %1602 : vector<1x8x1xf32>
    %cst_921 = arith.constant 9.99999997E-7 : f32
    %1609 = vector.broadcast %cst_921 : f32 to vector<1x8x1xf32>
    %1610 = arith.addf %1608, %1609 : vector<1x8x1xf32>
    %1611 = vector.broadcast %1610 : vector<1x8x1xf32> to vector<1x8x32xf32>
    %1612 = arith.divf %1607, %1611 : vector<1x8x32xf32>
    %1613 = vector.shape_cast %1591 : vector<1x32xf32> to vector<1x1x32xf32>
    %1614 = vector.broadcast %1613 : vector<1x1x32xf32> to vector<1x8x32xf32>
    %1615 = arith.addf %1612, %1614 : vector<1x8x32xf32>
    %c1_922 = arith.constant 1 : index
    %c0_923 = arith.constant 0 : index
    %c0_924 = arith.constant 0 : index
    %1616 = vector.load %arg24[%c1_922, %c0_923, %c0_924] : memref<2x32x64xf32, #tpu.memory_space<vmem>>, vector<1x32x64xf32>
    %1617 = vector.shape_cast %1616 : vector<1x32x64xf32> to vector<32x64xf32>
    %c1_925 = arith.constant 1 : index
    %c0_926 = arith.constant 0 : index
    %c0_927 = arith.constant 0 : index
    %1618 = vector.load %arg25[%c1_925, %c0_926, %c0_927] : memref<2x1x64xf32, #tpu.memory_space<vmem>>, vector<1x1x64xf32>
    %1619 = vector.shape_cast %1618 : vector<1x1x64xf32> to vector<1x64xf32>
    %1620 = vector.shape_cast %1617 : vector<32x64xf32> to vector<1x32x64xf32>
    "tpu.trace_start"() <{level = 10 : i32, message = "btd,bde->bte"}> : () -> ()
    %cst_928 = arith.constant dense<0.000000e+00> : vector<1x8x64xf32>
    %1621 = tpu.matmul %1615, %1620, %cst_928 {dimension_numbers = #tpu.dot_dimension_numbers<[2], [1], [1], [2], [0, 0, 0, 1, 1, 2], [0], [0]>} : vector<1x8x32xf32>, vector<1x32x64xf32>, vector<1x8x64xf32> -> vector<1x8x64xf32>
    "tpu.trace_stop"() : () -> ()
    %1622 = vector.shape_cast %1619 : vector<1x64xf32> to vector<1x1x64xf32>
    %1623 = vector.broadcast %1622 : vector<1x1x64xf32> to vector<1x8x64xf32>
    %1624 = arith.addf %1621, %1623 : vector<1x8x64xf32>
    %cst_929 = arith.constant 0.000000e+00 : f32
    %1625 = vector.broadcast %cst_929 : f32 to vector<1x8x64xf32>
    %1626 = arith.maximumf %1624, %1625 : vector<1x8x64xf32>
    %c1_930 = arith.constant 1 : index
    %c0_931 = arith.constant 0 : index
    %c0_932 = arith.constant 0 : index
    %1627 = vector.load %arg26[%c1_930, %c0_931, %c0_932] : memref<2x64x32xf32, #tpu.memory_space<vmem>>, vector<1x64x32xf32>
    %1628 = vector.shape_cast %1627 : vector<1x64x32xf32> to vector<64x32xf32>
    %c1_933 = arith.constant 1 : index
    %c0_934 = arith.constant 0 : index
    %c0_935 = arith.constant 0 : index
    %1629 = vector.load %arg27[%c1_933, %c0_934, %c0_935] : memref<2x1x32xf32, #tpu.memory_space<vmem>>, vector<1x1x32xf32>
    %1630 = vector.shape_cast %1629 : vector<1x1x32xf32> to vector<1x32xf32>
    %1631 = vector.shape_cast %1628 : vector<64x32xf32> to vector<1x64x32xf32>
    "tpu.trace_start"() <{level = 10 : i32, message = "btd,bde->bte"}> : () -> ()
    %cst_936 = arith.constant dense<0.000000e+00> : vector<1x8x32xf32>
    %1632 = tpu.matmul %1626, %1631, %cst_936 {dimension_numbers = #tpu.dot_dimension_numbers<[2], [1], [1], [2], [0, 0, 0, 1, 1, 2], [0], [0]>} : vector<1x8x64xf32>, vector<1x64x32xf32>, vector<1x8x32xf32> -> vector<1x8x32xf32>
    "tpu.trace_stop"() : () -> ()
    %1633 = vector.shape_cast %1630 : vector<1x32xf32> to vector<1x1x32xf32>
    %1634 = vector.broadcast %1633 : vector<1x1x32xf32> to vector<1x8x32xf32>
    %1635 = arith.addf %1632, %1634 : vector<1x8x32xf32>
    %1636 = arith.addf %1587, %1635 : vector<1x8x32xf32>
    %c0_937 = arith.constant 0 : index
    %c0_938 = arith.constant 0 : index
    %1637 = vector.load %arg28[%c0_937, %c0_938] : memref<1x32xf32, #tpu.memory_space<vmem>>, vector<1x32xf32>
    %c0_939 = arith.constant 0 : index
    %c0_940 = arith.constant 0 : index
    %1638 = vector.load %arg29[%c0_939, %c0_940] : memref<1x32xf32, #tpu.memory_space<vmem>>, vector<1x32xf32>
    %cst_941 = arith.constant dense<0.000000e+00> : vector<1x8xf32>
    %1639 = vector.multi_reduction <add>, %1636, %cst_941 [2] : vector<1x8x32xf32> to vector<1x8xf32>
    %1640 = vector.shape_cast %1639 : vector<1x8xf32> to vector<1x8x1xf32>
    %cst_942 = arith.constant 3.200000e+01 : f32
    %1641 = vector.broadcast %cst_942 : f32 to vector<1x8x1xf32>
    %1642 = arith.divf %1640, %1641 : vector<1x8x1xf32>
    %1643 = vector.broadcast %1642 : vector<1x8x1xf32> to vector<1x8x32xf32>
    %1644 = arith.subf %1636, %1643 : vector<1x8x32xf32>
    %1645 = arith.mulf %1644, %1644 : vector<1x8x32xf32>
    %cst_943 = arith.constant dense<0.000000e+00> : vector<1x8xf32>
    %1646 = vector.multi_reduction <add>, %1645, %cst_943 [2] : vector<1x8x32xf32> to vector<1x8xf32>
    %1647 = vector.shape_cast %1646 : vector<1x8xf32> to vector<1x8x1xf32>
    %cst_944 = arith.constant 3.100000e+01 : f32
    %1648 = vector.broadcast %cst_944 : f32 to vector<1x8x1xf32>
    %1649 = arith.divf %1647, %1648 : vector<1x8x1xf32>
    %1650 = vector.broadcast %1642 : vector<1x8x1xf32> to vector<1x8x32xf32>
    %1651 = arith.subf %1636, %1650 : vector<1x8x32xf32>
    %1652 = vector.shape_cast %1637 : vector<1x32xf32> to vector<1x1x32xf32>
    %1653 = vector.broadcast %1652 : vector<1x1x32xf32> to vector<1x8x32xf32>
    %1654 = arith.mulf %1653, %1651 : vector<1x8x32xf32>
    %1655 = math.sqrt %1649 : vector<1x8x1xf32>
    %cst_945 = arith.constant 9.99999997E-7 : f32
    %1656 = vector.broadcast %cst_945 : f32 to vector<1x8x1xf32>
    %1657 = arith.addf %1655, %1656 : vector<1x8x1xf32>
    %1658 = vector.broadcast %1657 : vector<1x8x1xf32> to vector<1x8x32xf32>
    %1659 = arith.divf %1654, %1658 : vector<1x8x32xf32>
    %1660 = vector.shape_cast %1638 : vector<1x32xf32> to vector<1x1x32xf32>
    %1661 = vector.broadcast %1660 : vector<1x1x32xf32> to vector<1x8x32xf32>
    %1662 = arith.addf %1659, %1661 : vector<1x8x32xf32>
    %c0_946 = arith.constant 0 : index
    %c0_947 = arith.constant 0 : index
    %1663 = vector.load %arg30[%c0_946, %c0_947] : memref<32x128xf32, #tpu.memory_space<vmem>>, vector<32x128xf32>
    %1664 = vector.shape_cast %1663 : vector<32x128xf32> to vector<1x32x128xf32>
    "tpu.trace_start"() <{level = 10 : i32, message = "btd,bdv->btv"}> : () -> ()
    %cst_948 = arith.constant dense<0.000000e+00> : vector<1x8x128xf32>
    %1665 = tpu.matmul %1662, %1664, %cst_948 {dimension_numbers = #tpu.dot_dimension_numbers<[2], [1], [1], [2], [0, 0, 0, 1, 1, 2], [0], [0]>} : vector<1x8x32xf32>, vector<1x32x128xf32>, vector<1x8x128xf32> -> vector<1x8x128xf32>
    "tpu.trace_stop"() : () -> ()
    %c0_949 = arith.constant 0 : index
    %c0_950 = arith.constant 0 : index
    %1666 = vector.load %arg31[%c0_949, %c0_950] : memref<1x128xf32, #tpu.memory_space<vmem>>, vector<1x128xf32>
    %1667 = vector.shape_cast %1666 : vector<1x128xf32> to vector<1x1x128xf32>
    %1668 = vector.broadcast %1667 : vector<1x1x128xf32> to vector<1x8x128xf32>
    %1669 = arith.addf %1665, %1668 : vector<1x8x128xf32>
    %cst_951 = arith.constant dense<0xFF800000> : vector<1x8xf32>
    %1670 = vector.multi_reduction <maximumf>, %1669, %cst_951 [2] : vector<1x8x128xf32> to vector<1x8xf32>
    %1671 = vector.shape_cast %1670 : vector<1x8xf32> to vector<1x8x1xf32>
    %1672 = vector.broadcast %1671 : vector<1x8x1xf32> to vector<1x8x128xf32>
    %1673 = arith.subf %1669, %1672 : vector<1x8x128xf32>
    %1674 = math.exp %1673 : vector<1x8x128xf32>
    %cst_952 = arith.constant dense<0.000000e+00> : vector<1x8xf32>
    %1675 = vector.multi_reduction <add>, %1674, %cst_952 [2] : vector<1x8x128xf32> to vector<1x8xf32>
    %1676 = vector.shape_cast %1675 : vector<1x8xf32> to vector<1x8x1xf32>
    %1677 = math.log %1676 : vector<1x8x1xf32>
    %1678 = vector.broadcast %1677 : vector<1x8x1xf32> to vector<1x8x128xf32>
    %1679 = arith.subf %1673, %1678 : vector<1x8x128xf32>
    %c0_953 = arith.constant 0 : index
    %c0_954 = arith.constant 0 : index
    %c0_955 = arith.constant 0 : index
    %1680 = vector.load %arg32[%c0_953, %c0_954, %c0_955] : memref<1x8x128xf32, #tpu.memory_space<vmem>>, vector<1x8x128xf32>
    tpu.vector_store %arg32[%c0_953, %c0_954, %c0_955], %1679 {strides = array<i32>} : memref<1x8x128xf32, #tpu.memory_space<vmem>>, vector<1x8x128xf32>,
    return
  }
  func.func @transform_0(%arg0: i32) -> (i32, i32, i32) {
    %c0_i32 = arith.constant 0 : i32
    %c0_i32_0 = arith.constant 0 : i32
    %c0_i32_1 = arith.constant 0 : i32
    return %arg0, %c0_i32, %c0_i32_0 : i32, i32, i32
  }
  func.func @transform_1(%arg0: i32) -> (i32, i32, i32) {
    %c0_i32 = arith.constant 0 : i32
    %c0_i32_0 = arith.constant 0 : i32
    %c0_i32_1 = arith.constant 0 : i32
    return %arg0, %c0_i32, %c0_i32_0 : i32, i32, i32
  }
  func.func @transform_2(%arg0: i32) -> (i32, i32, i32) {
    %c0_i32 = arith.constant 0 : i32
    %c0_i32_0 = arith.constant 0 : i32
    %c0_i32_1 = arith.constant 0 : i32
    return %arg0, %c0_i32, %c0_i32_0 : i32, i32, i32
  }
  func.func @transform_3(%arg0: i32) -> (i32, i32, i32) {
    %c0_i32 = arith.constant 0 : i32
    %c0_i32_0 = arith.constant 0 : i32
    %c0_i32_1 = arith.constant 0 : i32
    return %arg0, %c0_i32, %c0_i32_0 : i32, i32, i32
  }
  func.func @transform_4(%arg0: i32) -> (i32, i32, i32) {
    %c0_i32 = arith.constant 0 : i32
    %c0_i32_0 = arith.constant 0 : i32
    %c0_i32_1 = arith.constant 0 : i32
    return %arg0, %c0_i32, %c0_i32_0 : i32, i32, i32
  }
  func.func @transform_5(%arg0: i32) -> (i32, i32, i32) {
    %c0_i32 = arith.constant 0 : i32
    %c0_i32_0 = arith.constant 0 : i32
    %c0_i32_1 = arith.constant 0 : i32
    %c0_i32_2 = arith.constant 0 : i32
    return %c0_i32, %c0_i32_0, %c0_i32_1 : i32, i32, i32
  }
  func.func @transform_6(%arg0: i32) -> (i32, i32, i32) {
    %c0_i32 = arith.constant 0 : i32
    %c0_i32_0 = arith.constant 0 : i32
    %c0_i32_1 = arith.constant 0 : i32
    %c0_i32_2 = arith.constant 0 : i32
    return %c0_i32, %c0_i32_0, %c0_i32_1 : i32, i32, i32
  }
  func.func @transform_7(%arg0: i32) -> (i32, i32, i32) {
    %c0_i32 = arith.constant 0 : i32
    %c0_i32_0 = arith.constant 0 : i32
    %c0_i32_1 = arith.constant 0 : i32
    %c0_i32_2 = arith.constant 0 : i32
    return %c0_i32, %c0_i32_0, %c0_i32_1 : i32, i32, i32
  }
  func.func @transform_8(%arg0: i32) -> (i32, i32, i32) {
    %c0_i32 = arith.constant 0 : i32
    %c0_i32_0 = arith.constant 0 : i32
    %c0_i32_1 = arith.constant 0 : i32
    %c0_i32_2 = arith.constant 0 : i32
    return %c0_i32, %c0_i32_0, %c0_i32_1 : i32, i32, i32
  }
  func.func @transform_9(%arg0: i32) -> (i32, i32, i32) {
    %c0_i32 = arith.constant 0 : i32
    %c0_i32_0 = arith.constant 0 : i32
    %c0_i32_1 = arith.constant 0 : i32
    %c0_i32_2 = arith.constant 0 : i32
    return %c0_i32, %c0_i32_0, %c0_i32_1 : i32, i32, i32
  }
  func.func @transform_10(%arg0: i32) -> (i32, i32, i32) {
    %c0_i32 = arith.constant 0 : i32
    %c0_i32_0 = arith.constant 0 : i32
    %c0_i32_1 = arith.constant 0 : i32
    %c0_i32_2 = arith.constant 0 : i32
    return %c0_i32, %c0_i32_0, %c0_i32_1 : i32, i32, i32
  }
  func.func @transform_11(%arg0: i32) -> (i32, i32, i32) {
    %c0_i32 = arith.constant 0 : i32
    %c0_i32_0 = arith.constant 0 : i32
    %c0_i32_1 = arith.constant 0 : i32
    %c0_i32_2 = arith.constant 0 : i32
    return %c0_i32, %c0_i32_0, %c0_i32_1 : i32, i32, i32
  }
  func.func @transform_12(%arg0: i32) -> (i32, i32, i32) {
    %c0_i32 = arith.constant 0 : i32
    %c0_i32_0 = arith.constant 0 : i32
    %c0_i32_1 = arith.constant 0 : i32
    %c0_i32_2 = arith.constant 0 : i32
    return %c0_i32, %c0_i32_0, %c0_i32_1 : i32, i32, i32
  }
  func.func @transform_13(%arg0: i32) -> (i32, i32, i32) {
    %c0_i32 = arith.constant 0 : i32
    %c0_i32_0 = arith.constant 0 : i32
    %c0_i32_1 = arith.constant 0 : i32
    %c0_i32_2 = arith.constant 0 : i32
    return %c0_i32, %c0_i32_0, %c0_i32_1 : i32, i32, i32
  }
  func.func @transform_14(%arg0: i32) -> (i32, i32, i32) {
    %c0_i32 = arith.constant 0 : i32
    %c0_i32_0 = arith.constant 0 : i32
    %c0_i32_1 = arith.constant 0 : i32
    %c0_i32_2 = arith.constant 0 : i32
    return %c0_i32, %c0_i32_0, %c0_i32_1 : i32, i32, i32
  }
  func.func @transform_15(%arg0: i32) -> (i32, i32) {
    %c0_i32 = arith.constant 0 : i32
    %c0_i32_0 = arith.constant 0 : i32
    %c0_i32_1 = arith.constant 0 : i32
    return %c0_i32, %c0_i32_0 : i32, i32
  }
  func.func @transform_16(%arg0: i32) -> (i32, i32) {
    %c0_i32 = arith.constant 0 : i32
    %c0_i32_0 = arith.constant 0 : i32
    %c0_i32_1 = arith.constant 0 : i32
    return %c0_i32, %c0_i32_0 : i32, i32
  }
  func.func @transform_17(%arg0: i32) -> (i32, i32, i32) {
    %c0_i32 = arith.constant 0 : i32
    %c0_i32_0 = arith.constant 0 : i32
    %c0_i32_1 = arith.constant 0 : i32
    %c0_i32_2 = arith.constant 0 : i32
    return %c0_i32, %c0_i32_0, %c0_i32_1 : i32, i32, i32
  }
  func.func @transform_18(%arg0: i32) -> (i32, i32, i32) {
    %c0_i32 = arith.constant 0 : i32
    %c0_i32_0 = arith.constant 0 : i32
    %c0_i32_1 = arith.constant 0 : i32
    %c0_i32_2 = arith.constant 0 : i32
    return %c0_i32, %c0_i32_0, %c0_i32_1 : i32, i32, i32
  }
  func.func @transform_19(%arg0: i32) -> (i32, i32, i32) {
    %c0_i32 = arith.constant 0 : i32
    %c0_i32_0 = arith.constant 0 : i32
    %c0_i32_1 = arith.constant 0 : i32
    %c0_i32_2 = arith.constant 0 : i32
    return %c0_i32, %c0_i32_0, %c0_i32_1 : i32, i32, i32
  }
  func.func @transform_20(%arg0: i32) -> (i32, i32, i32) {
    %c0_i32 = arith.constant 0 : i32
    %c0_i32_0 = arith.constant 0 : i32
    %c0_i32_1 = arith.constant 0 : i32
    %c0_i32_2 = arith.constant 0 : i32
    return %c0_i32, %c0_i32_0, %c0_i32_1 : i32, i32, i32
  }
  func.func @transform_21(%arg0: i32) -> (i32, i32, i32) {
    %c0_i32 = arith.constant 0 : i32
    %c0_i32_0 = arith.constant 0 : i32
    %c0_i32_1 = arith.constant 0 : i32
    %c0_i32_2 = arith.constant 0 : i32
    return %c0_i32, %c0_i32_0, %c0_i32_1 : i32, i32, i32
  }
  func.func @transform_22(%arg0: i32) -> (i32, i32, i32) {
    %c0_i32 = arith.constant 0 : i32
    %c0_i32_0 = arith.constant 0 : i32
    %c0_i32_1 = arith.constant 0 : i32
    %c0_i32_2 = arith.constant 0 : i32
    return %c0_i32, %c0_i32_0, %c0_i32_1 : i32, i32, i32
  }
  func.func @transform_23(%arg0: i32) -> (i32, i32, i32) {
    %c0_i32 = arith.constant 0 : i32
    %c0_i32_0 = arith.constant 0 : i32
    %c0_i32_1 = arith.constant 0 : i32
    %c0_i32_2 = arith.constant 0 : i32
    return %c0_i32, %c0_i32_0, %c0_i32_1 : i32, i32, i32
  }
  func.func @transform_24(%arg0: i32) -> (i32, i32, i32) {
    %c0_i32 = arith.constant 0 : i32
    %c0_i32_0 = arith.constant 0 : i32
    %c0_i32_1 = arith.constant 0 : i32
    %c0_i32_2 = arith.constant 0 : i32
    return %c0_i32, %c0_i32_0, %c0_i32_1 : i32, i32, i32
  }
  func.func @transform_25(%arg0: i32) -> (i32, i32, i32) {
    %c0_i32 = arith.constant 0 : i32
    %c0_i32_0 = arith.constant 0 : i32
    %c0_i32_1 = arith.constant 0 : i32
    %c0_i32_2 = arith.constant 0 : i32
    return %c0_i32, %c0_i32_0, %c0_i32_1 : i32, i32, i32
  }
  func.func @transform_26(%arg0: i32) -> (i32, i32, i32) {
    %c0_i32 = arith.constant 0 : i32
    %c0_i32_0 = arith.constant 0 : i32
    %c0_i32_1 = arith.constant 0 : i32
    %c0_i32_2 = arith.constant 0 : i32
    return %c0_i32, %c0_i32_0, %c0_i32_1 : i32, i32, i32
  }
  func.func @transform_27(%arg0: i32) -> (i32, i32) {
    %c0_i32 = arith.constant 0 : i32
    %c0_i32_0 = arith.constant 0 : i32
    %c0_i32_1 = arith.constant 0 : i32
    return %c0_i32, %c0_i32_0 : i32, i32
  }
  func.func @transform_28(%arg0: i32) -> (i32, i32) {
    %c0_i32 = arith.constant 0 : i32
    %c0_i32_0 = arith.constant 0 : i32
    %c0_i32_1 = arith.constant 0 : i32
    return %c0_i32, %c0_i32_0 : i32, i32
  }
  func.func @transform_29(%arg0: i32) -> (i32, i32) {
    %c0_i32 = arith.constant 0 : i32
    %c0_i32_0 = arith.constant 0 : i32
    %c0_i32_1 = arith.constant 0 : i32
    return %c0_i32, %c0_i32_0 : i32, i32
  }
  func.func @transform_30(%arg0: i32) -> (i32, i32) {
    %c0_i32 = arith.constant 0 : i32
    %c0_i32_0 = arith.constant 0 : i32
    %c0_i32_1 = arith.constant 0 : i32
    return %c0_i32, %c0_i32_0 : i32, i32
  }
  func.func @transform_31(%arg0: i32) -> (i32, i32, i32) {
    %c0_i32 = arith.constant 0 : i32
    %c0_i32_0 = arith.constant 0 : i32
    %c0_i32_1 = arith.constant 0 : i32
    return %arg0, %c0_i32, %c0_i32_0 : i32, i32, i32
  }
}

</mosaic_0001>

<bundles_post_ra>
// kernel: _forward_jit.1
= control target key start
LH: loop header
LB: loop body
LE: loop exit
PB: predicated region body
PF: predicated region fallthrough
CT: control target
= control target key end

     0   :  { %s18019_s6 = smov 1   ;;  %s18020_s10 = smov 2   ;;  %s19865_s0 = inlined_call_operand.smem [shape: u32[32], index: -1, kind: input, shape index: {}] }
   0x1   :  { %s18060_s5 = sld [smem:[%s19865_s0]]   ;;  %s18021_s14 = smov 3  }
   0x2   :  { %s18065_s9 = sld [smem:[%s19865_s0 + %s18019_s6]]   ;;  %s18022_s18 = smov 4  }
   0x3   :  { %s18070_s13 = sld [smem:[%s19865_s0 + %s18020_s10]]   ;;  %s18023_s22 = smov 5  }
   0x4   :  { %s18075_s17 = sld [smem:[%s19865_s0 + %s18021_s14]]   ;;  %s18024_s26 = smov 6  }
   0x5   :  { %s18080_s21 = sld [smem:[%s19865_s0 + %s18022_s18]]   ;;  %s18025_s30 = smov 7  }
   0x6   :  { %s18085_s25 = sld [smem:[%s19865_s0 + %s18023_s22]]   ;;  %s18026_s4 = smov 8  }
   0x7   :  { %s18090_s29 = sld [smem:[%s19865_s0 + %s18024_s26]]   ;;  %s18027_s10 = smov 9  }
   0x8   :  { %s18095_s3 = sld [smem:[%s19865_s0 + %s18025_s30]]   ;;  %s18028_s15 = smov 10  }
   0x9   :  { %s18100_s8 = sld [smem:[%s19865_s0 + %s18026_s4]]   ;;  %s18029_s20 = smov 11  }
   0xa   :  { %19875 = sst [smem:[#allocation2_spill]] %s18075_s17  ;;  %s18030_s26 = smov 12  }
   0xb   :  { %19876 = sst [smem:[#allocation3_spill]] %s18080_s21  ;;  %s18031_s1 = smov 13  }
   0xc   :  { %s18105_s14 = sld [smem:[%s19865_s0 + %s18027_s10]]   ;;  %s18032_s7 = smov 14  }
   0xd   :  { %s18110_s19 = sld [smem:[%s19865_s0 + %s18028_s15]]   ;;  %s18033_s15 = smov 15  }
   0xe   :  { %s18115_s24 = sld [smem:[%s19865_s0 + %s18029_s20]]   ;;  %s18034_s22 = smov 16  }
   0xf   :  { %s18120_s30 = sld [smem:[%s19865_s0 + %s18030_s26]]   ;;  %s18035_s28 = smov 17  }
  0x10   :  { %s18125_s6 = sld [smem:[%s19865_s0 + %s18031_s1]]  }
  0x11   :  { %s18130_s12 = sld [smem:[%s19865_s0 + %s18032_s7]]   ;;  %s18036_s7 = smov 18  }
  0x12   :  { %s18135_s20 = sld [smem:[%s19865_s0 + %s18033_s15]]   ;;  %s18037_s15 = smov 19  }
  0x13   :  { %s18140_s27 = sld [smem:[%s19865_s0 + %s18034_s22]]   ;;  %s18038_s22 = smov 20  }
  0x14   :  { %s18145_s4 = sld [smem:[%s19865_s0 + %s18035_s28]]   ;;  %s18039_s28 = smov 21  }
  0x15   :  { %s18150_s21 = sld [smem:[%s19865_s0 + %s18036_s7]]   ;;  %s18040_s7 = smov 22  }
  0x16   :  { %s18165_s17 = sld [smem:[%s19865_s0 + %s18039_s28]]   ;;  %s18043_s28 = smov 25  }
  0x18   :  { %19877 = sst [smem:[#allocation4_spill]] %s18135_s20 }
  0x19   :  { %19878 = sst [smem:[#allocation5_spill]] %s18140_s27 }
  0x1a   :  { %19879 = sst [smem:[#allocation6_spill]] %s18145_s4 }
  0x1b   :  { %19880 = sst [smem:[#allocation7_spill]] %s18150_s21 }
  0x1c   :  { %s18155_s20 = sld [smem:[%s19865_s0 + %s18037_s15]]   ;;  %s18041_s15 = smov 23  }
  0x1d   :  { %s18160_s27 = sld [smem:[%s19865_s0 + %s18038_s22]]   ;;  %s18042_s22 = smov 24  }
  0x1e   :  { %s18170_s21 = sld [smem:[%s19865_s0 + %s18040_s7]]   ;;  %s18044_s7 = smov 26  }
  0x1f   :  { %s18185_s4 = sld [smem:[%s19865_s0 + %s18043_s28]]   ;;  %s18047_s28 = smov 29  }
  0x22   :  { %19881 = sst [smem:[#allocation8_spill]] %s18155_s20 }
  0x23   :  { %19882 = sst [smem:[#allocation9_spill]] %s18160_s27 }
  0x24   :  { %19883 = sst [smem:[#allocation10_spill]] %s18170_s21 }
  0x25   :  { %s18175_s20 = sld [smem:[%s19865_s0 + %s18041_s15]]   ;;  %s18045_s15 = smov 27  }
  0x26   :  { %s18180_s27 = sld [smem:[%s19865_s0 + %s18042_s22]]   ;;  %s18046_s22 = smov 28  }
  0x27   :  { %19886 = sst [smem:[#allocation13_spill]] %s18185_s4 }
  0x28   :  { %s18190_s21 = sld [smem:[%s19865_s0 + %s18044_s7]]   ;;  %s18048_s7 = smov 30  }
  0x29   :  { %s18205_s4 = sld [smem:[%s19865_s0 + %s18047_s28]]  }
  0x2b   :  { %19884 = sst [smem:[#allocation11_spill]] %s18175_s20 }
  0x2c   :  { %19885 = sst [smem:[#allocation12_spill]] %s18180_s27 }
  0x2d   :  { %s18195_s20 = sld [smem:[%s19865_s0 + %s18045_s15]]   ;;  %s18049_s15 = smov 31  }
  0x2e   :  { %19887 = sst [smem:[#allocation14_spill]] %s18190_s21 }
  0x2f   :  { %s18200_s27 = sld [smem:[%s19865_s0 + %s18046_s22]]   ;;  %s18217_s22 = smov 0  }
  0x30   :  { %s18210_s21 = sld [smem:[%s19865_s0 + %s18048_s7]]  }
  0x33   :  { %19888 = sst [smem:[#allocation15_spill]] %s18195_s20 }
  0x34   :  { %s18215_s20 = sld [smem:[%s19865_s0 + %s18049_s15]]  }
  0x35 LB: > { %s14931_s23 = sadd.s32 4294967295, %s18017_s22   ;;  %p14935_p0 = scmp.ge.s32.totalorder %s18017_s22, 1  ;;  %s18017_s22 = sphi %s18217_s22, %s73_s22  }
  0x36   : > { %p906_p1 = scmp.lt.s32.totalorder %s18017_s22, 3 }
  0x38   : > { %p907_p2 = pnand %p14935_p0, %p906_p1 }
  0x39   : > { %p1002_p3 = scmp.lt.s32.totalorder (!%p907_p2), %s14931_s23, 1  ;;  %s19889_s7 = sld [smem:[#allocation6_spill]] (!%p907_p2) }
  0x3a   : > { %910 = sbr.rel (%p907_p2) target bundleno = 26866 (0x68f2), region = 144  ;;  %s19890_s10 = sld [smem:[#allocation10_spill]] (!%p907_p2) }
  0x3b   : > { %s19891_s11 = sld [smem:[#allocation7_spill]] (!%p907_p2) }
  0x3c   : > { %s19892_s15 = sld [smem:[#allocation2_spill]] (!%p907_p2) }
  0x3d   : > { %s19893_s18 = sld [smem:[#allocation8_spill]] (!%p907_p2) }
  0x3f   : > { %s19904_s23 = smov (!%p1002_p3, %s14931_s23), 1  ;;  %vm1034_vm0 = vcmask 261120   ;;  %vm1038_vm1 = vcmask 254976   ;;  %v1097_v14 = vld [vmem:[%s18085_s25 + $0x18] sm:$0xff]  ;;  %v1096_v16 = vld [vmem:[%s18085_s25 + $0x10] sm:$0xff]  ;;  %v1095_v18 = vld [vmem:[%s18085_s25 + $0x8] sm:$0xff] }
  0x40   : > { %s15754_s0 = sshll.u32 %s19904_s23, 4  ;;  %16421 = vmatprep.subr.mxu0 %v1097_v14  ;;  %v14952_v15 = vld [vmem:[%s18085_s25 + $0x118] sm:$0xff]  ;;  %v14951_v17 = vld [vmem:[%s18085_s25 + $0x110] sm:$0xff]  ;;  %v14950_v19 = vld [vmem:[%s18085_s25 + $0x108] sm:$0xff]  ;;  %vm1362_vm6 = vcmask 64512   ;;  %vm1486_vm7 = vcmask 1041408  }
  0x41   : > { %s18231_s26 = scalar_lea.vmem %s18060_s5, %s15754_s0  ;;  %16422 = vmatpush3.msra.mxu0 %v1097_v14  ;;  %16432 = vmatprep.subr.mxu1 %v14952_v15  ;;  %v1094_v20 = vld [vmem:[%s18085_s25] sm:$0xff]  ;;  %v14960_v22 = vld [vmem:[%s18085_s25 + $0x218] sm:$0xff]  ;;  %v14959_v49 = vld [vmem:[%s18085_s25 + $0x210] sm:$0xff]  ;;  %s1015_s28 = scalar_lea.vmem %s18070_s13, %s15754_s0  ;;  %vm1460_vm9 = vcmask 74752   ;;  %vm1456_vm11 = vcmask 80896  }
  0x42   : > { %v1028_v0 = vld [vmem:[%s18231_s26] sm:$0xff]  ;;  %v18236_v2 = vld [vmem:[%s18231_s26 + $0x8] sm:$0x3]  ;;  %16423 = vmatprep.subr.mxu0 %v1096_v16  ;;  %16433 = vmatpush3.msra.mxu1 %v14952_v15  ;;  %v14962_v61 = vld [vmem:[%s18090_s29 + $0x10] ss:$0 sm:$0xff]  ;;  %s18723_s1 = sshll.u32 %s19904_s23, 3 }
  0x43   : > { %v1035_v1 = vsel %vm1034_vm0, %v1028_v0, 0.0  ;;  %v1039_v3 = vsel %vm1038_vm1, %v18236_v2, 0.0  ;;  %16424 = vmatpush3.msra.mxu0 %v1096_v16  ;;  %16434 = vmatprep.subr.mxu1 %v14951_v17  ;;  %v14949_v21 = vld [vmem:[%s18085_s25 + $0x100] sm:$0xff]  ;;  %v14958_v50 = vld [vmem:[%s18085_s25 + $0x208] sm:$0xff]  ;;  %v14975_v62 = vld [vmem:[%s18085_s25 + $0x38] sm:$0xff]  ;;  %s18730_s2 = scalar_lea.vmem %s18065_s9, %s18723_s1  ;;  %s1019_s16 = scalar_lea.vmem %s19892_s15, %s18723_s1 }
  0x44   : > { %1036 = vadd.xlane.f32.xlu0 %v1035_v1  ;;  %16425 = vmatprep.subr.mxu0 %v1095_v18  ;;  %v14944_v39 = vld [vmem:[%s18105_s14] ss:$0 sm:$0xff]  ;;  %v14954_v52 = vld [vmem:[%s18090_s29 + $0x8] ss:$0 sm:$0xff]  ;;  %s19894_s23 = sld [smem:[#allocation4_spill]] }
  0x45   : > { %16435 = vmatpush3.msra.mxu1 %v14951_v17  ;;  %16426 = vmatpush3.msra.mxu0 %v1095_v18  ;;  %v14945_v42 = vld [vmem:[%s18110_s19] ss:$0 sm:$0xff]  ;;  %s19895_s0 = sld [smem:[#allocation5_spill]] }
  0x46   : > { %16436 = vmatprep.subr.mxu1 %v14950_v19  ;;  %16427 = vmatprep.subr.mxu0 %v1094_v20  ;;  %v14957_v51 = vld [vmem:[%s18085_s25 + $0x200] sm:$0xff]  ;;  %s19898_s15 = sld [smem:[#allocation11_spill]] }
  0x47   : > { %16437 = vmatpush3.msra.mxu1 %v14950_v19  ;;  %16428 = vmatpush3.msra.mxu0 %v1094_v20  ;;  %v14946_v56 = vld [vmem:[%s18090_s29] ss:$0 sm:$0xff] }
  0x48   : > { %1040 = vadd.xlane.f32.xlu0 %v1039_v3  ;;  %16438 = vmatprep.subr.mxu1 %v14949_v21 }
  0x49   : > { %16439 = vmatpush3.msra.mxu1 %v14949_v21  ;;  %16443 = vmatprep.subr.mxu0 %v14960_v22 }
  0xcd   : > { %v1037_v4 = vpop.xlane.xlu0 %1036 }
  0xce   : > { %v1043_v5 = vmul.f32 0.03125, %v1037_v4 }
  0xd0   : > { %v1045_v6 = vsub.f32 %v1028_v0, %v1043_v5  ;;  %v14974_v5 = vld [vmem:[%s18085_s25 + $0x30] sm:$0xff] }
  0xd1   : > { %v1041_v7 = vpop.xlane.xlu0 %1040 }
  0xd2   : > { %v1044_v8 = vmul.f32 0.03125, %v1041_v7  ;;  %v1047_v9 = vmul.f32 %v1045_v6, %v1045_v6  ;;  %v1064_v40 = vmul.f32 %v14944_v39, %v1045_v6  ;;  %v14973_v6 = vld [vmem:[%s18085_s25 + $0x28] sm:$0xff]  ;;  %v14972_v7 = vld [vmem:[%s18085_s25 + $0x20] sm:$0xff] }
  0xd4   : > { %v1046_v10 = vsub.f32 %v18236_v2, %v1044_v8  ;;  %v1049_v11 = vsel %vm1034_vm0, %v1047_v9, 0.0  ;;  %v14991_v8 = vld [vmem:[%s18085_s25 + $0x238] sm:$0xff]  ;;  %v14990_v9 = vld [vmem:[%s18085_s25 + $0x230] sm:$0xff] }
  0xd5   : > { %1050 = vadd.xlane.f32.xlu1 %v1049_v11  ;;  %v14988_v11 = vld [vmem:[%s18085_s25 + $0x220] sm:$0xff] }
  0xd6   : > { %v1048_v12 = vmul.f32 %v1046_v10, %v1046_v10  ;;  %v1065_v44 = vmul.f32 %v14944_v39, %v1046_v10  ;;  %v14989_v10 = vld [vmem:[%s18085_s25 + $0x228] sm:$0xff] }
  0xd8   : > { %v1052_v13 = vsel %vm1038_vm1, %v1048_v12, 0.0  ;;  %v18303_v12 = vld [vmem:[%s1015_s28 + $0x8] sm:$0x3] }
  0xd9   : > { %1053 = vadd.xlane.f32.xlu1 %v1052_v13  ;;  %v18305_v13 = vld [vmem:[%s1015_s28] sm:$0xff]  ;;  %vm1453_vm8 = vcmp.eq.f32.partialorder %v18303_v12, 0.0  ;;  %s19897_s28 = sld [smem:[#allocation3_spill]] }
  0xda   : > { %vm1452_vm10 = vcmp.eq.f32.partialorder %v18305_v13, 0.0 }
 0x15e   : > { %v1051_v23 = vpop.xlane.xlu1 %1050 }
 0x15f   : > { %v1056_v24 = vmul.f32 0.032258064, %v1051_v23 }
 0x161   : > { %17809 = vrsqrt.f32 %v1056_v24  ;;  %vm1068_vm2 = vcmp.eq.f32.partialorder %v1056_v24, inf  ;;  %v1071_v29 = vand.u32 2147483648, %v1056_v24  ;;  %vm1070_vm3 = vcmp.eq.f32.partialorder %v1056_v24, 0.0 }
 0x162   : > { %v1054_v25 = vpop.xlane.xlu1 %1053 }
 0x163   : > { %v1057_v26 = vmul.f32 0.032258064, %v1054_v25 }
 0x165   : > { %17811 = vrsqrt.f32 %v1057_v26  ;;  %vm1075_vm4 = vcmp.eq.f32.partialorder %v1057_v26, inf  ;;  %v1078_v35 = vand.u32 2147483648, %v1057_v26  ;;  %vm1077_vm5 = vcmp.eq.f32.partialorder %v1057_v26, 0.0 }
 0x16e   : > { %v17810_v27 = vpop.eup %17809 }
 0x16f   : > { %v1067_v28 = vmul.f32 %v17810_v27, %v1056_v24 }
 0x171   : > { %v1069_v30 = vsel %vm1068_vm2, %v1056_v24, %v1067_v28  ;;  %vm3463_vm2 = vcmask 523264  }
 0x172   : > { %v17812_v31 = vpop.eup %17811  ;;  %v1072_v32 = vsel %vm1070_vm3, %v1071_v29, %v1069_v30 }
 0x173   : > { %v1080_v33 = vadd.f32 1e-06, %v1072_v32  ;;  %v1074_v34 = vmul.f32 %v17812_v31, %v1057_v26 }
 0x175   : > { %17813 = vrcp.f32 %v1080_v33  ;;  %v1076_v36 = vsel %vm1075_vm4, %v1057_v26, %v1074_v34  ;;  %v14993_v26 = vld [vmem:[%s18090_s29 + $0x11] ss:$0 sm:$0xff] }
 0x176   : > { %v1079_v37 = vsel %vm1077_vm5, %v1078_v35, %v1076_v36 }
 0x177   : > { %v1081_v38 = vadd.f32 1e-06, %v1079_v37 }
 0x179   : > { %17815 = vrcp.f32 %v1081_v38 }
 0x182   : > { %v17814_v41 = vpop.eup %17813 }
 0x183   : > { %v1083_v43 = vmul.f32 %v17814_v41, %v1064_v40  ;;  %v14983_v41 = vld [vmem:[%s18085_s25 + $0x138] sm:$0xff] }
 0x185   : > { %v18254_v45 = vadd.f32 %v14945_v42, %v1083_v43 }
 0x186   : > { %v17816_v46 = vpop.eup %17815 }
 0x187   : > { %v1085_v47 = vmul.f32 %v17816_v46, %v1065_v44  ;;  %16429 = vmatprep.mubr.msk.f32.mxu0 %vm1034_vm0, %v18254_v45  ;;  %16440 = vmatprep.mubr.msk.f32.mxu1 %vm1034_vm0, %v18254_v45 }
 0x189   : > { %v18260_v48 = vadd.f32 %v14945_v42, %v1085_v47 }
 0x18b   : > { %16430 = vmatmul.mubr.msk.f32.vlgmr.msra.gmra.mxu0 %vm1034_vm0, %v18260_v48  ;;  %16441 = vmatmul.mubr.msk.f32.vlgmr.msra.gmra.mxu1 %vm1034_vm0, %v18260_v48 }
 0x18c   : > { %16444 = vmatpush3.msra.mxu0 %v14960_v22  ;;  %16451 = vmatprep.mubr.msk.f32.mxu0 %vm1034_vm0, %v18254_v45  ;;  %v14977_v22 = vld [vmem:[%s18090_s29 + $0x1] ss:$0 sm:$0xff] }
 0x18d   : > { %16445 = vmatprep.subr.mxu0 %v14959_v49 }
 0x18e   : > { %16446 = vmatpush3.msra.mxu0 %v14959_v49 }
 0x18f   : > { %16447 = vmatprep.subr.mxu0 %v14958_v50 }
 0x190   : > { %16448 = vmatpush3.msra.mxu0 %v14958_v50  ;;  %v14982_v50 = vld [vmem:[%s18085_s25 + $0x130] sm:$0xff] }
 0x191   : > { %16449 = vmatprep.subr.mxu0 %v14957_v51 }
 0x192   : > { %16450 = vmatpush3.msra.mxu0 %v14957_v51  ;;  %v14981_v51 = vld [vmem:[%s18085_s25 + $0x128] sm:$0xff] }
 0x193   : > { %16452 = vmatmul.mubr.msk.f32.vlgmr.msra.gmra.mxu0 %vm1034_vm0, %v18260_v48 }
 0x24b   : > { %v16431_v53 = vpop.f32.mrf.mxu0  ;;  %v16442_v54 = vpop.f32.mrf.mxu1 }
 0x24c   : > { %v1271_v55 = vadd.f32 %v16442_v54, %v14954_v52  ;;  %v1183_v0 = vadd.f32 %v16431_v53, %v14946_v56 }
 0x24d   : > { %v1177_v57 = vpop.f32.mrf.mxu0  ;;  %v1265_v58 = vpop.f32.mrf.mxu1 }
 0x24e   : > { %v1178_v59 = vadd.f32 %v14946_v56, %v1177_v57  ;;  %v1266_v60 = vadd.f32 %v14954_v52, %v1265_v58  ;;  %16454 = vmatprep.subr.msk.mxu1 %vm1362_vm6, %v1271_v55  ;;  %v14980_v52 = vld [vmem:[%s18085_s25 + $0x120] sm:$0xff]  ;;  %v14985_v56 = vld [vmem:[%s18090_s29 + $0x9] ss:$0 sm:$0xff] }
 0x24f   : > { %16455 = vmatpush3.xpose.msk.msra.mxu1 %vm1362_vm6, %v1271_v55 }
 0x250   : > { %16456 = vmatprep.subr.msk.mxu1 %vm1362_vm6, %v1266_v60  ;;  %16458 = vmatprep.mubr.msk.f32.mxu1 %vm1362_vm6, %v1178_v59 }
 0x253   : > { %v16453_v63 = vpop.f32.mrf.mxu0  ;;  %16457 = vmatpush3.xpose.msk.msra.mxu1 %vm1362_vm6, %v1266_v60 }
 0x254   : > { %v1359_v1 = vadd.f32 %v16453_v63, %v14962_v61  ;;  %16468 = vmatprep.subr.mxu1 %v14975_v62 }
 0x255   : > { %v1353_v3 = vpop.f32.mrf.mxu0 }
 0x256   : > { %v1354_v4 = vadd.f32 %v14962_v61, %v1353_v3  ;;  %16461 = vmatprep.subr.msk.mxu0 %vm1486_vm7, %v1359_v1  ;;  %16459 = vmatmul.mubr.msk.f32.vlgmr.msra.gmra.mxu1 %vm1362_vm6, %v1183_v0 }
 0x257   : > { %16462 = vmatpush3.msk.msra.mxu0 %vm1486_vm7, %v1359_v1  ;;  %16469 = vmatpush3.msra.mxu1 %v14975_v62 }
 0x258   : > { %16463 = vmatprep.subr.mxu0 %v1354_v4  ;;  %16476 = vmatprep.mubr.msk.f32.mxu1 %vm1034_vm0, %v18254_v45 }
 0x259   : > { %16464 = vmatpush3.msra.mxu0 %v1354_v4  ;;  %16470 = vmatprep.subr.mxu1 %v14974_v5 }
 0x25a   : > { %16471 = vmatpush3.msra.mxu1 %v14974_v5  ;;  %16479 = vmatprep.subr.mxu0 %v14983_v41 }
 0x25b   : > { %16472 = vmatprep.subr.mxu1 %v14973_v6 }
 0x25c   : > { %16473 = vmatpush3.msra.mxu1 %v14973_v6 }
 0x25d   : > { %16474 = vmatprep.subr.mxu1 %v14972_v7 }
 0x25e   : > { %16475 = vmatpush3.msra.mxu1 %v14972_v7 }
 0x25f   : > { %16477 = vmatmul.mubr.msk.f32.vlgmr.msra.gmra.mxu1 %vm1034_vm0, %v18260_v48  ;;  %16490 = vmatprep.subr.mxu1 %v14991_v8 }
 0x260   : > { %16491 = vmatpush3.msra.mxu1 %v14991_v8  ;;  %16498 = vmatprep.mubr.msk.f32.mxu1 %vm1034_vm0, %v18254_v45 }
 0x261   : > { %16492 = vmatprep.subr.mxu1 %v14990_v9 }
 0x262   : > { %16493 = vmatpush3.msra.mxu1 %v14990_v9 }
 0x263   : > { %16494 = vmatprep.subr.mxu1 %v14989_v10 }
 0x264   : > { %16495 = vmatpush3.msra.mxu1 %v14989_v10 }
 0x265   : > { %16496 = vmatprep.subr.mxu1 %v14988_v11 }
 0x266   : > { %16497 = vmatpush3.msra.mxu1 %v14988_v11 }
 0x267   : > { %16499 = vmatmul.mubr.msk.f32.vlgmr.msra.gmra.mxu1 %vm1034_vm0, %v18260_v48 }
 0x316   : > { %v16460_v14 = vpop.f32.mrf.mxu1 }
 0x317   : > { %v1451_v15 = vmul.f32 0.35355338, %v16460_v14 }
 0x318   : > { %v1441_v16 = vpop.f32.mrf.mxu1 }
 0x319   : > { %v1450_v17 = vmul.f32 0.35355338, %v1441_v16  ;;  %v1455_v18 = vsel %vm1453_vm8, -1e+09, %v1451_v15 }
 0x31a   : > { %v1461_v19 = vsel %vm1460_vm9, %v1455_v18, -inf }
 0x31b   : > { %1462 = vmax.xlane.f32.xlu1 %v1461_v19  ;;  %v1454_v20 = vsel %vm1452_vm10, -1e+09, %v1450_v17 }
 0x31c   : > { %v1457_v21 = vsel %vm1456_vm11, %v1454_v20, -inf }
 0x31d   : > { %1458 = vmax.xlane.f32.xlu0 %v1457_v21 }
 0x31f   : > { %v16478_v23 = vpop.f32.mrf.mxu1 }
 0x320   : > { %v1651_v24 = vadd.f32 %v16478_v23, %v14977_v22 }
 0x321   : > { %v1645_v25 = vpop.f32.mrf.mxu1 }
 0x322   : > { %v1646_v53 = vadd.f32 %v14977_v22, %v1645_v25  ;;  %v15019_v25 = vld [vmem:[%s18085_s25 + $0x158] sm:$0xff] }
 0x327   : > { %v16500_v27 = vpop.f32.mrf.mxu1 }
 0x328   : > { %v1827_v28 = vadd.f32 %v16500_v27, %v14993_v26  ;;  %v15017_v27 = vld [vmem:[%s18085_s25 + $0x148] sm:$0xff] }
 0x329   : > { %v1821_v29 = vpop.f32.mrf.mxu1 }
 0x32a   : > { %v1822_v30 = vadd.f32 %v14993_v26, %v1821_v29  ;;  %16508 = vmatprep.subr.msk.mxu1 %vm1486_vm7, %v1827_v28  ;;  %v15018_v26 = vld [vmem:[%s18085_s25 + $0x150] sm:$0xff]  ;;  %v15003_v29 = vld [vmem:[%s18095_s3 + $0x8] sm:$0xff] }
 0x32b   : > { %16509 = vmatpush3.msk.msra.mxu1 %vm1486_vm7, %v1827_v28  ;;  %v15016_v28 = vld [vmem:[%s18085_s25 + $0x140] sm:$0xff] }
 0x32c   : > { %16510 = vmatprep.subr.mxu1 %v1822_v30 }
 0x32d   : > { %16511 = vmatpush3.msra.mxu1 %v1822_v30  ;;  %v15011_v30 = vld [vmem:[%s18085_s25 + $0x58] sm:$0xff] }
 0x3a4   : > { %v1463_v31 = vpop.xlane.xlu1 %1462 }
 0x3a5   : > { %v1465_v32 = vsub.f32 %v1455_v18, %v1463_v31  ;;  %v1565_v18 = vld [vmem:[%s18095_s3] sm:$0xff] }
 0x3a6   : > { %v1459_v33 = vpop.xlane.xlu0 %1458  ;;  %16520 = vmatprep.subr.mxu1 %v1565_v18 }
 0x3a7   : > { %v1468_v34 = vmul.f32 1.442695, %v1465_v32  ;;  %v1464_v35 = vsub.f32 %v1454_v20, %v1459_v33  ;;  %v15010_v33 = vld [vmem:[%s18085_s25 + $0x50] sm:$0xff] }
 0x3a9   : > { %17817 = vpow2.f32 %v1468_v34  ;;  %v1466_v36 = vmul.f32 1.442695, %v1464_v35  ;;  %v15009_v34 = vld [vmem:[%s18085_s25 + $0x48] sm:$0xff] }
 0x3ab   : > { %17819 = vpow2.f32 %v1466_v36  ;;  %v15008_v36 = vld [vmem:[%s18085_s25 + $0x40] sm:$0xff] }
 0x3b6   : > { %v17818_v37 = vpop.eup %17817 }
 0x3b7   : > { %v1473_v38 = vsel %vm1460_vm9, %v17818_v37, 0.0 }
 0x3b8   : > { %v17820_v39 = vpop.eup %17819  ;;  %1474 = vadd.xlane.f32.xlu1 %v1473_v38 }
 0x3b9   : > { %v1470_v40 = vsel %vm1456_vm11, %v17820_v39, 0.0 }
 0x3ba   : > { %1471 = vadd.xlane.f32.xlu0 %v1470_v40  ;;  %v15026_v40 = vld [vmem:[%s18085_s25 + $0x250] sm:$0xff] }
 0x441   : > { %v1475_v42 = vpop.xlane.xlu1 %1474 }
 0x442   : > { %17821 = vrcp.f32 %v1475_v42 }
 0x443   : > { %v1472_v43 = vpop.xlane.xlu0 %1471 }
 0x444   : > { %17823 = vrcp.f32 %v1472_v43  ;;  %v15025_v43 = vld [vmem:[%s18085_s25 + $0x248] sm:$0xff] }
 0x44f   : > { %v17822_v44 = vpop.eup %17821 }
 0x450   : > { %v1479_v49 = vmul.f32 %v17822_v44, %v17818_v37  ;;  %v15027_v37 = vld [vmem:[%s18085_s25 + $0x258] sm:$0xff] }
 0x451   : > { %v17824_v46 = vpop.eup %17823 }
 0x452   : > { %v1478_v47 = vmul.f32 %v17824_v46, %v17820_v39  ;;  %v15021_v39 = vld [vmem:[%s18090_s29 + $0xa] ss:$0 sm:$0xff] }
 0x454   : > { %16465 = vmatprep.mubr.msk.f32.mxu0 %vm1456_vm11, %v1478_v47  ;;  %v15024_v47 = vld [vmem:[%s18085_s25 + $0x240] sm:$0xff] }
 0x455   : > { %16466 = vmatmul.mubr.msk.f32.vlgmr.msra.gmra.mxu0 %vm1456_vm11, %v1479_v49 }
 0x456   : > { %16480 = vmatpush3.msra.mxu0 %v14983_v41  ;;  %16487 = vmatprep.mubr.msk.f32.mxu0 %vm1034_vm0, %v18254_v45 }
 0x457   : > { %16481 = vmatprep.subr.mxu0 %v14982_v50 }
 0x458   : > { %16482 = vmatpush3.msra.mxu0 %v14982_v50 }
 0x459   : > { %16483 = vmatprep.subr.mxu0 %v14981_v51 }
 0x45a   : > { %16484 = vmatpush3.msra.mxu0 %v14981_v51 }
 0x45b   : > { %16485 = vmatprep.subr.mxu0 %v14980_v52 }
 0x45c   : > { %16486 = vmatpush3.msra.mxu0 %v14980_v52  ;;  %v15013_v52 = vld [vmem:[%s18090_s29 + $0x2] ss:$0 sm:$0xff] }
 0x45d   : > { %16488 = vmatmul.mubr.msk.f32.vlgmr.msra.gmra.mxu0 %vm1034_vm0, %v18260_v48 }
 0x45e   : > { %16505 = vmatprep.mubr.msk.f32.mxu0 %vm1362_vm6, %v1646_v53 }
 0x515   : > { %v16467_v54 = vpop.f32.mrf.mxu0 }
 0x517   : > { %v1556_v55 = vpop.f32.mrf.mxu0 }
 0x51d   : > { %v16489_v57 = vpop.f32.mrf.mxu0 }
 0x51e   : > { %v1739_v58 = vadd.f32 %v16489_v57, %v14985_v56 }
 0x51f   : > { %v1733_v59 = vpop.f32.mrf.mxu0 }
 0x520   : > { %v1734_v60 = vadd.f32 %v14985_v56, %v1733_v59  ;;  %16501 = vmatprep.subr.msk.mxu0 %vm1362_vm6, %v1739_v58  ;;  %v15029_v56 = vld [vmem:[%s18090_s29 + $0x12] ss:$0 sm:$0xff] }
 0x521   : > { %16502 = vmatpush3.xpose.msk.msra.mxu0 %vm1362_vm6, %v1739_v58 }
 0x522   : > { %16503 = vmatprep.subr.msk.mxu0 %vm1362_vm6, %v1734_v60 }
 0x525   : > { %16504 = vmatpush3.xpose.msk.msra.mxu0 %vm1362_vm6, %v1734_v60 }
 0x526   : > { %16515 = vmatprep.subr.mxu0 %v15003_v29 }
 0x528   : > { %16506 = vmatmul.mubr.msk.f32.vlgmr.msra.gmra.mxu0 %vm1362_vm6, %v1651_v24 }
 0x529   : > { %16516 = vmatpush3.msra.mxu0 %v15003_v29  ;;  %v15060_v29 = vld [vmem:[%s18085_s25 + $0x270] sm:$0xff] }
 0x52a   : > { %16525 = vmatprep.subr.mxu0 %v15011_v30 }
 0x5e8   : > { %v16507_v61 = vpop.f32.mrf.mxu0 }
 0x5e9   : > { %v1918_v62 = vmul.f32 0.35355338, %v16507_v61 }
 0x5ea   : > { %v1908_v63 = vpop.f32.mrf.mxu0 }
 0x5eb   : > { %v1917_v0 = vmul.f32 0.35355338, %v1908_v63  ;;  %v1920_v1 = vsel %vm1453_vm8, -1e+09, %v1918_v62 }
 0x5ec   : > { %v1924_v3 = vsel %vm1460_vm9, %v1920_v1, -inf }
 0x5ed   : > { %1925 = vmax.xlane.f32.xlu1 %v1924_v3  ;;  %v1919_v4 = vsel %vm1452_vm10, -1e+09, %v1917_v0 }
 0x5ee   : > { %v1921_v5 = vsel %vm1456_vm11, %v1919_v4, -inf }
 0x5ef   : > { %1922 = vmax.xlane.f32.xlu0 %v1921_v5 }
 0x676   : > { %v1926_v6 = vpop.xlane.xlu1 %1925 }
 0x677   : > { %v1928_v7 = vsub.f32 %v1920_v1, %v1926_v6 }
 0x678   : > { %v1923_v8 = vpop.xlane.xlu0 %1922 }
 0x679   : > { %v1931_v9 = vmul.f32 1.442695, %v1928_v7  ;;  %v1927_v10 = vsub.f32 %v1919_v4, %v1923_v8 }
 0x67b   : > { %17825 = vpow2.f32 %v1931_v9  ;;  %v1929_v11 = vmul.f32 1.442695, %v1927_v10 }
 0x67d   : > { %17827 = vpow2.f32 %v1929_v11 }
 0x688   : > { %v17826_v14 = vpop.eup %17825 }
 0x689   : > { %v1936_v15 = vsel %vm1460_vm9, %v17826_v14, 0.0 }
 0x68a   : > { %v17828_v16 = vpop.eup %17827  ;;  %1937 = vadd.xlane.f32.xlu1 %v1936_v15 }
 0x68b   : > { %v1933_v17 = vsel %vm1456_vm11, %v17828_v16, 0.0 }
 0x68c   : > { %1934 = vadd.xlane.f32.xlu0 %v1933_v17 }
 0x713   : > { %v1938_v19 = vpop.xlane.xlu1 %1937 }
 0x714   : > { %17829 = vrcp.f32 %v1938_v19 }
 0x715   : > { %v1935_v20 = vpop.xlane.xlu0 %1934 }
 0x716   : > { %17831 = vrcp.f32 %v1935_v20 }
 0x721   : > { %v17830_v21 = vpop.eup %17829 }
 0x722   : > { %v1942_v24 = vmul.f32 %v17830_v21, %v17826_v14 }
 0x723   : > { %v17832_v22 = vpop.eup %17831 }
 0x724   : > { %v1941_v23 = vmul.f32 %v17832_v22, %v17828_v16 }
 0x726   : > { %16512 = vmatprep.mubr.msk.f32.mxu1 %vm1456_vm11, %v1941_v23 }
 0x727   : > { %16513 = vmatmul.mubr.msk.f32.vlgmr.msra.gmra.mxu1 %vm1456_vm11, %v1942_v24 }
 0x728   : > { %16522 = vmatprep.mubr.msk.f32.mxu1 %vm1362_vm6, %v1556_v55  ;;  %16521 = vmatpush3.msra.mxu1 %v1565_v18  ;;  %v15045_v18 = vld [vmem:[%s18085_s25 + $0x78] sm:$0xff] }
 0x729   : > { %16536 = vmatprep.subr.mxu1 %v15019_v25 }
 0x72b   : > { %16523 = vmatmul.mubr.msk.f32.vlgmr.msra.gmra.mxu1 %vm1362_vm6, %v16467_v54 }
 0x72c   : > { %16537 = vmatpush3.msra.mxu1 %v15019_v25  ;;  %16544 = vmatprep.mubr.msk.f32.mxu1 %vm1034_vm0, %v18254_v45  ;;  %v15044_v25 = vld [vmem:[%s18085_s25 + $0x70] sm:$0xff] }
 0x72d   : > { %16538 = vmatprep.subr.mxu1 %v15018_v26 }
 0x72e   : > { %16539 = vmatpush3.msra.mxu1 %v15018_v26  ;;  %v15043_v26 = vld [vmem:[%s18085_s25 + $0x68] sm:$0xff] }
 0x72f   : > { %16540 = vmatprep.subr.mxu1 %v15017_v27 }
 0x730   : > { %16541 = vmatpush3.msra.mxu1 %v15017_v27  ;;  %v15042_v27 = vld [vmem:[%s18085_s25 + $0x60] sm:$0xff] }
 0x731   : > { %16542 = vmatprep.subr.mxu1 %v15016_v28 }
 0x732   : > { %16543 = vmatpush3.msra.mxu1 %v15016_v28  ;;  %v15061_v28 = vld [vmem:[%s18085_s25 + $0x278] sm:$0xff] }
 0x733   : > { %16545 = vmatmul.mubr.msk.f32.vlgmr.msra.gmra.mxu1 %vm1034_vm0, %v18260_v48 }
 0x7e7   : > { %v16514_v31 = vpop.f32.mrf.mxu1 }
 0x7e9   : > { %v2018_v32 = vpop.f32.mrf.mxu1 }
 0x7ea   : > { %16517 = vmatprep.mubr.msk.f32.mxu0 %vm1362_vm6, %v2018_v32  ;;  %v15039_v32 = vld [vmem:[%s18095_s3 + $0x10] sm:$0xff] }
 0x7eb   : > { %16518 = vmatmul.mubr.msk.f32.vlgmr.msra.gmra.mxu0 %vm1362_vm6, %v16514_v31  ;;  %v18367_v35 = vpop.f32.mrf.mxu1  ;;  %v15058_v31 = vld [vmem:[%s18085_s25 + $0x260] sm:$0xff] }
 0x7ec   : > { %16526 = vmatpush3.msra.mxu0 %v15011_v30  ;;  %16533 = vmatprep.mubr.msk.f32.mxu0 %vm1034_vm0, %v18254_v45  ;;  %v15059_v30 = vld [vmem:[%s18085_s25 + $0x268] sm:$0xff] }
 0x7ed   : > { %16527 = vmatprep.subr.mxu0 %v15010_v33  ;;  %v18371_v38 = vpop.f32.mrf.mxu1 }
 0x7ee   : > { %16528 = vmatpush3.msra.mxu0 %v15010_v33  ;;  %v15053_v33 = vld [vmem:[%s18085_s25 + $0x178] sm:$0xff] }
 0x7ef   : > { %16529 = vmatprep.subr.mxu0 %v15009_v34 }
 0x7f0   : > { %16530 = vmatpush3.msra.mxu0 %v15009_v34 }
 0x7f1   : > { %16531 = vmatprep.subr.mxu0 %v15008_v36 }
 0x7f2   : > { %16532 = vmatpush3.msra.mxu0 %v15008_v36 }
 0x7f3   : > { %16534 = vmatmul.mubr.msk.f32.vlgmr.msra.gmra.mxu0 %vm1034_vm0, %v18260_v48  ;;  %v16546_v41 = vpop.f32.mrf.mxu1  ;;  %16547 = vmatprep.subr.mxu0 %v15027_v37 }
 0x7f4   : > { %v2364_v42 = vadd.f32 %v16546_v41, %v15021_v39  ;;  %16548 = vmatpush3.msra.mxu0 %v15027_v37  ;;  %16555 = vmatprep.mubr.msk.f32.mxu0 %vm1034_vm0, %v18254_v45  ;;  %v15052_v37 = vld [vmem:[%s18085_s25 + $0x170] sm:$0xff]  ;;  %v15050_v41 = vld [vmem:[%s18085_s25 + $0x160] sm:$0xff] }
 0x7f5   : > { %v2358_v44 = vpop.f32.mrf.mxu1  ;;  %16549 = vmatprep.subr.mxu0 %v15026_v40 }
 0x7f6   : > { %v2359_v46 = vadd.f32 %v15021_v39, %v2358_v44  ;;  %16550 = vmatpush3.msra.mxu0 %v15026_v40  ;;  %16558 = vmatprep.subr.msk.mxu1 %vm1362_vm6, %v2364_v42  ;;  %v15051_v39 = vld [vmem:[%s18085_s25 + $0x168] sm:$0xff]  ;;  %v15047_v40 = vld [vmem:[%s18090_s29 + $0x3] ss:$0 sm:$0xff] }
 0x7f7   : > { %16551 = vmatprep.subr.mxu0 %v15025_v43  ;;  %16559 = vmatpush3.xpose.msk.msra.mxu1 %vm1362_vm6, %v2364_v42 }
 0x7f8   : > { %16552 = vmatpush3.msra.mxu0 %v15025_v43  ;;  %16560 = vmatprep.subr.msk.mxu1 %vm1362_vm6, %v2359_v46 }
 0x7f9   : > { %16553 = vmatprep.subr.mxu0 %v15024_v47 }
 0x7fa   : > { %16554 = vmatpush3.msra.mxu0 %v15024_v47 }
 0x7fb   : > { %16556 = vmatmul.mubr.msk.f32.vlgmr.msra.gmra.mxu0 %vm1034_vm0, %v18260_v48  ;;  %16561 = vmatpush3.xpose.msk.msra.mxu1 %vm1362_vm6, %v2359_v46 }
 0x7fc   : > { %16572 = vmatprep.subr.mxu1 %v15039_v32 }
 0x8ab   : > { %v18387_v49 = vpop.f32.mrf.mxu0 }
 0x8ad   : > { %v18389_v50 = vpop.f32.mrf.mxu0 }
 0x8b3   : > { %v16535_v51 = vpop.f32.mrf.mxu0 }
 0x8b4   : > { %v2276_v55 = vadd.f32 %v16535_v51, %v15013_v52 }
 0x8b5   : > { %v2270_v53 = vpop.f32.mrf.mxu0 }
 0x8b6   : > { %v2271_v54 = vadd.f32 %v15013_v52, %v2270_v53 }
 0x8b8   : > { %16562 = vmatprep.mubr.msk.f32.mxu1 %vm1362_vm6, %v2271_v54  ;;  %v2188_v54 = vadd.f32 %v18367_v35, %v18387_v49 }
 0x8b9   : > { %16563 = vmatmul.mubr.msk.f32.vlgmr.msra.gmra.mxu1 %vm1362_vm6, %v2276_v55 }
 0x8ba   : > { %16573 = vmatpush3.msra.mxu1 %v15039_v32 }
 0x8bb   : > { %v16557_v57 = vpop.f32.mrf.mxu0  ;;  %16588 = vmatprep.subr.mxu1 %v15053_v33 }
 0x8bc   : > { %v2452_v58 = vadd.f32 %v16557_v57, %v15029_v56 }
 0x8bd   : > { %v2446_v59 = vpop.f32.mrf.mxu0 }
 0x8be   : > { %v2447_v60 = vadd.f32 %v15029_v56, %v2446_v59  ;;  %16565 = vmatprep.subr.msk.mxu0 %vm1486_vm7, %v2452_v58 }
 0x8bf   : > { %16566 = vmatpush3.msk.msra.mxu0 %vm1486_vm7, %v2452_v58 }
 0x8c0   : > { %16567 = vmatprep.subr.mxu0 %v2447_v60 }
 0x8c1   : > { %16568 = vmatpush3.msra.mxu0 %v2447_v60 }
 0x8c2   : > { %16577 = vmatprep.subr.mxu0 %v15045_v18 }
 0x979   : > { %v16564_v61 = vpop.f32.mrf.mxu1 }
 0x97a   : > { %v2543_v62 = vmul.f32 0.35355338, %v16564_v61 }
 0x97b   : > { %v2533_v63 = vpop.f32.mrf.mxu1 }
 0x97c   : > { %v2542_v0 = vmul.f32 0.35355338, %v2533_v63  ;;  %v2545_v1 = vsel %vm1453_vm8, -1e+09, %v2543_v62 }
 0x97d   : > { %v2549_v3 = vsel %vm1460_vm9, %v2545_v1, -inf }
 0x97e   : > { %2550 = vmax.xlane.f32.xlu1 %v2549_v3  ;;  %v2544_v4 = vsel %vm1452_vm10, -1e+09, %v2542_v0 }
 0x97f   : > { %v2546_v5 = vsel %vm1456_vm11, %v2544_v4, -inf }
 0x980   : > { %2547 = vmax.xlane.f32.xlu0 %v2546_v5 }
 0xa07   : > { %v2551_v6 = vpop.xlane.xlu1 %2550 }
 0xa08   : > { %v2553_v7 = vsub.f32 %v2545_v1, %v2551_v6 }
 0xa09   : > { %v2548_v8 = vpop.xlane.xlu0 %2547 }
 0xa0a   : > { %v2556_v9 = vmul.f32 1.442695, %v2553_v7  ;;  %v2552_v10 = vsub.f32 %v2544_v4, %v2548_v8 }
 0xa0c   : > { %17833 = vpow2.f32 %v2556_v9  ;;  %v2554_v11 = vmul.f32 1.442695, %v2552_v10 }
 0xa0e   : > { %17835 = vpow2.f32 %v2554_v11 }
 0xa19   : > { %v17834_v14 = vpop.eup %17833 }
 0xa1a   : > { %v2561_v15 = vsel %vm1460_vm9, %v17834_v14, 0.0 }
 0xa1b   : > { %v17836_v16 = vpop.eup %17835  ;;  %2562 = vadd.xlane.f32.xlu1 %v2561_v15 }
 0xa1c   : > { %v2558_v17 = vsel %vm1456_vm11, %v17836_v16, 0.0 }
 0xa1d   : > { %2559 = vadd.xlane.f32.xlu0 %v2558_v17 }
 0xaa4   : > { %v2563_v19 = vpop.xlane.xlu1 %2562 }
 0xaa5   : > { %17837 = vrcp.f32 %v2563_v19 }
 0xaa6   : > { %v2560_v20 = vpop.xlane.xlu0 %2559 }
 0xaa7   : > { %17839 = vrcp.f32 %v2560_v20 }
 0xab2   : > { %v17838_v21 = vpop.eup %17837 }
 0xab3   : > { %v2567_v24 = vmul.f32 %v17838_v21, %v17834_v14 }
 0xab4   : > { %v17840_v22 = vpop.eup %17839 }
 0xab5   : > { %v2566_v23 = vmul.f32 %v17840_v22, %v17836_v16 }
 0xab7   : > { %16569 = vmatprep.mubr.msk.f32.mxu0 %vm1456_vm11, %v2566_v23  ;;  %v15073_v23 = vld [vmem:[%s18095_s3 + $0x18] sm:$0xff] }
 0xab8   : > { %16570 = vmatmul.mubr.msk.f32.vlgmr.msra.gmra.mxu0 %vm1456_vm11, %v2567_v24 }
 0xab9   : > { %16578 = vmatpush3.msra.mxu0 %v15045_v18  ;;  %16585 = vmatprep.mubr.msk.f32.mxu0 %vm1034_vm0, %v18254_v45 }
 0xaba   : > { %16579 = vmatprep.subr.mxu0 %v15044_v25 }
 0xabb   : > { %16580 = vmatpush3.msra.mxu0 %v15044_v25 }
 0xabc   : > { %16581 = vmatprep.subr.mxu0 %v15043_v26 }
 0xabd   : > { %16582 = vmatpush3.msra.mxu0 %v15043_v26  ;;  %v2183_v26 = vadd.f32 %v18371_v38, %v18389_v50 }
 0xabe   : > { %16583 = vmatprep.subr.mxu0 %v15042_v27 }
 0xabf   : > { %16584 = vmatpush3.msra.mxu0 %v15042_v27 }
 0xac0   : > { %16586 = vmatmul.mubr.msk.f32.vlgmr.msra.gmra.mxu0 %vm1034_vm0, %v18260_v48  ;;  %16599 = vmatprep.subr.mxu0 %v15061_v28 }
 0xac1   : > { %16600 = vmatpush3.msra.mxu0 %v15061_v28  ;;  %16607 = vmatprep.mubr.msk.f32.mxu0 %vm1034_vm0, %v18254_v45  ;;  %v15076_v28 = vld [vmem:[%s18100_s8] ss:$0 sm:$0xff] }
 0xac2   : > { %16601 = vmatprep.subr.mxu0 %v15060_v29 }
 0xac3   : > { %16602 = vmatpush3.msra.mxu0 %v15060_v29 }
 0xac4   : > { %16603 = vmatprep.subr.mxu0 %v15059_v30 }
 0xac5   : > { %16604 = vmatpush3.msra.mxu0 %v15059_v30 }
 0xac6   : > { %16605 = vmatprep.subr.mxu0 %v15058_v31 }
 0xac7   : > { %16606 = vmatpush3.msra.mxu0 %v15058_v31 }
 0xac8   : > { %16608 = vmatmul.mubr.msk.f32.vlgmr.msra.gmra.mxu0 %vm1034_vm0, %v18260_v48 }
 0xb78   : > { %v16571_v34 = vpop.f32.mrf.mxu0 }
 0xb7a   : > { %v2643_v36 = vpop.f32.mrf.mxu0 }
 0xb7b   : > { %16574 = vmatprep.mubr.msk.f32.mxu1 %vm1362_vm6, %v2643_v36 }
 0xb7c   : > { %16575 = vmatmul.mubr.msk.f32.vlgmr.msra.gmra.mxu1 %vm1362_vm6, %v16571_v34 }
 0xb7d   : > { %16589 = vmatpush3.msra.mxu1 %v15053_v33  ;;  %16596 = vmatprep.mubr.msk.f32.mxu1 %vm1034_vm0, %v18254_v45  ;;  %v15063_v45 = vld [vmem:[%s18090_s29 + $0x13] ss:$0 sm:$0xff] }
 0xb7e   : > { %16590 = vmatprep.subr.mxu1 %v15052_v37 }
 0xb7f   : > { %16591 = vmatpush3.msra.mxu1 %v15052_v37 }
 0xb80   : > { %v16587_v42 = vpop.f32.mrf.mxu0  ;;  %16592 = vmatprep.subr.mxu1 %v15051_v39 }
 0xb81   : > { %v2822_v43 = vadd.f32 %v16587_v42, %v15047_v40  ;;  %16593 = vmatpush3.msra.mxu1 %v15051_v39  ;;  %v18009_v39 = vld [vmem:[%s18231_s26] sm:$0xff]  ;;  %s19896_s26 = sld [smem:[#allocation9_spill]] }
 0xb82   : > { %v2816_v44 = vpop.f32.mrf.mxu0  ;;  %16594 = vmatprep.subr.mxu1 %v15050_v41 }
 0xb83   : > { %v2817_v46 = vadd.f32 %v15047_v40, %v2816_v44  ;;  %16595 = vmatpush3.msra.mxu1 %v15050_v41 }
 0xb84   : > { %16597 = vmatmul.mubr.msk.f32.vlgmr.msra.gmra.mxu1 %vm1034_vm0, %v18260_v48  ;;  %v15055_v48 = vld [vmem:[%s18090_s29 + $0xb] ss:$0 sm:$0xff] }
 0xb85   : > { %16614 = vmatprep.mubr.msk.f32.mxu1 %vm1362_vm6, %v2817_v46 }
 0xb88   : > { %v16609_v47 = vpop.f32.mrf.mxu0 }
 0xb89   : > { %v2998_v51 = vadd.f32 %v16609_v47, %v15063_v45 }
 0xb8a   : > { %v2992_v52 = vpop.f32.mrf.mxu0 }
 0xb8b   : > { %v2993_v53 = vadd.f32 %v15063_v45, %v2992_v52  ;;  %16617 = vmatprep.subr.msk.mxu0 %vm1486_vm7, %v2998_v51  ;;  %v3357_v52 = vld [vmem:[%s18115_s24 + $0x18] sm:$0xff] }
 0xb8c   : > { %16618 = vmatpush3.msk.msra.mxu0 %vm1486_vm7, %v2998_v51 }
 0xb8d   : > { %16619 = vmatprep.subr.mxu0 %v2993_v53 }
 0xb8e   : > { %16620 = vmatpush3.msra.mxu0 %v2993_v53  ;;  %v3356_v53 = vld [vmem:[%s18115_s24 + $0x10] sm:$0xff] }
 0xb8f   : > { %16629 = vmatprep.subr.mxu0 %v3357_v52 }
 0xc3c   : > { %v16576_v55 = vpop.f32.mrf.mxu1 }
 0xc3d   : > { %v2736_v56 = vadd.f32 %v16576_v55, %v2188_v54  ;;  %v3355_v54 = vld [vmem:[%s18115_s24 + $0x8] sm:$0xff]  ;;  %v3354_v55 = vld [vmem:[%s18115_s24] sm:$0xff] }
 0xc3e   : > { %v2726_v57 = vpop.f32.mrf.mxu1 }
 0xc3f   : > { %v2735_v29 = vadd.f32 %v2726_v57, %v2183_v26  ;;  %v3454_v57 = vld [vmem:[%s18125_s6 + $0x30] sm:$0xff]  ;;  %v15081_v26 = vld [vmem:[%s18120_s30] ss:$0 sm:$0xff] }
 0xc44   : > { %v16598_v58 = vpop.f32.mrf.mxu1 }
 0xc45   : > { %v2910_v59 = vadd.f32 %v16598_v58, %v15055_v48  ;;  %v3452_v58 = vld [vmem:[%s18125_s6 + $0x20] sm:$0xff] }
 0xc46   : > { %v2904_v60 = vpop.f32.mrf.mxu1 }
 0xc47   : > { %v2905_v61 = vadd.f32 %v15055_v48, %v2904_v60  ;;  %16610 = vmatprep.subr.msk.mxu1 %vm1362_vm6, %v2910_v59  ;;  %v3453_v48 = vld [vmem:[%s18125_s6 + $0x28] sm:$0xff] }
 0xc48   : > { %16611 = vmatpush3.xpose.msk.msra.mxu1 %vm1362_vm6, %v2910_v59 }
 0xc49   : > { %16612 = vmatprep.subr.msk.mxu1 %vm1362_vm6, %v2905_v61 }
 0xc4c   : > { %16613 = vmatpush3.xpose.msk.msra.mxu1 %vm1362_vm6, %v2905_v61 }
 0xc4d   : > { %16624 = vmatprep.subr.mxu1 %v15073_v23 }
 0xc4f   : > { %16615 = vmatmul.mubr.msk.f32.vlgmr.msra.gmra.mxu1 %vm1362_vm6, %v2822_v43 }
 0xc50   : > { %16625 = vmatpush3.msra.mxu1 %v15073_v23  ;;  %v3450_v23 = vld [vmem:[%s18125_s6 + $0x10] sm:$0xff] }
 0xd0f   : > { %v16616_v62 = vpop.f32.mrf.mxu1 }
 0xd10   : > { %v3089_v35 = vmul.f32 0.35355338, %v16616_v62 }
 0xd11   : > { %v3079_v49 = vpop.f32.mrf.mxu1 }
 0xd12   : > { %v3088_v63 = vmul.f32 0.35355338, %v3079_v49  ;;  %v3091_v0 = vsel %vm1453_vm8, -1e+09, %v3089_v35 }
 0xd13   : > { %v3095_v1 = vsel %vm1460_vm9, %v3091_v0, -inf }
 0xd14   : > { %3096 = vmax.xlane.f32.xlu1 %v3095_v1  ;;  %v3090_v3 = vsel %vm1452_vm10, -1e+09, %v3088_v63 }
 0xd15   : > { %v3092_v4 = vsel %vm1456_vm11, %v3090_v3, -inf }
 0xd16   : > { %3093 = vmax.xlane.f32.xlu0 %v3092_v4 }
 0xd9d   : > { %v3097_v5 = vpop.xlane.xlu1 %3096 }
 0xd9e   : > { %v3099_v6 = vsub.f32 %v3091_v0, %v3097_v5 }
 0xd9f   : > { %v3094_v7 = vpop.xlane.xlu0 %3093 }
 0xda0   : > { %v3102_v8 = vmul.f32 1.442695, %v3099_v6  ;;  %v3098_v9 = vsub.f32 %v3090_v3, %v3094_v7 }
 0xda2   : > { %17841 = vpow2.f32 %v3102_v8  ;;  %v3100_v10 = vmul.f32 1.442695, %v3098_v9 }
 0xda4   : > { %17843 = vpow2.f32 %v3100_v10  ;;  %v15079_v10 = vld [vmem:[%s18105_s14 + $0x1] ss:$0 sm:$0xff] }
 0xdaf   : > { %v17842_v11 = vpop.eup %17841 }
 0xdb0   : > { %v3107_v14 = vsel %vm1460_vm9, %v17842_v11, 0.0 }
 0xdb1   : > { %v17844_v15 = vpop.eup %17843  ;;  %3108 = vadd.xlane.f32.xlu1 %v3107_v14 }
 0xdb2   : > { %v3104_v16 = vsel %vm1456_vm11, %v17844_v15, 0.0 }
 0xdb3   : > { %3105 = vadd.xlane.f32.xlu0 %v3104_v16 }
 0xe3a   : > { %v3109_v17 = vpop.xlane.xlu1 %3108 }
 0xe3b   : > { %17845 = vrcp.f32 %v3109_v17 }
 0xe3c   : > { %v3106_v18 = vpop.xlane.xlu0 %3105 }
 0xe3d   : > { %17847 = vrcp.f32 %v3106_v18  ;;  %v15080_v18 = vld [vmem:[%s18110_s19 + $0x1] ss:$0 sm:$0xff] }
 0xe48   : > { %v17846_v19 = vpop.eup %17845 }
 0xe49   : > { %v3113_v22 = vmul.f32 %v17846_v19, %v17842_v11 }
 0xe4a   : > { %v17848_v20 = vpop.eup %17847 }
 0xe4b   : > { %v3112_v21 = vmul.f32 %v17848_v20, %v17844_v15 }
 0xe4d   : > { %16621 = vmatprep.mubr.msk.f32.mxu0 %vm1456_vm11, %v3112_v21 }
 0xe4e   : > { %16622 = vmatmul.mubr.msk.f32.vlgmr.msra.gmra.mxu0 %vm1456_vm11, %v3113_v22  ;;  %v3451_v22 = vld [vmem:[%s18125_s6 + $0x18] sm:$0xff] }
 0xe4f   : > { %16630 = vmatpush3.msra.mxu0 %v3357_v52 }
 0xe50   : > { %16631 = vmatprep.subr.mxu0 %v3356_v53 }
 0xe51   : > { %16632 = vmatpush3.msra.mxu0 %v3356_v53 }
 0xe52   : > { %16633 = vmatprep.subr.mxu0 %v3355_v54 }
 0xe53   : > { %16634 = vmatpush3.msra.mxu0 %v3355_v54  ;;  %v15094_v54 = vld [vmem:[%s18085_s25 + $0x98] sm:$0xff] }
 0xe54   : > { %16635 = vmatprep.subr.mxu0 %v3354_v55 }
 0xe55   : > { %16636 = vmatpush3.msra.mxu0 %v3354_v55  ;;  %v15110_v55 = vld [vmem:[%s18085_s25 + $0x298] sm:$0xff] }
 0xe56   : > { %16659 = vmatprep.subr.mxu0 %v15094_v54 }
 0xf0e   : > { %v16623_v24 = vpop.f32.mrf.mxu0 }
 0xf10   : > { %v3189_v25 = vpop.f32.mrf.mxu0 }
 0xf11   : > { %16626 = vmatprep.mubr.msk.f32.mxu1 %vm1362_vm6, %v3189_v25  ;;  %v3448_v25 = vld [vmem:[%s18125_s6] sm:$0xff] }
 0xf12   : > { %16627 = vmatmul.mubr.msk.f32.vlgmr.msra.gmra.mxu1 %vm1362_vm6, %v16623_v24  ;;  %v3449_v24 = vld [vmem:[%s18125_s6 + $0x8] sm:$0xff] }
 0xfd2   : > { %v16628_v27 = vpop.f32.mrf.mxu1 }
 0xfd3   : > { %v3282_v30 = vadd.f32 %v16628_v27, %v2736_v56  ;;  %v3455_v56 = vld [vmem:[%s18125_s6 + $0x38] sm:$0xff] }
 0xfd4   : > { %v3272_v31 = vpop.f32.mrf.mxu1  ;;  %16640 = vmatprep.subr.mxu1 %v3455_v56 }
 0xfd5   : > { %v3291_v32 = vadd.f32 %v15076_v28, %v3282_v30  ;;  %v3281_v33 = vadd.f32 %v3272_v31, %v2735_v29  ;;  %16641 = vmatpush3.msra.mxu1 %v3455_v56  ;;  %v15093_v56 = vld [vmem:[%s18085_s25 + $0x90] sm:$0xff] }
 0xfd6   : > { %16642 = vmatprep.subr.mxu1 %v3454_v57 }
 0xfd7   : > { %v18464_v34 = vadd.f32 %v3291_v32, %v18236_v2  ;;  %v3290_v36 = vadd.f32 %v15076_v28, %v3281_v33  ;;  %16643 = vmatpush3.msra.mxu1 %v3454_v57  ;;  %v15084_v33 = vld [vmem:[%s18130_s12] ss:$0 sm:$0xff]  ;;  %v15109_v57 = vld [vmem:[%s18085_s25 + $0x290] sm:$0xff] }
 0xfd8   : > { %16644 = vmatprep.subr.mxu1 %v3453_v48 }
 0xfd9   : > { %v3301_v37 = vsel %vm1038_vm1, %v18464_v34, 0.0  ;;  %v18469_v40 = vadd.f32 %v18009_v39, %v3290_v36  ;;  %16645 = vmatpush3.msra.mxu1 %v3453_v48  ;;  %v15092_v48 = vld [vmem:[%s18085_s25 + $0x88] sm:$0xff] }
 0xfda   : > { %3302 = vadd.xlane.f32.xlu1 %v3301_v37  ;;  %16646 = vmatprep.subr.mxu1 %v3452_v58 }
 0xfdb   : > { %v3298_v38 = vsel %vm1034_vm0, %v18469_v40, 0.0  ;;  %16647 = vmatpush3.msra.mxu1 %v3452_v58  ;;  %v15108_v58 = vld [vmem:[%s18085_s25 + $0x288] sm:$0xff] }
 0xfdc   : > { %3299 = vadd.xlane.f32.xlu0 %v3298_v38  ;;  %16648 = vmatprep.subr.mxu1 %v3451_v22 }
 0xfdd   : > { %16649 = vmatpush3.msra.mxu1 %v3451_v22 }
 0xfde   : > { %16650 = vmatprep.subr.mxu1 %v3450_v23 }
 0xfdf   : > { %16651 = vmatpush3.msra.mxu1 %v3450_v23 }
 0xfe0   : > { %16652 = vmatprep.subr.mxu1 %v3449_v24 }
 0xfe1   : > { %16653 = vmatpush3.msra.mxu1 %v3449_v24 }
 0xfe2   : > { %16654 = vmatprep.subr.mxu1 %v3448_v25 }
 0xfe3   : > { %16655 = vmatpush3.msra.mxu1 %v3448_v25  ;;  %v15101_v25 = vld [vmem:[%s18085_s25 + $0x190] sm:$0xff] }
 0xfe4   : > { %16681 = vmatprep.subr.mxu1 %v15110_v55 }
0x1063   : > { %v3303_v50 = vpop.xlane.xlu1 %3302 }
0x1064   : > { %v3305_v41 = vmul.f32 0.03125, %v3303_v50 }
0x1065   : > { %v3300_v42 = vpop.xlane.xlu0 %3299 }
0x1066   : > { %v3307_v2 = vsub.f32 %v18464_v34, %v3305_v41  ;;  %v3304_v43 = vmul.f32 0.03125, %v3300_v42 }
0x1068   : > { %v3306_v44 = vsub.f32 %v18469_v40, %v3304_v43  ;;  %v3309_v46 = vmul.f32 %v3307_v2, %v3307_v2  ;;  %v3325_v14 = vmul.f32 %v15079_v10, %v3307_v2 }
0x106a   : > { %v3313_v45 = vsel %vm1038_vm1, %v3309_v46, 0.0  ;;  %v3308_v47 = vmul.f32 %v3306_v44, %v3306_v44  ;;  %v3324_v15 = vmul.f32 %v15079_v10, %v3306_v44 }
0x106b   : > { %3314 = vadd.xlane.f32.xlu1 %v3313_v45 }
0x106c   : > { %v3310_v51 = vsel %vm1034_vm0, %v3308_v47, 0.0 }
0x106d   : > { %3311 = vadd.xlane.f32.xlu0 %v3310_v51 }
0x10f4   : > { %v3315_v59 = vpop.xlane.xlu1 %3314 }
0x10f5   : > { %v3317_v60 = vmul.f32 0.032258064, %v3315_v59  ;;  %v15091_v59 = vld [vmem:[%s18085_s25 + $0x80] sm:$0xff] }
0x10f6   : > { %v3312_v61 = vpop.xlane.xlu0 %3311 }
0x10f7   : > { %17849 = vrsqrt.f32 %v3317_v60  ;;  %v3316_v62 = vmul.f32 0.032258064, %v3312_v61  ;;  %vm3335_vm12 = vcmp.eq.f32.partialorder %v3317_v60, inf  ;;  %v3338_v63 = vand.u32 2147483648, %v3317_v60  ;;  %v15102_v61 = vld [vmem:[%s18085_s25 + $0x198] sm:$0xff] }
0x10f8   : > { %vm3337_vm13 = vcmp.eq.f32.partialorder %v3317_v60, 0.0 }
0x10f9   : > { %17851 = vrsqrt.f32 %v3316_v62  ;;  %vm3328_vm14 = vcmp.eq.f32.partialorder %v3316_v62, inf  ;;  %v3331_v6 = vand.u32 2147483648, %v3316_v62  ;;  %vm3330_vm15 = vcmp.eq.f32.partialorder %v3316_v62, 0.0 }
0x1104   : > { %v17850_v35 = vpop.eup %17849 }
0x1105   : > { %v3334_v49 = vmul.f32 %v17850_v35, %v3317_v60 }
0x1106   : > { %v17852_v0 = vpop.eup %17851 }
0x1107   : > { %v3336_v1 = vsel %vm3335_vm12, %v3317_v60, %v3334_v49  ;;  %v3327_v4 = vmul.f32 %v17852_v0, %v3316_v62  ;;  %v15107_v60 = vld [vmem:[%s18085_s25 + $0x280] sm:$0xff] }
0x1108   : > { %v3339_v3 = vsel %vm3337_vm13, %v3338_v63, %v3336_v1 }
0x1109   : > { %v3341_v5 = vadd.f32 1e-06, %v3339_v3  ;;  %v3329_v7 = vsel %vm3328_vm14, %v3316_v62, %v3327_v4 }
0x110a   : > { %v3332_v8 = vsel %vm3330_vm15, %v3331_v6, %v3329_v7 }
0x110b   : > { %17853 = vrcp.f32 %v3341_v5  ;;  %v3340_v9 = vadd.f32 1e-06, %v3332_v8 }
0x110d   : > { %17855 = vrcp.f32 %v3340_v9 }
0x1118   : > { %v17854_v11 = vpop.eup %17853 }
0x1119   : > { %v3345_v17 = vmul.f32 %v17854_v11, %v3325_v14 }
0x111a   : > { %v17856_v16 = vpop.eup %17855 }
0x111b   : > { %v3343_v19 = vmul.f32 %v17856_v16, %v3324_v15  ;;  %v3353_v21 = vadd.f32 %v15080_v18, %v3345_v17  ;;  %v15089_v15 = vld [vmem:[%s18105_s14 + $0x2] ss:$0 sm:$0xff] }
0x111d   : > { %v3352_v20 = vadd.f32 %v15080_v18, %v3343_v19 }
0x111f   : > { %16637 = vmatprep.mubr.msk.f32.mxu0 %vm1034_vm0, %v3352_v20 }
0x1120   : > { %16638 = vmatmul.mubr.msk.f32.vlgmr.msra.gmra.mxu0 %vm1034_vm0, %v3353_v21  ;;  %v15090_v21 = vld [vmem:[%s18110_s19 + $0x2] ss:$0 sm:$0xff] }
0x1121   : > { %16660 = vmatpush3.msra.mxu0 %v15094_v54 }
0x1122   : > { %16661 = vmatprep.subr.mxu0 %v15093_v56 }
0x1123   : > { %16662 = vmatpush3.msra.mxu0 %v15093_v56 }
0x1124   : > { %16663 = vmatprep.subr.mxu0 %v15092_v48 }
0x1125   : > { %16664 = vmatpush3.msra.mxu0 %v15092_v48 }
0x1126   : > { %16665 = vmatprep.subr.mxu0 %v15091_v59 }
0x1127   : > { %16666 = vmatpush3.msra.mxu0 %v15091_v59 }
0x1128   : > { %16670 = vmatprep.subr.mxu0 %v15102_v61 }
0x11e0   : > { %v16639_v27 = vpop.f32.mrf.mxu0 }
0x11e1   : > { %v3443_v28 = vadd.f32 %v16639_v27, %v15081_v26  ;;  %v15099_v27 = vld [vmem:[%s18085_s25 + $0x180] sm:$0xff] }
0x11e2   : > { %v3437_v29 = vpop.f32.mrf.mxu0 }
0x11e3   : > { %v3438_v30 = vadd.f32 %v15081_v26, %v3437_v29  ;;  %v3447_v32 = vmax.f32 %v3443_v28, 0.0  ;;  %v15100_v26 = vld [vmem:[%s18085_s25 + $0x188] sm:$0xff]  ;;  %v15112_v28 = vld [vmem:[%s18090_s29 + $0x14] ss:$0 sm:$0xff] }
0x11e5   : > { %v3446_v31 = vmax.f32 %v3438_v30, 0.0 }
0x11e7   : > { %16656 = vmatprep.mubr.msk.f32.mxu1 %vm3463_vm2, %v3446_v31 }
0x11e8   : > { %16657 = vmatmul.mubr.msk.f32.vlgmr.msra.gmra.mxu1 %vm3463_vm2, %v3447_v32  ;;  %v15096_v32 = vld [vmem:[%s18090_s29 + $0x4] ss:$0 sm:$0xff] }
0x11e9   : > { %16682 = vmatpush3.msra.mxu1 %v15110_v55 }
0x11ea   : > { %16683 = vmatprep.subr.mxu1 %v15109_v57 }
0x11eb   : > { %16684 = vmatpush3.msra.mxu1 %v15109_v57 }
0x11ec   : > { %16685 = vmatprep.subr.mxu1 %v15108_v58 }
0x11ed   : > { %16686 = vmatpush3.msra.mxu1 %v15108_v58  ;;  %v15136_v58 = vld [vmem:[%s18090_s29 + $0xd] ss:$0 sm:$0xff] }
0x11ee   : > { %16687 = vmatprep.subr.mxu1 %v15107_v60 }
0x11ef   : > { %16688 = vmatpush3.msra.mxu1 %v15107_v60 }
0x12a8   : > { %v16658_v36 = vpop.f32.mrf.mxu1 }
0x12a9   : > { %v3542_v37 = vadd.f32 %v16658_v36, %v15084_v33 }
0x12aa   : > { %v3536_v39 = vpop.f32.mrf.mxu1 }
0x12ab   : > { %v18498_v38 = vadd.f32 %v3542_v37, %v18464_v34  ;;  %v3537_v50 = vadd.f32 %v15084_v33, %v3536_v39 }
0x12ad   : > { %v18501_v41 = vadd.f32 %v3537_v50, %v18469_v40  ;;  %v3554_v42 = vsel %vm1038_vm1, %v18498_v38, 0.0  ;;  %v15104_v50 = vld [vmem:[%s18090_s29 + $0xc] ss:$0 sm:$0xff] }
0x12ae   : > { %3555 = vadd.xlane.f32.xlu1 %v3554_v42 }
0x12af   : > { %v3551_v2 = vsel %vm1034_vm0, %v18501_v41, 0.0 }
0x12b0   : > { %3552 = vadd.xlane.f32.xlu0 %v3551_v2 }
0x1337   : > { %v3556_v43 = vpop.xlane.xlu1 %3555 }
0x1338   : > { %v3558_v44 = vmul.f32 0.03125, %v3556_v43 }
0x1339   : > { %v3553_v46 = vpop.xlane.xlu0 %3552 }
0x133a   : > { %v3560_v34 = vsub.f32 %v18498_v38, %v3558_v44  ;;  %v3557_v45 = vmul.f32 0.03125, %v3553_v46  ;;  %v15134_v46 = vld [vmem:[%s18085_s25 + $0x1b8] sm:$0xff] }
0x133c   : > { %v3559_v40 = vsub.f32 %v18501_v41, %v3557_v45  ;;  %v3562_v47 = vmul.f32 %v3560_v34, %v3560_v34  ;;  %v3578_v17 = vmul.f32 %v15089_v15, %v3560_v34  ;;  %v15133_v45 = vld [vmem:[%s18085_s25 + $0x1b0] sm:$0xff] }
0x133e   : > { %v3566_v51 = vsel %vm1038_vm1, %v3562_v47, 0.0  ;;  %v3561_v52 = vmul.f32 %v3559_v40, %v3559_v40  ;;  %v3577_v18 = vmul.f32 %v15089_v15, %v3559_v40  ;;  %v15132_v40 = vld [vmem:[%s18085_s25 + $0x1a8] sm:$0xff]  ;;  %v15131_v47 = vld [vmem:[%s18085_s25 + $0x1a0] sm:$0xff] }
0x133f   : > { %3567 = vadd.xlane.f32.xlu1 %v3566_v51 }
0x1340   : > { %v3563_v53 = vsel %vm1034_vm0, %v3561_v52, 0.0 }
0x1341   : > { %3564 = vadd.xlane.f32.xlu0 %v3563_v53 }
0x13c8   : > { %v3568_v62 = vpop.xlane.xlu1 %3567 }
0x13c9   : > { %v3570_v35 = vmul.f32 0.032258064, %v3568_v62 }
0x13ca   : > { %v3565_v49 = vpop.xlane.xlu0 %3564 }
0x13cb   : > { %17857 = vrsqrt.f32 %v3570_v35  ;;  %v3569_v63 = vmul.f32 0.032258064, %v3565_v49  ;;  %vm3588_vm3 = vcmp.eq.f32.partialorder %v3570_v35, inf  ;;  %v3591_v3 = vand.u32 2147483648, %v3570_v35 }
0x13cc   : > { %vm3590_vm4 = vcmp.eq.f32.partialorder %v3570_v35, 0.0 }
0x13cd   : > { %17859 = vrsqrt.f32 %v3569_v63  ;;  %vm3581_vm5 = vcmp.eq.f32.partialorder %v3569_v63, inf  ;;  %v3584_v9 = vand.u32 2147483648, %v3569_v63  ;;  %vm3583_vm12 = vcmp.eq.f32.partialorder %v3569_v63, 0.0 }
0x13d8   : > { %v17858_v0 = vpop.eup %17857 }
0x13d9   : > { %v3587_v1 = vmul.f32 %v17858_v0, %v3570_v35 }
0x13da   : > { %v17860_v4 = vpop.eup %17859 }
0x13db   : > { %v3589_v5 = vsel %vm3588_vm3, %v3570_v35, %v3587_v1  ;;  %v3580_v7 = vmul.f32 %v17860_v4, %v3569_v63  ;;  %vm18051_vm3 = vmmov 0  }
0x13dc   : > { %v3592_v6 = vsel %vm3590_vm4, %v3591_v3, %v3589_v5 }
0x13dd   : > { %v3594_v8 = vadd.f32 1e-06, %v3592_v6  ;;  %v3582_v10 = vsel %vm3581_vm5, %v3569_v63, %v3580_v7 }
0x13de   : > { %v3585_v11 = vsel %vm3583_vm12, %v3584_v9, %v3582_v10 }
0x13df   : > { %17861 = vrcp.f32 %v3594_v8  ;;  %v3593_v14 = vadd.f32 1e-06, %v3585_v11  ;;  %v15126_v8 = vld [vmem:[%s18085_s25 + $0xb8] sm:$0xff] }
0x13e1   : > { %17863 = vrcp.f32 %v3593_v14 }
0x13ec   : > { %v17862_v16 = vpop.eup %17861 }
0x13ed   : > { %v3598_v20 = vmul.f32 %v17862_v16, %v3578_v17  ;;  %v15125_v17 = vld [vmem:[%s18085_s25 + $0xb0] sm:$0xff] }
0x13ee   : > { %v17864_v19 = vpop.eup %17863 }
0x13ef   : > { %v3596_v22 = vmul.f32 %v17864_v19, %v3577_v18  ;;  %v18524_v24 = vadd.f32 %v15090_v21, %v3598_v20  ;;  %v15124_v18 = vld [vmem:[%s18085_s25 + $0xa8] sm:$0xff]  ;;  %v15123_v19 = vld [vmem:[%s18085_s25 + $0xa0] sm:$0xff]  ;;  %v15142_v20 = vld [vmem:[%s18085_s25 + $0x2b8] sm:$0xff] }
0x13f1   : > { %v18522_v23 = vadd.f32 %v15090_v21, %v3596_v22  ;;  %v15141_v21 = vld [vmem:[%s18085_s25 + $0x2b0] sm:$0xff]  ;;  %v15140_v22 = vld [vmem:[%s18085_s25 + $0x2a8] sm:$0xff] }
0x13f3   : > { %16667 = vmatprep.mubr.msk.f32.mxu0 %vm1034_vm0, %v18522_v23  ;;  %16689 = vmatprep.mubr.msk.f32.mxu1 %vm1034_vm0, %v18522_v23 }
0x13f4   : > { %16668 = vmatmul.mubr.msk.f32.vlgmr.msra.gmra.mxu0 %vm1034_vm0, %v18524_v24  ;;  %16690 = vmatmul.mubr.msk.f32.vlgmr.msra.gmra.mxu1 %vm1034_vm0, %v18524_v24 }
0x13f5   : > { %16671 = vmatpush3.msra.mxu0 %v15102_v61  ;;  %16678 = vmatprep.mubr.msk.f32.mxu0 %vm1034_vm0, %v18522_v23 }
0x13f6   : > { %16672 = vmatprep.subr.mxu0 %v15101_v25 }
0x13f7   : > { %16673 = vmatpush3.msra.mxu0 %v15101_v25  ;;  %v15139_v25 = vld [vmem:[%s18085_s25 + $0x2a0] sm:$0xff] }
0x13f8   : > { %16674 = vmatprep.subr.mxu0 %v15100_v26 }
0x13f9   : > { %16675 = vmatpush3.msra.mxu0 %v15100_v26 }
0x13fa   : > { %16676 = vmatprep.subr.mxu0 %v15099_v27 }
0x13fb   : > { %16677 = vmatpush3.msra.mxu0 %v15099_v27 }
0x13fc   : > { %16679 = vmatmul.mubr.msk.f32.vlgmr.msra.gmra.mxu0 %vm1034_vm0, %v18524_v24 }
0x14b4   : > { %v16669_v29 = vpop.f32.mrf.mxu0  ;;  %v16691_v30 = vpop.f32.mrf.mxu1 }
0x14b5   : > { %v3874_v31 = vadd.f32 %v16691_v30, %v15112_v28  ;;  %v3698_v34 = vadd.f32 %v16669_v29, %v15096_v32  ;;  %v15128_v29 = vld [vmem:[%s18090_s29 + $0x5] ss:$0 sm:$0xff] }
0x14b6   : > { %v3692_v33 = vpop.f32.mrf.mxu0  ;;  %v3868_v36 = vpop.f32.mrf.mxu1 }
0x14b7   : > { %v3693_v37 = vadd.f32 %v15096_v32, %v3692_v33  ;;  %v3869_v39 = vadd.f32 %v15112_v28, %v3868_v36  ;;  %16699 = vmatprep.subr.msk.mxu1 %vm1486_vm7, %v3874_v31  ;;  %v15144_v33 = vld [vmem:[%s18090_s29 + $0x15] ss:$0 sm:$0xff] }
0x14b8   : > { %16700 = vmatpush3.msk.msra.mxu1 %vm1486_vm7, %v3874_v31 }
0x14b9   : > { %16696 = vmatprep.mubr.msk.f32.mxu0 %vm1362_vm6, %v3693_v37  ;;  %16701 = vmatprep.subr.mxu1 %v3869_v39 }
0x14ba   : > { %16702 = vmatpush3.msra.mxu1 %v3869_v39 }
0x14bb   : > { %16706 = vmatprep.subr.mxu1 %v15126_v8 }
0x14bc   : > { %v16680_v42 = vpop.f32.mrf.mxu0 }
0x14bd   : > { %v3786_v2 = vadd.f32 %v16680_v42, %v15104_v50 }
0x14be   : > { %v3780_v43 = vpop.f32.mrf.mxu0 }
0x14bf   : > { %v3781_v44 = vadd.f32 %v15104_v50, %v3780_v43  ;;  %16692 = vmatprep.subr.msk.mxu0 %vm1362_vm6, %v3786_v2 }
0x14c0   : > { %16693 = vmatpush3.xpose.msk.msra.mxu0 %vm1362_vm6, %v3786_v2 }
0x14c1   : > { %16694 = vmatprep.subr.msk.mxu0 %vm1362_vm6, %v3781_v44 }
0x14c4   : > { %16695 = vmatpush3.xpose.msk.msra.mxu0 %vm1362_vm6, %v3781_v44 }
0x14c5   : > { %16717 = vmatprep.subr.mxu0 %v15134_v46 }
0x14c7   : > { %16697 = vmatmul.mubr.msk.f32.vlgmr.msra.gmra.mxu0 %vm1362_vm6, %v3698_v34 }
0x14c8   : > { %16718 = vmatpush3.msra.mxu0 %v15134_v46  ;;  %16725 = vmatprep.mubr.msk.f32.mxu0 %vm1034_vm0, %v18522_v23 }
0x14c9   : > { %16719 = vmatprep.subr.mxu0 %v15133_v45 }
0x14ca   : > { %16720 = vmatpush3.msra.mxu0 %v15133_v45 }
0x14cb   : > { %16721 = vmatprep.subr.mxu0 %v15132_v40 }
0x14cc   : > { %16722 = vmatpush3.msra.mxu0 %v15132_v40 }
0x14cd   : > { %16723 = vmatprep.subr.mxu0 %v15131_v47 }
0x14ce   : > { %16724 = vmatpush3.msra.mxu0 %v15131_v47 }
0x14cf   : > { %16726 = vmatmul.mubr.msk.f32.vlgmr.msra.gmra.mxu0 %vm1034_vm0, %v18524_v24 }
0x1587   : > { %v16698_v51 = vpop.f32.mrf.mxu0 }
0x1588   : > { %v3965_v52 = vmul.f32 0.35355338, %v16698_v51 }
0x1589   : > { %v3955_v53 = vpop.f32.mrf.mxu0 }
0x158a   : > { %v3964_v54 = vmul.f32 0.35355338, %v3955_v53  ;;  %v3967_v55 = vsel %vm1453_vm8, -1e+09, %v3965_v52 }
0x158b   : > { %v3971_v56 = vsel %vm1460_vm9, %v3967_v55, -inf }
0x158c   : > { %3972 = vmax.xlane.f32.xlu1 %v3971_v56  ;;  %v3966_v57 = vsel %vm1452_vm10, -1e+09, %v3964_v54 }
0x158d   : > { %v3968_v48 = vsel %vm1456_vm11, %v3966_v57, -inf }
0x158e   : > { %3969 = vmax.xlane.f32.xlu0 %v3968_v48 }
0x158f   : > { %v16727_v59 = vpop.f32.mrf.mxu0 }
0x1590   : > { %v4249_v60 = vadd.f32 %v16727_v59, %v15136_v58  ;;  %v15122_v59 = vld [vmem:[%s18095_s3 + $0x20] sm:$0xff] }
0x1591   : > { %v4243_v61 = vpop.f32.mrf.mxu0 }
0x1592   : > { %v4244_v62 = vadd.f32 %v15136_v58, %v4243_v61  ;;  %16739 = vmatprep.subr.msk.mxu0 %vm1362_vm6, %v4249_v60 }
0x1593   : > { %16740 = vmatpush3.xpose.msk.msra.mxu0 %vm1362_vm6, %v4249_v60 }
0x1594   : > { %16741 = vmatprep.subr.msk.mxu0 %vm1362_vm6, %v4244_v62 }
0x1597   : > { %16742 = vmatpush3.xpose.msk.msra.mxu0 %vm1362_vm6, %v4244_v62 }
0x1615   : > { %v3973_v35 = vpop.xlane.xlu1 %3972 }
0x1616   : > { %v3975_v49 = vsub.f32 %v3967_v55, %v3973_v35 }
0x1617   : > { %v3970_v63 = vpop.xlane.xlu0 %3969 }
0x1618   : > { %v3978_v0 = vmul.f32 1.442695, %v3975_v49  ;;  %v3974_v1 = vsub.f32 %v3966_v57, %v3970_v63 }
0x161a   : > { %17865 = vpow2.f32 %v3978_v0  ;;  %v3976_v3 = vmul.f32 1.442695, %v3974_v1  ;;  %v15170_v0 = vld [vmem:[%s18085_s25 + $0x1d8] sm:$0xff]  ;;  %v15169_v1 = vld [vmem:[%s18085_s25 + $0x1d0] sm:$0xff] }
0x161c   : > { %17867 = vpow2.f32 %v3976_v3  ;;  %v15168_v3 = vld [vmem:[%s18085_s25 + $0x1c8] sm:$0xff] }
0x1627   : > { %v17866_v4 = vpop.eup %17865 }
0x1628   : > { %v3983_v5 = vsel %vm1460_vm9, %v17866_v4, 0.0 }
0x1629   : > { %v17868_v6 = vpop.eup %17867  ;;  %3984 = vadd.xlane.f32.xlu1 %v3983_v5  ;;  %v15154_v5 = vld [vmem:[%s18095_s3 + $0x28] sm:$0xff] }
0x162a   : > { %v3980_v7 = vsel %vm1456_vm11, %v17868_v6, 0.0  ;;  %16753 = vmatprep.subr.mxu0 %v15154_v5 }
0x162b   : > { %3981 = vadd.xlane.f32.xlu0 %v3980_v7 }
0x16b2   : > { %v3985_v9 = vpop.xlane.xlu1 %3984 }
0x16b3   : > { %17869 = vrcp.f32 %v3985_v9  ;;  %v15161_v9 = vld [vmem:[%s18085_s25 + $0xd0] sm:$0xff] }
0x16b4   : > { %v3982_v10 = vpop.xlane.xlu0 %3981 }
0x16b5   : > { %17871 = vrcp.f32 %v3982_v10  ;;  %v15160_v10 = vld [vmem:[%s18085_s25 + $0xc8] sm:$0xff] }
0x16c0   : > { %v17870_v11 = vpop.eup %17869 }
0x16c1   : > { %v3989_v16 = vmul.f32 %v17870_v11, %v17866_v4  ;;  %v15167_v4 = vld [vmem:[%s18085_s25 + $0x1c0] sm:$0xff] }
0x16c2   : > { %v17872_v14 = vpop.eup %17871 }
0x16c3   : > { %v3988_v15 = vmul.f32 %v17872_v14, %v17868_v6  ;;  %v15162_v6 = vld [vmem:[%s18085_s25 + $0xd8] sm:$0xff]  ;;  %v15159_v14 = vld [vmem:[%s18085_s25 + $0xc0] sm:$0xff] }
0x16c5   : > { %16703 = vmatprep.mubr.msk.f32.mxu1 %vm1456_vm11, %v3988_v15  ;;  %v15178_v15 = vld [vmem:[%s18085_s25 + $0x2d8] sm:$0xff] }
0x16c6   : > { %16704 = vmatmul.mubr.msk.f32.vlgmr.msra.gmra.mxu1 %vm1456_vm11, %v3989_v16 }
0x16c7   : > { %16707 = vmatpush3.msra.mxu1 %v15126_v8  ;;  %16714 = vmatprep.mubr.msk.f32.mxu1 %vm1034_vm0, %v18522_v23 }
0x16c8   : > { %16708 = vmatprep.subr.mxu1 %v15125_v17 }
0x16c9   : > { %16709 = vmatpush3.msra.mxu1 %v15125_v17  ;;  %v15172_v17 = vld [vmem:[%s18090_s29 + $0xe] ss:$0 sm:$0xff] }
0x16ca   : > { %16710 = vmatprep.subr.mxu1 %v15124_v18 }
0x16cb   : > { %16711 = vmatpush3.msra.mxu1 %v15124_v18  ;;  %v15177_v18 = vld [vmem:[%s18085_s25 + $0x2d0] sm:$0xff] }
0x16cc   : > { %16712 = vmatprep.subr.mxu1 %v15123_v19 }
0x16cd   : > { %16713 = vmatpush3.msra.mxu1 %v15123_v19 }
0x16ce   : > { %16715 = vmatmul.mubr.msk.f32.vlgmr.msra.gmra.mxu1 %vm1034_vm0, %v18524_v24  ;;  %16728 = vmatprep.subr.mxu1 %v15142_v20 }
0x16cf   : > { %16729 = vmatpush3.msra.mxu1 %v15142_v20  ;;  %16736 = vmatprep.mubr.msk.f32.mxu1 %vm1034_vm0, %v18522_v23 }
0x16d0   : > { %16730 = vmatprep.subr.mxu1 %v15141_v21 }
0x16d1   : > { %16731 = vmatpush3.msra.mxu1 %v15141_v21  ;;  %v15176_v21 = vld [vmem:[%s18085_s25 + $0x2c8] sm:$0xff] }
0x16d2   : > { %16732 = vmatprep.subr.mxu1 %v15140_v22 }
0x16d3   : > { %16733 = vmatpush3.msra.mxu1 %v15140_v22 }
0x16d4   : > { %16734 = vmatprep.subr.mxu1 %v15139_v25 }
0x16d5   : > { %16735 = vmatpush3.msra.mxu1 %v15139_v25 }
0x16d6   : > { %16737 = vmatmul.mubr.msk.f32.vlgmr.msra.gmra.mxu1 %vm1034_vm0, %v18524_v24 }
0x1786   : > { %v16705_v26 = vpop.f32.mrf.mxu1 }
0x1788   : > { %v4065_v27 = vpop.f32.mrf.mxu1 }
0x178e   : > { %v16716_v28 = vpop.f32.mrf.mxu1 }
0x178f   : > { %v4161_v32 = vadd.f32 %v16716_v28, %v15128_v29 }
0x1790   : > { %v4155_v30 = vpop.f32.mrf.mxu1 }
0x1791   : > { %v4156_v31 = vadd.f32 %v15128_v29, %v4155_v30  ;;  %v15164_v30 = vld [vmem:[%s18090_s29 + $0x6] ss:$0 sm:$0xff] }
0x1793   : > { %16743 = vmatprep.mubr.msk.f32.mxu0 %vm1362_vm6, %v4156_v31 }
0x1794   : > { %16744 = vmatmul.mubr.msk.f32.vlgmr.msra.gmra.mxu0 %vm1362_vm6, %v4161_v32 }
0x1795   : > { %16754 = vmatpush3.msra.mxu0 %v15154_v5  ;;  %v15212_v5 = vld [vmem:[%s18085_s25 + $0x2f8] sm:$0xff] }
0x1796   : > { %v16738_v36 = vpop.f32.mrf.mxu1  ;;  %16763 = vmatprep.subr.mxu0 %v15162_v6 }
0x1797   : > { %v4337_v37 = vadd.f32 %v16738_v36, %v15144_v33  ;;  %v15180_v36 = vld [vmem:[%s18090_s29 + $0x16] ss:$0 sm:$0xff] }
0x1798   : > { %v4331_v39 = vpop.f32.mrf.mxu1 }
0x1799   : > { %v4332_v50 = vadd.f32 %v15144_v33, %v4331_v39  ;;  %16746 = vmatprep.subr.msk.mxu1 %vm1486_vm7, %v4337_v37 }
0x179a   : > { %16747 = vmatpush3.msk.msra.mxu1 %vm1486_vm7, %v4337_v37 }
0x179b   : > { %16748 = vmatprep.subr.mxu1 %v4332_v50 }
0x179c   : > { %16749 = vmatpush3.msra.mxu1 %v4332_v50 }
0x179d   : > { %16758 = vmatprep.subr.mxu1 %v15122_v59 }
0x1854   : > { %v16745_v42 = vpop.f32.mrf.mxu0 }
0x1855   : > { %v4428_v2 = vmul.f32 0.35355338, %v16745_v42 }
0x1856   : > { %v4418_v43 = vpop.f32.mrf.mxu0 }
0x1857   : > { %v4427_v44 = vmul.f32 0.35355338, %v4418_v43  ;;  %v4430_v46 = vsel %vm1453_vm8, -1e+09, %v4428_v2 }
0x1858   : > { %v4434_v34 = vsel %vm1460_vm9, %v4430_v46, -inf }
0x1859   : > { %4435 = vmax.xlane.f32.xlu1 %v4434_v34  ;;  %v4429_v45 = vsel %vm1452_vm10, -1e+09, %v4427_v44 }
0x185a   : > { %v4431_v40 = vsel %vm1456_vm11, %v4429_v45, -inf }
0x185b   : > { %4432 = vmax.xlane.f32.xlu0 %v4431_v40 }
0x18e2   : > { %v4436_v47 = vpop.xlane.xlu1 %4435 }
0x18e3   : > { %v4438_v51 = vsub.f32 %v4430_v46, %v4436_v47 }
0x18e4   : > { %v4433_v52 = vpop.xlane.xlu0 %4432 }
0x18e5   : > { %v4441_v53 = vmul.f32 1.442695, %v4438_v51  ;;  %v4437_v54 = vsub.f32 %v4429_v45, %v4433_v52 }
0x18e7   : > { %17873 = vpow2.f32 %v4441_v53  ;;  %v4439_v55 = vmul.f32 1.442695, %v4437_v54 }
0x18e9   : > { %17875 = vpow2.f32 %v4439_v55 }
0x18f4   : > { %v17874_v56 = vpop.eup %17873 }
0x18f5   : > { %v4446_v57 = vsel %vm1460_vm9, %v17874_v56, 0.0 }
0x18f6   : > { %v17876_v48 = vpop.eup %17875  ;;  %4447 = vadd.xlane.f32.xlu1 %v4446_v57 }
0x18f7   : > { %v4443_v58 = vsel %vm1456_vm11, %v17876_v48, 0.0 }
0x18f8   : > { %4444 = vadd.xlane.f32.xlu0 %v4443_v58 }
0x197f   : > { %v4448_v60 = vpop.xlane.xlu1 %4447 }
0x1980   : > { %17877 = vrcp.f32 %v4448_v60  ;;  %v15196_v60 = vld [vmem:[%s18085_s25 + $0xf8] sm:$0xff] }
0x1981   : > { %v4445_v61 = vpop.xlane.xlu0 %4444 }
0x1982   : > { %17879 = vrcp.f32 %v4445_v61 }
0x198d   : > { %v17878_v62 = vpop.eup %17877 }
0x198e   : > { %v4452_v63 = vmul.f32 %v17878_v62, %v17874_v56 }
0x198f   : > { %v17880_v35 = vpop.eup %17879 }
0x1990   : > { %v4451_v49 = vmul.f32 %v17880_v35, %v17876_v48 }
0x1992   : > { %16750 = vmatprep.mubr.msk.f32.mxu1 %vm1456_vm11, %v4451_v49 }
0x1993   : > { %16751 = vmatmul.mubr.msk.f32.vlgmr.msra.gmra.mxu1 %vm1456_vm11, %v4452_v63 }
0x1994   : > { %16760 = vmatprep.mubr.msk.f32.mxu1 %vm1362_vm6, %v4065_v27  ;;  %16759 = vmatpush3.msra.mxu1 %v15122_v59 }
0x1995   : > { %16774 = vmatprep.subr.mxu1 %v15170_v0 }
0x1997   : > { %16761 = vmatmul.mubr.msk.f32.vlgmr.msra.gmra.mxu1 %vm1362_vm6, %v16705_v26  ;;  %v15175_v26 = vld [vmem:[%s18085_s25 + $0x2c0] sm:$0xff] }
0x1998   : > { %16775 = vmatpush3.msra.mxu1 %v15170_v0  ;;  %16782 = vmatprep.mubr.msk.f32.mxu1 %vm1034_vm0, %v18522_v23 }
0x1999   : > { %16776 = vmatprep.subr.mxu1 %v15169_v1 }
0x199a   : > { %16777 = vmatpush3.msra.mxu1 %v15169_v1  ;;  %v15195_v1 = vld [vmem:[%s18085_s25 + $0xf0] sm:$0xff] }
0x199b   : > { %16778 = vmatprep.subr.mxu1 %v15168_v3 }
0x199c   : > { %16779 = vmatpush3.msra.mxu1 %v15168_v3  ;;  %v15194_v3 = vld [vmem:[%s18085_s25 + $0xe8] sm:$0xff] }
0x199d   : > { %16780 = vmatprep.subr.mxu1 %v15167_v4 }
0x199e   : > { %16781 = vmatpush3.msra.mxu1 %v15167_v4  ;;  %v15193_v4 = vld [vmem:[%s18085_s25 + $0xe0] sm:$0xff] }
0x199f   : > { %16783 = vmatmul.mubr.msk.f32.vlgmr.msra.gmra.mxu1 %vm1034_vm0, %v18524_v24 }
0x1a53   : > { %v16752_v7 = vpop.f32.mrf.mxu1 }
0x1a55   : > { %v4528_v8 = vpop.f32.mrf.mxu1 }
0x1a56   : > { %16755 = vmatprep.mubr.msk.f32.mxu0 %vm1362_vm6, %v4528_v8  ;;  %v15209_v8 = vld [vmem:[%s18085_s25 + $0x2e0] sm:$0xff] }
0x1a57   : > { %16756 = vmatmul.mubr.msk.f32.vlgmr.msra.gmra.mxu0 %vm1362_vm6, %v16752_v7  ;;  %v18626_v11 = vpop.f32.mrf.mxu1  ;;  %v15210_v7 = vld [vmem:[%s18085_s25 + $0x2e8] sm:$0xff] }
0x1a58   : > { %16764 = vmatpush3.msra.mxu0 %v15162_v6  ;;  %16771 = vmatprep.mubr.msk.f32.mxu0 %vm1034_vm0, %v18522_v23  ;;  %v15211_v6 = vld [vmem:[%s18085_s25 + $0x2f0] sm:$0xff] }
0x1a59   : > { %16765 = vmatprep.subr.mxu0 %v15161_v9  ;;  %v18630_v16 = vpop.f32.mrf.mxu1 }
0x1a5a   : > { %16766 = vmatpush3.msra.mxu0 %v15161_v9  ;;  %v15190_v9 = vld [vmem:[%s18095_s3 + $0x30] sm:$0xff] }
0x1a5b   : > { %16767 = vmatprep.subr.mxu0 %v15160_v10 }
0x1a5c   : > { %16768 = vmatpush3.msra.mxu0 %v15160_v10  ;;  %v15204_v10 = vld [vmem:[%s18085_s25 + $0x1f8] sm:$0xff] }
0x1a5d   : > { %16769 = vmatprep.subr.mxu0 %v15159_v14 }
0x1a5e   : > { %16770 = vmatpush3.msra.mxu0 %v15159_v14 }
0x1a5f   : > { %16772 = vmatmul.mubr.msk.f32.vlgmr.msra.gmra.mxu0 %vm1034_vm0, %v18524_v24  ;;  %v16784_v19 = vpop.f32.mrf.mxu1  ;;  %16785 = vmatprep.subr.mxu0 %v15178_v15 }
0x1a60   : > { %v4874_v20 = vadd.f32 %v16784_v19, %v15172_v17  ;;  %16786 = vmatpush3.msra.mxu0 %v15178_v15  ;;  %16793 = vmatprep.mubr.msk.f32.mxu0 %vm1034_vm0, %v18522_v23  ;;  %v15198_v19 = vld [vmem:[%s18090_s29 + $0x7] ss:$0 sm:$0xff] }
0x1a61   : > { %v4868_v22 = vpop.f32.mrf.mxu1  ;;  %16787 = vmatprep.subr.mxu0 %v15177_v18 }
0x1a62   : > { %v4869_v25 = vadd.f32 %v15172_v17, %v4868_v22  ;;  %16788 = vmatpush3.msra.mxu0 %v15177_v18  ;;  %16796 = vmatprep.subr.msk.mxu1 %vm1362_vm6, %v4874_v20  ;;  %v15203_v17 = vld [vmem:[%s18085_s25 + $0x1f0] sm:$0xff]  ;;  %v15202_v18 = vld [vmem:[%s18085_s25 + $0x1e8] sm:$0xff] }
0x1a63   : > { %16789 = vmatprep.subr.mxu0 %v15176_v21  ;;  %16797 = vmatpush3.xpose.msk.msra.mxu1 %vm1362_vm6, %v4874_v20  ;;  %v15201_v20 = vld [vmem:[%s18085_s25 + $0x1e0] sm:$0xff] }
0x1a64   : > { %16790 = vmatpush3.msra.mxu0 %v15176_v21  ;;  %16798 = vmatprep.subr.msk.mxu1 %vm1362_vm6, %v4869_v25 }
0x1a65   : > { %16791 = vmatprep.subr.mxu0 %v15175_v26 }
0x1a66   : > { %16792 = vmatpush3.msra.mxu0 %v15175_v26 }
0x1a67   : > { %16794 = vmatmul.mubr.msk.f32.vlgmr.msra.gmra.mxu0 %vm1034_vm0, %v18524_v24  ;;  %16799 = vmatpush3.xpose.msk.msra.mxu1 %vm1362_vm6, %v4869_v25 }
0x1a68   : > { %16810 = vmatprep.subr.mxu1 %v15190_v9 }
0x1b17   : > { %v18646_v27 = vpop.f32.mrf.mxu0 }
0x1b19   : > { %v18648_v28 = vpop.f32.mrf.mxu0 }
0x1b1f   : > { %v16773_v29 = vpop.f32.mrf.mxu0 }
0x1b20   : > { %v4786_v33 = vadd.f32 %v16773_v29, %v15164_v30 }
0x1b21   : > { %v4780_v31 = vpop.f32.mrf.mxu0 }
0x1b22   : > { %v4781_v32 = vadd.f32 %v15164_v30, %v4780_v31 }
0x1b24   : > { %16800 = vmatprep.mubr.msk.f32.mxu1 %vm1362_vm6, %v4781_v32 }
0x1b25   : > { %16801 = vmatmul.mubr.msk.f32.vlgmr.msra.gmra.mxu1 %vm1362_vm6, %v4786_v33  ;;  %v4698_v33 = vadd.f32 %v18626_v11, %v18646_v27 }
0x1b26   : > { %16811 = vmatpush3.msra.mxu1 %v15190_v9 }
0x1b27   : > { %v16795_v37 = vpop.f32.mrf.mxu0  ;;  %16826 = vmatprep.subr.mxu1 %v15204_v10 }
0x1b28   : > { %v4962_v39 = vadd.f32 %v16795_v37, %v15180_v36 }
0x1b29   : > { %v4956_v50 = vpop.f32.mrf.mxu0 }
0x1b2a   : > { %v4957_v42 = vadd.f32 %v15180_v36, %v4956_v50  ;;  %16803 = vmatprep.subr.msk.mxu0 %vm1486_vm7, %v4962_v39 }
0x1b2b   : > { %16804 = vmatpush3.msk.msra.mxu0 %vm1486_vm7, %v4962_v39 }
0x1b2c   : > { %16805 = vmatprep.subr.mxu0 %v4957_v42 }
0x1b2d   : > { %16806 = vmatpush3.msra.mxu0 %v4957_v42 }
0x1b2e   : > { %16815 = vmatprep.subr.mxu0 %v15196_v60 }
0x1be5   : > { %v16802_v2 = vpop.f32.mrf.mxu1 }
0x1be6   : > { %v5053_v43 = vmul.f32 0.35355338, %v16802_v2 }
0x1be7   : > { %v5043_v44 = vpop.f32.mrf.mxu1 }
0x1be8   : > { %v5052_v46 = vmul.f32 0.35355338, %v5043_v44  ;;  %v5055_v34 = vsel %vm1453_vm8, -1e+09, %v5053_v43 }
0x1be9   : > { %v5059_v45 = vsel %vm1460_vm9, %v5055_v34, -inf }
0x1bea   : > { %5060 = vmax.xlane.f32.xlu1 %v5059_v45  ;;  %v5054_v40 = vsel %vm1452_vm10, -1e+09, %v5052_v46 }
0x1beb   : > { %v5056_v47 = vsel %vm1456_vm11, %v5054_v40, -inf }
0x1bec   : > { %5057 = vmax.xlane.f32.xlu0 %v5056_v47 }
0x1c73   : > { %v5061_v51 = vpop.xlane.xlu1 %5060 }
0x1c74   : > { %v5063_v52 = vsub.f32 %v5055_v34, %v5061_v51 }
0x1c75   : > { %v5058_v53 = vpop.xlane.xlu0 %5057 }
0x1c76   : > { %v5066_v54 = vmul.f32 1.442695, %v5063_v52  ;;  %v5062_v55 = vsub.f32 %v5054_v40, %v5058_v53 }
0x1c78   : > { %17881 = vpow2.f32 %v5066_v54  ;;  %v5064_v56 = vmul.f32 1.442695, %v5062_v55 }
0x1c7a   : > { %17883 = vpow2.f32 %v5064_v56 }
0x1c85   : > { %v17882_v57 = vpop.eup %17881 }
0x1c86   : > { %v5071_v48 = vsel %vm1460_vm9, %v17882_v57, 0.0 }
0x1c87   : > { %v17884_v58 = vpop.eup %17883  ;;  %5072 = vadd.xlane.f32.xlu1 %v5071_v48 }
0x1c88   : > { %v5068_v59 = vsel %vm1456_vm11, %v17884_v58, 0.0 }
0x1c89   : > { %5069 = vadd.xlane.f32.xlu0 %v5068_v59 }
0x1d10   : > { %v5073_v61 = vpop.xlane.xlu1 %5072 }
0x1d11   : > { %17885 = vrcp.f32 %v5073_v61 }
0x1d12   : > { %v5070_v62 = vpop.xlane.xlu0 %5069 }
0x1d13   : > { %17887 = vrcp.f32 %v5070_v62 }
0x1d1e   : > { %v17886_v35 = vpop.eup %17885 }
0x1d1f   : > { %v5077_v0 = vmul.f32 %v17886_v35, %v17882_v57 }
0x1d20   : > { %v17888_v49 = vpop.eup %17887 }
0x1d21   : > { %v5076_v63 = vmul.f32 %v17888_v49, %v17884_v58  ;;  %v15224_v49 = vld [vmem:[%s18095_s3 + $0x38] sm:$0xff] }
0x1d23   : > { %16807 = vmatprep.mubr.msk.f32.mxu0 %vm1456_vm11, %v5076_v63 }
0x1d24   : > { %16808 = vmatmul.mubr.msk.f32.vlgmr.msra.gmra.mxu0 %vm1456_vm11, %v5077_v0 }
0x1d25   : > { %16816 = vmatpush3.msra.mxu0 %v15196_v60  ;;  %16823 = vmatprep.mubr.msk.f32.mxu0 %vm1034_vm0, %v18522_v23 }
0x1d26   : > { %16817 = vmatprep.subr.mxu0 %v15195_v1 }
0x1d27   : > { %16818 = vmatpush3.msra.mxu0 %v15195_v1  ;;  %v4693_v1 = vadd.f32 %v18630_v16, %v18648_v28  ;;  %v6119_v28 = vld [vmem:[%s18730_s2] sm:$0xff] }
0x1d28   : > { %16819 = vmatprep.subr.mxu0 %v15194_v3 }
0x1d29   : > { %16820 = vmatpush3.msra.mxu0 %v15194_v3 }
0x1d2a   : > { %16821 = vmatprep.subr.mxu0 %v15193_v4 }
0x1d2b   : > { %16822 = vmatpush3.msra.mxu0 %v15193_v4  ;;  %v15228_v4 = vld [vmem:[%s18100_s8 + $0x1] ss:$0 sm:$0xff] }
0x1d2c   : > { %16824 = vmatmul.mubr.msk.f32.vlgmr.msra.gmra.mxu0 %vm1034_vm0, %v18524_v24  ;;  %16837 = vmatprep.subr.mxu0 %v15212_v5 }
0x1d2d   : > { %16838 = vmatpush3.msra.mxu0 %v15212_v5  ;;  %16845 = vmatprep.mubr.msk.f32.mxu0 %vm1034_vm0, %v18522_v23 }
0x1d2e   : > { %16839 = vmatprep.subr.mxu0 %v15211_v6 }
0x1d2f   : > { %16840 = vmatpush3.msra.mxu0 %v15211_v6 }
0x1d30   : > { %16841 = vmatprep.subr.mxu0 %v15210_v7 }
0x1d31   : > { %16842 = vmatpush3.msra.mxu0 %v15210_v7 }
0x1d32   : > { %16843 = vmatprep.subr.mxu0 %v15209_v8 }
0x1d33   : > { %16844 = vmatpush3.msra.mxu0 %v15209_v8 }
0x1d34   : > { %16846 = vmatmul.mubr.msk.f32.vlgmr.msra.gmra.mxu0 %vm1034_vm0, %v18524_v24 }
0x1de4   : > { %v16809_v14 = vpop.f32.mrf.mxu0 }
0x1de6   : > { %v5153_v15 = vpop.f32.mrf.mxu0 }
0x1de7   : > { %16812 = vmatprep.mubr.msk.f32.mxu1 %vm1362_vm6, %v5153_v15 }
0x1de8   : > { %16813 = vmatmul.mubr.msk.f32.vlgmr.msra.gmra.mxu1 %vm1362_vm6, %v16809_v14 }
0x1de9   : > { %16827 = vmatpush3.msra.mxu1 %v15204_v10  ;;  %16834 = vmatprep.mubr.msk.f32.mxu1 %vm1034_vm0, %v18522_v23  ;;  %v15214_v23 = vld [vmem:[%s18090_s29 + $0x17] ss:$0 sm:$0xff] }
0x1dea   : > { %16828 = vmatprep.subr.mxu1 %v15203_v17 }
0x1deb   : > { %16829 = vmatpush3.msra.mxu1 %v15203_v17 }
0x1dec   : > { %v16825_v21 = vpop.f32.mrf.mxu0  ;;  %16830 = vmatprep.subr.mxu1 %v15202_v18 }
0x1ded   : > { %v5332_v22 = vadd.f32 %v16825_v21, %v15198_v19  ;;  %16831 = vmatpush3.msra.mxu1 %v15202_v18  ;;  %v6124_v18 = vsel %vm1034_vm0, %v6119_v28, 0.0 }
0x1dee   : > { %v5326_v25 = vpop.f32.mrf.mxu0  ;;  %16832 = vmatprep.subr.mxu1 %v15201_v20 }
0x1def   : > { %v5327_v26 = vadd.f32 %v15198_v19, %v5326_v25  ;;  %16833 = vmatpush3.msra.mxu1 %v15201_v20 }
0x1df0   : > { %16835 = vmatmul.mubr.msk.f32.vlgmr.msra.gmra.mxu1 %vm1034_vm0, %v18524_v24  ;;  %v15206_v24 = vld [vmem:[%s18090_s29 + $0xf] ss:$0 sm:$0xff] }
0x1df1   : > { %16852 = vmatprep.mubr.msk.f32.mxu1 %vm1362_vm6, %v5327_v26 }
0x1df4   : > { %v16847_v29 = vpop.f32.mrf.mxu0 }
0x1df5   : > { %v5508_v30 = vadd.f32 %v16847_v29, %v15214_v23 }
0x1df6   : > { %v5502_v31 = vpop.f32.mrf.mxu0 }
0x1df7   : > { %v5503_v32 = vadd.f32 %v15214_v23, %v5502_v31  ;;  %16855 = vmatprep.subr.msk.mxu0 %vm1486_vm7, %v5508_v30 }
0x1df8   : > { %16856 = vmatpush3.msk.msra.mxu0 %vm1486_vm7, %v5508_v30 }
0x1df9   : > { %16857 = vmatprep.subr.mxu0 %v5503_v32 }
0x1dfa   : > { %16858 = vmatpush3.msra.mxu0 %v5503_v32 }
0x1ea8   : > { %v16814_v36 = vpop.f32.mrf.mxu1 }
0x1ea9   : > { %v5246_v37 = vadd.f32 %v16814_v36, %v4698_v33 }
0x1eaa   : > { %v5236_v39 = vpop.f32.mrf.mxu1 }
0x1eab   : > { %v5245_v5 = vadd.f32 %v5236_v39, %v4693_v1  ;;  %v15235_v39 = vld [vmem:[%s18115_s24 + $0x30] sm:$0xff]  ;;  %v15231_v1 = vld [vmem:[%s18105_s14 + $0x3] ss:$0 sm:$0xff] }
0x1eb0   : > { %v16836_v50 = vpop.f32.mrf.mxu1 }
0x1eb1   : > { %v5420_v42 = vadd.f32 %v16836_v50, %v15206_v24  ;;  %v15233_v50 = vld [vmem:[%s18115_s24 + $0x20] sm:$0xff] }
0x1eb2   : > { %v5414_v2 = vpop.f32.mrf.mxu1 }
0x1eb3   : > { %v5415_v43 = vadd.f32 %v15206_v24, %v5414_v2  ;;  %16848 = vmatprep.subr.msk.mxu1 %vm1362_vm6, %v5420_v42  ;;  %v15234_v24 = vld [vmem:[%s18115_s24 + $0x28] sm:$0xff]  ;;  %v15248_v2 = vld [vmem:[%s18125_s6 + $0x78] sm:$0xff] }
0x1eb4   : > { %16849 = vmatpush3.xpose.msk.msra.mxu1 %vm1362_vm6, %v5420_v42  ;;  %v18050_v42 = vmov 0.0  }
0x1eb5   : > { %16850 = vmatprep.subr.msk.mxu1 %vm1362_vm6, %v5415_v43 }
0x1eb8   : > { %16851 = vmatpush3.xpose.msk.msra.mxu1 %vm1362_vm6, %v5415_v43  ;;  %v15247_v43 = vld [vmem:[%s18125_s6 + $0x70] sm:$0xff] }
0x1eb9   : > { %16862 = vmatprep.subr.mxu1 %v15224_v49 }
0x1ebb   : > { %16853 = vmatmul.mubr.msk.f32.vlgmr.msra.gmra.mxu1 %vm1362_vm6, %v5332_v22 }
0x1ebc   : > { %16863 = vmatpush3.msra.mxu1 %v15224_v49 }
0x1ebd   : > { %16878 = vmatprep.subr.mxu1 %v15248_v2 }
0x1f7b   : > { %v16854_v44 = vpop.f32.mrf.mxu1 }
0x1f7c   : > { %v5599_v11 = vmul.f32 0.35355338, %v16854_v44  ;;  %v15246_v44 = vld [vmem:[%s18125_s6 + $0x68] sm:$0xff] }
0x1f7d   : > { %v5589_v27 = vpop.f32.mrf.mxu1 }
0x1f7e   : > { %v5598_v46 = vmul.f32 0.35355338, %v5589_v27  ;;  %v5601_v34 = vsel %vm1453_vm8, -1e+09, %v5599_v11  ;;  %v15245_v11 = vld [vmem:[%s18125_s6 + $0x60] sm:$0xff]  ;;  %v15244_v27 = vld [vmem:[%s18125_s6 + $0x58] sm:$0xff] }
0x1f7f   : > { %v5605_v45 = vsel %vm1460_vm9, %v5601_v34, -inf }
0x1f80   : > { %5606 = vmax.xlane.f32.xlu1 %v5605_v45  ;;  %v5600_v40 = vsel %vm1452_vm10, -1e+09, %v5598_v46 }
0x1f81   : > { %v5602_v47 = vsel %vm1456_vm11, %v5600_v40, -inf }
0x1f82   : > { %5603 = vmax.xlane.f32.xlu0 %v5602_v47 }
0x2009   : > { %v5607_v51 = vpop.xlane.xlu1 %5606 }
0x200a   : > { %v5609_v52 = vsub.f32 %v5601_v34, %v5607_v51 }
0x200b   : > { %v5604_v53 = vpop.xlane.xlu0 %5603 }
0x200c   : > { %v5612_v54 = vmul.f32 1.442695, %v5609_v52  ;;  %v5608_v55 = vsub.f32 %v5600_v40, %v5604_v53 }
0x200e   : > { %17889 = vpow2.f32 %v5612_v54  ;;  %v5610_v56 = vmul.f32 1.442695, %v5608_v55 }
0x2010   : > { %17891 = vpow2.f32 %v5610_v56 }
0x201b   : > { %v17890_v57 = vpop.eup %17889 }
0x201c   : > { %v5617_v12 = vsel %vm1460_vm9, %v17890_v57, 0.0 }
0x201d   : > { %v17892_v48 = vpop.eup %17891  ;;  %5618 = vadd.xlane.f32.xlu1 %v5617_v12 }
0x201e   : > { %v5614_v13 = vsel %vm1456_vm11, %v17892_v48, 0.0 }
0x201f   : > { %5615 = vadd.xlane.f32.xlu0 %v5614_v13 }
0x20a6   : > { %v5619_v58 = vpop.xlane.xlu1 %5618 }
0x20a7   : > { %17893 = vrcp.f32 %v5619_v58 }
0x20a8   : > { %v5616_v59 = vpop.xlane.xlu0 %5615 }
0x20a9   : > { %17895 = vrcp.f32 %v5616_v59 }
0x20b4   : > { %v17894_v60 = vpop.eup %17893 }
0x20b5   : > { %v5623_v35 = vmul.f32 %v17894_v60, %v17890_v57 }
0x20b6   : > { %v17896_v61 = vpop.eup %17895 }
0x20b7   : > { %v5622_v62 = vmul.f32 %v17896_v61, %v17892_v48 }
0x20b9   : > { %16859 = vmatprep.mubr.msk.f32.mxu0 %vm1456_vm11, %v5622_v62 }
0x20ba   : > { %16860 = vmatmul.mubr.msk.f32.vlgmr.msra.gmra.mxu0 %vm1456_vm11, %v5623_v35 }
0x217a   : > { %v16861_v63 = vpop.f32.mrf.mxu0 }
0x217c   : > { %v5699_v0 = vpop.f32.mrf.mxu0 }
0x217d   : > { %16864 = vmatprep.mubr.msk.f32.mxu1 %vm1362_vm6, %v5699_v0 }
0x217e   : > { %16865 = vmatmul.mubr.msk.f32.vlgmr.msra.gmra.mxu1 %vm1362_vm6, %v16861_v63 }
0x217f   : > { %16879 = vmatpush3.msra.mxu1 %v15248_v2 }
0x2180   : > { %16880 = vmatprep.subr.mxu1 %v15247_v43 }
0x2181   : > { %16881 = vmatpush3.msra.mxu1 %v15247_v43 }
0x2182   : > { %16882 = vmatprep.subr.mxu1 %v15246_v44 }
0x2183   : > { %16883 = vmatpush3.msra.mxu1 %v15246_v44  ;;  %v15269_v44 = vld [vmem:[%s19889_s7 + $0x218] sm:$0xff] }
0x2184   : > { %16884 = vmatprep.subr.mxu1 %v15245_v11 }
0x2185   : > { %16885 = vmatpush3.msra.mxu1 %v15245_v11 }
0x2186   : > { %16886 = vmatprep.subr.mxu1 %v15244_v27 }
0x2187   : > { %16887 = vmatpush3.msra.mxu1 %v15244_v27  ;;  %v15268_v27 = vld [vmem:[%s19889_s7 + $0x210] sm:$0xff] }
0x223e   : > { %v16866_v3 = vpop.f32.mrf.mxu1 }
0x223f   : > { %v5792_v6 = vadd.f32 %v16866_v3, %v5246_v37  ;;  %v15236_v37 = vld [vmem:[%s18115_s24 + $0x38] sm:$0xff] }
0x2240   : > { %v5782_v7 = vpop.f32.mrf.mxu1  ;;  %16867 = vmatprep.subr.mxu0 %v15236_v37 }
0x2241   : > { %v5802_v8 = vadd.f32 %v15228_v4, %v5792_v6  ;;  %v5791_v9 = vadd.f32 %v5782_v7, %v5245_v5  ;;  %16868 = vmatpush3.msra.mxu0 %v15236_v37 }
0x2242   : > { %16869 = vmatprep.subr.mxu0 %v15235_v39 }
0x2243   : > { %v18726_v10 = vadd.f32 %v5802_v8, %v18498_v38  ;;  %v5801_v14 = vadd.f32 %v15228_v4, %v5791_v9  ;;  %16870 = vmatpush3.msra.mxu0 %v15235_v39  ;;  %v15232_v8 = vld [vmem:[%s18110_s19 + $0x3] ss:$0 sm:$0xff] }
0x2244   : > { %16871 = vmatprep.subr.mxu0 %v15234_v24 }
0x2245   : > { %v18733_v15 = vadd.f32 %v5801_v14, %v18501_v41  ;;  %v5812_v16 = vsel %vm1038_vm1, %v18726_v10, 0.0  ;;  %16872 = vmatpush3.msra.mxu0 %v15234_v24  ;;  %v15255_v14 = vld [vmem:[%s18165_s17] ss:$0 sm:$0xff] }
0x2246   : > { %5813 = vadd.xlane.f32.xlu1 %v5812_v16  ;;  %16873 = vmatprep.subr.mxu0 %v15233_v50 }
0x2247   : > { %v5809_v17 = vsel %vm1034_vm0, %v18733_v15, 0.0  ;;  %16874 = vmatpush3.msra.mxu0 %v15233_v50 }
0x2248   : > { %5810 = vadd.xlane.f32.xlu0 %v5809_v17  ;;  %16897 = vmatprep.subr.mxu0 %v18050_v42  ;;  %v6161_v17 = vld [vmem:[%s19889_s7 + $0x18] sm:$0xff] }
0x224c   : > { %6125 = vadd.xlane.f32.xlu0 %v6124_v18 }
0x22cf   : > { %v5814_v38 = vpop.xlane.xlu1 %5813 }
0x22d0   : > { %v5816_v19 = vmul.f32 0.03125, %v5814_v38 }
0x22d1   : > { %v5811_v20 = vpop.xlane.xlu0 %5810 }
0x22d2   : > { %v18742_v21 = vsub.f32 %v18726_v10, %v5816_v19  ;;  %v5815_v41 = vmul.f32 0.03125, %v5811_v20  ;;  %v6160_v19 = vld [vmem:[%s19889_s7 + $0x10] sm:$0xff] }
0x22d4   : > { %v18745_v22 = vsub.f32 %v18733_v15, %v5815_v41  ;;  %v5820_v25 = vmul.f32 %v18742_v21, %v18742_v21  ;;  %v5836_v4 = vmul.f32 %v15231_v1, %v18742_v21  ;;  %v6159_v21 = vld [vmem:[%s19889_s7 + $0x8] sm:$0xff]  ;;  %v15256_v41 = vld [vmem:[%s19890_s10] ss:$0 sm:$0xff] }
0x22d5   : > { %v6126_v26 = vpop.xlane.xlu0 %6125 }
0x22d6   : > { %v6127_v23 = vmul.f32 0.03125, %v6126_v26  ;;  %v5824_v29 = vsel %vm1038_vm1, %v5820_v25, 0.0  ;;  %v5819_v30 = vmul.f32 %v18745_v22, %v18745_v22  ;;  %v5835_v5 = vmul.f32 %v15231_v1, %v18745_v22  ;;  %v6158_v22 = vld [vmem:[%s19889_s7] sm:$0xff]  ;;  %v15262_v26 = vld [vmem:[%s19889_s7 + $0x118] sm:$0xff] }
0x22d7   : > { %5825 = vadd.xlane.f32.xlu0 %v5824_v29  ;;  %v15260_v29 = vld [vmem:[%s19889_s7 + $0x108] sm:$0xff] }
0x22d8   : > { %v18752_v31 = vsub.f32 %v6119_v28, %v6127_v23  ;;  %v5821_v32 = vsel %vm1034_vm0, %v5819_v30, 0.0  ;;  %v15261_v23 = vld [vmem:[%s19889_s7 + $0x110] sm:$0xff]  ;;  %v15259_v30 = vld [vmem:[%s19889_s7 + $0x100] sm:$0xff] }
0x22d9   : > { %5822 = vadd.xlane.f32.xlu1 %v5821_v32  ;;  %v15242_v32 = vld [vmem:[%s18125_s6 + $0x48] sm:$0xff] }
0x22da   : > { %v6129_v33 = vmul.f32 %v18752_v31, %v18752_v31  ;;  %v6140_v38 = vmul.f32 %v15255_v14, %v18752_v31  ;;  %v15243_v31 = vld [vmem:[%s18125_s6 + $0x50] sm:$0xff] }
0x22db   : > { %16888 = vmatprep.subr.mxu1 %v15243_v31 }
0x22dc   : > { %v6130_v36 = vsel %vm1034_vm0, %v6129_v33, 0.0  ;;  %16889 = vmatpush3.msra.mxu1 %v15243_v31  ;;  %v15241_v33 = vld [vmem:[%s18125_s6 + $0x40] sm:$0xff] }
0x22dd   : > { %6131 = vadd.xlane.f32.xlu1 %v6130_v36  ;;  %16890 = vmatprep.subr.mxu1 %v15242_v32  ;;  %v15238_v36 = vld [vmem:[%s18120_s30 + $0x1] ss:$0 sm:$0xff] }
0x22de   : > { %16891 = vmatpush3.msra.mxu1 %v15242_v32 }
0x22df   : > { %16892 = vmatprep.subr.mxu1 %v15241_v33 }
0x22e0   : > { %16893 = vmatpush3.msra.mxu1 %v15241_v33  ;;  %v15288_v33 = vld [vmem:[%s19891_s11 + $0x9] ss:$0 sm:$0xff] }
0x22e1   : > { %16919 = vmatprep.subr.mxu1 %v18050_v42 }
0x2360   : > { %v5826_v46 = vpop.xlane.xlu0 %5825 }
0x2361   : > { %v5828_v34 = vmul.f32 0.032258064, %v5826_v46 }
0x2362   : > { %v5823_v45 = vpop.xlane.xlu1 %5822 }
0x2363   : > { %17897 = vrsqrt.f32 %v5828_v34  ;;  %v5827_v40 = vmul.f32 0.032258064, %v5823_v45  ;;  %vm5846_vm8 = vcmp.eq.f32.partialorder %v5828_v34, inf  ;;  %v5849_v54 = vand.u32 2147483648, %v5828_v34  ;;  %v15266_v45 = vld [vmem:[%s19889_s7 + $0x200] sm:$0xff] }
0x2364   : > { %vm5848_vm9 = vcmp.eq.f32.partialorder %v5828_v34, 0.0 }
0x2365   : > { %17899 = vrsqrt.f32 %v5827_v40  ;;  %vm5839_vm10 = vcmp.eq.f32.partialorder %v5827_v40, inf  ;;  %v5842_v13 = vand.u32 2147483648, %v5827_v40  ;;  %vm5841_vm13 = vcmp.eq.f32.partialorder %v5827_v40, 0.0 }
0x2366   : > { %v6132_v47 = vpop.xlane.xlu1 %6131 }
0x2367   : > { %v6133_v51 = vmul.f32 0.032258064, %v6132_v47 }
0x2369   : > { %17901 = vrsqrt.f32 %v6133_v51  ;;  %vm6143_vm14 = vcmp.eq.f32.partialorder %v6133_v51, inf  ;;  %v6146_v35 = vand.u32 2147483648, %v6133_v51  ;;  %vm6145_vm15 = vcmp.eq.f32.partialorder %v6133_v51, 0.0 }
0x2370   : > { %v17898_v52 = vpop.eup %17897 }
0x2371   : > { %v5845_v53 = vmul.f32 %v17898_v52, %v5828_v34 }
0x2372   : > { %v17900_v55 = vpop.eup %17899 }
0x2373   : > { %v5847_v56 = vsel %vm5846_vm8, %v5828_v34, %v5845_v53  ;;  %v5838_v12 = vmul.f32 %v17900_v55, %v5827_v40  ;;  %v15267_v34 = vld [vmem:[%s19889_s7 + $0x208] sm:$0xff]  ;;  %v15279_v55 = vld [vmem:[%s19889_s7 + $0x38] sm:$0xff] }
0x2374   : > { %v5850_v57 = vsel %vm5848_vm9, %v5849_v54, %v5847_v56  ;;  %v15278_v56 = vld [vmem:[%s19889_s7 + $0x30] sm:$0xff] }
0x2375   : > { %v5852_v48 = vadd.f32 1e-06, %v5850_v57  ;;  %v5840_v59 = vsel %vm5839_vm10, %v5827_v40, %v5838_v12  ;;  %v15264_v40 = vld [vmem:[%s19891_s11 + $0x8] ss:$0 sm:$0xff]  ;;  %v15276_v12 = vld [vmem:[%s19889_s7 + $0x20] sm:$0xff] }
0x2376   : > { %v17902_v58 = vpop.eup %17901  ;;  %v5843_v60 = vsel %vm5841_vm13, %v5842_v13, %v5840_v59  ;;  %v15277_v57 = vld [vmem:[%s19889_s7 + $0x28] sm:$0xff]  ;;  %v15292_v13 = vld [vmem:[%s19889_s7 + $0x230] sm:$0xff]  ;;  %v15290_v59 = vld [vmem:[%s19889_s7 + $0x220] sm:$0xff] }
0x2377   : > { %17903 = vrcp.f32 %v5852_v48  ;;  %v6142_v61 = vmul.f32 %v17902_v58, %v6133_v51  ;;  %v5851_v62 = vadd.f32 1e-06, %v5843_v60  ;;  %v15293_v48 = vld [vmem:[%s19889_s7 + $0x238] sm:$0xff]  ;;  %v15291_v58 = vld [vmem:[%s19889_s7 + $0x228] sm:$0xff]  ;;  %v18858_v60 = vld [vmem:[%s18130_s12 + $0x1] ss:$0 sm:$0xff] }
0x2379   : > { %v6144_v49 = vsel %vm6143_vm14, %v6133_v51, %v6142_v61  ;;  %17905 = vrcp.f32 %v5851_v62  ;;  %v15257_v51 = vld [vmem:[%s19891_s11] ss:$0 sm:$0xff] }
0x237a   : > { %v6147_v63 = vsel %vm6145_vm15, %v6146_v35, %v6144_v49  ;;  %v15271_v49 = vld [vmem:[%s19891_s11 + $0x10] ss:$0 sm:$0xff] }
0x237b   : > { %v6148_v0 = vadd.f32 1e-06, %v6147_v63 }
0x237d   : > { %17907 = vrcp.f32 %v6148_v0 }
0x2384   : > { %v17904_v3 = vpop.eup %17903 }
0x2385   : > { %v5856_v7 = vmul.f32 %v17904_v3, %v5836_v4  ;;  %v18868_v3 = vld [vmem:[%s1019_s16] sm:$0xff]  ;;  %s19899_s16 = sld [smem:[#allocation13_spill]] }
0x2386   : > { %v17906_v6 = vpop.eup %17905  ;;  %vm6485_vm4 = vcmp.eq.f32.partialorder %v18868_v3, 0.0 }
0x2387   : > { %v5854_v9 = vmul.f32 %v17906_v6, %v5835_v5  ;;  %v5864_v28 = vadd.f32 %v15232_v8, %v5856_v7 }
0x2389   : > { %v5863_v16 = vadd.f32 %v15232_v8, %v5854_v9 }
0x238a   : > { %v17908_v18 = vpop.eup %17907 }
0x238b   : > { %16875 = vmatprep.mubr.msk.f32.mxu0 %vm1034_vm0, %v5863_v16  ;;  %v6150_v20 = vmul.f32 %v17908_v18, %v6140_v38 }
0x238c   : > { %16876 = vmatmul.mubr.msk.f32.vlgmr.msra.gmra.mxu0 %vm1034_vm0, %v5864_v28 }
0x238d   : > { %16898 = vmatpush3.msra.mxu0 %v6161_v17  ;;  %16905 = vmatprep.mubr.msk.f32.mxu0 %vm18051_vm3, %v18050_v42  ;;  %v18785_v25 = vadd.f32 %v15256_v41, %v6150_v20 }
0x238e   : > { %16899 = vmatprep.subr.mxu0 %v18050_v42 }
0x238f   : > { %16900 = vmatpush3.msra.mxu0 %v6160_v19 }
0x2390   : > { %16901 = vmatprep.subr.mxu0 %v18050_v42 }
0x2391   : > { %16902 = vmatpush3.msra.mxu0 %v6159_v21 }
0x2392   : > { %16903 = vmatprep.subr.mxu0 %v18050_v42 }
0x2393   : > { %16904 = vmatpush3.msra.mxu0 %v6158_v22 }
0x2394   : > { %16906 = vmatmul.mubr.msk.f32.vlgmr.msra.gmra.mxu0 %vm1034_vm0, %v18785_v25  ;;  %16908 = vmatprep.subr.mxu0 %v18050_v42 }
0x2395   : > { %16909 = vmatpush3.msra.mxu0 %v15262_v26  ;;  %16916 = vmatprep.mubr.msk.f32.mxu0 %vm18051_vm3, %v18050_v42  ;;  %v15286_v26 = vld [vmem:[%s19889_s7 + $0x138] sm:$0xff] }
0x2396   : > { %16910 = vmatprep.subr.mxu0 %v18050_v42 }
0x2397   : > { %16911 = vmatpush3.msra.mxu0 %v15261_v23  ;;  %v15285_v23 = vld [vmem:[%s19889_s7 + $0x130] sm:$0xff] }
0x2398   : > { %16912 = vmatprep.subr.mxu0 %v18050_v42 }
0x2399   : > { %16913 = vmatpush3.msra.mxu0 %v15260_v29  ;;  %v15284_v29 = vld [vmem:[%s19889_s7 + $0x128] sm:$0xff] }
0x239a   : > { %16914 = vmatprep.subr.mxu0 %v18050_v42 }
0x239b   : > { %16915 = vmatpush3.msra.mxu0 %v15259_v30  ;;  %v15283_v30 = vld [vmem:[%s19889_s7 + $0x120] sm:$0xff] }
0x239c   : > { %16917 = vmatmul.mubr.msk.f32.vlgmr.msra.gmra.mxu0 %vm1034_vm0, %v18785_v25  ;;  %16930 = vmatprep.subr.mxu0 %v18050_v42 }
0x239d   : > { %16932 = vmatprep.mubr.msk.f32.mxu0 %vm18051_vm3, %v18050_v42 }
0x244c   : > { %v16877_v37 = vpop.f32.mrf.mxu0 }
0x244d   : > { %v5956_v39 = vadd.f32 %v16877_v37, %v15238_v36  ;;  %v15281_v37 = vld [vmem:[%s19891_s11 + $0x1] ss:$0 sm:$0xff] }
0x244e   : > { %v5950_v24 = vpop.f32.mrf.mxu0 }
0x244f   : > { %v5951_v50 = vadd.f32 %v15238_v36, %v5950_v24  ;;  %v5960_v43 = vmax.f32 %v5956_v39, 0.0  ;;  %v15295_v24 = vld [vmem:[%s19891_s11 + $0x11] ss:$0 sm:$0xff] }
0x2451   : > { %v5959_v2 = vmax.f32 %v5951_v50, 0.0 }
0x2453   : > { %16894 = vmatprep.mubr.msk.f32.mxu1 %vm3463_vm2, %v5959_v2 }
0x2454   : > { %v6238_v11 = vpop.f32.mrf.mxu0  ;;  %16895 = vmatmul.mubr.msk.f32.vlgmr.msra.gmra.mxu1 %vm3463_vm2, %v5960_v43 }
0x2455   : > { %16920 = vmatpush3.msra.mxu1 %v15269_v44  ;;  %16927 = vmatprep.mubr.msk.f32.mxu1 %vm18051_vm3, %v18050_v42  ;;  %v6239_v54 = vadd.f32 %v15257_v51, %v6238_v11 }
0x2456   : > { %v16907_v46 = vpop.f32.mrf.mxu0  ;;  %16921 = vmatprep.subr.mxu1 %v18050_v42 }
0x2457   : > { %16922 = vmatpush3.msra.mxu1 %v15268_v27 }
0x2458   : > { %16923 = vmatprep.subr.mxu1 %v18050_v42 }
0x2459   : > { %16924 = vmatpush3.msra.mxu1 %v15267_v34 }
0x245a   : > { %16925 = vmatprep.subr.mxu1 %v18050_v42 }
0x245b   : > { %16926 = vmatpush3.msra.mxu1 %v15266_v45 }
0x245c   : > { %v6321_v47 = vpop.f32.mrf.mxu0  ;;  %16928 = vmatmul.mubr.msk.f32.vlgmr.msra.gmra.mxu1 %vm1034_vm0, %v18785_v25  ;;  %16935 = vmatprep.subr.mxu1 %v18050_v42 }
0x245d   : > { %v6322_v52 = vadd.f32 %v15264_v40, %v6321_v47  ;;  %16937 = vmatprep.mubr.msk.f32.mxu1 %vm18051_vm3, %v18050_v42 }
0x245e   : > { %v16918_v53 = vpop.f32.mrf.mxu0 }
0x245f   : > { %16931 = vmatpush3.xpose.msk.msra.mxu0 %vm1362_vm6, %v6322_v52  ;;  %v15300_v53 = vld [vmem:[%s19893_s18 + $0x8] sm:$0xff] }
0x2460   : > { %16940 = vmatprep.subr.mxu0 %v18050_v42 }
0x2462   : > { %16933 = vmatmul.mubr.msk.f32.vlgmr.msra.gmra.mxu0 %vm1362_vm6, %v6239_v54 }
0x2463   : > { %16941 = vmatpush3.msra.mxu0 %v15279_v55  ;;  %16948 = vmatprep.mubr.msk.f32.mxu0 %vm18051_vm3, %v18050_v42 }
0x2464   : > { %16942 = vmatprep.subr.mxu0 %v18050_v42 }
0x2465   : > { %16943 = vmatpush3.msra.mxu0 %v15278_v56 }
0x2466   : > { %16944 = vmatprep.subr.mxu0 %v18050_v42 }
0x2467   : > { %16945 = vmatpush3.msra.mxu0 %v15277_v57  ;;  %v6571_v57 = vld [vmem:[%s19893_s18] sm:$0xff] }
0x2468   : > { %16946 = vmatprep.subr.mxu0 %v18050_v42 }
0x2469   : > { %16947 = vmatpush3.msra.mxu0 %v15276_v12  ;;  %v15313_v12 = vld [vmem:[%s19889_s7 + $0x158] sm:$0xff] }
0x246a   : > { %16949 = vmatmul.mubr.msk.f32.vlgmr.msra.gmra.mxu0 %vm1034_vm0, %v18785_v25  ;;  %16962 = vmatprep.subr.mxu0 %v18050_v42 }
0x246b   : > { %16963 = vmatpush3.msra.mxu0 %v15293_v48  ;;  %16970 = vmatprep.mubr.msk.f32.mxu0 %vm18051_vm3, %v18050_v42  ;;  %v15312_v48 = vld [vmem:[%s19889_s7 + $0x150] sm:$0xff] }
0x246c   : > { %16964 = vmatprep.subr.mxu0 %v18050_v42 }
0x246d   : > { %16965 = vmatpush3.msra.mxu0 %v15292_v13  ;;  %v15311_v13 = vld [vmem:[%s19889_s7 + $0x148] sm:$0xff] }
0x246e   : > { %16966 = vmatprep.subr.mxu0 %v18050_v42 }
0x246f   : > { %16967 = vmatpush3.msra.mxu0 %v15291_v58  ;;  %v15310_v58 = vld [vmem:[%s19889_s7 + $0x140] sm:$0xff] }
0x2470   : > { %16968 = vmatprep.subr.mxu0 %v18050_v42 }
0x2471   : > { %16969 = vmatpush3.msra.mxu0 %v15290_v59  ;;  %v15306_v59 = vld [vmem:[%s19889_s7 + $0x58] sm:$0xff] }
0x2472   : > { %16971 = vmatmul.mubr.msk.f32.vlgmr.msra.gmra.mxu0 %vm1034_vm0, %v18785_v25  ;;  %16983 = vmatprep.subr.mxu0 %v18050_v42 }
0x2473   : > { %16985 = vmatprep.mubr.msk.f32.mxu0 %vm18051_vm3, %v18050_v42  ;;  %16984 = vmatpush3.msra.mxu0 %v15300_v53  ;;  %v15343_v53 = vld [vmem:[%s19889_s7 + $0x260] sm:$0xff] }
0x2474   : > { %16993 = vmatprep.subr.mxu0 %v18050_v42 }
0x2514   : > { %v16896_v61 = vpop.f32.mrf.mxu1 }
0x2515   : > { %v18861_v62 = vadd.f32 %v16896_v61, %v18858_v60 }
0x2516   : > { %v18863_v35 = vpop.f32.mrf.mxu1 }
0x251c   : > { %v6404_v63 = vpop.f32.mrf.mxu1 }
0x251d   : > { %v6405_v0 = vadd.f32 %v15271_v49, %v6404_v63  ;;  %v15305_v49 = vld [vmem:[%s19889_s7 + $0x50] sm:$0xff] }
0x251e   : > { %v16929_v1 = vpop.f32.mrf.mxu1 }
0x251f   : > { %16936 = vmatpush3.msra.mxu1 %v6405_v0  ;;  %v15304_v0 = vld [vmem:[%s19889_s7 + $0x48] sm:$0xff] }
0x2520   : > { %16951 = vmatprep.subr.mxu1 %v18050_v42 }
0x2522   : > { %v6480_v4 = vpop.f32.mrf.mxu0 }
0x2523   : > { %v6484_v5 = vmul.f32 0.35355338, %v6480_v4  ;;  %v15303_v4 = vld [vmem:[%s19889_s7 + $0x40] sm:$0xff] }
0x2524   : > { %v16934_v6 = vpop.f32.mrf.mxu0 }
0x2525   : > { %v6486_v7 = vsel %vm6485_vm4, -1e+09, %v6484_v5  ;;  %v15320_v6 = vld [vmem:[%s19889_s7 + $0x258] sm:$0xff] }
0x2526   : > { %v6487_v8 = vsel %vm1362_vm6, %v6486_v7, -inf }
0x2527   : > { %6488 = vmax.xlane.f32.xlu0 %v6487_v8  ;;  %v15315_v8 = vld [vmem:[%s19891_s11 + $0xa] ss:$0 sm:$0xff] }
0x252a   : > { %v6651_v9 = vpop.f32.mrf.mxu0 }
0x252b   : > { %v6652_v2 = vadd.f32 %v15281_v37, %v6651_v9  ;;  %v15318_v9 = vld [vmem:[%s19889_s7 + $0x248] sm:$0xff] }
0x252c   : > { %v16950_v14 = vpop.f32.mrf.mxu0 }
0x2532   : > { %v6817_v16 = vpop.f32.mrf.mxu0 }
0x2533   : > { %v6818_v43 = vadd.f32 %v15295_v24, %v6817_v16 }
0x2534   : > { %v16972_v28 = vpop.f32.mrf.mxu0 }
0x2535   : > { %v15317_v28 = vld [vmem:[%s19889_s7 + $0x240] sm:$0xff] }
0x25b0   : > { %v6489_v17 = vpop.xlane.xlu0 %6488 }
0x25b1   : > { %v6490_v18 = vsub.f32 %v6486_v7, %v6489_v17  ;;  %v15319_v7 = vld [vmem:[%s19889_s7 + $0x250] sm:$0xff] }
0x25b3   : > { %v6491_v38 = vmul.f32 1.442695, %v6490_v18 }
0x25b5   : > { %17909 = vpow2.f32 %v6491_v38 }
0x25c2   : > { %v17910_v19 = vpop.eup %17909 }
0x25c3   : > { %v6493_v20 = vsel %vm1362_vm6, %v17910_v19, 0.0 }
0x25c4   : > { %6494 = vadd.xlane.f32.xlu1 %v6493_v20 }
0x264d   : > { %v6495_v21 = vpop.xlane.xlu1 %6494 }
0x264e   : > { %17911 = vrcp.f32 %v6495_v21 }
0x265b   : > { %v17912_v41 = vpop.eup %17911 }
0x265c   : > { %v6497_v22 = vmul.f32 %v17912_v41, %v17910_v19  ;;  %v15308_v19 = vld [vmem:[%s19891_s11 + $0x2] ss:$0 sm:$0xff] }
0x265e   : > { %16938 = vmatmul.mubr.msk.f32.vlgmr.msra.gmra.mxu1 %vm1362_vm6, %v6497_v22  ;;  %v15322_v22 = vld [vmem:[%s19891_s11 + $0x12] ss:$0 sm:$0xff] }
0x265f   : > { %16952 = vmatpush3.msra.mxu1 %v15286_v26  ;;  %16959 = vmatprep.mubr.msk.f32.mxu1 %vm18051_vm3, %v18050_v42 }
0x2660   : > { %16953 = vmatprep.subr.mxu1 %v18050_v42 }
0x2661   : > { %16954 = vmatpush3.msra.mxu1 %v15285_v23 }
0x2662   : > { %16955 = vmatprep.subr.mxu1 %v18050_v42 }
0x2663   : > { %16956 = vmatpush3.msra.mxu1 %v15284_v29 }
0x2664   : > { %16957 = vmatprep.subr.mxu1 %v18050_v42 }
0x2665   : > { %16958 = vmatpush3.msra.mxu1 %v15283_v30 }
0x2666   : > { %16960 = vmatmul.mubr.msk.f32.vlgmr.msra.gmra.mxu1 %vm1034_vm0, %v18785_v25  ;;  %16973 = vmatprep.subr.mxu1 %v18050_v42 }
0x2667   : > { %16975 = vmatprep.mubr.msk.f32.mxu1 %vm18051_vm3, %v18050_v42 }
0x271e   : > { %v6567_v31 = vpop.f32.mrf.mxu1 }
0x2720   : > { %v16939_v32 = vpop.f32.mrf.mxu1 }
0x2726   : > { %v6734_v36 = vpop.f32.mrf.mxu1 }
0x2727   : > { %v6735_v39 = vadd.f32 %v15288_v33, %v6734_v36 }
0x2728   : > { %v16961_v50 = vpop.f32.mrf.mxu1 }
0x2729   : > { %16974 = vmatpush3.xpose.msk.msra.mxu1 %vm1362_vm6, %v6735_v39 }
0x272a   : > { %16978 = vmatprep.subr.mxu1 %v18050_v42 }
0x272c   : > { %16976 = vmatmul.mubr.msk.f32.vlgmr.msra.gmra.mxu1 %vm1362_vm6, %v6652_v2 }
0x272d   : > { %16979 = vmatpush3.msra.mxu1 %v6818_v43  ;;  %16980 = vmatprep.mubr.msk.f32.mxu1 %vm18051_vm3, %v18050_v42  ;;  %v15327_v43 = vld [vmem:[%s19893_s18 + $0x10] sm:$0xff] }
0x272e   : > { %16988 = vmatprep.subr.mxu1 %v18050_v42 }
0x27ec   : > { %v6893_v44 = vpop.f32.mrf.mxu1 }
0x27ed   : > { %v6897_v11 = vmul.f32 0.35355338, %v6893_v44 }
0x27ee   : > { %v16977_v27 = vpop.f32.mrf.mxu1 }
0x27ef   : > { %v6898_v46 = vsel %vm6485_vm4, -1e+09, %v6897_v11 }
0x27f0   : > { %v6899_v34 = vsel %vm1362_vm6, %v6898_v46, -inf }
0x27f1   : > { %6900 = vmax.xlane.f32.xlu0 %v6899_v34  ;;  %v15331_v34 = vld [vmem:[%s19889_s7 + $0x70] sm:$0xff] }
0x287a   : > { %v6901_v45 = vpop.xlane.xlu0 %6900 }
0x287b   : > { %v6902_v40 = vsub.f32 %v6898_v46, %v6901_v45  ;;  %v15332_v46 = vld [vmem:[%s19889_s7 + $0x78] sm:$0xff]  ;;  %v15330_v45 = vld [vmem:[%s19889_s7 + $0x68] sm:$0xff] }
0x287d   : > { %v6903_v47 = vmul.f32 1.442695, %v6902_v40  ;;  %v15329_v40 = vld [vmem:[%s19889_s7 + $0x60] sm:$0xff] }
0x287f   : > { %17913 = vpow2.f32 %v6903_v47  ;;  %v15346_v47 = vld [vmem:[%s19889_s7 + $0x278] sm:$0xff] }
0x288c   : > { %v17914_v51 = vpop.eup %17913 }
0x288d   : > { %v6905_v52 = vsel %vm1362_vm6, %v17914_v51, 0.0 }
0x288e   : > { %6906 = vadd.xlane.f32.xlu1 %v6905_v52  ;;  %v15344_v52 = vld [vmem:[%s19889_s7 + $0x268] sm:$0xff] }
0x2917   : > { %v6907_v54 = vpop.xlane.xlu1 %6906 }
0x2918   : > { %17915 = vrcp.f32 %v6907_v54  ;;  %v15339_v54 = vld [vmem:[%s19889_s7 + $0x178] sm:$0xff] }
0x2925   : > { %v17916_v55 = vpop.eup %17915 }
0x2926   : > { %v6909_v56 = vmul.f32 %v17916_v55, %v17914_v51  ;;  %v15345_v51 = vld [vmem:[%s19889_s7 + $0x270] sm:$0xff] }
0x2928   : > { %16981 = vmatmul.mubr.msk.f32.vlgmr.msra.gmra.mxu1 %vm1362_vm6, %v6909_v56  ;;  %v15338_v56 = vld [vmem:[%s19889_s7 + $0x170] sm:$0xff] }
0x2929   : > { %16989 = vmatpush3.msra.mxu1 %v6571_v57  ;;  %16990 = vmatprep.mubr.msk.f32.mxu1 %vm18051_vm3, %v18050_v42 }
0x292a   : > { %17004 = vmatprep.subr.mxu1 %v18050_v42 }
0x292c   : > { %16991 = vmatmul.mubr.msk.f32.vlgmr.msra.gmra.mxu1 %vm1362_vm6, %v6567_v31 }
0x292d   : > { %17005 = vmatpush3.msra.mxu1 %v15313_v12  ;;  %17012 = vmatprep.mubr.msk.f32.mxu1 %vm18051_vm3, %v18050_v42  ;;  %v15337_v12 = vld [vmem:[%s19889_s7 + $0x168] sm:$0xff] }
0x292e   : > { %17006 = vmatprep.subr.mxu1 %v18050_v42 }
0x292f   : > { %17007 = vmatpush3.msra.mxu1 %v15312_v48  ;;  %v15336_v48 = vld [vmem:[%s19889_s7 + $0x160] sm:$0xff] }
0x2930   : > { %17008 = vmatprep.subr.mxu1 %v18050_v42 }
0x2931   : > { %17009 = vmatpush3.msra.mxu1 %v15311_v13 }
0x2932   : > { %17010 = vmatprep.subr.mxu1 %v18050_v42 }
0x2933   : > { %17011 = vmatpush3.msra.mxu1 %v15310_v58 }
0x2934   : > { %17013 = vmatmul.mubr.msk.f32.vlgmr.msra.gmra.mxu1 %vm1034_vm0, %v18785_v25  ;;  %17026 = vmatprep.subr.mxu1 %v18050_v42 }
0x2935   : > { %17028 = vmatprep.mubr.msk.f32.mxu1 %vm18051_vm3, %v18050_v42 }
0x29e8   : > { %v6979_v61 = vpop.f32.mrf.mxu1 }
0x29e9   : > { %16986 = vmatmul.mubr.msk.f32.vlgmr.msra.gmra.mxu0 %vm1362_vm6, %v6979_v61 }
0x29ea   : > { %16994 = vmatpush3.msra.mxu0 %v15306_v59  ;;  %v16982_v63 = vpop.f32.mrf.mxu1  ;;  %17001 = vmatprep.mubr.msk.f32.mxu0 %vm18051_vm3, %v18050_v42 }
0x29eb   : > { %16995 = vmatprep.subr.mxu0 %v18050_v42 }
0x29ec   : > { %16996 = vmatpush3.msra.mxu0 %v15305_v49  ;;  %v18933_v1 = vpop.f32.mrf.mxu1 }
0x29ed   : > { %16997 = vmatprep.subr.mxu0 %v18050_v42 }
0x29ee   : > { %16998 = vmatpush3.msra.mxu0 %v15304_v0  ;;  %v16992_v5 = vpop.f32.mrf.mxu1 }
0x29ef   : > { %16999 = vmatprep.subr.mxu0 %v18050_v42  ;;  %v15341_v5 = vld [vmem:[%s19891_s11 + $0xb] ss:$0 sm:$0xff] }
0x29f0   : > { %17000 = vmatpush3.msra.mxu0 %v15303_v4 }
0x29f1   : > { %17002 = vmatmul.mubr.msk.f32.vlgmr.msra.gmra.mxu0 %vm1034_vm0, %v18785_v25  ;;  %17015 = vmatprep.subr.mxu0 %v18050_v42 }
0x29f2   : > { %17016 = vmatpush3.msra.mxu0 %v15320_v6  ;;  %17023 = vmatprep.mubr.msk.f32.mxu0 %vm18051_vm3, %v18050_v42 }
0x29f3   : > { %17017 = vmatprep.subr.mxu0 %v18050_v42 }
0x29f4   : > { %v7293_v14 = vpop.f32.mrf.mxu1  ;;  %17018 = vmatpush3.msra.mxu0 %v15319_v7  ;;  %v15334_v7 = vld [vmem:[%s19891_s11 + $0x3] ss:$0 sm:$0xff] }
0x29f5   : > { %v7294_v16 = vadd.f32 %v15315_v8, %v7293_v14  ;;  %17019 = vmatprep.subr.mxu0 %v18050_v42 }
0x29f6   : > { %v17014_v17 = vpop.f32.mrf.mxu1  ;;  %17020 = vmatpush3.msra.mxu0 %v15318_v9 }
0x29f7   : > { %17021 = vmatprep.subr.mxu0 %v18050_v42  ;;  %17027 = vmatpush3.xpose.msk.msra.mxu1 %vm1362_vm6, %v7294_v16 }
0x29f8   : > { %17022 = vmatpush3.msra.mxu0 %v15317_v28  ;;  %17031 = vmatprep.subr.mxu1 %v18050_v42 }
0x29f9   : > { %17024 = vmatmul.mubr.msk.f32.vlgmr.msra.gmra.mxu0 %vm1034_vm0, %v18785_v25  ;;  %17036 = vmatprep.subr.mxu0 %v18050_v42 }
0x29fa   : > { %17038 = vmatprep.mubr.msk.f32.mxu0 %vm18051_vm3, %v18050_v42  ;;  %17037 = vmatpush3.msra.mxu0 %v15327_v43 }
0x29fb   : > { %17052 = vmatprep.subr.mxu0 %v18050_v42 }
0x2aa9   : > { %v18958_v18 = vpop.f32.mrf.mxu0 }
0x2aaa   : > { %v7128_v49 = vadd.f32 %v18933_v1, %v18958_v18  ;;  %v6051_v1 = vadd.f32 %v18858_v60, %v18863_v35 }
0x2aab   : > { %v16987_v38 = vpop.f32.mrf.mxu0 }
0x2ab1   : > { %v7210_v20 = vpop.f32.mrf.mxu0 }
0x2ab2   : > { %v7211_v21 = vadd.f32 %v15308_v19, %v7210_v20  ;;  %v6059_v20 = vadd.f32 %v6051_v1, %v18733_v15 }
0x2ab3   : > { %v17003_v41 = vpop.f32.mrf.mxu0 }
0x2ab4   : > { %17029 = vmatmul.mubr.msk.f32.vlgmr.msra.gmra.mxu1 %vm1362_vm6, %v7211_v21  ;;  %v6063_v21 = vsel %vm1034_vm0, %v6059_v20, 0.0 }
0x2ab5   : > { %17033 = vmatprep.mubr.msk.f32.mxu1 %vm18051_vm3, %v18050_v42 }
0x2ab9   : > { %v7376_v26 = vpop.f32.mrf.mxu0 }
0x2aba   : > { %v7377_v23 = vadd.f32 %v15322_v22, %v7376_v26 }
0x2abb   : > { %v17025_v29 = vpop.f32.mrf.mxu0 }
0x2abc   : > { %17032 = vmatpush3.msra.mxu1 %v7377_v23 }
0x2abd   : > { %17041 = vmatprep.subr.mxu1 %v18050_v42 }
0x2b74   : > { %v7452_v30 = vpop.f32.mrf.mxu1 }
0x2b75   : > { %v7456_v31 = vmul.f32 0.35355338, %v7452_v30 }
0x2b76   : > { %v17030_v32 = vpop.f32.mrf.mxu1 }
0x2b77   : > { %v7457_v33 = vsel %vm6485_vm4, -1e+09, %v7456_v31  ;;  %v6060_v31 = vadd.f32 %v18861_v62, %v18726_v10 }
0x2b78   : > { %v7458_v36 = vsel %vm1362_vm6, %v7457_v33, -inf }
0x2b79   : > { %7459 = vmax.xlane.f32.xlu0 %v7458_v36  ;;  %v6066_v15 = vsel %vm1038_vm1, %v6060_v31, 0.0  ;;  %v15353_v36 = vld [vmem:[%s19893_s18 + $0x18] sm:$0xff] }
0x2c02   : > { %v7460_v37 = vpop.xlane.xlu0 %7459 }
0x2c03   : > { %v7461_v39 = vsub.f32 %v7457_v33, %v7460_v37 }
0x2c05   : > { %v7462_v24 = vmul.f32 1.442695, %v7461_v39 }
0x2c07   : > { %17917 = vpow2.f32 %v7462_v24 }
0x2c14   : > { %v17918_v50 = vpop.eup %17917 }
0x2c15   : > { %v7464_v2 = vsel %vm1362_vm6, %v17918_v50, 0.0 }
0x2c16   : > { %7465 = vadd.xlane.f32.xlu1 %v7464_v2 }
0x2c9f   : > { %v7466_v44 = vpop.xlane.xlu1 %7465 }
0x2ca0   : > { %17919 = vrcp.f32 %v7466_v44 }
0x2cad   : > { %v17920_v11 = vpop.eup %17919 }
0x2cae   : > { %v7468_v27 = vmul.f32 %v17920_v11, %v17918_v50 }
0x2cb0   : > { %17034 = vmatmul.mubr.msk.f32.vlgmr.msra.gmra.mxu1 %vm1362_vm6, %v7468_v27 }
0x2cb1   : > { %17042 = vmatpush3.msra.mxu1 %v15332_v46  ;;  %17049 = vmatprep.mubr.msk.f32.mxu1 %vm18051_vm3, %v18050_v42 }
0x2cb2   : > { %17043 = vmatprep.subr.mxu1 %v18050_v42 }
0x2cb3   : > { %17044 = vmatpush3.msra.mxu1 %v15331_v34  ;;  %v15253_v34 = vld [vmem:[%s19894_s23] ss:$0 sm:$0xff]  ;;  %s19900_s23 = sld [smem:[#allocation12_spill]] }
0x2cb4   : > { %17045 = vmatprep.subr.mxu1 %v18050_v42 }
0x2cb5   : > { %17046 = vmatpush3.msra.mxu1 %v15330_v45 }
0x2cb6   : > { %17047 = vmatprep.subr.mxu1 %v18050_v42 }
0x2cb7   : > { %17048 = vmatpush3.msra.mxu1 %v15329_v40 }
0x2cb8   : > { %17050 = vmatmul.mubr.msk.f32.vlgmr.msra.gmra.mxu1 %vm1034_vm0, %v18785_v25  ;;  %17063 = vmatprep.subr.mxu1 %v18050_v42 }
0x2cb9   : > { %17064 = vmatpush3.msra.mxu1 %v15346_v47  ;;  %17071 = vmatprep.mubr.msk.f32.mxu1 %vm18051_vm3, %v18050_v42 }
0x2cba   : > { %17065 = vmatprep.subr.mxu1 %v18050_v42 }
0x2cbb   : > { %17066 = vmatpush3.msra.mxu1 %v15345_v51  ;;  %v15254_v51 = vld [vmem:[%s19895_s0] ss:$0 sm:$0xff]  ;;  %s19901_s0 = sld [smem:[#allocation14_spill]] }
0x2cbc   : > { %17067 = vmatprep.subr.mxu1 %v18050_v42 }
0x2cbd   : > { %17068 = vmatpush3.msra.mxu1 %v15344_v52 }
0x2cbe   : > { %17069 = vmatprep.subr.mxu1 %v18050_v42 }
0x2cbf   : > { %17070 = vmatpush3.msra.mxu1 %v15343_v53 }
0x2cc0   : > { %17072 = vmatmul.mubr.msk.f32.vlgmr.msra.gmra.mxu1 %vm1034_vm0, %v18785_v25  ;;  %17084 = vmatprep.subr.mxu1 %v18050_v42 }
0x2cc1   : > { %17086 = vmatprep.mubr.msk.f32.mxu1 %vm18051_vm3, %v18050_v42  ;;  %17085 = vmatpush3.msra.mxu1 %v15353_v36 }
0x2d70   : > { %v7538_v55 = vpop.f32.mrf.mxu1 }
0x2d71   : > { %17039 = vmatmul.mubr.msk.f32.vlgmr.msra.gmra.mxu0 %vm1362_vm6, %v7538_v55 }
0x2d72   : > { %17053 = vmatpush3.msra.mxu0 %v15339_v54  ;;  %v17035_v57 = vpop.f32.mrf.mxu1  ;;  %17060 = vmatprep.mubr.msk.f32.mxu0 %vm18051_vm3, %v18050_v42 }
0x2d73   : > { %17054 = vmatprep.subr.mxu0 %v18050_v42  ;;  %v15355_v57 = vld [vmem:[%s19896_s26] ss:$0 sm:$0xff] }
0x2d74   : > { %17055 = vmatpush3.msra.mxu0 %v15338_v56 }
0x2d75   : > { %17056 = vmatprep.subr.mxu0 %v18050_v42 }
0x2d76   : > { %17057 = vmatpush3.msra.mxu0 %v15337_v12 }
0x2d77   : > { %17058 = vmatprep.subr.mxu0 %v18050_v42 }
0x2d78   : > { %v7697_v13 = vpop.f32.mrf.mxu1  ;;  %17059 = vmatpush3.msra.mxu0 %v15336_v48 }
0x2d79   : > { %17061 = vmatmul.mubr.msk.f32.vlgmr.msra.gmra.mxu0 %vm1034_vm0, %v18785_v25  ;;  %17074 = vmatprep.subr.mxu0 %v18050_v42  ;;  %v15348_v25 = vld [vmem:[%s19891_s11 + $0x13] ss:$0 sm:$0xff]  ;;  %v7698_v14 = vadd.f32 %v15334_v7, %v7697_v13  ;;  %v15367_v7 = vld [vmem:[%s19889_s7 + $0x400] sm:$0xff] }
0x2d7a   : > { %v17051_v58 = vpop.f32.mrf.mxu1  ;;  %17076 = vmatprep.mubr.msk.f32.mxu0 %vm18051_vm3, %v18050_v42 }
0x2d80   : > { %v7863_v59 = vpop.f32.mrf.mxu1 }
0x2d81   : > { %v7864_v16 = vadd.f32 %v15348_v25, %v7863_v59  ;;  %v18010_v59 = vld [vmem:[%s18730_s2] sm:$0xff]  ;;  %s1023_s2 = scalar_lea.vmem %s19897_s28, %s18723_s1  ;;  %s19902_s28 = sld [smem:[#allocation15_spill]] }
0x2d82   : > { %v17073_v61 = vpop.f32.mrf.mxu1 }
0x2e31   : > { %v7613_v63 = vpop.f32.mrf.mxu0 }
0x2e32   : > { %v19016_v0 = vadd.f32 %v7613_v63, %v7128_v49 }
0x2e33   : > { %v17040_v4 = vpop.f32.mrf.mxu0 }
0x2e39   : > { %v7780_v6 = vpop.f32.mrf.mxu0 }
0x2e3a   : > { %v7781_v8 = vadd.f32 %v15341_v5, %v7780_v6  ;;  %v15370_v5 = vld [vmem:[%s19889_s7 + $0x418] sm:$0xff]  ;;  %v15368_v6 = vld [vmem:[%s19889_s7 + $0x408] sm:$0xff] }
0x2e3b   : > { %v17062_v9 = vpop.f32.mrf.mxu0  ;;  %17100 = vmatprep.subr.mxu1 %v15370_v5 }
0x2e3c   : > { %17075 = vmatpush3.xpose.msk.msra.mxu0 %vm1362_vm6, %v7781_v8 }
0x2e3d   : > { %17079 = vmatprep.subr.mxu0 %v18050_v42 }
0x2e3f   : > { %17077 = vmatmul.mubr.msk.f32.vlgmr.msra.gmra.mxu0 %vm1362_vm6, %v7698_v14 }
0x2e40   : > { %17080 = vmatpush3.msra.mxu0 %v7864_v16  ;;  %17081 = vmatprep.mubr.msk.f32.mxu0 %vm18051_vm3, %v18050_v42 }
0x2e41   : > { %17089 = vmatprep.subr.mxu0 %v18050_v42 }
0x2eff   : > { %v7939_v28 = vpop.f32.mrf.mxu0 }
0x2f00   : > { %v7943_v17 = vmul.f32 0.35355338, %v7939_v28 }
0x2f01   : > { %v17078_v18 = vpop.f32.mrf.mxu0 }
0x2f02   : > { %v7944_v38 = vsel %vm6485_vm4, -1e+09, %v7943_v17 }
0x2f03   : > { %v7945_v19 = vsel %vm1362_vm6, %v7944_v38, -inf }
0x2f04   : > { %7946 = vmax.xlane.f32.xlu0 %v7945_v19 }
0x2f08   : > { %6064 = vadd.xlane.f32.xlu0 %v6063_v21 }
0x2f8d   : > { %v7947_v41 = vpop.xlane.xlu0 %7946 }
0x2f8e   : > { %v7948_v22 = vsub.f32 %v7944_v38, %v7947_v41 }
0x2f90   : > { %v7949_v26 = vmul.f32 1.442695, %v7948_v22 }
0x2f91   : > { %v6065_v60 = vpop.xlane.xlu0 %6064 }
0x2f92   : > { %17921 = vpow2.f32 %v7949_v26  ;;  %v6069_v35 = vmul.f32 0.03125, %v6065_v60  ;;  %v15363_v60 = vld [vmem:[%s19889_s7 + $0x318] sm:$0xff] }
0x2f94   : > { %v6071_v29 = vsub.f32 %v6059_v20, %v6069_v35  ;;  %v15362_v35 = vld [vmem:[%s19889_s7 + $0x310] sm:$0xff] }
0x2f96   : > { %v6073_v32 = vmul.f32 %v6071_v29, %v6071_v29  ;;  %v6089_v40 = vmul.f32 %v15253_v34, %v6071_v29  ;;  %v15361_v29 = vld [vmem:[%s19889_s7 + $0x308] sm:$0xff] }
0x2f98   : > { %v6075_v33 = vsel %vm1034_vm0, %v6073_v32, 0.0 }
0x2f9f   : > { %v17922_v23 = vpop.eup %17921 }
0x2fa0   : > { %v7951_v30 = vsel %vm1362_vm6, %v17922_v23, 0.0 }
0x2fa1   : > { %7952 = vadd.xlane.f32.xlu1 %v7951_v30  ;;  %v15360_v30 = vld [vmem:[%s19889_s7 + $0x300] sm:$0xff] }
0x2fa5   : > { %6067 = vadd.xlane.f32.xlu1 %v6066_v15 }
0x2fa9   : > { %6076 = vadd.xlane.f32.xlu1 %v6075_v33 }
0x302a   : > { %v7953_v37 = vpop.xlane.xlu1 %7952 }
0x302b   : > { %17923 = vrcp.f32 %v7953_v37 }
0x302e   : > { %v6068_v10 = vpop.xlane.xlu1 %6067 }
0x302f   : > { %v6070_v55 = vmul.f32 0.03125, %v6068_v10 }
0x3031   : > { %v6072_v13 = vsub.f32 %v6060_v31, %v6070_v55  ;;  %v15378_v31 = vld [vmem:[%s19889_s7 + $0x518] sm:$0xff] }
0x3032   : > { %v6077_v62 = vpop.xlane.xlu1 %6076 }
0x3033   : > { %v6081_v50 = vmul.f32 0.032258064, %v6077_v62  ;;  %v6074_v63 = vmul.f32 %v6072_v13, %v6072_v13  ;;  %v6090_v41 = vmul.f32 %v15253_v34, %v6072_v13  ;;  %v15358_v62 = vld [vmem:[%s18165_s17 + $0x1] ss:$0 sm:$0xff]  ;;  %v15390_v13 = vld [vmem:[%s19889_s7 + $0x328] sm:$0xff] }
0x3034   : > { %v15375_v34 = vld [vmem:[%s19889_s7 + $0x500] sm:$0xff] }
0x3035   : > { %17925 = vrsqrt.f32 %v6081_v50  ;;  %vm6093_vm5 = vcmp.eq.f32.partialorder %v6081_v50, inf  ;;  %v6096_v11 = vand.u32 2147483648, %v6081_v50  ;;  %vm6095_vm12 = vcmp.eq.f32.partialorder %v6081_v50, 0.0 }
0x3036   : > { %v6078_v4 = vsel %vm1038_vm1, %v6074_v63, 0.0 }
0x3038   : > { %v17924_v39 = vpop.eup %17923 }
0x3039   : > { %v7955_v24 = vmul.f32 %v17924_v39, %v17922_v23 }
0x303b   : > { %17082 = vmatmul.mubr.msk.f32.vlgmr.msra.gmra.mxu0 %vm1362_vm6, %v7955_v24 }
0x303c   : > { %17097 = vmatprep.mubr.msk.f32.mxu0 %vm18051_vm3, %v18050_v42  ;;  %17090 = vmatpush3.msra.mxu0 %v15363_v60 }
0x303d   : > { %17091 = vmatprep.subr.mxu0 %v18050_v42 }
0x303e   : > { %17092 = vmatpush3.msra.mxu0 %v15362_v35 }
0x303f   : > { %17093 = vmatprep.subr.mxu0 %v18050_v42 }
0x3040   : > { %17094 = vmatpush3.msra.mxu0 %v15361_v29 }
0x3041   : > { %17095 = vmatprep.subr.mxu0 %v18050_v42 }
0x3042   : > { %v17926_v2 = vpop.eup %17925  ;;  %17096 = vmatpush3.msra.mxu0 %v15360_v30  ;;  %v15399_v30 = vld [vmem:[%s19889_s7 + $0x438] sm:$0xff] }
0x3043   : > { %v6092_v43 = vmul.f32 %v17926_v2, %v6081_v50  ;;  %17111 = vmatprep.subr.mxu0 %v15378_v31 }
0x3045   : > { %v6094_v44 = vsel %vm6093_vm5, %v6081_v50, %v6092_v43  ;;  %v15359_v43 = vld [vmem:[%s19890_s10 + $0x1] ss:$0 sm:$0xff] }
0x3046   : > { %v6097_v27 = vsel %vm6095_vm12, %v6096_v11, %v6094_v44 }
0x3047   : > { %v6105_v46 = vadd.f32 1e-06, %v6097_v27  ;;  %v15377_v27 = vld [vmem:[%s19889_s7 + $0x510] sm:$0xff] }
0x3049   : > { %17927 = vrcp.f32 %v6105_v46  ;;  %v15376_v46 = vld [vmem:[%s19889_s7 + $0x508] sm:$0xff] }
0x3056   : > { %v17928_v45 = vpop.eup %17927 }
0x3057   : > { %v6108_v47 = vmul.f32 %v17928_v45, %v6089_v40  ;;  %v15372_v45 = vld [vmem:[%s19891_s11 + $0x20] ss:$0 sm:$0xff] }
0x3059   : > { %v19045_v52 = vadd.f32 %v15254_v51, %v6108_v47 }
0x30fb   : > { %v8025_v53 = vpop.f32.mrf.mxu0 }
0x30fc   : > { %17087 = vmatmul.mubr.msk.f32.vlgmr.msra.gmra.mxu1 %vm1362_vm6, %v8025_v53 }
0x30fd   : > { %v17083_v54 = vpop.f32.mrf.mxu0  ;;  %17108 = vmatprep.mubr.msk.f32.mxu1 %vm1034_vm0, %v19045_v52  ;;  %17101 = vmatpush3.msra.mxu1 %v15370_v5 }
0x30fe   : > { %v15365_v54 = vld [vmem:[%s19891_s11 + $0x18] ss:$0 sm:$0xff] }
0x31bc   : > { %v8100_v56 = vpop.f32.mrf.mxu1 }
0x31bd   : > { %v8104_v12 = vadd.f32 %v8100_v56, %v19016_v0  ;;  %v15369_v0 = vld [vmem:[%s19889_s7 + $0x410] sm:$0xff] }
0x31be   : > { %v17088_v48 = vpop.f32.mrf.mxu1  ;;  %17102 = vmatprep.subr.mxu1 %v15369_v0 }
0x31bf   : > { %v8112_v58 = vadd.f32 %v15355_v57, %v8104_v12  ;;  %17103 = vmatpush3.msra.mxu1 %v15369_v0  ;;  %v15392_v57 = vld [vmem:[%s19889_s7 + $0x338] sm:$0xff]  ;;  %v15391_v48 = vld [vmem:[%s19889_s7 + $0x330] sm:$0xff] }
0x31c0   : > { %17104 = vmatprep.subr.mxu1 %v15368_v6 }
0x31c1   : > { %v19053_v61 = vadd.f32 %v18010_v59, %v8112_v58  ;;  %17105 = vmatpush3.msra.mxu1 %v15368_v6  ;;  %v15380_v58 = vld [vmem:[%s19891_s11 + $0x28] ss:$0 sm:$0xff]  ;;  %v15389_v59 = vld [vmem:[%s19889_s7 + $0x320] sm:$0xff]  ;;  %v15406_v6 = vld [vmem:[%s19889_s7 + $0x530] sm:$0xff] }
0x31c2   : > { %17106 = vmatprep.subr.mxu1 %v15367_v7 }
0x31c3   : > { %v8118_v49 = vsel %vm1034_vm0, %v19053_v61, 0.0  ;;  %17107 = vmatpush3.msra.mxu1 %v15367_v7  ;;  %v15405_v7 = vld [vmem:[%s19889_s7 + $0x528] sm:$0xff] }
0x31c4   : > { %8119 = vadd.xlane.f32.xlu0 %v8118_v49  ;;  %17122 = vmatprep.subr.mxu1 %v18050_v42 }
0x31c8   : > { %6079 = vadd.xlane.f32.xlu0 %v6078_v4  ;;  %v15407_v4 = vld [vmem:[%s19889_s7 + $0x538] sm:$0xff] }
0x324d   : > { %v8120_v8 = vpop.xlane.xlu0 %8119 }
0x324e   : > { %v8121_v25 = vmul.f32 0.03125, %v8120_v8  ;;  %v15404_v8 = vld [vmem:[%s19889_s7 + $0x520] sm:$0xff] }
0x3250   : > { %v8122_v9 = vsub.f32 %v19053_v61, %v8121_v25  ;;  %v19129_v25 = vld [vmem:[%s1023_s2] sm:$0xff]  ;;  %s1027_s2 = scalar_lea.vmem %s18215_s20, %s18723_s1 }
0x3251   : > { %v6080_v14 = vpop.xlane.xlu0 %6079  ;;  %vm8500_vm13 = vcmp.eq.f32.partialorder %v19129_v25, 0.0 }
0x3252   : > { %v6082_v16 = vmul.f32 0.032258064, %v6080_v14  ;;  %v8123_v1 = vmul.f32 %v8122_v9, %v8122_v9  ;;  %v8134_v50 = vmul.f32 %v15358_v62, %v8122_v9 }
0x3254   : > { %17929 = vrsqrt.f32 %v6082_v16  ;;  %v8124_v28 = vsel %vm1034_vm0, %v8123_v1, 0.0  ;;  %vm6100_vm1 = vcmp.eq.f32.partialorder %v6082_v16, inf  ;;  %v6103_v38 = vand.u32 2147483648, %v6082_v16 }
0x3255   : > { %8125 = vadd.xlane.f32.xlu1 %v8124_v28  ;;  %vm6102_vm8 = vcmp.eq.f32.partialorder %v6082_v16, 0.0 }
0x3261   : > { %v17930_v17 = vpop.eup %17929 }
0x3262   : > { %v6099_v18 = vmul.f32 %v17930_v17, %v6082_v16 }
0x3264   : > { %v6101_v19 = vsel %vm6100_vm1, %v6082_v16, %v6099_v18 }
0x3265   : > { %v6104_v20 = vsel %vm6102_vm8, %v6103_v38, %v6101_v19  ;;  %v15409_v38 = vld [vmem:[%s19891_s11 + $0x29] ss:$0 sm:$0xff] }
0x3266   : > { %v6106_v21 = vadd.f32 1e-06, %v6104_v20 }
0x3268   : > { %17931 = vrcp.f32 %v6106_v21 }
0x3275   : > { %v17932_v22 = vpop.eup %17931 }
0x3276   : > { %v6110_v26 = vmul.f32 %v17932_v22, %v6090_v41 }
0x3278   : > { %v19067_v23 = vadd.f32 %v15254_v51, %v6110_v26 }
0x327a   : > { %17109 = vmatmul.mubr.msk.f32.vlgmr.msra.gmra.mxu1 %vm1034_vm0, %v19067_v23 }
0x327b   : > { %17126 = vmatprep.mubr.msk.f32.mxu1 %vm18051_vm3, %v18050_v42 }
0x32de   : > { %v8126_v15 = vpop.xlane.xlu1 %8125 }
0x32df   : > { %v8127_v32 = vmul.f32 0.032258064, %v8126_v15 }
0x32e1   : > { %17933 = vrsqrt.f32 %v8127_v32  ;;  %vm8137_vm9 = vcmp.eq.f32.partialorder %v8127_v32, inf  ;;  %v8140_v37 = vand.u32 2147483648, %v8127_v32  ;;  %vm8139_vm10 = vcmp.eq.f32.partialorder %v8127_v32, 0.0 }
0x32ee   : > { %v17934_v33 = vpop.eup %17933 }
0x32ef   : > { %v8136_v36 = vmul.f32 %v17934_v33, %v8127_v32  ;;  %v15398_v33 = vld [vmem:[%s19889_s7 + $0x430] sm:$0xff] }
0x32f1   : > { %v8138_v39 = vsel %vm8137_vm9, %v8127_v32, %v8136_v36  ;;  %v15397_v36 = vld [vmem:[%s19889_s7 + $0x428] sm:$0xff] }
0x32f2   : > { %v8141_v24 = vsel %vm8139_vm10, %v8140_v37, %v8138_v39  ;;  %v15396_v37 = vld [vmem:[%s19889_s7 + $0x420] sm:$0xff] }
0x32f3   : > { %v8142_v10 = vadd.f32 1e-06, %v8141_v24 }
0x32f5   : > { %17935 = vrcp.f32 %v8142_v10  ;;  %v15401_v10 = vld [vmem:[%s19891_s11 + $0x21] ss:$0 sm:$0xff] }
0x3302   : > { %v17936_v2 = vpop.eup %17935 }
0x3303   : > { %v8144_v44 = vmul.f32 %v17936_v2, %v8134_v50 }
0x3305   : > { %v19081_v11 = vadd.f32 %v15359_v43, %v8144_v44  ;;  %v15394_v43 = vld [vmem:[%s19891_s11 + $0x19] ss:$0 sm:$0xff] }
0x3307   : > { %17098 = vmatmul.mubr.msk.f32.vlgmr.msra.gmra.mxu0 %vm1034_vm0, %v19081_v11 }
0x3308   : > { %17112 = vmatpush3.msra.mxu0 %v15378_v31  ;;  %17119 = vmatprep.mubr.msk.f32.mxu0 %vm1034_vm0, %v19045_v52 }
0x3309   : > { %17113 = vmatprep.subr.mxu0 %v15377_v27 }
0x330a   : > { %17114 = vmatpush3.msra.mxu0 %v15377_v27 }
0x330b   : > { %17115 = vmatprep.subr.mxu0 %v15376_v46 }
0x330c   : > { %17116 = vmatpush3.msra.mxu0 %v15376_v46 }
0x330d   : > { %17117 = vmatprep.subr.mxu0 %v15375_v34 }
0x330e   : > { %17118 = vmatpush3.msra.mxu0 %v15375_v34 }
0x330f   : > { %17120 = vmatmul.mubr.msk.f32.vlgmr.msra.gmra.mxu0 %vm1034_vm0, %v19067_v23  ;;  %17129 = vmatprep.subr.mxu0 %v18050_v42 }
0x3310   : > { %17133 = vmatprep.mubr.msk.f32.mxu0 %vm18051_vm3, %v18050_v42 }
0x333a   : > { %v17110_v40 = vpop.f32.mrf.mxu1 }
0x333b   : > { %v8329_v47 = vadd.f32 %v17110_v40, %v15372_v45 }
0x333c   : > { %v8323_v51 = vpop.f32.mrf.mxu1 }
0x333d   : > { %17123 = vmatpush3.xpose.msk.msra.mxu1 %vm1362_vm6, %v8329_v47  ;;  %v8324_v53 = vadd.f32 %v15372_v45, %v8323_v51 }
0x333e   : > { %17124 = vmatprep.subr.mxu1 %v18050_v42 }
0x3341   : > { %17125 = vmatpush3.xpose.msk.msra.mxu1 %vm1362_vm6, %v8324_v53 }
0x3342   : > { %17136 = vmatprep.subr.mxu1 %v18050_v42 }
0x33c7   : > { %v8234_v55 = vpop.f32.mrf.mxu0 }
0x33c8   : > { %v8235_v56 = vadd.f32 %v15365_v54, %v8234_v55 }
0x33c9   : > { %v17099_v12 = vpop.f32.mrf.mxu0 }
0x33ca   : > { %17127 = vmatmul.mubr.msk.f32.vlgmr.msra.gmra.mxu1 %vm1362_vm6, %v8235_v56 }
0x33cb   : > { %17137 = vmatpush3.msra.mxu1 %v15392_v57  ;;  %17144 = vmatprep.mubr.msk.f32.mxu1 %vm18051_vm3, %v18050_v42  ;;  %v15417_v57 = vld [vmem:[%s19893_s18 + $0x48] sm:$0xff] }
0x33cc   : > { %17138 = vmatprep.subr.mxu1 %v18050_v42 }
0x33cd   : > { %17139 = vmatpush3.msra.mxu1 %v15391_v48 }
0x33ce   : > { %17140 = vmatprep.subr.mxu1 %v18050_v42 }
0x33cf   : > { %v17121_v49 = vpop.f32.mrf.mxu0  ;;  %17141 = vmatpush3.msra.mxu1 %v15390_v13 }
0x33d0   : > { %v8417_v63 = vadd.f32 %v17121_v49, %v15380_v58  ;;  %17142 = vmatprep.subr.mxu1 %v18050_v42  ;;  %v15429_v49 = vld [vmem:[%s19889_s7 + $0x450] sm:$0xff] }
0x33d1   : > { %v8411_v5 = vpop.f32.mrf.mxu0  ;;  %17143 = vmatpush3.msra.mxu1 %v15389_v59  ;;  %v15430_v59 = vld [vmem:[%s19889_s7 + $0x458] sm:$0xff] }
0x33d2   : > { %v8412_v0 = vadd.f32 %v15380_v58, %v8411_v5  ;;  %17130 = vmatpush3.msk.msra.mxu0 %vm1486_vm7, %v8417_v63  ;;  %17145 = vmatmul.mubr.msk.f32.vlgmr.msra.gmra.mxu1 %vm1034_vm0, %v19081_v11  ;;  %v15388_v58 = vld [vmem:[%s19893_s18 + $0x40] sm:$0xff]  ;;  %v15428_v63 = vld [vmem:[%s19889_s7 + $0x448] sm:$0xff]  ;;  %v15423_v5 = vld [vmem:[%s19889_s7 + $0x358] sm:$0xff] }
0x33d3   : > { %17158 = vmatprep.subr.mxu1 %v15407_v4  ;;  %17131 = vmatprep.subr.mxu0 %v18050_v42 }
0x33d4   : > { %17159 = vmatpush3.msra.mxu1 %v15407_v4  ;;  %17166 = vmatprep.mubr.msk.f32.mxu1 %vm1034_vm0, %v19045_v52  ;;  %v15427_v4 = vld [vmem:[%s19889_s7 + $0x440] sm:$0xff] }
0x33d5   : > { %17132 = vmatpush3.msra.mxu0 %v8412_v0  ;;  %17160 = vmatprep.subr.mxu1 %v15406_v6 }
0x33d6   : > { %17161 = vmatpush3.msra.mxu1 %v15406_v6  ;;  %17147 = vmatprep.subr.mxu0 %v15399_v30  ;;  %v15422_v6 = vld [vmem:[%s19889_s7 + $0x350] sm:$0xff] }
0x33d7   : > { %17162 = vmatprep.subr.mxu1 %v15405_v7 }
0x33d8   : > { %17163 = vmatpush3.msra.mxu1 %v15405_v7 }
0x33d9   : > { %17164 = vmatprep.subr.mxu1 %v15404_v8 }
0x33da   : > { %17165 = vmatpush3.msra.mxu1 %v15404_v8  ;;  %v15421_v8 = vld [vmem:[%s19889_s7 + $0x348] sm:$0xff] }
0x33db   : > { %17167 = vmatmul.mubr.msk.f32.vlgmr.msra.gmra.mxu1 %vm1034_vm0, %v19067_v23  ;;  %17176 = vmatprep.subr.mxu1 %v18050_v42 }
0x33dc   : > { %17180 = vmatprep.mubr.msk.f32.mxu1 %vm18051_vm3, %v18050_v42 }
0x348a   : > { %v8495_v9 = vpop.f32.mrf.mxu1 }
0x348b   : > { %v8499_v14 = vmul.f32 0.35355338, %v8495_v9 }
0x348c   : > { %v17128_v16 = vpop.f32.mrf.mxu1 }
0x348d   : > { %v8501_v1 = vsel %vm8500_vm13, -1e+09, %v8499_v14  ;;  %v15420_v14 = vld [vmem:[%s19889_s7 + $0x340] sm:$0xff] }
0x348e   : > { %v8502_v28 = vsel %vm1456_vm11, %v8501_v1, -inf }
0x348f   : > { %8503 = vmax.xlane.f32.xlu0 %v8502_v28  ;;  %v15437_v28 = vld [vmem:[%s19889_s7 + $0x550] sm:$0xff] }
0x3492   : > { %v8670_v17 = vpop.f32.mrf.mxu1 }
0x3493   : > { %v8671_v27 = vadd.f32 %v15394_v43, %v8670_v17  ;;  %v15432_v17 = vld [vmem:[%s19891_s11 + $0x22] ss:$0 sm:$0xff] }
0x3494   : > { %v17146_v18 = vpop.f32.mrf.mxu1 }
0x3495   : > { %v15436_v18 = vld [vmem:[%s19889_s7 + $0x548] sm:$0xff] }
0x349b   : > { %v17168_v19 = vpop.f32.mrf.mxu1 }
0x349c   : > { %v8847_v20 = vadd.f32 %v17168_v19, %v15409_v38  ;;  %v15435_v19 = vld [vmem:[%s19889_s7 + $0x540] sm:$0xff] }
0x349d   : > { %v8841_v21 = vpop.f32.mrf.mxu1 }
0x349e   : > { %v8842_v41 = vadd.f32 %v15409_v38, %v8841_v21  ;;  %17177 = vmatpush3.msk.msra.mxu1 %vm1486_vm7, %v8847_v20 }
0x349f   : > { %17178 = vmatprep.subr.mxu1 %v18050_v42 }
0x34a0   : > { %17179 = vmatpush3.msra.mxu1 %v8842_v41 }
0x34a1   : > { %17188 = vmatprep.subr.mxu1 %v18050_v42 }
0x3518   : > { %v8504_v22 = vpop.xlane.xlu0 %8503 }
0x3519   : > { %v8505_v26 = vsub.f32 %v8501_v1, %v8504_v22  ;;  %v15438_v1 = vld [vmem:[%s19889_s7 + $0x558] sm:$0xff] }
0x351b   : > { %v8506_v60 = vmul.f32 1.442695, %v8505_v26 }
0x351d   : > { %17937 = vpow2.f32 %v8506_v60  ;;  %v15425_v60 = vld [vmem:[%s19891_s11 + $0x1a] ss:$0 sm:$0xff] }
0x352a   : > { %v17938_v35 = vpop.eup %17937 }
0x352b   : > { %v8508_v29 = vsel %vm1456_vm11, %v17938_v35, 0.0 }
0x352c   : > { %8509 = vadd.xlane.f32.xlu1 %v8508_v29 }
0x35b5   : > { %v8510_v31 = vpop.xlane.xlu1 %8509 }
0x35b6   : > { %17939 = vrcp.f32 %v8510_v31  ;;  %v15440_v31 = vld [vmem:[%s19891_s11 + $0x2a] ss:$0 sm:$0xff] }
0x35c3   : > { %v17940_v15 = vpop.eup %17939 }
0x35c4   : > { %v8512_v32 = vmul.f32 %v17940_v15, %v17938_v35 }
0x35c6   : > { %17134 = vmatmul.mubr.msk.f32.vlgmr.msra.gmra.mxu0 %vm1456_vm11, %v8512_v32 }
0x35c7   : > { %17148 = vmatpush3.msra.mxu0 %v15399_v30  ;;  %17155 = vmatprep.mubr.msk.f32.mxu0 %vm1034_vm0, %v19045_v52 }
0x35c8   : > { %17149 = vmatprep.subr.mxu0 %v15398_v33 }
0x35c9   : > { %17150 = vmatpush3.msra.mxu0 %v15398_v33 }
0x35ca   : > { %17151 = vmatprep.subr.mxu0 %v15397_v36 }
0x35cb   : > { %17152 = vmatpush3.msra.mxu0 %v15397_v36 }
0x35cc   : > { %17153 = vmatprep.subr.mxu0 %v15396_v37 }
0x35cd   : > { %17154 = vmatpush3.msra.mxu0 %v15396_v37 }
0x35ce   : > { %17156 = vmatmul.mubr.msk.f32.vlgmr.msra.gmra.mxu0 %vm1034_vm0, %v19067_v23  ;;  %17169 = vmatprep.subr.mxu0 %v18050_v42 }
0x35cf   : > { %17173 = vmatprep.mubr.msk.f32.mxu0 %vm18051_vm3, %v18050_v42 }
0x3686   : > { %v8585_v39 = vpop.f32.mrf.mxu0 }
0x3688   : > { %v17135_v24 = vpop.f32.mrf.mxu0 }
0x368e   : > { %v17157_v62 = vpop.f32.mrf.mxu0 }
0x368f   : > { %v8759_v50 = vadd.f32 %v17157_v62, %v15401_v10 }
0x3690   : > { %v8753_v2 = vpop.f32.mrf.mxu0 }
0x3691   : > { %17170 = vmatpush3.xpose.msk.msra.mxu0 %vm1362_vm6, %v8759_v50  ;;  %v8754_v44 = vadd.f32 %v15401_v10, %v8753_v2 }
0x3692   : > { %17171 = vmatprep.subr.mxu0 %v18050_v42 }
0x3695   : > { %17172 = vmatpush3.xpose.msk.msra.mxu0 %vm1362_vm6, %v8754_v44 }
0x3696   : > { %17183 = vmatprep.subr.mxu0 %v18050_v42 }
0x3698   : > { %17174 = vmatmul.mubr.msk.f32.vlgmr.msra.gmra.mxu0 %vm1362_vm6, %v8671_v27 }
0x3699   : > { %17185 = vmatprep.mubr.msk.f32.mxu0 %vm18051_vm3, %v18050_v42  ;;  %17184 = vmatpush3.msra.mxu0 %v15417_v57  ;;  %v15466_v57 = vld [vmem:[%s19889_s7 + $0x568] sm:$0xff] }
0x369a   : > { %17193 = vmatprep.subr.mxu0 %v18050_v42 }
0x3758   : > { %v8925_v46 = vpop.f32.mrf.mxu0 }
0x3759   : > { %v8929_v34 = vmul.f32 0.35355338, %v8925_v46  ;;  %v15448_v46 = vld [vmem:[%s19893_s18 + $0x50] sm:$0xff] }
0x375a   : > { %v17175_v45 = vpop.f32.mrf.mxu0 }
0x375b   : > { %v8930_v40 = vsel %vm8500_vm13, -1e+09, %v8929_v34 }
0x375c   : > { %v8931_v47 = vsel %vm1456_vm11, %v8930_v40, -inf }
0x375d   : > { %8932 = vmax.xlane.f32.xlu0 %v8931_v47  ;;  %v15453_v47 = vld [vmem:[%s19889_s7 + $0x378] sm:$0xff] }
0x37e6   : > { %v8933_v51 = vpop.xlane.xlu0 %8932 }
0x37e7   : > { %v8934_v53 = vsub.f32 %v8930_v40, %v8933_v51  ;;  %v15452_v51 = vld [vmem:[%s19889_s7 + $0x370] sm:$0xff] }
0x37e9   : > { %v8935_v54 = vmul.f32 1.442695, %v8934_v53  ;;  %v15451_v53 = vld [vmem:[%s19889_s7 + $0x368] sm:$0xff] }
0x37eb   : > { %17941 = vpow2.f32 %v8935_v54  ;;  %v15450_v54 = vld [vmem:[%s19889_s7 + $0x360] sm:$0xff] }
0x37f8   : > { %v17942_v55 = vpop.eup %17941 }
0x37f9   : > { %v8937_v56 = vsel %vm1456_vm11, %v17942_v55, 0.0 }
0x37fa   : > { %8938 = vadd.xlane.f32.xlu1 %v8937_v56  ;;  %v15467_v56 = vld [vmem:[%s19889_s7 + $0x570] sm:$0xff] }
0x3883   : > { %v8939_v12 = vpop.xlane.xlu1 %8938 }
0x3884   : > { %17943 = vrcp.f32 %v8939_v12  ;;  %v15465_v12 = vld [vmem:[%s19889_s7 + $0x560] sm:$0xff] }
0x3891   : > { %v17944_v48 = vpop.eup %17943 }
0x3892   : > { %v8941_v13 = vmul.f32 %v17944_v48, %v17942_v55  ;;  %v15468_v55 = vld [vmem:[%s19889_s7 + $0x578] sm:$0xff] }
0x3894   : > { %17181 = vmatmul.mubr.msk.f32.vlgmr.msra.gmra.mxu1 %vm1456_vm11, %v8941_v13  ;;  %v15459_v13 = vld [vmem:[%s19889_s7 + $0x470] sm:$0xff] }
0x3895   : > { %17189 = vmatpush3.msra.mxu1 %v15388_v58  ;;  %17190 = vmatprep.mubr.msk.f32.mxu1 %vm18051_vm3, %v18050_v42 }
0x3896   : > { %17204 = vmatprep.subr.mxu1 %v15430_v59 }
0x3898   : > { %17191 = vmatmul.mubr.msk.f32.vlgmr.msra.gmra.mxu1 %vm1362_vm6, %v8585_v39 }
0x3899   : > { %17205 = vmatpush3.msra.mxu1 %v15430_v59  ;;  %17212 = vmatprep.mubr.msk.f32.mxu1 %vm1034_vm0, %v19045_v52  ;;  %v15458_v59 = vld [vmem:[%s19889_s7 + $0x468] sm:$0xff] }
0x389a   : > { %17206 = vmatprep.subr.mxu1 %v15429_v49 }
0x389b   : > { %17207 = vmatpush3.msra.mxu1 %v15429_v49  ;;  %v15457_v49 = vld [vmem:[%s19889_s7 + $0x460] sm:$0xff] }
0x389c   : > { %17208 = vmatprep.subr.mxu1 %v15428_v63 }
0x389d   : > { %17209 = vmatpush3.msra.mxu1 %v15428_v63 }
0x389e   : > { %17210 = vmatprep.subr.mxu1 %v15427_v4 }
0x389f   : > { %17211 = vmatpush3.msra.mxu1 %v15427_v4 }
0x38a0   : > { %17213 = vmatmul.mubr.msk.f32.vlgmr.msra.gmra.mxu1 %vm1034_vm0, %v19067_v23  ;;  %17226 = vmatprep.subr.mxu1 %v18050_v42 }
0x38a1   : > { %17230 = vmatprep.mubr.msk.f32.mxu1 %vm18051_vm3, %v18050_v42 }
0x3954   : > { %v9014_v0 = vpop.f32.mrf.mxu1 }
0x3955   : > { %17186 = vmatmul.mubr.msk.f32.vlgmr.msra.gmra.mxu0 %vm1362_vm6, %v9014_v0 }
0x3956   : > { %17194 = vmatpush3.msra.mxu0 %v15423_v5  ;;  %v17182_v7 = vpop.f32.mrf.mxu1  ;;  %17201 = vmatprep.mubr.msk.f32.mxu0 %vm18051_vm3, %v18050_v42  ;;  %v15470_v5 = vld [vmem:[%s19891_s11 + $0x2b] ss:$0 sm:$0xff] }
0x3957   : > { %17195 = vmatprep.subr.mxu0 %v18050_v42 }
0x3958   : > { %17196 = vmatpush3.msra.mxu0 %v15422_v6  ;;  %v19190_v9 = vpop.f32.mrf.mxu1 }
0x3959   : > { %17197 = vmatprep.subr.mxu0 %v18050_v42 }
0x395a   : > { %17198 = vmatpush3.msra.mxu0 %v15421_v8  ;;  %v17192_v16 = vpop.f32.mrf.mxu1 }
0x395b   : > { %17199 = vmatprep.subr.mxu0 %v18050_v42 }
0x395c   : > { %17200 = vmatpush3.msra.mxu0 %v15420_v14 }
0x395d   : > { %17202 = vmatmul.mubr.msk.f32.vlgmr.msra.gmra.mxu0 %vm1034_vm0, %v19081_v11  ;;  %17215 = vmatprep.subr.mxu0 %v15438_v1 }
0x395e   : > { %17216 = vmatpush3.msra.mxu0 %v15438_v1  ;;  %17223 = vmatprep.mubr.msk.f32.mxu0 %vm1034_vm0, %v19045_v52 }
0x395f   : > { %17217 = vmatprep.subr.mxu0 %v15437_v28 }
0x3960   : > { %v17214_v38 = vpop.f32.mrf.mxu1  ;;  %17218 = vmatpush3.msra.mxu0 %v15437_v28 }
0x3961   : > { %v9334_v20 = vadd.f32 %v17214_v38, %v15432_v17  ;;  %17219 = vmatprep.subr.mxu0 %v15436_v18 }
0x3962   : > { %v9328_v21 = vpop.f32.mrf.mxu1  ;;  %17220 = vmatpush3.msra.mxu0 %v15436_v18 }
0x3963   : > { %17221 = vmatprep.subr.mxu0 %v15435_v19  ;;  %17227 = vmatpush3.xpose.msk.msra.mxu1 %vm1362_vm6, %v9334_v20  ;;  %v9329_v41 = vadd.f32 %v15432_v17, %v9328_v21  ;;  %v15462_v17 = vld [vmem:[%s19891_s11 + $0x23] ss:$0 sm:$0xff]  ;;  %v15455_v20 = vld [vmem:[%s19891_s11 + $0x1b] ss:$0 sm:$0xff] }
0x3964   : > { %17222 = vmatpush3.msra.mxu0 %v15435_v19  ;;  %17228 = vmatprep.subr.mxu1 %v18050_v42 }
0x3965   : > { %17224 = vmatmul.mubr.msk.f32.vlgmr.msra.gmra.mxu0 %vm1034_vm0, %v19067_v23  ;;  %17233 = vmatprep.subr.mxu0 %v18050_v42 }
0x3966   : > { %17237 = vmatprep.mubr.msk.f32.mxu0 %vm18051_vm3, %v18050_v42 }
0x3967   : > { %17229 = vmatpush3.xpose.msk.msra.mxu1 %vm1362_vm6, %v9329_v41 }
0x3968   : > { %17240 = vmatprep.subr.mxu1 %v18050_v42 }
0x3a15   : > { %v19213_v22 = vpop.f32.mrf.mxu0 }
0x3a16   : > { %v9163_v14 = vadd.f32 %v19190_v9, %v19213_v22 }
0x3a17   : > { %v17187_v26 = vpop.f32.mrf.mxu0 }
0x3a1d   : > { %v9245_v35 = vpop.f32.mrf.mxu0 }
0x3a1e   : > { %v9246_v29 = vadd.f32 %v15425_v60, %v9245_v35 }
0x3a1f   : > { %v17203_v30 = vpop.f32.mrf.mxu0 }
0x3a20   : > { %17231 = vmatmul.mubr.msk.f32.vlgmr.msra.gmra.mxu1 %vm1362_vm6, %v9246_v29 }
0x3a21   : > { %17242 = vmatprep.mubr.msk.f32.mxu1 %vm18051_vm3, %v18050_v42  ;;  %17241 = vmatpush3.msra.mxu1 %v15448_v46 }
0x3a25   : > { %v17225_v15 = vpop.f32.mrf.mxu0 }
0x3a26   : > { %v9422_v32 = vadd.f32 %v17225_v15, %v15440_v31 }
0x3a27   : > { %v9416_v33 = vpop.f32.mrf.mxu0 }
0x3a28   : > { %v9417_v36 = vadd.f32 %v15440_v31, %v9416_v33  ;;  %17234 = vmatpush3.msk.msra.mxu0 %vm1486_vm7, %v9422_v32  ;;  %v15478_v33 = vld [vmem:[%s19893_s18 + $0x58] sm:$0xff] }
0x3a29   : > { %17235 = vmatprep.subr.mxu0 %v18050_v42 }
0x3a2a   : > { %17236 = vmatpush3.msra.mxu0 %v9417_v36 }
0x3a2b   : > { %17245 = vmatprep.subr.mxu0 %v18050_v42 }
0x3ae0   : > { %v9500_v37 = vpop.f32.mrf.mxu1 }
0x3ae1   : > { %v9504_v39 = vmul.f32 0.35355338, %v9500_v37 }
0x3ae2   : > { %v17232_v24 = vpop.f32.mrf.mxu1 }
0x3ae3   : > { %v9505_v10 = vsel %vm8500_vm13, -1e+09, %v9504_v39 }
0x3ae4   : > { %v9506_v62 = vsel %vm1456_vm11, %v9505_v10, -inf }
0x3ae5   : > { %9507 = vmax.xlane.f32.xlu0 %v9506_v62 }
0x3b6e   : > { %v9508_v50 = vpop.xlane.xlu0 %9507 }
0x3b6f   : > { %v9509_v2 = vsub.f32 %v9505_v10, %v9508_v50  ;;  %v15481_v50 = vld [vmem:[%s19896_s26 + $0x2] ss:$0 sm:$0xff] }
0x3b71   : > { %v9510_v43 = vmul.f32 1.442695, %v9509_v2 }
0x3b73   : > { %17945 = vpow2.f32 %v9510_v43 }
0x3b80   : > { %v17946_v44 = vpop.eup %17945 }
0x3b81   : > { %v9512_v27 = vsel %vm1456_vm11, %v17946_v44, 0.0 }
0x3b82   : > { %9513 = vadd.xlane.f32.xlu1 %v9512_v27 }
0x3c0b   : > { %v9514_v34 = vpop.xlane.xlu1 %9513 }
0x3c0c   : > { %17947 = vrcp.f32 %v9514_v34 }
0x3c19   : > { %v17948_v45 = vpop.eup %17947 }
0x3c1a   : > { %v9516_v40 = vmul.f32 %v17948_v45, %v17946_v44 }
0x3c1c   : > { %17238 = vmatmul.mubr.msk.f32.vlgmr.msra.gmra.mxu0 %vm1456_vm11, %v9516_v40 }
0x3c1d   : > { %17246 = vmatpush3.msra.mxu0 %v15453_v47  ;;  %17253 = vmatprep.mubr.msk.f32.mxu0 %vm18051_vm3, %v18050_v42 }
0x3c1e   : > { %17247 = vmatprep.subr.mxu0 %v18050_v42 }
0x3c1f   : > { %17248 = vmatpush3.msra.mxu0 %v15452_v51 }
0x3c20   : > { %17249 = vmatprep.subr.mxu0 %v18050_v42 }
0x3c21   : > { %17250 = vmatpush3.msra.mxu0 %v15451_v53  ;;  %v10223_v53 = vld [vmem:[%s19898_s15 + $0x18] sm:$0xff] }
0x3c22   : > { %17251 = vmatprep.subr.mxu0 %v18050_v42 }
0x3c23   : > { %17252 = vmatpush3.msra.mxu0 %v15450_v54  ;;  %v10222_v54 = vld [vmem:[%s19898_s15 + $0x10] sm:$0xff] }
0x3c24   : > { %17254 = vmatmul.mubr.msk.f32.vlgmr.msra.gmra.mxu0 %vm1034_vm0, %v19081_v11  ;;  %17267 = vmatprep.subr.mxu0 %v15468_v55  ;;  %v15460_v11 = vld [vmem:[%s19889_s7 + $0x478] sm:$0xff] }
0x3c25   : > { %17268 = vmatpush3.msra.mxu0 %v15468_v55  ;;  %17275 = vmatprep.mubr.msk.f32.mxu0 %vm1034_vm0, %v19045_v52  ;;  %v10220_v55 = vld [vmem:[%s19898_s15] sm:$0xff] }
0x3c26   : > { %17269 = vmatprep.subr.mxu0 %v15467_v56  ;;  %17256 = vmatprep.subr.mxu1 %v15460_v11 }
0x3c27   : > { %17270 = vmatpush3.msra.mxu0 %v15467_v56  ;;  %v10312_v56 = vld [vmem:[%s19899_s16 + $0x38] sm:$0xff] }
0x3c28   : > { %17271 = vmatprep.subr.mxu0 %v15466_v57 }
0x3c29   : > { %17272 = vmatpush3.msra.mxu0 %v15466_v57  ;;  %v10311_v57 = vld [vmem:[%s19899_s16 + $0x30] sm:$0xff] }
0x3c2a   : > { %17273 = vmatprep.subr.mxu0 %v15465_v12 }
0x3c2b   : > { %17274 = vmatpush3.msra.mxu0 %v15465_v12  ;;  %v10310_v12 = vld [vmem:[%s19899_s16 + $0x28] sm:$0xff] }
0x3c2c   : > { %17276 = vmatmul.mubr.msk.f32.vlgmr.msra.gmra.mxu0 %vm1034_vm0, %v19067_v23  ;;  %17285 = vmatprep.subr.mxu0 %v18050_v42 }
0x3c2d   : > { %17289 = vmatprep.mubr.msk.f32.mxu0 %vm18051_vm3, %v18050_v42 }
0x3cdc   : > { %v9589_v48 = vpop.f32.mrf.mxu0 }
0x3cdd   : > { %17243 = vmatmul.mubr.msk.f32.vlgmr.msra.gmra.mxu1 %vm1362_vm6, %v9589_v48  ;;  %v10308_v48 = vld [vmem:[%s19899_s16 + $0x18] sm:$0xff] }
0x3cde   : > { %17257 = vmatpush3.msra.mxu1 %v15460_v11  ;;  %v17239_v58 = vpop.f32.mrf.mxu0  ;;  %17264 = vmatprep.mubr.msk.f32.mxu1 %vm1034_vm0, %v19045_v52  ;;  %v10309_v11 = vld [vmem:[%s19899_s16 + $0x20] sm:$0xff] }
0x3cdf   : > { %17258 = vmatprep.subr.mxu1 %v15459_v13 }
0x3ce0   : > { %17259 = vmatpush3.msra.mxu1 %v15459_v13 }
0x3ce1   : > { %17260 = vmatprep.subr.mxu1 %v15458_v59 }
0x3ce2   : > { %17261 = vmatpush3.msra.mxu1 %v15458_v59 }
0x3ce3   : > { %17262 = vmatprep.subr.mxu1 %v15457_v49 }
0x3ce4   : > { %v9748_v63 = vpop.f32.mrf.mxu0  ;;  %17263 = vmatpush3.msra.mxu1 %v15457_v49 }
0x3ce5   : > { %17265 = vmatmul.mubr.msk.f32.vlgmr.msra.gmra.mxu1 %vm1034_vm0, %v19067_v23  ;;  %17278 = vmatprep.subr.mxu1 %v18050_v42  ;;  %v9749_v41 = vadd.f32 %v15455_v20, %v9748_v63 }
0x3ce6   : > { %v17255_v4 = vpop.f32.mrf.mxu0  ;;  %17282 = vmatprep.mubr.msk.f32.mxu1 %vm18051_vm3, %v18050_v42 }
0x3cec   : > { %v17277_v0 = vpop.f32.mrf.mxu0 }
0x3ced   : > { %v9925_v6 = vadd.f32 %v17277_v0, %v15470_v5 }
0x3cee   : > { %v9919_v7 = vpop.f32.mrf.mxu0 }
0x3cef   : > { %v9920_v8 = vadd.f32 %v15470_v5, %v9919_v7  ;;  %17286 = vmatpush3.msk.msra.mxu0 %vm1486_vm7, %v9925_v6  ;;  %v15484_v6 = vld [vmem:[%s18165_s17 + $0x2] ss:$0 sm:$0xff] }
0x3cf0   : > { %17287 = vmatprep.subr.mxu0 %v18050_v42 }
0x3cf1   : > { %17288 = vmatpush3.msra.mxu0 %v9920_v8 }
0x3cf2   : > { %17297 = vmatprep.subr.mxu0 %v18050_v42 }
0x3d9d   : > { %v9664_v16 = vpop.f32.mrf.mxu1 }
0x3d9e   : > { %v9668_v1 = vadd.f32 %v9664_v16, %v9163_v14  ;;  %v15485_v14 = vld [vmem:[%s19890_s10 + $0x2] ss:$0 sm:$0xff] }
0x3d9f   : > { %v17244_v28 = vpop.f32.mrf.mxu1 }
0x3da0   : > { %v10307_v28 = vld [vmem:[%s19899_s16 + $0x10] sm:$0xff] }
0x3da5   : > { %v17266_v18 = vpop.f32.mrf.mxu1 }
0x3da6   : > { %v9837_v38 = vadd.f32 %v17266_v18, %v15462_v17  ;;  %v10305_v18 = vld [vmem:[%s19899_s16] sm:$0xff] }
0x3da7   : > { %v9831_v19 = vpop.f32.mrf.mxu1 }
0x3da8   : > { %17279 = vmatpush3.xpose.msk.msra.mxu1 %vm1362_vm6, %v9837_v38  ;;  %v9832_v21 = vadd.f32 %v15462_v17, %v9831_v19  ;;  %v10306_v17 = vld [vmem:[%s19899_s16 + $0x8] sm:$0xff]  ;;  %v15486_v38 = vld [vmem:[%s19900_s23] ss:$0 sm:$0xff] }
0x3da9   : > { %17280 = vmatprep.subr.mxu1 %v18050_v42 }
0x3dac   : > { %17281 = vmatpush3.xpose.msk.msra.mxu1 %vm1362_vm6, %v9832_v21 }
0x3dad   : > { %17292 = vmatprep.subr.mxu1 %v18050_v42 }
0x3daf   : > { %17283 = vmatmul.mubr.msk.f32.vlgmr.msra.gmra.mxu1 %vm1362_vm6, %v9749_v41 }
0x3db0   : > { %17294 = vmatprep.mubr.msk.f32.mxu1 %vm18051_vm3, %v18050_v42  ;;  %17293 = vmatpush3.msra.mxu1 %v15478_v33 }
0x3db1   : > { %17308 = vmatprep.subr.mxu1 %v18050_v42 }
0x3e6f   : > { %v10003_v9 = vpop.f32.mrf.mxu1 }
0x3e70   : > { %v10007_v22 = vmul.f32 0.35355338, %v10003_v9  ;;  %v15488_v9 = vld [vmem:[%s19901_s0] ss:$0 sm:$0xff] }
0x3e71   : > { %v17284_v26 = vpop.f32.mrf.mxu1 }
0x3e72   : > { %v10008_v60 = vsel %vm8500_vm13, -1e+09, %v10007_v22 }
0x3e73   : > { %v10009_v35 = vsel %vm1456_vm11, %v10008_v60, -inf }
0x3e74   : > { %10010 = vmax.xlane.f32.xlu0 %v10009_v35 }
0x3efd   : > { %v10011_v29 = vpop.xlane.xlu0 %10010 }
0x3efe   : > { %v10012_v30 = vsub.f32 %v10008_v60, %v10011_v29 }
0x3f00   : > { %v10013_v31 = vmul.f32 1.442695, %v10012_v30 }
0x3f02   : > { %17949 = vpow2.f32 %v10013_v31 }
0x3f0f   : > { %v17950_v15 = vpop.eup %17949 }
0x3f10   : > { %v10015_v32 = vsel %vm1456_vm11, %v17950_v15, 0.0 }
0x3f11   : > { %10016 = vadd.xlane.f32.xlu1 %v10015_v32 }
0x3f9a   : > { %v10017_v36 = vpop.xlane.xlu1 %10016 }
0x3f9b   : > { %17951 = vrcp.f32 %v10017_v36  ;;  %v15497_v36 = vld [vmem:[%s19889_s7 + $0x98] sm:$0xff] }
0x3fa8   : > { %v17952_v37 = vpop.eup %17951 }
0x3fa9   : > { %v10019_v39 = vmul.f32 %v17952_v37, %v17950_v15  ;;  %v15511_v37 = vld [vmem:[%s19889_s7 + $0x298] sm:$0xff] }
0x3fab   : > { %17290 = vmatmul.mubr.msk.f32.vlgmr.msra.gmra.mxu0 %vm1456_vm11, %v10019_v39  ;;  %v15496_v39 = vld [vmem:[%s19889_s7 + $0x90] sm:$0xff] }
0x3fac   : > { %17305 = vmatprep.mubr.msk.f32.mxu0 %vm18051_vm3, %v18050_v42  ;;  %17298 = vmatpush3.msra.mxu0 %v10223_v53 }
0x3fad   : > { %17299 = vmatprep.subr.mxu0 %v18050_v42 }
0x3fae   : > { %17300 = vmatpush3.msra.mxu0 %v10222_v54 }
0x3faf   : > { %17301 = vmatprep.subr.mxu0 %v18050_v42 }
0x406b   : > { %v10092_v24 = vpop.f32.mrf.mxu0 }
0x406c   : > { %17295 = vmatmul.mubr.msk.f32.vlgmr.msra.gmra.mxu1 %vm1362_vm6, %v10092_v24  ;;  %v15510_v24 = vld [vmem:[%s19889_s7 + $0x290] sm:$0xff] }
0x406d   : > { %v17291_v10 = vpop.f32.mrf.mxu0  ;;  %17324 = vmatprep.mubr.msk.f32.mxu1 %vm18051_vm3, %v18050_v42  ;;  %17309 = vmatpush3.msra.mxu1 %v10312_v56 }
0x406e   : > { %17310 = vmatprep.subr.mxu1 %v18050_v42  ;;  %v15495_v10 = vld [vmem:[%s19889_s7 + $0x88] sm:$0xff] }
0x406f   : > { %17311 = vmatpush3.msra.mxu1 %v10311_v57  ;;  %v15504_v57 = vld [vmem:[%s19889_s7 + $0x198] sm:$0xff] }
0x4070   : > { %17312 = vmatprep.subr.mxu1 %v18050_v42 }
0x4071   : > { %17313 = vmatpush3.msra.mxu1 %v10310_v12  ;;  %v15503_v12 = vld [vmem:[%s19889_s7 + $0x190] sm:$0xff] }
0x4072   : > { %17314 = vmatprep.subr.mxu1 %v18050_v42 }
0x4073   : > { %17315 = vmatpush3.msra.mxu1 %v10309_v11  ;;  %v15502_v11 = vld [vmem:[%s19889_s7 + $0x188] sm:$0xff] }
0x4074   : > { %17316 = vmatprep.subr.mxu1 %v18050_v42 }
0x4075   : > { %17317 = vmatpush3.msra.mxu1 %v10308_v48  ;;  %v15501_v48 = vld [vmem:[%s19889_s7 + $0x180] sm:$0xff] }
0x4076   : > { %17318 = vmatprep.subr.mxu1 %v18050_v42 }
0x4077   : > { %17319 = vmatpush3.msra.mxu1 %v10307_v28  ;;  %v15520_v28 = vld [vmem:[%s19889_s7 + $0xa8] sm:$0xff] }
0x4078   : > { %17320 = vmatprep.subr.mxu1 %v18050_v42 }
0x4079   : > { %17321 = vmatpush3.msra.mxu1 %v10306_v17  ;;  %v15519_v17 = vld [vmem:[%s19889_s7 + $0xa0] sm:$0xff] }
0x407a   : > { %17322 = vmatprep.subr.mxu1 %v18050_v42 }
0x407b   : > { %17323 = vmatpush3.msra.mxu1 %v10305_v18  ;;  %v15536_v18 = vld [vmem:[%s19889_s7 + $0x2b8] sm:$0xff] }
0x407c   : > { %17349 = vmatprep.subr.mxu1 %v18050_v42 }
0x412c   : > { %v10167_v62 = vpop.f32.mrf.mxu1 }
0x412d   : > { %v10171_v2 = vadd.f32 %v10167_v62, %v9668_v1  ;;  %v15509_v62 = vld [vmem:[%s19889_s7 + $0x288] sm:$0xff] }
0x412e   : > { %v17296_v43 = vpop.f32.mrf.mxu1 }
0x412f   : > { %v10180_v44 = vadd.f32 %v15481_v50, %v10171_v2  ;;  %v15494_v50 = vld [vmem:[%s19889_s7 + $0x80] sm:$0xff] }
0x4130   : > { %v15508_v2 = vld [vmem:[%s19889_s7 + $0x280] sm:$0xff] }
0x4131   : > { %v19292_v27 = vadd.f32 %v10180_v44, %v19053_v61  ;;  %v10221_v61 = vld [vmem:[%s19898_s15 + $0x8] sm:$0xff] }
0x4132   : > { %17302 = vmatpush3.msra.mxu0 %v10221_v61  ;;  %v15493_v61 = vld [vmem:[%s19890_s10 + $0x3] ss:$0 sm:$0xff] }
0x4133   : > { %v10186_v46 = vsel %vm1034_vm0, %v19292_v27, 0.0  ;;  %17303 = vmatprep.subr.mxu0 %v18050_v42 }
0x4134   : > { %10187 = vadd.xlane.f32.xlu0 %v10186_v46  ;;  %17304 = vmatpush3.msra.mxu0 %v10220_v55 }
0x4135   : > { %17327 = vmatprep.subr.mxu0 %v18050_v42 }
0x41bd   : > { %v10188_v34 = vpop.xlane.xlu0 %10187 }
0x41be   : > { %v10189_v45 = vmul.f32 0.03125, %v10188_v34 }
0x41c0   : > { %v10190_v40 = vsub.f32 %v19292_v27, %v10189_v45 }
0x41c2   : > { %v10191_v47 = vmul.f32 %v10190_v40, %v10190_v40  ;;  %v10202_v7 = vmul.f32 %v15484_v6, %v10190_v40  ;;  %v15499_v6 = vld [vmem:[%s19891_s11 + $0x4] ss:$0 sm:$0xff] }
0x41c4   : > { %v10192_v51 = vsel %vm1034_vm0, %v10191_v47, 0.0 }
0x41c5   : > { %10193 = vadd.xlane.f32.xlu1 %v10192_v51  ;;  %v15492_v51 = vld [vmem:[%s18165_s17 + $0x3] ss:$0 sm:$0xff] }
0x424e   : > { %v10194_v13 = vpop.xlane.xlu1 %10193 }
0x424f   : > { %v10195_v58 = vmul.f32 0.032258064, %v10194_v13  ;;  %v15513_v13 = vld [vmem:[%s19891_s11 + $0x14] ss:$0 sm:$0xff] }
0x4251   : > { %17953 = vrsqrt.f32 %v10195_v58  ;;  %vm10205_vm14 = vcmp.eq.f32.partialorder %v10195_v58, inf  ;;  %v10208_v63 = vand.u32 2147483648, %v10195_v58  ;;  %vm10207_vm15 = vcmp.eq.f32.partialorder %v10195_v58, 0.0 }
0x425e   : > { %v17954_v59 = vpop.eup %17953 }
0x425f   : > { %v10204_v49 = vmul.f32 %v17954_v59, %v10195_v58 }
0x4261   : > { %v10206_v4 = vsel %vm10205_vm14, %v10195_v58, %v10204_v49 }
0x4262   : > { %v10209_v5 = vsel %vm10207_vm15, %v10208_v63, %v10206_v4 }
0x4263   : > { %v10210_v0 = vadd.f32 1e-06, %v10209_v5  ;;  %v15506_v5 = vld [vmem:[%s19891_s11 + $0xc] ss:$0 sm:$0xff] }
0x4265   : > { %17955 = vrcp.f32 %v10210_v0 }
0x4272   : > { %v17956_v8 = vpop.eup %17955 }
0x4273   : > { %v10212_v16 = vmul.f32 %v17956_v8, %v10202_v7 }
0x4275   : > { %v10219_v1 = vadd.f32 %v15485_v14, %v10212_v16  ;;  %v15522_v16 = vld [vmem:[%s19889_s7 + $0xb8] sm:$0xff] }
0x4277   : > { %17306 = vmatmul.mubr.msk.f32.vlgmr.msra.gmra.mxu0 %vm1034_vm0, %v10219_v1  ;;  %v15521_v1 = vld [vmem:[%s19889_s7 + $0xb0] sm:$0xff] }
0x4278   : > { %17335 = vmatprep.mubr.msk.f32.mxu0 %vm18051_vm3, %v18050_v42  ;;  %17328 = vmatpush3.msra.mxu0 %v15497_v36 }
0x4279   : > { %17329 = vmatprep.subr.mxu0 %v18050_v42 }
0x427a   : > { %17330 = vmatpush3.msra.mxu0 %v15496_v39 }
0x427b   : > { %17331 = vmatprep.subr.mxu0 %v18050_v42 }
0x427c   : > { %17332 = vmatpush3.msra.mxu0 %v15495_v10 }
0x427d   : > { %17333 = vmatprep.subr.mxu0 %v18050_v42 }
0x427e   : > { %17334 = vmatpush3.msra.mxu0 %v15494_v50  ;;  %v15528_v50 = vld [vmem:[%s19889_s7 + $0x1b0] sm:$0xff] }
0x427f   : > { %17338 = vmatprep.subr.mxu0 %v18050_v42 }
0x4337   : > { %v10300_v19 = vpop.f32.mrf.mxu0 }
0x4338   : > { %v10301_v20 = vadd.f32 %v15486_v38, %v10300_v19  ;;  %v15535_v38 = vld [vmem:[%s19889_s7 + $0x2b0] sm:$0xff]  ;;  %v15534_v19 = vld [vmem:[%s19889_s7 + $0x2a8] sm:$0xff] }
0x4339   : > { %v17307_v21 = vpop.f32.mrf.mxu0 }
0x433a   : > { %v10304_v41 = vmax.f32 %v10301_v20, 0.0  ;;  %v15533_v20 = vld [vmem:[%s19889_s7 + $0x2a0] sm:$0xff] }
0x433c   : > { %17325 = vmatmul.mubr.msk.f32.vlgmr.msra.gmra.mxu1 %vm3463_vm2, %v10304_v41 }
0x433d   : > { %17357 = vmatprep.mubr.msk.f32.mxu1 %vm18051_vm3, %v18050_v42  ;;  %17350 = vmatpush3.msra.mxu1 %v15511_v37 }
0x433e   : > { %17351 = vmatprep.subr.mxu1 %v18050_v42 }
0x433f   : > { %17352 = vmatpush3.msra.mxu1 %v15510_v24 }
0x4340   : > { %17353 = vmatprep.subr.mxu1 %v18050_v42 }
0x4341   : > { %17354 = vmatpush3.msra.mxu1 %v15509_v62  ;;  %v15529_v62 = vld [vmem:[%s19889_s7 + $0x1b8] sm:$0xff] }
0x4342   : > { %17355 = vmatprep.subr.mxu1 %v18050_v42 }
0x4343   : > { %17356 = vmatpush3.msra.mxu1 %v15508_v2  ;;  %v15527_v2 = vld [vmem:[%s19889_s7 + $0x1a8] sm:$0xff] }
0x4344   : > { %17365 = vmatprep.subr.mxu1 %v18050_v42 }
0x43fc   : > { %v10389_v22 = vpop.f32.mrf.mxu1 }
0x43fd   : > { %v10390_v26 = vadd.f32 %v15488_v9, %v10389_v22 }
0x43fe   : > { %v17326_v60 = vpop.f32.mrf.mxu1 }
0x43ff   : > { %v19333_v35 = vadd.f32 %v10390_v26, %v19292_v27 }
0x4401   : > { %v10398_v29 = vsel %vm1034_vm0, %v19333_v35, 0.0 }
0x4402   : > { %10399 = vadd.xlane.f32.xlu0 %v10398_v29 }
0x448b   : > { %v10400_v30 = vpop.xlane.xlu0 %10399 }
0x448c   : > { %v10401_v31 = vmul.f32 0.03125, %v10400_v30 }
0x448e   : > { %v10402_v15 = vsub.f32 %v19333_v35, %v10401_v31 }
0x4490   : > { %v10403_v32 = vmul.f32 %v10402_v15, %v10402_v15  ;;  %v10414_v53 = vmul.f32 %v15492_v51, %v10402_v15 }
0x4492   : > { %v10404_v33 = vsel %vm1034_vm0, %v10403_v32, 0.0 }
0x4493   : > { %10405 = vadd.xlane.f32.xlu1 %v10404_v33 }
0x451c   : > { %v10406_v43 = vpop.xlane.xlu1 %10405 }
0x451d   : > { %v10407_v44 = vmul.f32 0.032258064, %v10406_v43  ;;  %v15526_v43 = vld [vmem:[%s19889_s7 + $0x1a0] sm:$0xff] }
0x451f   : > { %17957 = vrsqrt.f32 %v10407_v44  ;;  %vm10417_vm5 = vcmp.eq.f32.partialorder %v10407_v44, inf  ;;  %v10420_v34 = vand.u32 2147483648, %v10407_v44  ;;  %vm10419_vm12 = vcmp.eq.f32.partialorder %v10407_v44, 0.0 }
0x452c   : > { %v17958_v27 = vpop.eup %17957 }
0x452d   : > { %v10416_v46 = vmul.f32 %v17958_v27, %v10407_v44 }
0x452f   : > { %v10418_v45 = vsel %vm10417_vm5, %v10407_v44, %v10416_v46  ;;  %v15531_v46 = vld [vmem:[%s19891_s11 + $0xd] ss:$0 sm:$0xff] }
0x4530   : > { %v10421_v40 = vsel %vm10419_vm12, %v10420_v34, %v10418_v45  ;;  %v15524_v45 = vld [vmem:[%s19891_s11 + $0x5] ss:$0 sm:$0xff] }
0x4531   : > { %v10422_v47 = vadd.f32 1e-06, %v10421_v40 }
0x4533   : > { %17959 = vrcp.f32 %v10422_v47  ;;  %v15538_v47 = vld [vmem:[%s19891_s11 + $0x15] ss:$0 sm:$0xff] }
0x4540   : > { %v17960_v54 = vpop.eup %17959 }
0x4541   : > { %v10424_v55 = vmul.f32 %v17960_v54, %v10414_v53 }
0x4543   : > { %v19357_v56 = vadd.f32 %v15493_v61, %v10424_v55 }
0x4545   : > { %17336 = vmatmul.mubr.msk.f32.vlgmr.msra.gmra.mxu0 %vm1034_vm0, %v19357_v56  ;;  %17358 = vmatmul.mubr.msk.f32.vlgmr.msra.gmra.mxu1 %vm1034_vm0, %v19357_v56 }
0x4546   : > { %17339 = vmatpush3.msra.mxu0 %v15504_v57  ;;  %17346 = vmatprep.mubr.msk.f32.mxu0 %vm18051_vm3, %v18050_v42 }
0x4547   : > { %17340 = vmatprep.subr.mxu0 %v18050_v42  ;;  %17367 = vmatprep.mubr.msk.f32.mxu1 %vm18051_vm3, %v18050_v42 }
0x4548   : > { %17341 = vmatpush3.msra.mxu0 %v15503_v12 }
0x4549   : > { %17342 = vmatprep.subr.mxu0 %v18050_v42 }
0x454a   : > { %17343 = vmatpush3.msra.mxu0 %v15502_v11 }
0x454b   : > { %17344 = vmatprep.subr.mxu0 %v18050_v42 }
0x454c   : > { %17345 = vmatpush3.msra.mxu0 %v15501_v48 }
0x454d   : > { %17347 = vmatmul.mubr.msk.f32.vlgmr.msra.gmra.mxu0 %vm1034_vm0, %v19357_v56  ;;  %17360 = vmatprep.subr.mxu0 %v18050_v42 }
0x454e   : > { %17362 = vmatprep.mubr.msk.f32.mxu0 %vm18051_vm3, %v18050_v42 }
0x4605   : > { %v10514_v58 = vpop.f32.mrf.mxu0  ;;  %v10680_v59 = vpop.f32.mrf.mxu1 }
0x4606   : > { %v10681_v49 = vadd.f32 %v15513_v13, %v10680_v59  ;;  %v10515_v14 = vadd.f32 %v15499_v6, %v10514_v58  ;;  %v15518_v6 = vld [vmem:[%s19893_s18 + $0x20] sm:$0xff] }
0x4607   : > { %v17337_v63 = vpop.f32.mrf.mxu0  ;;  %v17359_v4 = vpop.f32.mrf.mxu1 }
0x4608   : > { %17366 = vmatpush3.msra.mxu1 %v10681_v49  ;;  %v15543_v63 = vld [vmem:[%s19893_s18 + $0x28] sm:$0xff] }
0x4609   : > { %17381 = vmatprep.subr.mxu1 %v18050_v42 }
0x460d   : > { %v10597_v0 = vpop.f32.mrf.mxu0 }
0x460e   : > { %v10598_v7 = vadd.f32 %v15506_v5, %v10597_v0 }
0x460f   : > { %v17348_v8 = vpop.f32.mrf.mxu0 }
0x4610   : > { %17361 = vmatpush3.xpose.msk.msra.mxu0 %vm1362_vm6, %v10598_v7  ;;  %v15556_v7 = vld [vmem:[%s19889_s7 + $0x1d8] sm:$0xff]  ;;  %v15555_v8 = vld [vmem:[%s19889_s7 + $0x1d0] sm:$0xff] }
0x4611   : > { %17370 = vmatprep.subr.mxu0 %v18050_v42 }
0x4613   : > { %17363 = vmatmul.mubr.msk.f32.vlgmr.msra.gmra.mxu0 %vm1362_vm6, %v10515_v14  ;;  %v15554_v14 = vld [vmem:[%s19889_s7 + $0x1c8] sm:$0xff] }
0x4614   : > { %17371 = vmatpush3.msra.mxu0 %v15522_v16  ;;  %17378 = vmatprep.mubr.msk.f32.mxu0 %vm18051_vm3, %v18050_v42  ;;  %v15553_v16 = vld [vmem:[%s19889_s7 + $0x1c0] sm:$0xff] }
0x4615   : > { %17372 = vmatprep.subr.mxu0 %v18050_v42 }
0x4616   : > { %17373 = vmatpush3.msra.mxu0 %v15521_v1  ;;  %v15549_v1 = vld [vmem:[%s19889_s7 + $0xd8] sm:$0xff] }
0x4617   : > { %17374 = vmatprep.subr.mxu0 %v18050_v42 }
0x4618   : > { %17375 = vmatpush3.msra.mxu0 %v15520_v28 }
0x4619   : > { %17376 = vmatprep.subr.mxu0 %v18050_v42 }
0x461a   : > { %17377 = vmatpush3.msra.mxu0 %v15519_v17  ;;  %v15548_v17 = vld [vmem:[%s19889_s7 + $0xd0] sm:$0xff] }
0x461b   : > { %17379 = vmatmul.mubr.msk.f32.vlgmr.msra.gmra.mxu0 %vm1034_vm0, %v19357_v56  ;;  %17392 = vmatprep.subr.mxu0 %v18050_v42 }
0x461c   : > { %17393 = vmatpush3.msra.mxu0 %v15536_v18  ;;  %17400 = vmatprep.mubr.msk.f32.mxu0 %vm18051_vm3, %v18050_v42 }
0x461d   : > { %17394 = vmatprep.subr.mxu0 %v18050_v42 }
0x461e   : > { %17395 = vmatpush3.msra.mxu0 %v15535_v38  ;;  %v15547_v38 = vld [vmem:[%s19889_s7 + $0xc8] sm:$0xff] }
0x461f   : > { %17396 = vmatprep.subr.mxu0 %v18050_v42 }
0x4620   : > { %17397 = vmatpush3.msra.mxu0 %v15534_v19 }
0x4621   : > { %17398 = vmatprep.subr.mxu0 %v18050_v42 }
0x4622   : > { %17399 = vmatpush3.msra.mxu0 %v15533_v20  ;;  %v15546_v20 = vld [vmem:[%s19889_s7 + $0xc0] sm:$0xff] }
0x4623   : > { %17401 = vmatmul.mubr.msk.f32.vlgmr.msra.gmra.mxu0 %vm1034_vm0, %v19357_v56  ;;  %17413 = vmatprep.subr.mxu0 %v18050_v42 }
0x4624   : > { %17415 = vmatprep.mubr.msk.f32.mxu0 %vm18051_vm3, %v18050_v42  ;;  %17414 = vmatpush3.msra.mxu0 %v15543_v63  ;;  %v15582_v63 = vld [vmem:[%s19889_s7 + $0x1f8] sm:$0xff] }
0x4625   : > { %17423 = vmatprep.subr.mxu0 %v18050_v42 }
0x46d3   : > { %v10756_v21 = vpop.f32.mrf.mxu0 }
0x46d4   : > { %v10760_v41 = vmul.f32 0.35355338, %v10756_v21 }
0x46d5   : > { %v17364_v9 = vpop.f32.mrf.mxu0 }
0x46d6   : > { %v10761_v22 = vsel %vm6485_vm4, -1e+09, %v10760_v41  ;;  %v15563_v41 = vld [vmem:[%s19889_s7 + $0x2d8] sm:$0xff]  ;;  %v15562_v9 = vld [vmem:[%s19889_s7 + $0x2d0] sm:$0xff] }
0x46d7   : > { %v10762_v26 = vsel %vm1362_vm6, %v10761_v22, -inf }
0x46d8   : > { %10763 = vmax.xlane.f32.xlu0 %v10762_v26  ;;  %v15561_v26 = vld [vmem:[%s19889_s7 + $0x2c8] sm:$0xff] }
0x46db   : > { %v10927_v60 = vpop.f32.mrf.mxu0 }
0x46dc   : > { %v10928_v53 = vadd.f32 %v15524_v45, %v10927_v60 }
0x46dd   : > { %v17380_v29 = vpop.f32.mrf.mxu0 }
0x46e3   : > { %v11093_v30 = vpop.f32.mrf.mxu0 }
0x46e4   : > { %v11094_v54 = vadd.f32 %v15538_v47, %v11093_v30  ;;  %v15560_v30 = vld [vmem:[%s19889_s7 + $0x2c0] sm:$0xff] }
0x46e5   : > { %v17402_v31 = vpop.f32.mrf.mxu0 }
0x4761   : > { %v10764_v15 = vpop.xlane.xlu0 %10763 }
0x4762   : > { %v10765_v32 = vsub.f32 %v10761_v22, %v10764_v15  ;;  %v15558_v22 = vld [vmem:[%s19891_s11 + $0xe] ss:$0 sm:$0xff] }
0x4764   : > { %v10766_v33 = vmul.f32 1.442695, %v10765_v32 }
0x4766   : > { %17961 = vpow2.f32 %v10766_v33  ;;  %v15551_v33 = vld [vmem:[%s19891_s11 + $0x6] ss:$0 sm:$0xff] }
0x4773   : > { %v17962_v36 = vpop.eup %17961 }
0x4774   : > { %v10768_v37 = vsel %vm1362_vm6, %v17962_v36, 0.0 }
0x4775   : > { %10769 = vadd.xlane.f32.xlu1 %v10768_v37 }
0x47fe   : > { %v10770_v39 = vpop.xlane.xlu1 %10769 }
0x47ff   : > { %17963 = vrcp.f32 %v10770_v39 }
0x480c   : > { %v17964_v24 = vpop.eup %17963 }
0x480d   : > { %v10772_v10 = vmul.f32 %v17964_v24, %v17962_v36  ;;  %v15565_v24 = vld [vmem:[%s19891_s11 + $0x16] ss:$0 sm:$0xff] }
0x480f   : > { %17368 = vmatmul.mubr.msk.f32.vlgmr.msra.gmra.mxu1 %vm1362_vm6, %v10772_v10 }
0x4810   : > { %17382 = vmatpush3.msra.mxu1 %v15529_v62  ;;  %17389 = vmatprep.mubr.msk.f32.mxu1 %vm18051_vm3, %v18050_v42 }
0x4811   : > { %17383 = vmatprep.subr.mxu1 %v18050_v42 }
0x4812   : > { %17384 = vmatpush3.msra.mxu1 %v15528_v50 }
0x4813   : > { %17385 = vmatprep.subr.mxu1 %v18050_v42 }
0x4814   : > { %17386 = vmatpush3.msra.mxu1 %v15527_v2 }
0x4815   : > { %17387 = vmatprep.subr.mxu1 %v18050_v42 }
0x4816   : > { %17388 = vmatpush3.msra.mxu1 %v15526_v43 }
0x4817   : > { %17390 = vmatmul.mubr.msk.f32.vlgmr.msra.gmra.mxu1 %vm1034_vm0, %v19357_v56  ;;  %17403 = vmatprep.subr.mxu1 %v18050_v42 }
0x4818   : > { %17405 = vmatprep.mubr.msk.f32.mxu1 %vm18051_vm3, %v18050_v42 }
0x48cf   : > { %v10842_v44 = vpop.f32.mrf.mxu1 }
0x48d1   : > { %v17369_v27 = vpop.f32.mrf.mxu1 }
0x48d7   : > { %v11010_v34 = vpop.f32.mrf.mxu1 }
0x48d8   : > { %v11011_v40 = vadd.f32 %v15531_v46, %v11010_v34 }
0x48d9   : > { %v17391_v51 = vpop.f32.mrf.mxu1 }
0x48da   : > { %17404 = vmatpush3.xpose.msk.msra.mxu1 %vm1362_vm6, %v11011_v40 }
0x48db   : > { %17408 = vmatprep.subr.mxu1 %v18050_v42 }
0x48dd   : > { %17406 = vmatmul.mubr.msk.f32.vlgmr.msra.gmra.mxu1 %vm1362_vm6, %v10928_v53  ;;  %v15570_v53 = vld [vmem:[%s19893_s18 + $0x30] sm:$0xff] }
0x48de   : > { %17409 = vmatpush3.msra.mxu1 %v11094_v54  ;;  %17410 = vmatprep.mubr.msk.f32.mxu1 %vm18051_vm3, %v18050_v42 }
0x48df   : > { %17418 = vmatprep.subr.mxu1 %v18050_v42 }
0x499d   : > { %v11169_v61 = vpop.f32.mrf.mxu1 }
0x499e   : > { %v11173_v55 = vmul.f32 0.35355338, %v11169_v61 }
0x499f   : > { %v17407_v57 = vpop.f32.mrf.mxu1 }
0x49a0   : > { %v11174_v12 = vsel %vm6485_vm4, -1e+09, %v11173_v55  ;;  %v15575_v57 = vld [vmem:[%s19889_s7 + $0xf8] sm:$0xff] }
0x49a1   : > { %v11175_v11 = vsel %vm1362_vm6, %v11174_v12, -inf }
0x49a2   : > { %11176 = vmax.xlane.f32.xlu0 %v11175_v11  ;;  %v15573_v11 = vld [vmem:[%s19889_s7 + $0xe8] sm:$0xff] }
0x4a2b   : > { %v11177_v48 = vpop.xlane.xlu0 %11176 }
0x4a2c   : > { %v11178_v13 = vsub.f32 %v11174_v12, %v11177_v48  ;;  %v15574_v12 = vld [vmem:[%s19889_s7 + $0xf0] sm:$0xff]  ;;  %v15572_v48 = vld [vmem:[%s19889_s7 + $0xe0] sm:$0xff] }
0x4a2e   : > { %v11179_v58 = vmul.f32 1.442695, %v11178_v13  ;;  %v15589_v13 = vld [vmem:[%s19889_s7 + $0x2f8] sm:$0xff] }
0x4a30   : > { %17965 = vpow2.f32 %v11179_v58  ;;  %v15588_v58 = vld [vmem:[%s19889_s7 + $0x2f0] sm:$0xff] }
0x4a3d   : > { %v17966_v59 = vpop.eup %17965 }
0x4a3e   : > { %v11181_v49 = vsel %vm1362_vm6, %v17966_v59, 0.0 }
0x4a3f   : > { %11182 = vadd.xlane.f32.xlu1 %v11181_v49  ;;  %v15586_v49 = vld [vmem:[%s19889_s7 + $0x2e0] sm:$0xff] }
0x4ac8   : > { %v11183_v4 = vpop.xlane.xlu1 %11182 }
0x4ac9   : > { %17967 = vrcp.f32 %v11183_v4 }
0x4ad6   : > { %v17968_v5 = vpop.eup %17967 }
0x4ad7   : > { %v11185_v0 = vmul.f32 %v17968_v5, %v17966_v59  ;;  %v15587_v59 = vld [vmem:[%s19889_s7 + $0x2e8] sm:$0xff]  ;;  %v15581_v5 = vld [vmem:[%s19889_s7 + $0x1f0] sm:$0xff] }
0x4ad9   : > { %17411 = vmatmul.mubr.msk.f32.vlgmr.msra.gmra.mxu1 %vm1362_vm6, %v11185_v0 }
0x4ada   : > { %17419 = vmatpush3.msra.mxu1 %v15518_v6  ;;  %17420 = vmatprep.mubr.msk.f32.mxu1 %vm18051_vm3, %v18050_v42  ;;  %v15580_v6 = vld [vmem:[%s19889_s7 + $0x1e8] sm:$0xff] }
0x4adb   : > { %17434 = vmatprep.subr.mxu1 %v18050_v42 }
0x4add   : > { %17421 = vmatmul.mubr.msk.f32.vlgmr.msra.gmra.mxu1 %vm1362_vm6, %v10842_v44 }
0x4ade   : > { %17435 = vmatpush3.msra.mxu1 %v15556_v7  ;;  %17442 = vmatprep.mubr.msk.f32.mxu1 %vm18051_vm3, %v18050_v42  ;;  %v15579_v7 = vld [vmem:[%s19889_s7 + $0x1e0] sm:$0xff] }
0x4adf   : > { %17436 = vmatprep.subr.mxu1 %v18050_v42 }
0x4ae0   : > { %17437 = vmatpush3.msra.mxu1 %v15555_v8 }
0x4ae1   : > { %17438 = vmatprep.subr.mxu1 %v18050_v42 }
0x4ae2   : > { %17439 = vmatpush3.msra.mxu1 %v15554_v14 }
0x4ae3   : > { %17440 = vmatprep.subr.mxu1 %v18050_v42 }
0x4ae4   : > { %17441 = vmatpush3.msra.mxu1 %v15553_v16 }
0x4ae5   : > { %17443 = vmatmul.mubr.msk.f32.vlgmr.msra.gmra.mxu1 %vm1034_vm0, %v19357_v56  ;;  %17456 = vmatprep.subr.mxu1 %v18050_v42 }
0x4ae6   : > { %17458 = vmatprep.mubr.msk.f32.mxu1 %vm18051_vm3, %v18050_v42 }
0x4b99   : > { %v11255_v28 = vpop.f32.mrf.mxu1 }
0x4b9a   : > { %17416 = vmatmul.mubr.msk.f32.vlgmr.msra.gmra.mxu0 %vm1362_vm6, %v11255_v28 }
0x4b9b   : > { %17424 = vmatpush3.msra.mxu0 %v15549_v1  ;;  %v17412_v18 = vpop.f32.mrf.mxu1  ;;  %17431 = vmatprep.mubr.msk.f32.mxu0 %vm18051_vm3, %v18050_v42 }
0x4b9c   : > { %17425 = vmatprep.subr.mxu0 %v18050_v42 }
0x4b9d   : > { %17426 = vmatpush3.msra.mxu0 %v15548_v17  ;;  %v19473_v19 = vpop.f32.mrf.mxu1 }
0x4b9e   : > { %17427 = vmatprep.subr.mxu0 %v18050_v42 }
0x4b9f   : > { %17428 = vmatpush3.msra.mxu0 %v15547_v38  ;;  %v17422_v21 = vpop.f32.mrf.mxu1 }
0x4ba0   : > { %17429 = vmatprep.subr.mxu0 %v18050_v42 }
0x4ba1   : > { %17430 = vmatpush3.msra.mxu0 %v15546_v20  ;;  %v15584_v20 = vld [vmem:[%s19891_s11 + $0xf] ss:$0 sm:$0xff] }
0x4ba2   : > { %17432 = vmatmul.mubr.msk.f32.vlgmr.msra.gmra.mxu0 %vm1034_vm0, %v19357_v56  ;;  %17445 = vmatprep.subr.mxu0 %v18050_v42 }
0x4ba3   : > { %17446 = vmatpush3.msra.mxu0 %v15563_v41  ;;  %17453 = vmatprep.mubr.msk.f32.mxu0 %vm18051_vm3, %v18050_v42  ;;  %v15577_v41 = vld [vmem:[%s19891_s11 + $0x7] ss:$0 sm:$0xff] }
0x4ba4   : > { %17447 = vmatprep.subr.mxu0 %v18050_v42 }
0x4ba5   : > { %v11569_v60 = vpop.f32.mrf.mxu1  ;;  %17448 = vmatpush3.msra.mxu0 %v15562_v9 }
0x4ba6   : > { %v11570_v29 = vadd.f32 %v15558_v22, %v11569_v60  ;;  %17449 = vmatprep.subr.mxu0 %v18050_v42  ;;  %v15591_v22 = vld [vmem:[%s19891_s11 + $0x17] ss:$0 sm:$0xff] }
0x4ba7   : > { %v17444_v31 = vpop.f32.mrf.mxu1  ;;  %17450 = vmatpush3.msra.mxu0 %v15561_v26 }
0x4ba8   : > { %17451 = vmatprep.subr.mxu0 %v18050_v42  ;;  %17457 = vmatpush3.xpose.msk.msra.mxu1 %vm1362_vm6, %v11570_v29 }
0x4ba9   : > { %17452 = vmatpush3.msra.mxu0 %v15560_v30  ;;  %17461 = vmatprep.subr.mxu1 %v18050_v42 }
0x4baa   : > { %17454 = vmatmul.mubr.msk.f32.vlgmr.msra.gmra.mxu0 %vm1034_vm0, %v19357_v56  ;;  %17466 = vmatprep.subr.mxu0 %v18050_v42 }
0x4bab   : > { %17468 = vmatprep.mubr.msk.f32.mxu0 %vm18051_vm3, %v18050_v42  ;;  %17467 = vmatpush3.msra.mxu0 %v15570_v53 }
0x4bac   : > { %17482 = vmatprep.subr.mxu0 %v18050_v42 }
0x4c5a   : > { %v19498_v15 = vpop.f32.mrf.mxu0 }
0x4c5b   : > { %v11404_v28 = vadd.f32 %v19473_v19, %v19498_v15 }
0x4c5c   : > { %v17417_v32 = vpop.f32.mrf.mxu0 }
0x4c62   : > { %v11486_v36 = vpop.f32.mrf.mxu0 }
0x4c63   : > { %v11487_v37 = vadd.f32 %v15551_v33, %v11486_v36 }
0x4c64   : > { %v17433_v39 = vpop.f32.mrf.mxu0 }
0x4c65   : > { %17459 = vmatmul.mubr.msk.f32.vlgmr.msra.gmra.mxu1 %vm1362_vm6, %v11487_v37 }
0x4c66   : > { %17463 = vmatprep.mubr.msk.f32.mxu1 %vm18051_vm3, %v18050_v42 }
0x4c6a   : > { %v11652_v10 = vpop.f32.mrf.mxu0 }
0x4c6b   : > { %v11653_v62 = vadd.f32 %v15565_v24, %v11652_v10  ;;  %v15596_v24 = vld [vmem:[%s19893_s18 + $0x38] sm:$0xff] }
0x4c6c   : > { %v17455_v50 = vpop.f32.mrf.mxu0 }
0x4c6d   : > { %17462 = vmatpush3.msra.mxu1 %v11653_v62  ;;  %v15614_v50 = vld [vmem:[%s19889_s7 + $0x498] sm:$0xff] }
0x4c6e   : > { %17471 = vmatprep.subr.mxu1 %v18050_v42 }
0x4d25   : > { %v11728_v2 = vpop.f32.mrf.mxu1 }
0x4d26   : > { %v11732_v43 = vmul.f32 0.35355338, %v11728_v2 }
0x4d27   : > { %v17460_v44 = vpop.f32.mrf.mxu1 }
0x4d28   : > { %v11733_v27 = vsel %vm6485_vm4, -1e+09, %v11732_v43  ;;  %v15613_v43 = vld [vmem:[%s19889_s7 + $0x490] sm:$0xff] }
0x4d29   : > { %v11734_v46 = vsel %vm1362_vm6, %v11733_v27, -inf }
0x4d2a   : > { %11735 = vmax.xlane.f32.xlu0 %v11734_v46  ;;  %v15611_v46 = vld [vmem:[%s19889_s7 + $0x480] sm:$0xff] }
0x4db3   : > { %v11736_v34 = vpop.xlane.xlu0 %11735 }
0x4db4   : > { %v11737_v45 = vsub.f32 %v11733_v27, %v11736_v34  ;;  %v15612_v27 = vld [vmem:[%s19889_s7 + $0x488] sm:$0xff] }
0x4db6   : > { %v11738_v40 = vmul.f32 1.442695, %v11737_v45  ;;  %v15599_v45 = vld [vmem:[%s19896_s26 + $0x1] ss:$0 sm:$0xff] }
0x4db8   : > { %17969 = vpow2.f32 %v11738_v40 }
0x4dc5   : > { %v17970_v47 = vpop.eup %17969 }
0x4dc6   : > { %v11740_v51 = vsel %vm1362_vm6, %v17970_v47, 0.0 }
0x4dc7   : > { %11741 = vadd.xlane.f32.xlu1 %v11740_v51 }
0x4e50   : > { %v11742_v54 = vpop.xlane.xlu1 %11741 }
0x4e51   : > { %17971 = vrcp.f32 %v11742_v54  ;;  %v15616_v54 = vld [vmem:[%s19891_s11 + $0x24] ss:$0 sm:$0xff] }
0x4e5e   : > { %v17972_v61 = vpop.eup %17971 }
0x4e5f   : > { %v11744_v55 = vmul.f32 %v17972_v61, %v17970_v47 }
0x4e61   : > { %17464 = vmatmul.mubr.msk.f32.vlgmr.msra.gmra.mxu1 %vm1362_vm6, %v11744_v55 }
0x4e62   : > { %17472 = vmatpush3.msra.mxu1 %v15575_v57  ;;  %17479 = vmatprep.mubr.msk.f32.mxu1 %vm18051_vm3, %v18050_v42 }
0x4e63   : > { %17473 = vmatprep.subr.mxu1 %v18050_v42 }
0x4e64   : > { %17474 = vmatpush3.msra.mxu1 %v15574_v12 }
0x4e65   : > { %17475 = vmatprep.subr.mxu1 %v18050_v42 }
0x4e66   : > { %17476 = vmatpush3.msra.mxu1 %v15573_v11 }
0x4e67   : > { %17477 = vmatprep.subr.mxu1 %v18050_v42 }
0x4e68   : > { %17478 = vmatpush3.msra.mxu1 %v15572_v48 }
0x4e69   : > { %17480 = vmatmul.mubr.msk.f32.vlgmr.msra.gmra.mxu1 %vm1034_vm0, %v19357_v56  ;;  %17493 = vmatprep.subr.mxu1 %v18050_v42 }
0x4e6a   : > { %17494 = vmatpush3.msra.mxu1 %v15589_v13  ;;  %17501 = vmatprep.mubr.msk.f32.mxu1 %vm18051_vm3, %v18050_v42 }
0x4e6b   : > { %17495 = vmatprep.subr.mxu1 %v18050_v42 }
0x4e6c   : > { %17496 = vmatpush3.msra.mxu1 %v15588_v58 }
0x4e6d   : > { %17497 = vmatprep.subr.mxu1 %v18050_v42 }
0x4e6e   : > { %17498 = vmatpush3.msra.mxu1 %v15587_v59 }
0x4e6f   : > { %17499 = vmatprep.subr.mxu1 %v18050_v42 }
0x4e70   : > { %17500 = vmatpush3.msra.mxu1 %v15586_v49  ;;  %v15607_v49 = vld [vmem:[%s19889_s7 + $0x398] sm:$0xff] }
0x4e71   : > { %17502 = vmatmul.mubr.msk.f32.vlgmr.msra.gmra.mxu1 %vm1034_vm0, %v19357_v56  ;;  %17514 = vmatprep.subr.mxu1 %v18050_v42 }
0x4e72   : > { %17516 = vmatprep.mubr.msk.f32.mxu1 %vm18051_vm3, %v18050_v42  ;;  %17515 = vmatpush3.msra.mxu1 %v15596_v24  ;;  %v15651_v24 = vld [vmem:[%s19889_s7 + $0x5b8] sm:$0xff] }
0x4e73   : > { %17530 = vmatprep.subr.mxu1 %v15614_v50 }
0x4f21   : > { %v11814_v4 = vpop.f32.mrf.mxu1 }
0x4f22   : > { %17469 = vmatmul.mubr.msk.f32.vlgmr.msra.gmra.mxu0 %vm1362_vm6, %v11814_v4  ;;  %v15605_v4 = vld [vmem:[%s19889_s7 + $0x388] sm:$0xff] }
0x4f23   : > { %17483 = vmatpush3.msra.mxu0 %v15582_v63  ;;  %v17465_v0 = vpop.f32.mrf.mxu1  ;;  %17490 = vmatprep.mubr.msk.f32.mxu0 %vm18051_vm3, %v18050_v42  ;;  %v15606_v63 = vld [vmem:[%s19889_s7 + $0x390] sm:$0xff] }
0x4f24   : > { %17484 = vmatprep.subr.mxu0 %v18050_v42  ;;  %v15622_v0 = vld [vmem:[%s19889_s7 + $0x598] sm:$0xff] }
0x4f25   : > { %17485 = vmatpush3.msra.mxu0 %v15581_v5  ;;  %v15604_v5 = vld [vmem:[%s19889_s7 + $0x380] sm:$0xff] }
0x4f26   : > { %17486 = vmatprep.subr.mxu0 %v18050_v42 }
0x4f27   : > { %17487 = vmatpush3.msra.mxu0 %v15580_v6 }
0x4f28   : > { %17488 = vmatprep.subr.mxu0 %v18050_v42 }
0x4f29   : > { %v11973_v8 = vpop.f32.mrf.mxu1  ;;  %17489 = vmatpush3.msra.mxu0 %v15579_v7 }
0x4f2a   : > { %17491 = vmatmul.mubr.msk.f32.vlgmr.msra.gmra.mxu0 %vm1034_vm0, %v19357_v56  ;;  %17504 = vmatprep.subr.mxu0 %v18050_v42  ;;  %v11974_v26 = vadd.f32 %v15577_v41, %v11973_v8 }
0x4f2b   : > { %v17481_v14 = vpop.f32.mrf.mxu1  ;;  %17506 = vmatprep.mubr.msk.f32.mxu0 %vm18051_vm3, %v18050_v42 }
0x4f31   : > { %v12139_v16 = vpop.f32.mrf.mxu1 }
0x4f32   : > { %v12140_v60 = vadd.f32 %v15591_v22, %v12139_v16  ;;  %v15621_v22 = vld [vmem:[%s19889_s7 + $0x590] sm:$0xff] }
0x4f33   : > { %v17503_v1 = vpop.f32.mrf.mxu1 }
0x4fe2   : > { %v11889_v17 = vpop.f32.mrf.mxu0 }
0x4fe3   : > { %v11893_v18 = vadd.f32 %v11889_v17, %v11404_v28 }
0x4fe4   : > { %v17470_v38 = vpop.f32.mrf.mxu0 }
0x4fea   : > { %v12056_v21 = vpop.f32.mrf.mxu0 }
0x4feb   : > { %v12057_v9 = vadd.f32 %v15584_v20, %v12056_v21  ;;  %v15603_v21 = vld [vmem:[%s19890_s10 + $0x4] ss:$0 sm:$0xff] }
0x4fec   : > { %v17492_v56 = vpop.f32.mrf.mxu0 }
0x4fed   : > { %17505 = vmatpush3.xpose.msk.msra.mxu0 %vm1362_vm6, %v12057_v9  ;;  %v15620_v56 = vld [vmem:[%s19889_s7 + $0x588] sm:$0xff] }
0x4fee   : > { %17509 = vmatprep.subr.mxu0 %v18050_v42 }
0x4ff0   : > { %17507 = vmatmul.mubr.msk.f32.vlgmr.msra.gmra.mxu0 %vm1362_vm6, %v11974_v26  ;;  %v15619_v26 = vld [vmem:[%s19889_s7 + $0x580] sm:$0xff] }
0x4ff1   : > { %17510 = vmatpush3.msra.mxu0 %v12140_v60  ;;  %17511 = vmatprep.mubr.msk.f32.mxu0 %vm18051_vm3, %v18050_v42  ;;  %v15609_v60 = vld [vmem:[%s19891_s11 + $0x1c] ss:$0 sm:$0xff] }
0x4ff2   : > { %17519 = vmatprep.subr.mxu0 %v18050_v42 }
0x50b0   : > { %v12215_v19 = vpop.f32.mrf.mxu0 }
0x50b1   : > { %v12219_v29 = vmul.f32 0.35355338, %v12215_v19 }
0x50b2   : > { %v17508_v30 = vpop.f32.mrf.mxu0 }
0x50b3   : > { %v12220_v31 = vsel %vm6485_vm4, -1e+09, %v12219_v29  ;;  %v15636_v30 = vld [vmem:[%s19889_s7 + $0x3b8] sm:$0xff] }
0x50b4   : > { %v12221_v15 = vsel %vm1362_vm6, %v12220_v31, -inf }
0x50b5   : > { %12222 = vmax.xlane.f32.xlu0 %v12221_v15  ;;  %v15635_v15 = vld [vmem:[%s19889_s7 + $0x3b0] sm:$0xff] }
0x513e   : > { %v12223_v32 = vpop.xlane.xlu0 %12222 }
0x513f   : > { %v12224_v33 = vsub.f32 %v12220_v31, %v12223_v32  ;;  %v15634_v32 = vld [vmem:[%s19889_s7 + $0x3a8] sm:$0xff] }
0x5141   : > { %v12225_v36 = vmul.f32 1.442695, %v12224_v33  ;;  %v15624_v33 = vld [vmem:[%s19891_s11 + $0x2c] ss:$0 sm:$0xff] }
0x5143   : > { %17973 = vpow2.f32 %v12225_v36  ;;  %v15633_v36 = vld [vmem:[%s19889_s7 + $0x3a0] sm:$0xff] }
0x5150   : > { %v17974_v37 = vpop.eup %17973 }
0x5151   : > { %v12227_v39 = vsel %vm1362_vm6, %v17974_v37, 0.0 }
0x5152   : > { %12228 = vadd.xlane.f32.xlu1 %v12227_v39 }
0x51db   : > { %v12229_v10 = vpop.xlane.xlu1 %12228 }
0x51dc   : > { %17975 = vrcp.f32 %v12229_v10 }
0x51e9   : > { %v17976_v3 = vpop.eup %17975 }
0x51ea   : > { %v12231_v62 = vmul.f32 %v17976_v3, %v17974_v37 }
0x51ec   : > { %17512 = vmatmul.mubr.msk.f32.vlgmr.msra.gmra.mxu0 %vm1362_vm6, %v12231_v62  ;;  %v15650_v62 = vld [vmem:[%s19889_s7 + $0x5b0] sm:$0xff] }
0x51ed   : > { %17527 = vmatprep.mubr.msk.f32.mxu0 %vm18051_vm3, %v18050_v42  ;;  %17520 = vmatpush3.msra.mxu0 %v15607_v49 }
0x51ee   : > { %17521 = vmatprep.subr.mxu0 %v18050_v42 }
0x51ef   : > { %17522 = vmatpush3.msra.mxu0 %v15606_v63  ;;  %v15642_v63 = vld [vmem:[%s19889_s7 + $0x4b0] sm:$0xff] }
0x51f0   : > { %17523 = vmatprep.subr.mxu0 %v18050_v42 }
0x51f1   : > { %17524 = vmatpush3.msra.mxu0 %v15605_v4  ;;  %v15641_v4 = vld [vmem:[%s19889_s7 + $0x4a8] sm:$0xff] }
0x51f2   : > { %17525 = vmatprep.subr.mxu0 %v18050_v42 }
0x51f3   : > { %17526 = vmatpush3.msra.mxu0 %v15604_v5  ;;  %v15640_v5 = vld [vmem:[%s19889_s7 + $0x4a0] sm:$0xff] }
0x51f4   : > { %17541 = vmatprep.subr.mxu0 %v15622_v0 }
0x52ac   : > { %v12301_v2 = vpop.f32.mrf.mxu0 }
0x52ad   : > { %17517 = vmatmul.mubr.msk.f32.vlgmr.msra.gmra.mxu1 %vm1362_vm6, %v12301_v2  ;;  %v15648_v2 = vld [vmem:[%s19889_s7 + $0x5a0] sm:$0xff] }
0x52ae   : > { %17531 = vmatpush3.msra.mxu1 %v15614_v50  ;;  %v17513_v44 = vpop.f32.mrf.mxu0  ;;  %17538 = vmatprep.mubr.msk.f32.mxu1 %vm1034_vm0, %v19045_v52  ;;  %v15649_v50 = vld [vmem:[%s19889_s7 + $0x5a8] sm:$0xff] }
0x52af   : > { %17532 = vmatprep.subr.mxu1 %v15613_v43 }
0x52b0   : > { %17533 = vmatpush3.msra.mxu1 %v15613_v43 }
0x52b1   : > { %17534 = vmatprep.subr.mxu1 %v15612_v27 }
0x52b2   : > { %17535 = vmatpush3.msra.mxu1 %v15612_v27 }
0x52b3   : > { %17536 = vmatprep.subr.mxu1 %v15611_v46 }
0x52b4   : > { %17537 = vmatpush3.msra.mxu1 %v15611_v46 }
0x52b5   : > { %17539 = vmatmul.mubr.msk.f32.vlgmr.msra.gmra.mxu1 %vm1034_vm0, %v19067_v23  ;;  %17552 = vmatprep.subr.mxu1 %v18050_v42 }
0x52b6   : > { %17556 = vmatprep.mubr.msk.f32.mxu1 %vm18051_vm3, %v18050_v42 }
0x536d   : > { %v12376_v34 = vpop.f32.mrf.mxu1 }
0x536e   : > { %v12380_v40 = vadd.f32 %v12376_v34, %v11893_v18  ;;  %v15602_v18 = vld [vmem:[%s18165_s17 + $0x4] ss:$0 sm:$0xff] }
0x536f   : > { %v17518_v47 = vpop.f32.mrf.mxu1 }
0x5370   : > { %v12389_v51 = vadd.f32 %v15599_v45, %v12380_v40  ;;  %v15653_v47 = vld [vmem:[%s19891_s11 + $0x2d] ss:$0 sm:$0xff] }
0x5372   : > { %v19587_v53 = vadd.f32 %v12389_v51, %v19333_v35 }
0x5374   : > { %v12395_v61 = vsel %vm1034_vm0, %v19587_v53, 0.0 }
0x5375   : > { %v17540_v55 = vpop.f32.mrf.mxu1  ;;  %12396 = vadd.xlane.f32.xlu0 %v12395_v61 }
0x5376   : > { %v12600_v57 = vadd.f32 %v17540_v55, %v15616_v54 }
0x5377   : > { %v12594_v12 = vpop.f32.mrf.mxu1 }
0x5378   : > { %17553 = vmatpush3.xpose.msk.msra.mxu1 %vm1362_vm6, %v12600_v57  ;;  %v12595_v11 = vadd.f32 %v15616_v54, %v12594_v12 }
0x5379   : > { %17554 = vmatprep.subr.mxu1 %v18050_v42 }
0x537c   : > { %17555 = vmatpush3.xpose.msk.msra.mxu1 %vm1362_vm6, %v12595_v11 }
0x537d   : > { %17566 = vmatprep.subr.mxu1 %v18050_v42 }
0x53fe   : > { %v12397_v35 = vpop.xlane.xlu0 %12396 }
0x53ff   : > { %v12398_v48 = vmul.f32 0.03125, %v12397_v35 }
0x5401   : > { %v12399_v13 = vsub.f32 %v19587_v53, %v12398_v48 }
0x5403   : > { %v12400_v58 = vmul.f32 %v12399_v13, %v12399_v13  ;;  %v12411_v38 = vmul.f32 %v15602_v18, %v12399_v13  ;;  %v15643_v13 = vld [vmem:[%s19889_s7 + $0x4b8] sm:$0xff] }
0x5405   : > { %v12401_v59 = vsel %vm1034_vm0, %v12400_v58, 0.0 }
0x5406   : > { %12402 = vadd.xlane.f32.xlu1 %v12401_v59 }
0x548f   : > { %v12403_v6 = vpop.xlane.xlu1 %12402 }
0x5490   : > { %v12404_v7 = vmul.f32 0.032258064, %v12403_v6 }
0x5492   : > { %17977 = vrsqrt.f32 %v12404_v7  ;;  %vm12414_vm4 = vcmp.eq.f32.partialorder %v12404_v7, inf  ;;  %v12417_v16 = vand.u32 2147483648, %v12404_v7  ;;  %vm12416_vm1 = vcmp.eq.f32.partialorder %v12404_v7, 0.0 }
0x549f   : > { %v17978_v8 = vpop.eup %17977 }
0x54a0   : > { %v12413_v14 = vmul.f32 %v17978_v8, %v12404_v7 }
0x54a2   : > { %v12415_v1 = vsel %vm12414_vm4, %v12404_v7, %v12413_v14  ;;  %v15645_v7 = vld [vmem:[%s19891_s11 + $0x25] ss:$0 sm:$0xff] }
0x54a3   : > { %v12418_v28 = vsel %vm12416_vm1, %v12417_v16, %v12415_v1  ;;  %v15638_v1 = vld [vmem:[%s19891_s11 + $0x1d] ss:$0 sm:$0xff] }
0x54a4   : > { %v12419_v17 = vadd.f32 1e-06, %v12418_v28 }
0x54a6   : > { %17979 = vrcp.f32 %v12419_v17 }
0x54b3   : > { %v17980_v20 = vpop.eup %17979 }
0x54b4   : > { %v12421_v41 = vmul.f32 %v17980_v20, %v12411_v38 }
0x54b6   : > { %v19608_v9 = vadd.f32 %v15603_v21, %v12421_v41 }
0x54b8   : > { %17528 = vmatmul.mubr.msk.f32.vlgmr.msra.gmra.mxu0 %vm1034_vm0, %v19608_v9 }
0x54b9   : > { %17542 = vmatpush3.msra.mxu0 %v15622_v0  ;;  %17549 = vmatprep.mubr.msk.f32.mxu0 %vm1034_vm0, %v19045_v52 }
0x54ba   : > { %17543 = vmatprep.subr.mxu0 %v15621_v22 }
0x54bb   : > { %17544 = vmatpush3.msra.mxu0 %v15621_v22 }
0x54bc   : > { %17545 = vmatprep.subr.mxu0 %v15620_v56 }
0x54bd   : > { %17546 = vmatpush3.msra.mxu0 %v15620_v56 }
0x54be   : > { %17547 = vmatprep.subr.mxu0 %v15619_v26 }
0x54bf   : > { %17548 = vmatpush3.msra.mxu0 %v15619_v26 }
0x54c0   : > { %17550 = vmatmul.mubr.msk.f32.vlgmr.msra.gmra.mxu0 %vm1034_vm0, %v19067_v23  ;;  %17559 = vmatprep.subr.mxu0 %v18050_v42 }
0x54c1   : > { %17563 = vmatprep.mubr.msk.f32.mxu0 %vm18051_vm3, %v18050_v42 }
0x5578   : > { %v12511_v19 = vpop.f32.mrf.mxu0 }
0x5579   : > { %v12512_v29 = vadd.f32 %v15609_v60, %v12511_v19 }
0x557a   : > { %v17529_v31 = vpop.f32.mrf.mxu0 }
0x557b   : > { %17557 = vmatmul.mubr.msk.f32.vlgmr.msra.gmra.mxu1 %vm1362_vm6, %v12512_v29  ;;  %v15661_v29 = vld [vmem:[%s19893_s18 + $0x68] sm:$0xff] }
0x557c   : > { %17567 = vmatpush3.msra.mxu1 %v15636_v30  ;;  %17574 = vmatprep.mubr.msk.f32.mxu1 %vm18051_vm3, %v18050_v42 }
0x557d   : > { %17568 = vmatprep.subr.mxu1 %v18050_v42 }
0x557e   : > { %17569 = vmatpush3.msra.mxu1 %v15635_v15 }
0x557f   : > { %17570 = vmatprep.subr.mxu1 %v18050_v42 }
0x5580   : > { %v17551_v37 = vpop.f32.mrf.mxu0  ;;  %17571 = vmatpush3.msra.mxu1 %v15634_v32  ;;  %v15632_v32 = vld [vmem:[%s19893_s18 + $0x60] sm:$0xff] }
0x5581   : > { %v12688_v39 = vadd.f32 %v17551_v37, %v15624_v33  ;;  %17572 = vmatprep.subr.mxu1 %v18050_v42  ;;  %v15672_v37 = vld [vmem:[%s19889_s7 + $0x4c8] sm:$0xff] }
0x5582   : > { %v12682_v10 = vpop.f32.mrf.mxu0  ;;  %17573 = vmatpush3.msra.mxu1 %v15633_v36  ;;  %v15673_v36 = vld [vmem:[%s19889_s7 + $0x4d0] sm:$0xff] }
0x5583   : > { %v12683_v3 = vadd.f32 %v15624_v33, %v12682_v10  ;;  %17560 = vmatpush3.msk.msra.mxu0 %vm1486_vm7, %v12688_v39  ;;  %17575 = vmatmul.mubr.msk.f32.vlgmr.msra.gmra.mxu1 %vm1034_vm0, %v19608_v9  ;;  %v15674_v33 = vld [vmem:[%s19889_s7 + $0x4d8] sm:$0xff]  ;;  %v15671_v39 = vld [vmem:[%s19889_s7 + $0x4c0] sm:$0xff] }
0x5584   : > { %17588 = vmatprep.subr.mxu1 %v15651_v24  ;;  %17561 = vmatprep.subr.mxu0 %v18050_v42 }
0x5585   : > { %17589 = vmatpush3.msra.mxu1 %v15651_v24  ;;  %17596 = vmatprep.mubr.msk.f32.mxu1 %vm1034_vm0, %v19045_v52  ;;  %v15667_v24 = vld [vmem:[%s19889_s7 + $0x3d8] sm:$0xff] }
0x5586   : > { %17562 = vmatpush3.msra.mxu0 %v12683_v3  ;;  %17590 = vmatprep.subr.mxu1 %v15650_v62  ;;  %v15666_v3 = vld [vmem:[%s19889_s7 + $0x3d0] sm:$0xff] }
0x5587   : > { %17591 = vmatpush3.msra.mxu1 %v15650_v62  ;;  %17577 = vmatprep.subr.mxu0 %v15643_v13 }
0x5588   : > { %17592 = vmatprep.subr.mxu1 %v15649_v50 }
0x5589   : > { %17593 = vmatpush3.msra.mxu1 %v15649_v50  ;;  %v15665_v50 = vld [vmem:[%s19889_s7 + $0x3c8] sm:$0xff] }
0x558a   : > { %17594 = vmatprep.subr.mxu1 %v15648_v2 }
0x558b   : > { %17595 = vmatpush3.msra.mxu1 %v15648_v2 }
0x558c   : > { %17597 = vmatmul.mubr.msk.f32.vlgmr.msra.gmra.mxu1 %vm1034_vm0, %v19067_v23  ;;  %17606 = vmatprep.subr.mxu1 %v18050_v42 }
0x558d   : > { %17610 = vmatprep.mubr.msk.f32.mxu1 %vm18051_vm3, %v18050_v42 }
0x563b   : > { %v12766_v43 = vpop.f32.mrf.mxu1 }
0x563c   : > { %v12770_v44 = vmul.f32 0.35355338, %v12766_v43  ;;  %v15664_v43 = vld [vmem:[%s19889_s7 + $0x3c0] sm:$0xff] }
0x563d   : > { %v17558_v27 = vpop.f32.mrf.mxu1 }
0x563e   : > { %v12771_v46 = vsel %vm8500_vm13, -1e+09, %v12770_v44  ;;  %v15682_v27 = vld [vmem:[%s19889_s7 + $0x5d8] sm:$0xff] }
0x563f   : > { %v12772_v34 = vsel %vm1456_vm11, %v12771_v46, -inf }
0x5640   : > { %12773 = vmax.xlane.f32.xlu0 %v12772_v34  ;;  %v15676_v34 = vld [vmem:[%s19891_s11 + $0x26] ss:$0 sm:$0xff] }
0x5643   : > { %v12940_v45 = vpop.f32.mrf.mxu1 }
0x5644   : > { %v12941_v17 = vadd.f32 %v15638_v1, %v12940_v45  ;;  %v15680_v45 = vld [vmem:[%s19889_s7 + $0x5c8] sm:$0xff] }
0x5645   : > { %v17576_v40 = vpop.f32.mrf.mxu1 }
0x564c   : > { %v17598_v51 = vpop.f32.mrf.mxu1 }
0x564d   : > { %v13117_v54 = vadd.f32 %v17598_v51, %v15653_v47 }
0x564e   : > { %v13111_v61 = vpop.f32.mrf.mxu1 }
0x564f   : > { %v13112_v55 = vadd.f32 %v15653_v47, %v13111_v61  ;;  %17607 = vmatpush3.msk.msra.mxu1 %vm1486_vm7, %v13117_v54  ;;  %v15679_v47 = vld [vmem:[%s19889_s7 + $0x5c0] sm:$0xff] }
0x5650   : > { %17608 = vmatprep.subr.mxu1 %v18050_v42 }
0x5651   : > { %17609 = vmatpush3.msra.mxu1 %v13112_v55 }
0x5652   : > { %17618 = vmatprep.subr.mxu1 %v18050_v42 }
0x56c9   : > { %v12774_v57 = vpop.xlane.xlu0 %12773 }
0x56ca   : > { %v12775_v12 = vsub.f32 %v12771_v46, %v12774_v57  ;;  %v15681_v46 = vld [vmem:[%s19889_s7 + $0x5d0] sm:$0xff] }
0x56cc   : > { %v12776_v11 = vmul.f32 1.442695, %v12775_v12  ;;  %v15669_v12 = vld [vmem:[%s19891_s11 + $0x1e] ss:$0 sm:$0xff] }
0x56ce   : > { %17981 = vpow2.f32 %v12776_v11 }
0x56db   : > { %v17982_v35 = vpop.eup %17981 }
0x56dc   : > { %v12778_v48 = vsel %vm1456_vm11, %v17982_v35, 0.0 }
0x56dd   : > { %12779 = vadd.xlane.f32.xlu1 %v12778_v48 }
0x5766   : > { %v12780_v58 = vpop.xlane.xlu1 %12779 }
0x5767   : > { %17983 = vrcp.f32 %v12780_v58 }
0x5774   : > { %v17984_v59 = vpop.eup %17983 }
0x5775   : > { %v12782_v49 = vmul.f32 %v17984_v59, %v17982_v35 }
0x5777   : > { %17564 = vmatmul.mubr.msk.f32.vlgmr.msra.gmra.mxu0 %vm1456_vm11, %v12782_v49 }
0x5778   : > { %17578 = vmatpush3.msra.mxu0 %v15643_v13  ;;  %17585 = vmatprep.mubr.msk.f32.mxu0 %vm1034_vm0, %v19045_v52  ;;  %v15684_v13 = vld [vmem:[%s19891_s11 + $0x2e] ss:$0 sm:$0xff] }
0x5779   : > { %17579 = vmatprep.subr.mxu0 %v15642_v63 }
0x577a   : > { %17580 = vmatpush3.msra.mxu0 %v15642_v63 }
0x577b   : > { %17581 = vmatprep.subr.mxu0 %v15641_v4 }
0x577c   : > { %17582 = vmatpush3.msra.mxu0 %v15641_v4 }
0x577d   : > { %17583 = vmatprep.subr.mxu0 %v15640_v5 }
0x577e   : > { %17584 = vmatpush3.msra.mxu0 %v15640_v5 }
0x577f   : > { %17586 = vmatmul.mubr.msk.f32.vlgmr.msra.gmra.mxu0 %vm1034_vm0, %v19067_v23  ;;  %17599 = vmatprep.subr.mxu0 %v18050_v42 }
0x5780   : > { %17603 = vmatprep.mubr.msk.f32.mxu0 %vm18051_vm3, %v18050_v42 }
0x5837   : > { %v12855_v0 = vpop.f32.mrf.mxu0 }
0x5839   : > { %v17565_v6 = vpop.f32.mrf.mxu0 }
0x583f   : > { %v17587_v8 = vpop.f32.mrf.mxu0 }
0x5840   : > { %v13029_v14 = vadd.f32 %v17587_v8, %v15645_v7 }
0x5841   : > { %v13023_v16 = vpop.f32.mrf.mxu0 }
0x5842   : > { %17600 = vmatpush3.xpose.msk.msra.mxu0 %vm1362_vm6, %v13029_v14  ;;  %v13024_v28 = vadd.f32 %v15645_v7, %v13023_v16 }
0x5843   : > { %17601 = vmatprep.subr.mxu0 %v18050_v42 }
0x5846   : > { %17602 = vmatpush3.xpose.msk.msra.mxu0 %vm1362_vm6, %v13024_v28 }
0x5847   : > { %17613 = vmatprep.subr.mxu0 %v18050_v42 }
0x5849   : > { %17604 = vmatmul.mubr.msk.f32.vlgmr.msra.gmra.mxu0 %vm1362_vm6, %v12941_v17  ;;  %v15692_v17 = vld [vmem:[%s19893_s18 + $0x70] sm:$0xff] }
0x584a   : > { %17615 = vmatprep.mubr.msk.f32.mxu0 %vm18051_vm3, %v18050_v42  ;;  %17614 = vmatpush3.msra.mxu0 %v15661_v29  ;;  %v15709_v29 = vld [vmem:[%s19889_s7 + $0x5e0] sm:$0xff] }
0x584b   : > { %17623 = vmatprep.subr.mxu0 %v18050_v42 }
0x5909   : > { %v13195_v18 = vpop.f32.mrf.mxu0 }
0x590a   : > { %v13199_v38 = vmul.f32 0.35355338, %v13195_v18 }
0x590b   : > { %v17605_v20 = vpop.f32.mrf.mxu0 }
0x590c   : > { %v13200_v21 = vsel %vm8500_vm13, -1e+09, %v13199_v38 }
0x590d   : > { %v13201_v41 = vsel %vm1456_vm11, %v13200_v21, -inf }
0x590e   : > { %13202 = vmax.xlane.f32.xlu0 %v13201_v41  ;;  %v15696_v41 = vld [vmem:[%s19889_s7 + $0x3f0] sm:$0xff] }
0x5997   : > { %v13203_v22 = vpop.xlane.xlu0 %13202 }
0x5998   : > { %v13204_v56 = vsub.f32 %v13200_v21, %v13203_v22  ;;  %v15697_v21 = vld [vmem:[%s19889_s7 + $0x3f8] sm:$0xff]  ;;  %v15695_v22 = vld [vmem:[%s19889_s7 + $0x3e8] sm:$0xff] }
0x599a   : > { %v13205_v26 = vmul.f32 1.442695, %v13204_v56  ;;  %v15694_v56 = vld [vmem:[%s19889_s7 + $0x3e0] sm:$0xff] }
0x599c   : > { %17985 = vpow2.f32 %v13205_v26  ;;  %v15712_v26 = vld [vmem:[%s19889_s7 + $0x5f8] sm:$0xff] }
0x59a9   : > { %v17986_v60 = vpop.eup %17985 }
0x59aa   : > { %v13207_v19 = vsel %vm1456_vm11, %v17986_v60, 0.0 }
0x59ab   : > { %13208 = vadd.xlane.f32.xlu1 %v13207_v19  ;;  %v15710_v19 = vld [vmem:[%s19889_s7 + $0x5e8] sm:$0xff] }
0x5a34   : > { %v13209_v30 = vpop.xlane.xlu1 %13208 }
0x5a35   : > { %17987 = vrcp.f32 %v13209_v30 }
0x5a42   : > { %v17988_v31 = vpop.eup %17987 }
0x5a43   : > { %v13211_v15 = vmul.f32 %v17988_v31, %v17986_v60  ;;  %v15711_v60 = vld [vmem:[%s19889_s7 + $0x5f0] sm:$0xff] }
0x5a44   : > { %v15703_v31 = vld [vmem:[%s19889_s7 + $0x4f0] sm:$0xff] }
0x5a45   : > { %17611 = vmatmul.mubr.msk.f32.vlgmr.msra.gmra.mxu1 %vm1456_vm11, %v13211_v15 }
0x5a46   : > { %17619 = vmatpush3.msra.mxu1 %v15632_v32  ;;  %17620 = vmatprep.mubr.msk.f32.mxu1 %vm18051_vm3, %v18050_v42  ;;  %v15702_v32 = vld [vmem:[%s19889_s7 + $0x4e8] sm:$0xff] }
0x5a47   : > { %17634 = vmatprep.subr.mxu1 %v15674_v33 }
0x5a49   : > { %17621 = vmatmul.mubr.msk.f32.vlgmr.msra.gmra.mxu1 %vm1362_vm6, %v12855_v0 }
0x5a4a   : > { %17635 = vmatpush3.msra.mxu1 %v15674_v33  ;;  %17642 = vmatprep.mubr.msk.f32.mxu1 %vm1034_vm0, %v19045_v52  ;;  %v15701_v33 = vld [vmem:[%s19889_s7 + $0x4e0] sm:$0xff] }
0x5a4b   : > { %17636 = vmatprep.subr.mxu1 %v15673_v36 }
0x5a4c   : > { %17637 = vmatpush3.msra.mxu1 %v15673_v36 }
0x5a4d   : > { %17638 = vmatprep.subr.mxu1 %v15672_v37 }
0x5a4e   : > { %17639 = vmatpush3.msra.mxu1 %v15672_v37 }
0x5a4f   : > { %17640 = vmatprep.subr.mxu1 %v15671_v39 }
0x5a50   : > { %17641 = vmatpush3.msra.mxu1 %v15671_v39 }
0x5a51   : > { %17643 = vmatmul.mubr.msk.f32.vlgmr.msra.gmra.mxu1 %vm1034_vm0, %v19067_v23  ;;  %17656 = vmatprep.subr.mxu1 %v18050_v42 }
0x5a52   : > { %17660 = vmatprep.mubr.msk.f32.mxu1 %vm18051_vm3, %v18050_v42 }
0x5b05   : > { %v13284_v10 = vpop.f32.mrf.mxu1 }
0x5b06   : > { %17616 = vmatmul.mubr.msk.f32.vlgmr.msra.gmra.mxu0 %vm1362_vm6, %v13284_v10 }
0x5b07   : > { %17624 = vmatpush3.msra.mxu0 %v15667_v24  ;;  %v17612_v62 = vpop.f32.mrf.mxu1  ;;  %17631 = vmatprep.mubr.msk.f32.mxu0 %vm18051_vm3, %v18050_v42 }
0x5b08   : > { %17625 = vmatprep.subr.mxu0 %v18050_v42 }
0x5b09   : > { %17626 = vmatpush3.msra.mxu0 %v15666_v3  ;;  %v19707_v2 = vpop.f32.mrf.mxu1 }
0x5b0a   : > { %17627 = vmatprep.subr.mxu0 %v18050_v42 }
0x5b0b   : > { %17628 = vmatpush3.msra.mxu0 %v15665_v50  ;;  %v17622_v44 = vpop.f32.mrf.mxu1 }
0x5b0c   : > { %17629 = vmatprep.subr.mxu0 %v18050_v42  ;;  %v15706_v44 = vld [vmem:[%s19891_s11 + $0x27] ss:$0 sm:$0xff] }
0x5b0d   : > { %17630 = vmatpush3.msra.mxu0 %v15664_v43 }
0x5b0e   : > { %17632 = vmatmul.mubr.msk.f32.vlgmr.msra.gmra.mxu0 %vm1034_vm0, %v19608_v9  ;;  %17645 = vmatprep.subr.mxu0 %v15682_v27 }
0x5b0f   : > { %17646 = vmatpush3.msra.mxu0 %v15682_v27  ;;  %17653 = vmatprep.mubr.msk.f32.mxu0 %vm1034_vm0, %v19045_v52 }
0x5b10   : > { %17647 = vmatprep.subr.mxu0 %v15681_v46 }
0x5b11   : > { %v17644_v40 = vpop.f32.mrf.mxu1  ;;  %17648 = vmatpush3.msra.mxu0 %v15681_v46 }
0x5b12   : > { %v13604_v51 = vadd.f32 %v17644_v40, %v15676_v34  ;;  %17649 = vmatprep.subr.mxu0 %v15680_v45 }
0x5b13   : > { %v13598_v54 = vpop.f32.mrf.mxu1  ;;  %17650 = vmatpush3.msra.mxu0 %v15680_v45  ;;  %v15699_v45 = vld [vmem:[%s19891_s11 + $0x1f] ss:$0 sm:$0xff] }
0x5b14   : > { %17651 = vmatprep.subr.mxu0 %v15679_v47  ;;  %17657 = vmatpush3.xpose.msk.msra.mxu1 %vm1362_vm6, %v13604_v51  ;;  %v13599_v61 = vadd.f32 %v15676_v34, %v13598_v54 }
0x5b15   : > { %17652 = vmatpush3.msra.mxu0 %v15679_v47  ;;  %17658 = vmatprep.subr.mxu1 %v18050_v42 }
0x5b16   : > { %17654 = vmatmul.mubr.msk.f32.vlgmr.msra.gmra.mxu0 %vm1034_vm0, %v19067_v23  ;;  %17663 = vmatprep.subr.mxu0 %v18050_v42 }
0x5b17   : > { %17667 = vmatprep.mubr.msk.f32.mxu0 %vm18051_vm3, %v18050_v42 }
0x5b18   : > { %17659 = vmatpush3.xpose.msk.msra.mxu1 %vm1362_vm6, %v13599_v61 }
0x5b19   : > { %17670 = vmatprep.subr.mxu1 %v18050_v42 }
0x5bc6   : > { %v19730_v55 = vpop.f32.mrf.mxu0 }
0x5bc8   : > { %v17617_v57 = vpop.f32.mrf.mxu0 }
0x5bce   : > { %v13515_v11 = vpop.f32.mrf.mxu0 }
0x5bcf   : > { %v13516_v35 = vadd.f32 %v15669_v12, %v13515_v11 }
0x5bd0   : > { %v17633_v48 = vpop.f32.mrf.mxu0 }
0x5bd1   : > { %17661 = vmatmul.mubr.msk.f32.vlgmr.msra.gmra.mxu1 %vm1362_vm6, %v13516_v35 }
0x5bd2   : > { %17672 = vmatprep.mubr.msk.f32.mxu1 %vm18051_vm3, %v18050_v42  ;;  %17671 = vmatpush3.msra.mxu1 %v15692_v17 }
0x5bd6   : > { %v17655_v58 = vpop.f32.mrf.mxu0 }
0x5bd7   : > { %v13692_v59 = vadd.f32 %v17655_v58, %v15684_v13 }
0x5bd8   : > { %v13686_v49 = vpop.f32.mrf.mxu0 }
0x5bd9   : > { %v13687_v63 = vadd.f32 %v15684_v13, %v13686_v49  ;;  %17664 = vmatpush3.msk.msra.mxu0 %vm1486_vm7, %v13692_v59  ;;  %v15722_v13 = vld [vmem:[%s19893_s18 + $0x78] sm:$0xff] }
0x5bda   : > { %17665 = vmatprep.subr.mxu0 %v18050_v42 }
0x5bdb   : > { %17666 = vmatpush3.msra.mxu0 %v13687_v63 }
0x5bdc   : > { %17675 = vmatprep.subr.mxu0 %v18050_v42 }
0x5c91   : > { %v13770_v4 = vpop.f32.mrf.mxu1 }
0x5c92   : > { %v13774_v5 = vmul.f32 0.35355338, %v13770_v4 }
0x5c93   : > { %v17662_v0 = vpop.f32.mrf.mxu1 }
0x5c94   : > { %v13775_v6 = vsel %vm8500_vm13, -1e+09, %v13774_v5  ;;  %v15725_v5 = vld [vmem:[%s19896_s26 + $0x3] ss:$0 sm:$0xff] }
0x5c95   : > { %v13776_v7 = vsel %vm1456_vm11, %v13775_v6, -inf }
0x5c96   : > { %13777 = vmax.xlane.f32.xlu0 %v13776_v7 }
0x5d1f   : > { %v13778_v8 = vpop.xlane.xlu0 %13777 }
0x5d20   : > { %v13779_v14 = vsub.f32 %v13775_v6, %v13778_v8 }
0x5d22   : > { %v13780_v16 = vmul.f32 1.442695, %v13779_v14 }
0x5d24   : > { %17989 = vpow2.f32 %v13780_v16 }
0x5d31   : > { %v17990_v1 = vpop.eup %17989 }
0x5d32   : > { %v13782_v28 = vsel %vm1456_vm11, %v17990_v1, 0.0 }
0x5d33   : > { %13783 = vadd.xlane.f32.xlu1 %v13782_v28 }
0x5dbc   : > { %v13784_v18 = vpop.xlane.xlu1 %13783 }
0x5dbd   : > { %17991 = vrcp.f32 %v13784_v18 }
0x5dca   : > { %v17992_v38 = vpop.eup %17991 }
0x5dcb   : > { %v13786_v20 = vmul.f32 %v17992_v38, %v17990_v1  ;;  %v15733_v38 = vld [vmem:[%s19898_s15 + $0x38] sm:$0xff] }
0x5dcd   : > { %17668 = vmatmul.mubr.msk.f32.vlgmr.msra.gmra.mxu0 %vm1456_vm11, %v13786_v20  ;;  %v15732_v20 = vld [vmem:[%s19898_s15 + $0x30] sm:$0xff] }
0x5dce   : > { %17676 = vmatpush3.msra.mxu0 %v15697_v21  ;;  %17683 = vmatprep.mubr.msk.f32.mxu0 %vm18051_vm3, %v18050_v42  ;;  %v15730_v21 = vld [vmem:[%s19898_s15 + $0x20] sm:$0xff] }
0x5dcf   : > { %17677 = vmatprep.subr.mxu0 %v18050_v42 }
0x5dd0   : > { %17678 = vmatpush3.msra.mxu0 %v15696_v41  ;;  %v15744_v41 = vld [vmem:[%s19899_s16 + $0x78] sm:$0xff] }
0x5dd1   : > { %17679 = vmatprep.subr.mxu0 %v18050_v42 }
0x5dd2   : > { %17680 = vmatpush3.msra.mxu0 %v15695_v22  ;;  %v15743_v22 = vld [vmem:[%s19899_s16 + $0x70] sm:$0xff] }
0x5dd3   : > { %17681 = vmatprep.subr.mxu0 %v18050_v42 }
0x5dd4   : > { %17682 = vmatpush3.msra.mxu0 %v15694_v56  ;;  %v15742_v56 = vld [vmem:[%s19899_s16 + $0x68] sm:$0xff] }
0x5dd5   : > { %17684 = vmatmul.mubr.msk.f32.vlgmr.msra.gmra.mxu0 %vm1034_vm0, %v19608_v9  ;;  %17697 = vmatprep.subr.mxu0 %v15712_v26  ;;  %v15704_v9 = vld [vmem:[%s19889_s7 + $0x4f8] sm:$0xff] }
0x5dd6   : > { %17698 = vmatpush3.msra.mxu0 %v15712_v26  ;;  %17705 = vmatprep.mubr.msk.f32.mxu0 %vm1034_vm0, %v19045_v52  ;;  %v15741_v26 = vld [vmem:[%s19899_s16 + $0x60] sm:$0xff] }
0x5dd7   : > { %17699 = vmatprep.subr.mxu0 %v15711_v60  ;;  %17686 = vmatprep.subr.mxu1 %v15704_v9 }
0x5dd8   : > { %17700 = vmatpush3.msra.mxu0 %v15711_v60  ;;  %v15740_v60 = vld [vmem:[%s19899_s16 + $0x58] sm:$0xff] }
0x5dd9   : > { %17701 = vmatprep.subr.mxu0 %v15710_v19 }
0x5dda   : > { %17702 = vmatpush3.msra.mxu0 %v15710_v19 }
0x5ddb   : > { %17703 = vmatprep.subr.mxu0 %v15709_v29 }
0x5ddc   : > { %17704 = vmatpush3.msra.mxu0 %v15709_v29 }
0x5ddd   : > { %17706 = vmatmul.mubr.msk.f32.vlgmr.msra.gmra.mxu0 %vm1034_vm0, %v19067_v23  ;;  %17715 = vmatprep.subr.mxu0 %v18050_v42 }
0x5dde   : > { %17719 = vmatprep.mubr.msk.f32.mxu0 %vm18051_vm3, %v18050_v42 }
0x5e8d   : > { %v13859_v30 = vpop.f32.mrf.mxu0 }
0x5e8e   : > { %17673 = vmatmul.mubr.msk.f32.vlgmr.msra.gmra.mxu1 %vm1362_vm6, %v13859_v30 }
0x5e8f   : > { %17687 = vmatpush3.msra.mxu1 %v15704_v9  ;;  %v17669_v15 = vpop.f32.mrf.mxu0  ;;  %17694 = vmatprep.mubr.msk.f32.mxu1 %vm1034_vm0, %v19045_v52  ;;  %v15714_v52 = vld [vmem:[%s19891_s11 + $0x2f] ss:$0 sm:$0xff] }
0x5e90   : > { %17688 = vmatprep.subr.mxu1 %v15703_v31 }
0x5e91   : > { %17689 = vmatpush3.msra.mxu1 %v15703_v31 }
0x5e92   : > { %17690 = vmatprep.subr.mxu1 %v15702_v32 }
0x5e93   : > { %17691 = vmatpush3.msra.mxu1 %v15702_v32 }
0x5e94   : > { %17692 = vmatprep.subr.mxu1 %v15701_v33 }
0x5e95   : > { %v14018_v36 = vpop.f32.mrf.mxu0  ;;  %17693 = vmatpush3.msra.mxu1 %v15701_v33 }
0x5e96   : > { %17695 = vmatmul.mubr.msk.f32.vlgmr.msra.gmra.mxu1 %vm1034_vm0, %v19067_v23  ;;  %17708 = vmatprep.subr.mxu1 %v18050_v42  ;;  %v13433_v23 = vadd.f32 %v19707_v2, %v19730_v55  ;;  %v14019_v47 = vadd.f32 %v15699_v45, %v14018_v36  ;;  %v15728_v36 = vld [vmem:[%s18165_s17 + $0x5] ss:$0 sm:$0xff] }
0x5e97   : > { %v17685_v37 = vpop.f32.mrf.mxu0  ;;  %17712 = vmatprep.mubr.msk.f32.mxu1 %vm18051_vm3, %v18050_v42 }
0x5e9d   : > { %v17707_v39 = vpop.f32.mrf.mxu0 }
0x5e9e   : > { %v14195_v24 = vadd.f32 %v17707_v39, %v15714_v52  ;;  %v15729_v39 = vld [vmem:[%s19890_s10 + $0x5] ss:$0 sm:$0xff] }
0x5e9f   : > { %v14189_v10 = vpop.f32.mrf.mxu0 }
0x5ea0   : > { %v14190_v3 = vadd.f32 %v15714_v52, %v14189_v10  ;;  %17716 = vmatpush3.msk.msra.mxu0 %vm1486_vm7, %v14195_v24 }
0x5ea1   : > { %17717 = vmatprep.subr.mxu0 %v18050_v42 }
0x5ea2   : > { %17718 = vmatpush3.msra.mxu0 %v14190_v3  ;;  %v15739_v3 = vld [vmem:[%s19899_s16 + $0x50] sm:$0xff] }
0x5ea3   : > { %17727 = vmatprep.subr.mxu0 %v18050_v42 }
0x5f4e   : > { %v13934_v62 = vpop.f32.mrf.mxu1 }
0x5f4f   : > { %v13938_v50 = vadd.f32 %v13934_v62, %v13433_v23  ;;  %v15738_v23 = vld [vmem:[%s19899_s16 + $0x48] sm:$0xff]  ;;  %v15737_v62 = vld [vmem:[%s19899_s16 + $0x40] sm:$0xff] }
0x5f50   : > { %v17674_v43 = vpop.f32.mrf.mxu1 }
0x5f56   : > { %v17696_v27 = vpop.f32.mrf.mxu1 }
0x5f57   : > { %v14107_v46 = vadd.f32 %v17696_v27, %v15706_v44 }
0x5f58   : > { %v14101_v34 = vpop.f32.mrf.mxu1 }
0x5f59   : > { %17709 = vmatpush3.xpose.msk.msra.mxu1 %vm1362_vm6, %v14107_v46  ;;  %v14102_v40 = vadd.f32 %v15706_v44, %v14101_v34  ;;  %v15746_v34 = vld [vmem:[%s19901_s0 + $0x1] ss:$0 sm:$0xff] }
0x5f5a   : > { %17710 = vmatprep.subr.mxu1 %v18050_v42 }
0x5f5d   : > { %17711 = vmatpush3.xpose.msk.msra.mxu1 %vm1362_vm6, %v14102_v40 }
0x5f5e   : > { %17722 = vmatprep.subr.mxu1 %v18050_v42 }
0x5f60   : > { %17713 = vmatmul.mubr.msk.f32.vlgmr.msra.gmra.mxu1 %vm1362_vm6, %v14019_v47 }
0x5f61   : > { %17724 = vmatprep.mubr.msk.f32.mxu1 %vm18051_vm3, %v18050_v42  ;;  %17723 = vmatpush3.msra.mxu1 %v15722_v13  ;;  %v14704_v13 = vld [vmem:[%s18205_s4] sm:$0xff] }
0x5f62   : > { %17738 = vmatprep.subr.mxu1 %v18050_v42 }
0x6020   : > { %v14273_v2 = vpop.f32.mrf.mxu1 }
0x6021   : > { %v14277_v51 = vmul.f32 0.35355338, %v14273_v2 }
0x6022   : > { %v17714_v54 = vpop.f32.mrf.mxu1 }
0x6023   : > { %v14278_v61 = vsel %vm8500_vm13, -1e+09, %v14277_v51 }
0x6024   : > { %v14279_v55 = vsel %vm1456_vm11, %v14278_v61, -inf }
0x6025   : > { %14280 = vmax.xlane.f32.xlu0 %v14279_v55 }
0x60ae   : > { %v14281_v57 = vpop.xlane.xlu0 %14280 }
0x60af   : > { %v14282_v12 = vsub.f32 %v14278_v61, %v14281_v57 }
0x60b1   : > { %v14283_v11 = vmul.f32 1.442695, %v14282_v12 }
0x60b3   : > { %17993 = vpow2.f32 %v14283_v11  ;;  %v14707_v11 = vld [vmem:[%s18205_s4 + $0x18] sm:$0xff] }
0x60c0   : > { %v17994_v35 = vpop.eup %17993 }
0x60c1   : > { %v14285_v48 = vsel %vm1456_vm11, %v17994_v35, 0.0 }
0x60c2   : > { %14286 = vadd.xlane.f32.xlu1 %v14285_v48  ;;  %v14705_v48 = vld [vmem:[%s18205_s4 + $0x8] sm:$0xff] }
0x614b   : > { %v14287_v58 = vpop.xlane.xlu1 %14286 }
0x614c   : > { %17995 = vrcp.f32 %v14287_v58 }
0x6159   : > { %v17996_v25 = vpop.eup %17995 }
0x615a   : > { %v14289_v59 = vmul.f32 %v17996_v25, %v17994_v35  ;;  %v14706_v35 = vld [vmem:[%s18205_s4 + $0x10] sm:$0xff] }
0x615c   : > { %17720 = vmatmul.mubr.msk.f32.vlgmr.msra.gmra.mxu0 %vm1456_vm11, %v14289_v59 }
0x615d   : > { %17735 = vmatprep.mubr.msk.f32.mxu0 %vm18051_vm3, %v18050_v42  ;;  %17728 = vmatpush3.msra.mxu0 %v15733_v38 }
0x615e   : > { %17729 = vmatprep.subr.mxu0 %v18050_v42 }
0x615f   : > { %17730 = vmatpush3.msra.mxu0 %v15732_v20 }
0x6160   : > { %17731 = vmatprep.subr.mxu0 %v18050_v42 }
0x621c   : > { %v14362_v49 = vpop.f32.mrf.mxu0 }
0x621d   : > { %17725 = vmatmul.mubr.msk.f32.vlgmr.msra.gmra.mxu1 %vm1362_vm6, %v14362_v49 }
0x621e   : > { %v17721_v63 = vpop.f32.mrf.mxu0  ;;  %17754 = vmatprep.mubr.msk.f32.mxu1 %vm18051_vm3, %v18050_v42  ;;  %17739 = vmatpush3.msra.mxu1 %v15744_v41 }
0x621f   : > { %17740 = vmatprep.subr.mxu1 %v18050_v42 }
0x6220   : > { %17741 = vmatpush3.msra.mxu1 %v15743_v22 }
0x6221   : > { %17742 = vmatprep.subr.mxu1 %v18050_v42 }
0x6222   : > { %17743 = vmatpush3.msra.mxu1 %v15742_v56 }
0x6223   : > { %17744 = vmatprep.subr.mxu1 %v18050_v42 }
0x6224   : > { %17745 = vmatpush3.msra.mxu1 %v15741_v26 }
0x6225   : > { %17746 = vmatprep.subr.mxu1 %v18050_v42 }
0x6226   : > { %17747 = vmatpush3.msra.mxu1 %v15740_v60 }
0x6227   : > { %17748 = vmatprep.subr.mxu1 %v18050_v42 }
0x6228   : > { %17749 = vmatpush3.msra.mxu1 %v15739_v3 }
0x6229   : > { %17750 = vmatprep.subr.mxu1 %v18050_v42 }
0x622a   : > { %17751 = vmatpush3.msra.mxu1 %v15738_v23 }
0x622b   : > { %17752 = vmatprep.subr.mxu1 %v18050_v42 }
0x622c   : > { %17753 = vmatpush3.msra.mxu1 %v15737_v62 }
0x62dd   : > { %v14437_v4 = vpop.f32.mrf.mxu1 }
0x62de   : > { %v14441_v0 = vadd.f32 %v14437_v4, %v13938_v50  ;;  %v15735_v50 = vld [vmem:[%s19900_s23 + $0x1] ss:$0 sm:$0xff] }
0x62df   : > { %v17726_v6 = vpop.f32.mrf.mxu1 }
0x62e0   : > { %v14450_v7 = vadd.f32 %v15725_v5, %v14441_v0  ;;  %v15748_v6 = vld [vmem:[%s19902_s28] ss:$0 sm:$0xff] }
0x62e2   : > { %v19809_v8 = vadd.f32 %v14450_v7, %v19587_v53  ;;  %v15731_v53 = vld [vmem:[%s19898_s15 + $0x28] sm:$0xff] }
0x62e3   : > { %17732 = vmatpush3.msra.mxu0 %v15731_v53 }
0x62e4   : > { %v14456_v14 = vsel %vm1034_vm0, %v19809_v8, 0.0  ;;  %17733 = vmatprep.subr.mxu0 %v18050_v42 }
0x62e5   : > { %14457 = vadd.xlane.f32.xlu0 %v14456_v14  ;;  %17734 = vmatpush3.msra.mxu0 %v15730_v21  ;;  %v15749_v14 = vld [vmem:[%s18200_s27] ss:$0 sm:$0xff] }
0x62e6   : > { %17757 = vmatprep.subr.mxu0 %v18050_v42 }
0x636e   : > { %v14458_v16 = vpop.xlane.xlu0 %14457 }
0x636f   : > { %v14459_v1 = vmul.f32 0.03125, %v14458_v16 }
0x6371   : > { %v14460_v28 = vsub.f32 %v19809_v8, %v14459_v1  ;;  %v15750_v1 = vld [vmem:[%s18210_s21] ss:$0 sm:$0xff] }
0x6373   : > { %v14461_v17 = vmul.f32 %v14460_v28, %v14460_v28  ;;  %v14472_v37 = vmul.f32 %v15728_v36, %v14460_v28 }
0x6375   : > { %v14462_v18 = vsel %vm1034_vm0, %v14461_v17, 0.0 }
0x6376   : > { %14463 = vadd.xlane.f32.xlu1 %v14462_v18 }
0x63ff   : > { %v14464_v19 = vpop.xlane.xlu1 %14463 }
0x6400   : > { %v14465_v29 = vmul.f32 0.032258064, %v14464_v19 }
0x6402   : > { %17997 = vrsqrt.f32 %v14465_v29  ;;  %vm14475_vm6 = vcmp.eq.f32.partialorder %v14465_v29, inf  ;;  %v14478_v31 = vand.u32 2147483648, %v14465_v29  ;;  %vm14477_vm7 = vcmp.eq.f32.partialorder %v14465_v29, 0.0 }
0x640f   : > { %v17998_v9 = vpop.eup %17997 }
0x6410   : > { %v14474_v30 = vmul.f32 %v17998_v9, %v14465_v29 }
0x6412   : > { %v14476_v15 = vsel %vm14475_vm6, %v14465_v29, %v14474_v30 }
0x6413   : > { %v14479_v32 = vsel %vm14477_vm7, %v14478_v31, %v14476_v15 }
0x6414   : > { %v14480_v33 = vadd.f32 1e-06, %v14479_v32 }
0x6416   : > { %17999 = vrcp.f32 %v14480_v33 }
0x6423   : > { %v18000_v52 = vpop.eup %17999 }
0x6424   : > { %v14482_v24 = vmul.f32 %v18000_v52, %v14472_v37 }
0x6426   : > { %v14489_v10 = vadd.f32 %v15729_v39, %v14482_v24 }
0x6428   : > { %17736 = vmatmul.mubr.msk.f32.vlgmr.msra.gmra.mxu0 %vm1034_vm0, %v14489_v10 }
0x6429   : > { %17765 = vmatprep.mubr.msk.f32.mxu0 %vm18051_vm3, %v18050_v42  ;;  %17758 = vmatpush3.msra.mxu0 %v14707_v11 }
0x642a   : > { %17759 = vmatprep.subr.mxu0 %v18050_v42 }
0x642b   : > { %17760 = vmatpush3.msra.mxu0 %v14706_v35 }
0x642c   : > { %17761 = vmatprep.subr.mxu0 %v18050_v42 }
0x642d   : > { %17762 = vmatpush3.msra.mxu0 %v14705_v48 }
0x642e   : > { %17763 = vmatprep.subr.mxu0 %v18050_v42 }
0x642f   : > { %17764 = vmatpush3.msra.mxu0 %v14704_v13 }
0x64e8   : > { %v14572_v43 = vpop.f32.mrf.mxu0 }
0x64e9   : > { %v14573_v44 = vadd.f32 %v15735_v50, %v14572_v43 }
0x64ea   : > { %v17737_v27 = vpop.f32.mrf.mxu0 }
0x64eb   : > { %v14576_v46 = vmax.f32 %v14573_v44, 0.0 }
0x64ed   : > { %17755 = vmatmul.mubr.msk.f32.vlgmr.msra.gmra.mxu1 %vm3463_vm2, %v14576_v46 }
0x65ad   : > { %v14663_v45 = vpop.f32.mrf.mxu1 }
0x65ae   : > { %v14664_v40 = vadd.f32 %v15746_v34, %v14663_v45 }
0x65af   : > { %v17756_v47 = vpop.f32.mrf.mxu1 }
0x65b0   : > { %v14667_v2 = vadd.f32 %v14664_v40, %v19809_v8 }
0x65b2   : > { %v14670_v51 = vsel %vm1034_vm0, %v14667_v2, 0.0 }
0x65b3   : > { %14671 = vadd.xlane.f32.xlu0 %v14670_v51 }
0x663c   : > { %v14672_v54 = vpop.xlane.xlu0 %14671 }
0x663d   : > { %v14673_v61 = vmul.f32 0.03125, %v14672_v54 }
0x663f   : > { %v14674_v55 = vsub.f32 %v14667_v2, %v14673_v61 }
0x6641   : > { %v14675_v57 = vmul.f32 %v14674_v55, %v14674_v55  ;;  %v14686_v7 = vmul.f32 %v15748_v6, %v14674_v55 }
0x6643   : > { %v14676_v12 = vsel %vm1034_vm0, %v14675_v57, 0.0 }
0x6644   : > { %14677 = vadd.xlane.f32.xlu1 %v14676_v12 }
0x66cd   : > { %v14678_v58 = vpop.xlane.xlu1 %14677 }
0x66ce   : > { %v14679_v25 = vmul.f32 0.032258064, %v14678_v58 }
0x66d0   : > { %18001 = vrsqrt.f32 %v14679_v25  ;;  %vm14689_vm11 = vcmp.eq.f32.partialorder %v14679_v25, inf  ;;  %v14692_v63 = vand.u32 2147483648, %v14679_v25  ;;  %vm14691_vm2 = vcmp.eq.f32.partialorder %v14679_v25, 0.0 }
0x66dd   : > { %v18002_v59 = vpop.eup %18001 }
0x66de   : > { %v14688_v49 = vmul.f32 %v18002_v59, %v14679_v25 }
0x66e0   : > { %v14690_v4 = vsel %vm14689_vm11, %v14679_v25, %v14688_v49 }
0x66e1   : > { %v14693_v5 = vsel %vm14691_vm2, %v14692_v63, %v14690_v4 }
0x66e2   : > { %v14694_v0 = vadd.f32 1e-06, %v14693_v5 }
0x66e4   : > { %18003 = vrcp.f32 %v14694_v0 }
0x66f1   : > { %v18004_v8 = vpop.eup %18003 }
0x66f2   : > { %v14696_v42 = vmul.f32 %v18004_v8, %v14686_v7 }
0x66f4   : > { %v14703_v16 = vadd.f32 %v15749_v14, %v14696_v42 }
0x66f6   : > { %17766 = vmatmul.mubr.msk.f32.vlgmr.msra.gmra.mxu0 %vm1034_vm0, %v14703_v16 }
0x67b6   : > { %v14784_v28 = vpop.f32.mrf.mxu0 }
0x67b7   : > { %v14785_v17 = vadd.f32 %v15750_v1, %v14784_v28 }
0x67b8   : > { %v17767_v18 = vpop.f32.mrf.mxu0 }
0x67b9   : > { %14788 = vmax.xlane.f32.xlu0 %v14785_v17 }
0x6842   : > { %v14789_v38 = vpop.xlane.xlu0 %14788 }
0x6843   : > { %v14790_v20 = vsub.f32 %v14785_v17, %v14789_v38 }
0x6845   : > { %v14791_v53 = vmul.f32 1.442695, %v14790_v20 }
0x6847   : > { %18005 = vpow2.f32 %v14791_v53 }
0x6854   : > { %v18006_v21 = vpop.eup %18005 }
0x6855   : > { %14793 = vadd.xlane.f32.xlu1 %v18006_v21 }
0x68de   : > { %v14794_v41 = vpop.xlane.xlu1 %14793 }
0x68df   : > { %18007 = vlog2.f32 %v14794_v41 }
0x68ec   : > { %v18008_v22 = vpop.eup %18007 }
0x68ed   : > { %v14796_v56 = vmul.f32 0.6931472, %v18008_v22 }
0x68ef   : > { %v14797_v26 = vsub.f32 %v14790_v20, %v14796_v56 }
0x68f1   : > { %14798 = vst [vmem:[%s1027_s2] sm:$0xff] %v14797_v26 }
0x68f2 PF: > { %s73_s22 = sadd.s32 1, %s18017_s22  }
0x68f3   : > { %p70_p4 = scmp.ge.s32.totalorder %s73_s22, 4  }
0x68f5   :  { %72 = sbr.rel (!%p70_p4) target bundleno = 53 (0x35), region = 407 }

</bundles_post_ra>
